<compile_context>
chip_gen: v7x
topology: tpu7x:2x2x1
jax: 0.10.0
libtpu: 0.0.40
codegen_flags: <defaults>
</compile_context>

<pallas_src>
import functools

import numpy as np

import jax
import jax.numpy as jnp
from jax.experimental import pallas as pl
from jax.experimental.pallas import tpu as pltpu

BN_EPS = 1e-3  # partial(nn.BatchNorm2d, eps=0.001)
LANE = 128


def _round_up(x, m):
    return ((x + m - 1) // m) * m


# ----------------------- generation-dependent sizing ------------------------

def _tpu_vmem_bytes():
    try:
        info = pltpu.get_tpu_info()
        return int(getattr(info, "vmem_capacity_bytes", 64 * 1024 * 1024))
    except Exception:
        return 64 * 1024 * 1024


_VMEM_PHYS = _tpu_vmem_bytes()
# v5e / v6e: 128 MiB physical -> big budget & tiles.  v7x: 64 MiB physical -> moderate.
VMEM_LIMIT_BYTES = min(96 * 1024 * 1024, (_VMEM_PHYS * 3) // 4)
if _VMEM_PHYS >= 100 * 1024 * 1024:
    _TM, _TN, _TK = 512, 512, 1024
else:
    _TM, _TN, _TK = 512, 256, 512


def _cparams(dimension_semantics):
    return pltpu.CompilerParams(
        dimension_semantics=dimension_semantics,
        vmem_limit_bytes=VMEM_LIMIT_BYTES,
    )


def _pick_tile(dim, target, align):
    """Return (tile, padded_dim): tile is a multiple of `align`, divides padded_dim >= dim."""
    if dim <= target:
        t = _round_up(max(dim, 1), align)
        return t, t
    t = (target // align) * align
    tt = t
    while tt >= align:
        if dim % tt == 0:
            return tt, dim
        tt -= align
    return t, _round_up(dim, t)


# ----------------------------- Pallas kernels ------------------------------


def _mm_kernel(*refs, act, has_res):
    # Tiled matmul: out = act((x @ w) + bias) [+ residual]; BN scale pre-folded into w.
    if has_res:
        x_ref, w_ref, b_ref, res_ref, o_ref, acc_ref = refs
    else:
        x_ref, w_ref, b_ref, o_ref, acc_ref = refs
        res_ref = None
    k = pl.program_id(2)

    @pl.when(k == 0)
    def _init():
        acc_ref[...] = jnp.zeros_like(acc_ref)

    acc_ref[...] += jnp.dot(x_ref[...], w_ref[...], preferred_element_type=jnp.float32)

    @pl.when(k == pl.num_programs(2) - 1)
    def _finalize():
        y = acc_ref[...] + b_ref[...]
        if act == "silu":
            y = y * jax.nn.sigmoid(y)
        if res_ref is not None:
            y = y + res_ref[...].astype(jnp.float32)
        o_ref[...] = y.astype(o_ref.dtype)


def matmul_bn_act(x, w, bias, act, residual=None):
    """1x1 conv as tiled matmul with fused folded-BN bias, activation and residual (bf16 out)."""
    M, K = x.shape
    K2, N = w.shape
    assert K == K2
    tm, Mp = _pick_tile(M, _TM, 8)
    tn, Np = _pick_tile(N, _TN, LANE)
    tk, Kp = _pick_tile(K, _TK, LANE)
    assert Np == N and Kp == K  # channel dims are padded to multiples of 128
    if Mp != M:
        x = jnp.pad(x, ((0, Mp - M), (0, 0)))
        if residual is not None:
            residual = jnp.pad(residual, ((0, Mp - M), (0, 0)))
    grid = (Mp // tm, N // tn, K // tk)
    in_specs = [
        pl.BlockSpec((tm, tk), lambda i, j, k: (i, k)),
        pl.BlockSpec((tk, tn), lambda i, j, k: (k, j)),
        pl.BlockSpec((1, tn), lambda i, j, k: (0, j)),
    ]
    args = [x, w, bias.reshape(1, N)]
    if residual is not None:
        in_specs.append(pl.BlockSpec((tm, tn), lambda i, j, k: (i, j)))
        args.append(residual)
    bytes_acc = Mp * K * 2 + K * N * 2 + Mp * N * 2 + (Mp * N * 2 if residual is not None else 0)
    out = pl.pallas_call(
        functools.partial(_mm_kernel, act=act, has_res=residual is not None),
        out_shape=jax.ShapeDtypeStruct((Mp, N), jnp.bfloat16),
        grid=grid,
        in_specs=in_specs,
        out_specs=pl.BlockSpec((tm, tn), lambda i, j, k: (i, j)),
        scratch_shapes=[pltpu.VMEM((tm, tn), jnp.float32)],
        compiler_params=_cparams(("parallel", "parallel", "arbitrary")),
        cost_estimate=pl.CostEstimate(
            flops=2 * Mp * N * K,
            transcendentals=Mp * N if act == "silu" else 0,
            bytes_accessed=int(bytes_acc)),
    )(*args)
    return out[:M] if Mp != M else out


def _gated_mm_kernel(*refs, act, has_res):
    # 1x1 project conv with the SE gate fused into the input load:
    # out = act(((x * gate) @ w) + bias) [+ residual]
    if has_res:
        x_ref, g_ref, w_ref, b_ref, res_ref, o_ref, acc_ref = refs
    else:
        x_ref, g_ref, w_ref, b_ref, o_ref, acc_ref = refs
        res_ref = None
    k = pl.program_id(3)

    @pl.when(k == 0)
    def _init():
        acc_ref[...] = jnp.zeros_like(acc_ref)

    xg = (x_ref[0].astype(jnp.float32) * g_ref[0]).astype(jnp.bfloat16)  # (thw, tk) * (1, tk)
    acc_ref[...] += jnp.dot(xg, w_ref[...], preferred_element_type=jnp.float32)

    @pl.when(k == pl.num_programs(3) - 1)
    def _finalize():
        y = acc_ref[...] + b_ref[...]
        if act == "silu":
            y = y * jax.nn.sigmoid(y)
        if res_ref is not None:
            y = y + res_ref[0].astype(jnp.float32)
        o_ref[0] = y.astype(o_ref.dtype)


def gated_project(x3, gate, w, bias, act, residual3=None):
    """SE gating fused into the 1x1 project conv. x3: (B, M, K) bf16; gate: (B, K) f32."""
    B, M, K = x3.shape
    K2, N = w.shape
    assert K == K2
    thw, Mp = _pick_tile(M, _TM, 8)
    tn, _ = _pick_tile(N, _TN, LANE)
    tk, _ = _pick_tile(K, _TK, LANE)
    if Mp != M:
        x3 = jnp.pad(x3, ((0, 0), (0, Mp - M), (0, 0)))
        if residual3 is not None:
            residual3 = jnp.pad(residual3, ((0, 0), (0, Mp - M), (0, 0)))
    grid = (B, Mp // thw, N // tn, K // tk)
    in_specs = [
        pl.BlockSpec((1, thw, tk), lambda b, i, j, k: (b, i, k)),
        pl.BlockSpec((1, 1, tk), lambda b, i, j, k: (b, 0, k)),
        pl.BlockSpec((tk, tn), lambda b, i, j, k: (k, j)),
        pl.BlockSpec((1, tn), lambda b, i, j, k: (0, j)),
    ]
    args = [x3, gate.reshape(B, 1, K), w, bias.reshape(1, N)]
    if residual3 is not None:
        in_specs.append(pl.BlockSpec((1, thw, tn), lambda b, i, j, k: (b, i, j)))
        args.append(residual3)
    out = pl.pallas_call(
        functools.partial(_gated_mm_kernel, act=act, has_res=residual3 is not None),
        out_shape=jax.ShapeDtypeStruct((B, Mp, N), jnp.bfloat16),
        grid=grid,
        in_specs=in_specs,
        out_specs=pl.BlockSpec((1, thw, tn), lambda b, i, j, k: (b, i, j)),
        scratch_shapes=[pltpu.VMEM((thw, tn), jnp.float32)],
        compiler_params=_cparams(("parallel", "parallel", "parallel", "arbitrary")),
        cost_estimate=pl.CostEstimate(
            flops=2 * B * Mp * N * K,
            transcendentals=0,
            bytes_accessed=int(B * Mp * K * 2 + K * N * 2 + B * Mp * N * 2)),
    )(*args)
    return out[:, :M, :] if Mp != M else out


def _tapconv_kernel(*refs, offsets, m_out, act, has_res):
    # k x k conv on the flattened padded image: the k^2 taps are static row-offset slices of the
    # in-VMEM image block; each tap contributes one MXU matmul into an f32 accumulator.
    if has_res:
        x_ref, w_ref, b_ref, res_ref, o_ref = refs
    else:
        x_ref, w_ref, b_ref, o_ref = refs
        res_ref = None
    acc = None
    for t, off in enumerate(offsets):
        xs = x_ref[0, off:off + m_out, :]
        d = jnp.dot(xs, w_ref[t], preferred_element_type=jnp.float32)
        acc = d if acc is None else acc + d
    y = acc + b_ref[...]
    if act == "silu":
        y = y * jax.nn.sigmoid(y)
    if res_ref is not None:
        y = y + res_ref[0].astype(jnp.float32)
    o_ref[0] = y.astype(o_ref.dtype)


def _tapconv_call(xf, w, bias, offsets, m_out, act, resf):
    N, R, Cin = xf.shape
    T = len(offsets)
    Coutp = w.shape[-1]
    tn, _ = _pick_tile(Coutp, _TN, LANE)

    # shrink tn if a full-image block + accumulator would overflow the VMEM budget
    def footprint(tn_):
        res_b = 2 * m_out * tn_ * 2 if resf is not None else 0
        return (2 * R * Cin * 2 + m_out * tn_ * 4 + 2 * m_out * tn_ * 2
                + 2 * T * Cin * tn_ * 2 + res_b)
    while tn > LANE and Coutp % (tn // 2) == 0 and footprint(tn) > (2 * VMEM_LIMIT_BYTES) // 3:
        tn //= 2
    # TODO(synk): for very large spatial inputs, tile M with halo DMA instead of full-image blocks.

    in_specs = [
        pl.BlockSpec((1, R, Cin), lambda n, j: (n, 0, 0)),
        pl.BlockSpec((T, Cin, tn), lambda n, j: (0, 0, j)),
        pl.BlockSpec((1, tn), lambda n, j: (0, j)),
    ]
    args = [xf, w, bias.reshape(1, Coutp)]
    if resf is not None:
        in_specs.append(pl.BlockSpec((1, m_out, tn), lambda n, j: (n, 0, j)))
        args.append(resf)
    return pl.pallas_call(
        functools.partial(_tapconv_kernel, offsets=offsets, m_out=m_out, act=act,
                          has_res=resf is not None),
        out_shape=jax.ShapeDtypeStruct((N, m_out, Coutp), jnp.bfloat16),
        grid=(N, Coutp // tn),
        in_specs=in_specs,
        out_specs=pl.BlockSpec((1, m_out, tn), lambda n, j: (n, 0, j)),
        compiler_params=_cparams(("parallel", "parallel")),
        cost_estimate=pl.CostEstimate(
            flops=2 * N * m_out * Coutp * T * Cin,
            transcendentals=N * m_out * Coutp if act == "silu" else 0,
            bytes_accessed=int(N * R * Cin * 2 + T * Cin * Coutp * 2 + N * m_out * Coutp * 2)),
    )(*args)


def _dwtap_kernel(x_ref, w_ref, b_ref, mask_ref, y_ref, s_ref, *, offsets, m_out, act):
    # Depthwise conv via static tap slices (VPU FMAs) + fused, masked SE pooling partial sums.
    acc = x_ref[0, offsets[0]:offsets[0] + m_out, :].astype(jnp.float32) * w_ref[0]
    for t in range(1, len(offsets)):
        off = offsets[t]
        acc = acc + x_ref[0, off:off + m_out, :].astype(jnp.float32) * w_ref[t]
    y = acc + b_ref[...]
    if act == "silu":
        y = y * jax.nn.sigmoid(y)
    y_ref[0] = y.astype(y_ref.dtype)
    s_ref[0] = jnp.sum(y * mask_ref[...], axis=0, keepdims=True)


def _se_fc_kernel(p_ref, w1_ref, b1_ref, w2_ref, b2_ref, g_ref):
    # SqueezeExcite gate FCs on the (already pooled) per-image channel means.
    s = jnp.dot(p_ref[...], w1_ref[...], preferred_element_type=jnp.float32) + b1_ref[...]
    s = s * jax.nn.sigmoid(s)
    s = jnp.dot(s, w2_ref[...], preferred_element_type=jnp.float32) + b2_ref[...]
    g_ref[...] = jax.nn.sigmoid(s)


def se_fc(pooled, w1, b1, w2, b2):
    N, C = pooled.shape
    Csq = w1.shape[1]
    return pl.pallas_call(
        _se_fc_kernel,
        out_shape=jax.ShapeDtypeStruct((N, C), jnp.float32),
        grid=(1,),
        in_specs=[
            pl.BlockSpec((N, C), lambda i: (0, 0)),
            pl.BlockSpec((C, Csq), lambda i: (0, 0)),
            pl.BlockSpec((1, Csq), lambda i: (0, 0)),
            pl.BlockSpec((Csq, C), lambda i: (0, 0)),
            pl.BlockSpec((1, C), lambda i: (0, 0)),
        ],
        out_specs=pl.BlockSpec((N, C), lambda i: (0, 0)),
        compiler_params=_cparams(("arbitrary",)),
    )(pooled, w1, b1.reshape(1, Csq), w2, b2.reshape(1, C))


def _pool_fc_kernel(x_ref, w_ref, b_ref, o_ref, sum_ref, *, hw_total):
    # AdaptiveAvgPool2d(1) + Flatten + Linear, tiled over HW.
    h = pl.program_id(0)

    @pl.when(h == 0)
    def _init():
        sum_ref[...] = jnp.zeros_like(sum_ref)

    sum_ref[...] += jnp.sum(x_ref[...].astype(jnp.float32), axis=1)

    @pl.when(h == pl.num_programs(0) - 1)
    def _finalize():
        pooled = sum_ref[...] * (1.0 / hw_total)
        o_ref[...] = jnp.dot(pooled, w_ref[...], preferred_element_type=jnp.float32) + b_ref[...]


def pool_fc(x3, w, b, hw_valid):
    N, HW, F = x3.shape
    NC = w.shape[1]
    thw, HWp = _pick_tile(HW, 512, 8)
    if HWp != HW:
        x3 = jnp.pad(x3, ((0, 0), (0, HWp - HW), (0, 0)))
    grid = (HWp // thw,)
    return pl.pallas_call(
        functools.partial(_pool_fc_kernel, hw_total=hw_valid),
        out_shape=jax.ShapeDtypeStruct((N, NC), jnp.float32),
        grid=grid,
        in_specs=[
            pl.BlockSpec((N, thw, F), lambda h: (0, h, 0)),
            pl.BlockSpec((F, NC), lambda h: (0, 0)),
            pl.BlockSpec((1, NC), lambda h: (0, 0)),
        ],
        out_specs=pl.BlockSpec((N, NC), lambda h: (0, 0)),
        scratch_shapes=[pltpu.VMEM((N, F), jnp.float32)],
        compiler_params=_cparams(("arbitrary",)),
    )(x3, w, b.reshape(1, NC))


# ----------------------------- JAX glue (layers) ---------------------------


def _flat_pad(x, k):
    """Zero-pad spatially and flatten row-major per image; returns (xf, geometry)."""
    N, H, W, C = x.shape
    pad = (k - 1) // 2
    Hp, Wp = H + 2 * pad, W + 2 * pad
    m_out = H * Wp                       # stride-1 output rows per image, over the (H, Wp) grid
    mp = _round_up(m_out, 8)
    off_max = (k - 1) * Wp + (k - 1)
    rows = mp + off_max
    xf = jnp.pad(x, ((0, 0), (pad, pad), (pad, pad), (0, 0))).reshape(N, Hp * Wp, C)
    xf = jnp.pad(xf, ((0, 0), (0, rows - Hp * Wp), (0, 0)))
    offsets = tuple(dy * Wp + dx for dy in range(k) for dx in range(k))
    return xf, (H, W, Wp, m_out, mp, offsets)


def _residual_to_flat(res, Wp, m_out, mp):
    N, H, W, C = res.shape
    rf = jnp.pad(res, ((0, 0), (0, 0), (0, Wp - W), (0, 0))).reshape(N, m_out, C)
    if mp != m_out:
        rf = jnp.pad(rf, ((0, 0), (0, mp - m_out), (0, 0)))
    return rf


def conv_k_bn_act(x, p, stride, act, residual=None):
    """ConvBNAct (groups=1), optional fused residual add. x: dense NHWC bf16 (channels padded)."""
    k = p["k"]
    N, H, W, Cin = x.shape
    Coutp = p["w"].shape[-1]
    if k == 1 and stride == 1:
        r2 = None if residual is None else residual.reshape(N * H * W, Coutp)
        y = matmul_bn_act(x.reshape(N * H * W, Cin), p["w"], p["bias"], act, residual=r2)
        return y.reshape(N, H, W, Coutp)
    xf, (H, W, Wp, m_out, mp, offsets) = _flat_pad(x, k)
    resf = None
    if residual is not None:
        assert stride == 1
        resf = _residual_to_flat(residual, Wp, m_out, mp)
    y = _tapconv_call(xf, p["w"], p["bias"], offsets, mp, act, resf)   # (N, mp, Coutp)
    y = y[:, :m_out, :].reshape(N, H, Wp, Coutp)
    if stride == 1:
        return y[:, :, :W, :]
    ho = (H - 1) // stride + 1
    wo = (W - 1) // stride + 1
    return y[:, ::stride, ::stride, :][:, :ho, :wo, :]


def dwconv_tap(x, p, stride, act):
    """Depthwise ConvBNAct with fused SE pooling.  Returns (flat y, pooled means, geometry)."""
    k = p["k"]
    N, H, W, C = x.shape
    xf, (H, W, Wp, m_out, mp, offsets) = _flat_pad(x, k)
    R = xf.shape[1]
    ho = (H - 1) // stride + 1
    wo = (W - 1) // stride + 1
    # mask of stride-valid output positions in the (H, Wp) flat layout (built once, static shapes)
    m2 = np.zeros((H, Wp), np.float32)
    m2[0:stride * ho:stride, 0:stride * wo:stride] = 1.0
    mask = np.zeros((mp, 1), np.float32)
    mask[:m_out, 0] = m2.reshape(-1)
    mask = jnp.asarray(mask)
    tc, _ = _pick_tile(C, _TN, LANE)
    y, sums = pl.pallas_call(
        functools.partial(_dwtap_kernel, offsets=offsets, m_out=mp, act=act),
        out_shape=(jax.ShapeDtypeStruct((N, mp, C), jnp.bfloat16),
                   jax.ShapeDtypeStruct((N, 1, C), jnp.float32)),
        grid=(N, C // tc),
        in_specs=[
            pl.BlockSpec((1, R, tc), lambda n, c: (n, 0, c)),
            pl.BlockSpec((k * k, 1, tc), lambda n, c: (0, 0, c)),
            pl.BlockSpec((1, tc), lambda n, c: (0, c)),
            pl.BlockSpec((mp, 1), lambda n, c: (0, 0)),
        ],
        out_specs=(pl.BlockSpec((1, mp, tc), lambda n, c: (n, 0, c)),
                   pl.BlockSpec((1, 1, tc), lambda n, c: (n, 0, c))),
        compiler_params=_cparams(("parallel", "parallel")),
    )(xf, p["w"].reshape(k * k, 1, C), p["bias"].reshape(1, C), mask)
    pooled = sums.reshape(N, C) * (1.0 / (ho * wo))
    return y, pooled, (H, W, Wp, m_out, mp, ho, wo)


def fused_mbconv_forward(x, bp):
    res = x if bp["has_shortcut"] else None   # DropPath is identity in eval mode
    if bp["has_expansion"]:
        r = conv_k_bn_act(x, bp["expand"], bp["stride"], "silu")
        r = conv_k_bn_act(r, bp["project"], 1, "none", residual=res)
    else:
        r = conv_k_bn_act(x, bp["project"], bp["stride"], "silu", residual=res)
    return r


def mbconv_forward(x, bp):
    N, H, W, _ = x.shape
    r = conv_k_bn_act(x, bp["expand"], 1, "silu")                       # 1x1 expand
    yflat, pooled, (H2, W2, Wp, m_out, mp, ho, wo) = dwconv_tap(r, bp["dw"], bp["stride"], "silu")
    Coutp = bp["project"]["w"].shape[-1]
    gate = None
    if bp["se"] is not None:
        gate = se_fc(pooled, bp["se"]["w1"], bp["se"]["b1"], bp["se"]["w2"], bp["se"]["b2"])

    if bp["stride"] == 1:
        # keep the flat (H, Wp) layout through the 1x1 project; densify the (smaller) output.
        resf = None
        if bp["has_shortcut"]:
            resf = _residual_to_flat(x, Wp, m_out, mp)
        if gate is not None:
            y = gated_project(yflat, gate, bp["project"]["w"], bp["project"]["bias"], "none",
                              residual3=resf)
        else:
            y2 = matmul_bn_act(yflat.reshape(N * mp, yflat.shape[-1]),
                               bp["project"]["w"], bp["project"]["bias"], "none",
                               residual=None if resf is None else resf.reshape(N * mp, Coutp))
            y = y2.reshape(N, mp, Coutp)
        return y[:, :m_out, :].reshape(N, H2, Wp, Coutp)[:, :, :W2, :]

    # stride 2: densify + subsample the dw output, then 1x1 project (no shortcut possible)
    s = bp["stride"]
    yd = yflat[:, :m_out, :].reshape(N, H2, Wp, -1)[:, ::s, ::s, :][:, :ho, :wo, :]
    cexpp = yd.shape[-1]
    if gate is not None:
        y = gated_project(yd.reshape(N, ho * wo, cexpp), gate,
                          bp["project"]["w"], bp["project"]["bias"], "none")
        return y.reshape(N, ho, wo, Coutp)
    y = matmul_bn_act(yd.reshape(N * ho * wo, cexpp), bp["project"]["w"], bp["project"]["bias"],
                      "none")
    return y.reshape(N, ho, wo, Coutp)


def efficientnetv2_forward(x_nchw, params):
    # NCHW f32 in -> NHWC bf16 internal (channel-padded to 128-multiples).
    x = jnp.transpose(x_nchw, (0, 2, 3, 1)).astype(jnp.bfloat16)
    x = conv_k_bn_act(x, params["stem"], 2, "silu")
    for bp in params["blocks"]:
        if bp["op"] == 0:
            x = fused_mbconv_forward(x, bp)
        else:
            x = mbconv_forward(x, bp)
    x = conv_k_bn_act(x, params["head_project"], 1, "silu")
    N, H, W, F = x.shape
    # head dropout is identity in eval mode
    return pool_fc(x.reshape(N, H * W, F), params["fc_w"], params["fc_b"], H * W)


# --------------------------- parameter construction ------------------------


def _fold_bn(cout):
    gamma = jnp.ones((cout,), jnp.float32)
    beta = jnp.zeros((cout,), jnp.float32)
    mean = jnp.zeros((cout,), jnp.float32)
    var = jnp.ones((cout,), jnp.float32)
    scale = gamma / jnp.sqrt(var + BN_EPS)
    bias = beta - mean * scale
    return scale, bias


def _conv_bn_params(key, cin, cout, k, cin_pad=None, depthwise=False):
    # Conv2d (kaiming-normal fan_out, bias=False) with eval-mode BN(eps=1e-3) folded into the
    # weight.  Weights are zero-padded to lane-dense channel counts; conv weights stored bf16
    # (MXU), depthwise weights stay f32 (VPU).
    # NOTE: tap ordering is (dy, dx)-major / channel-minor; loading real PyTorch checkpoints
    # requires permuting the (Cout, Cin, kh, kw) weight to (kh*kw, Cin, Cout).
    cin_pad = cin if cin_pad is None else cin_pad
    cout_pad = _round_up(cout, LANE)
    scale, bias = _fold_bn(cout)
    if depthwise:
        std = (2.0 / (k * k)) ** 0.5
        w = jax.random.normal(key, (k * k, cout), jnp.float32) * std
        wf = jnp.pad(w * scale[None, :], ((0, 0), (0, cout_pad - cout)))
        b = jnp.pad(bias, (0, cout_pad - cout))
        return {"w": wf, "bias": b, "k": k, "cout_pad": cout_pad}
    std = (2.0 / (k * k * cout)) ** 0.5
    w = jax.random.normal(key, (k * k, cin, cout), jnp.float32) * std
    wf = jnp.pad(w * scale[None, None, :],
                 ((0, 0), (0, cin_pad - cin), (0, cout_pad - cout)))
    if k == 1:
        wf = wf.reshape(cin_pad, cout_pad)
    b = jnp.pad(bias, (0, cout_pad - cout))
    return {"w": wf.astype(jnp.bfloat16), "bias": b, "k": k, "cout_pad": cout_pad}


def init_efficientnetv2(key, model_cnf, num_classes, num_features):
    for cnf in model_cnf:
        assert len(cnf) == 8
    keys = iter(jax.random.split(key, 256))

    params = {"stem": _conv_bn_params(next(keys), 3, model_cnf[0][4], 3, cin_pad=3)}
    prev_pad = params["stem"]["cout_pad"]

    blocks = []
    for cnf in model_cnf:
        repeats, k, stride, expand, cin0, cout, op, se_ratio = cnf
        for i in range(repeats):
            cin = cin0 if i == 0 else cout
            s = stride if i == 0 else 1
            cexp = cin * expand
            bp = {"op": op, "stride": s, "has_shortcut": (s == 1 and cin == cout)}
            if op == 0:  # FusedMBConv (se_ratio must be 0)
                assert se_ratio == 0
                bp["has_expansion"] = expand != 1
                if expand != 1:
                    bp["expand"] = _conv_bn_params(next(keys), cin, cexp, k, cin_pad=prev_pad)
                    bp["project"] = _conv_bn_params(next(keys), cexp, cout, 1,
                                                    cin_pad=bp["expand"]["cout_pad"])
                else:
                    bp["project"] = _conv_bn_params(next(keys), cin, cout, k, cin_pad=prev_pad)
            else:  # MBConv
                assert expand != 1
                bp["expand"] = _conv_bn_params(next(keys), cin, cexp, 1, cin_pad=prev_pad)
                cexp_pad = bp["expand"]["cout_pad"]
                bp["dw"] = _conv_bn_params(next(keys), cexp, cexp, k, depthwise=True)
                if se_ratio > 0:
                    csq = int(cin * se_ratio)
                    w1 = jax.random.normal(next(keys), (cexp, csq), jnp.float32) * (2.0 / csq) ** 0.5
                    w2 = jax.random.normal(next(keys), (csq, cexp), jnp.float32) * (2.0 / cexp) ** 0.5
                    bp["se"] = {
                        "w1": jnp.pad(w1, ((0, cexp_pad - cexp), (0, 0))),
                        "b1": jnp.zeros((csq,), jnp.float32),
                        "w2": jnp.pad(w2, ((0, 0), (0, cexp_pad - cexp))),
                        "b2": jnp.zeros((cexp_pad,), jnp.float32),
                    }
                else:
                    bp["se"] = None
                bp["project"] = _conv_bn_params(next(keys), cexp, cout, 1, cin_pad=cexp_pad)
            prev_pad = bp["project"]["cout_pad"]
            blocks.append(bp)
    params["blocks"] = blocks

    params["head_project"] = _conv_bn_params(next(keys), model_cnf[-1][-3], num_features, 1,
                                             cin_pad=prev_pad)
    featp = params["head_project"]["cout_pad"]
    fc_w = jax.random.normal(next(keys), (num_features, num_classes), jnp.float32) * 0.01
    params["fc_w"] = jnp.pad(fc_w, ((0, featp - num_features), (0, 0)))
    params["fc_b"] = jnp.zeros((num_classes,), jnp.float32)
    return params


# ----------------------------------- main -----------------------------------

if __name__ == "__main__":
    # small EfficientNetV2-style config:
    # [repeats, kernel, stride, expand_ratio, in_c, out_c, operator(0=Fused,1=MB), se_ratio]
    model_cnf = [
        [1, 3, 1, 1, 8, 8, 0, 0],        # FusedMBConv, no expansion, shortcut
        [1, 3, 2, 4, 8, 16, 0, 0],       # FusedMBConv with expansion, stride 2
        [1, 3, 2, 4, 16, 24, 1, 0.25],   # MBConv with SE, stride 2
        [1, 3, 1, 6, 24, 24, 1, 0.25],   # MBConv with SE, shortcut
    ]
    num_classes = 10
    num_features = 64

    key = jax.random.PRNGKey(0)
    pkey, xkey = jax.random.split(key)
    params = init_efficientnetv2(pkey, model_cnf, num_classes, num_features)

    x = jax.random.normal(xkey, (2, 3, 16, 16), jnp.float32)  # NCHW, like PyTorch

    fwd = jax.jit(lambda inp: efficientnetv2_forward(inp, params))
    out = jax.block_until_ready(fwd(x))
    assert out.shape == (2, num_classes), out.shape
    assert bool(jnp.all(jnp.isfinite(out)))
    print("KERNEL_OK")
</pallas_src>

<mosaic_0001>
module attributes {stable_mosaic.version = 11 : i64} {
  func.func @_tapconv_kernel(%arg0: i32, %arg1: i32, %arg2: memref<1x326x3xbf16, #tpu.memory_space<vmem>>, %arg3: memref<9x3x128xbf16, #tpu.memory_space<vmem>>, %arg4: memref<1x128xf32, #tpu.memory_space<vmem>>, %arg5: memref<1x288x128xbf16, #tpu.memory_space<vmem>>) attributes {dimension_semantics = [#tpu.dimension_semantics<parallel>, #tpu.dimension_semantics<parallel>], iteration_bounds = array<i64: 2, 1>, scalar_prefetch = 0 : i64, scratch_operands = 0 : i64, tpu.core_type = #tpu.core_type<tc>, window_params = [{transform_indices = @transform_0, window_bounds = array<i64: 1, 326, 3>}, {transform_indices = @transform_1, window_bounds = array<i64: 9, 3, 128>}, {transform_indices = @transform_2, window_bounds = array<i64: 1, 128>}, {transform_indices = @transform_3, window_bounds = array<i64: 1, 288, 128>}]} {
    %c0 = arith.constant 0 : index
    %c0_0 = arith.constant 0 : index
    %c0_1 = arith.constant 0 : index
    %0 = vector.load %arg2[%c0, %c0_0, %c0_1] : memref<1x326x3xbf16, #tpu.memory_space<vmem>>, vector<1x288x3xbf16>
    %1 = vector.shape_cast %0 : vector<1x288x3xbf16> to vector<288x3xbf16>
    %c0_2 = arith.constant 0 : index
    %c0_3 = arith.constant 0 : index
    %c0_4 = arith.constant 0 : index
    %2 = vector.load %arg3[%c0_2, %c0_3, %c0_4] : memref<9x3x128xbf16, #tpu.memory_space<vmem>>, vector<1x3x128xbf16>
    %3 = vector.shape_cast %2 : vector<1x3x128xbf16> to vector<3x128xbf16>
    %cst = arith.constant dense<0.000000e+00> : vector<288x128xf32>
    %4 = tpu.matmul %1, %3, %cst {dimension_numbers = #tpu.dot_dimension_numbers<[1], [0], [0], [1], [0, 0, 1, 1], [], []>} : vector<288x3xbf16>, vector<3x128xbf16>, vector<288x128xf32> -> vector<288x128xf32>
    %c0_5 = arith.constant 0 : index
    %c1 = arith.constant 1 : index
    %c0_6 = arith.constant 0 : index
    %5 = vector.load %arg2[%c0_5, %c1, %c0_6] : memref<1x326x3xbf16, #tpu.memory_space<vmem>>, vector<1x288x3xbf16>
    %6 = vector.shape_cast %5 : vector<1x288x3xbf16> to vector<288x3xbf16>
    %c1_7 = arith.constant 1 : index
    %c0_8 = arith.constant 0 : index
    %c0_9 = arith.constant 0 : index
    %7 = vector.load %arg3[%c1_7, %c0_8, %c0_9] : memref<9x3x128xbf16, #tpu.memory_space<vmem>>, vector<1x3x128xbf16>
    %8 = vector.shape_cast %7 : vector<1x3x128xbf16> to vector<3x128xbf16>
    %cst_10 = arith.constant dense<0.000000e+00> : vector<288x128xf32>
    %9 = tpu.matmul %6, %8, %cst_10 {dimension_numbers = #tpu.dot_dimension_numbers<[1], [0], [0], [1], [0, 0, 1, 1], [], []>} : vector<288x3xbf16>, vector<3x128xbf16>, vector<288x128xf32> -> vector<288x128xf32>
    %10 = arith.addf %4, %9 : vector<288x128xf32>
    %c0_11 = arith.constant 0 : index
    %c2 = arith.constant 2 : index
    %c0_12 = arith.constant 0 : index
    %11 = vector.load %arg2[%c0_11, %c2, %c0_12] : memref<1x326x3xbf16, #tpu.memory_space<vmem>>, vector<1x288x3xbf16>
    %12 = vector.shape_cast %11 : vector<1x288x3xbf16> to vector<288x3xbf16>
    %c2_13 = arith.constant 2 : index
    %c0_14 = arith.constant 0 : index
    %c0_15 = arith.constant 0 : index
    %13 = vector.load %arg3[%c2_13, %c0_14, %c0_15] : memref<9x3x128xbf16, #tpu.memory_space<vmem>>, vector<1x3x128xbf16>
    %14 = vector.shape_cast %13 : vector<1x3x128xbf16> to vector<3x128xbf16>
    %cst_16 = arith.constant dense<0.000000e+00> : vector<288x128xf32>
    %15 = tpu.matmul %12, %14, %cst_16 {dimension_numbers = #tpu.dot_dimension_numbers<[1], [0], [0], [1], [0, 0, 1, 1], [], []>} : vector<288x3xbf16>, vector<3x128xbf16>, vector<288x128xf32> -> vector<288x128xf32>
    %16 = arith.addf %10, %15 : vector<288x128xf32>
    %c0_17 = arith.constant 0 : index
    %c18 = arith.constant 18 : index
    %c0_18 = arith.constant 0 : index
    %17 = vector.load %arg2[%c0_17, %c18, %c0_18] : memref<1x326x3xbf16, #tpu.memory_space<vmem>>, vector<1x288x3xbf16>
    %18 = vector.shape_cast %17 : vector<1x288x3xbf16> to vector<288x3xbf16>
    %c3 = arith.constant 3 : index
    %c0_19 = arith.constant 0 : index
    %c0_20 = arith.constant 0 : index
    %19 = vector.load %arg3[%c3, %c0_19, %c0_20] : memref<9x3x128xbf16, #tpu.memory_space<vmem>>, vector<1x3x128xbf16>
    %20 = vector.shape_cast %19 : vector<1x3x128xbf16> to vector<3x128xbf16>
    %cst_21 = arith.constant dense<0.000000e+00> : vector<288x128xf32>
    %21 = tpu.matmul %18, %20, %cst_21 {dimension_numbers = #tpu.dot_dimension_numbers<[1], [0], [0], [1], [0, 0, 1, 1], [], []>} : vector<288x3xbf16>, vector<3x128xbf16>, vector<288x128xf32> -> vector<288x128xf32>
    %22 = arith.addf %16, %21 : vector<288x128xf32>
    %c0_22 = arith.constant 0 : index
    %c19 = arith.constant 19 : index
    %c0_23 = arith.constant 0 : index
    %23 = vector.load %arg2[%c0_22, %c19, %c0_23] : memref<1x326x3xbf16, #tpu.memory_space<vmem>>, vector<1x288x3xbf16>
    %24 = vector.shape_cast %23 : vector<1x288x3xbf16> to vector<288x3xbf16>
    %c4 = arith.constant 4 : index
    %c0_24 = arith.constant 0 : index
    %c0_25 = arith.constant 0 : index
    %25 = vector.load %arg3[%c4, %c0_24, %c0_25] : memref<9x3x128xbf16, #tpu.memory_space<vmem>>, vector<1x3x128xbf16>
    %26 = vector.shape_cast %25 : vector<1x3x128xbf16> to vector<3x128xbf16>
    %cst_26 = arith.constant dense<0.000000e+00> : vector<288x128xf32>
    %27 = tpu.matmul %24, %26, %cst_26 {dimension_numbers = #tpu.dot_dimension_numbers<[1], [0], [0], [1], [0, 0, 1, 1], [], []>} : vector<288x3xbf16>, vector<3x128xbf16>, vector<288x128xf32> -> vector<288x128xf32>
    %28 = arith.addf %22, %27 : vector<288x128xf32>
    %c0_27 = arith.constant 0 : index
    %c20 = arith.constant 20 : index
    %c0_28 = arith.constant 0 : index
    %29 = vector.load %arg2[%c0_27, %c20, %c0_28] : memref<1x326x3xbf16, #tpu.memory_space<vmem>>, vector<1x288x3xbf16>
    %30 = vector.shape_cast %29 : vector<1x288x3xbf16> to vector<288x3xbf16>
    %c5 = arith.constant 5 : index
    %c0_29 = arith.constant 0 : index
    %c0_30 = arith.constant 0 : index
    %31 = vector.load %arg3[%c5, %c0_29, %c0_30] : memref<9x3x128xbf16, #tpu.memory_space<vmem>>, vector<1x3x128xbf16>
    %32 = vector.shape_cast %31 : vector<1x3x128xbf16> to vector<3x128xbf16>
    %cst_31 = arith.constant dense<0.000000e+00> : vector<288x128xf32>
    %33 = tpu.matmul %30, %32, %cst_31 {dimension_numbers = #tpu.dot_dimension_numbers<[1], [0], [0], [1], [0, 0, 1, 1], [], []>} : vector<288x3xbf16>, vector<3x128xbf16>, vector<288x128xf32> -> vector<288x128xf32>
    %34 = arith.addf %28, %33 : vector<288x128xf32>
    %c0_32 = arith.constant 0 : index
    %c36 = arith.constant 36 : index
    %c0_33 = arith.constant 0 : index
    %35 = vector.load %arg2[%c0_32, %c36, %c0_33] : memref<1x326x3xbf16, #tpu.memory_space<vmem>>, vector<1x288x3xbf16>
    %36 = vector.shape_cast %35 : vector<1x288x3xbf16> to vector<288x3xbf16>
    %c6 = arith.constant 6 : index
    %c0_34 = arith.constant 0 : index
    %c0_35 = arith.constant 0 : index
    %37 = vector.load %arg3[%c6, %c0_34, %c0_35] : memref<9x3x128xbf16, #tpu.memory_space<vmem>>, vector<1x3x128xbf16>
    %38 = vector.shape_cast %37 : vector<1x3x128xbf16> to vector<3x128xbf16>
    %cst_36 = arith.constant dense<0.000000e+00> : vector<288x128xf32>
    %39 = tpu.matmul %36, %38, %cst_36 {dimension_numbers = #tpu.dot_dimension_numbers<[1], [0], [0], [1], [0, 0, 1, 1], [], []>} : vector<288x3xbf16>, vector<3x128xbf16>, vector<288x128xf32> -> vector<288x128xf32>
    %40 = arith.addf %34, %39 : vector<288x128xf32>
    %c0_37 = arith.constant 0 : index
    %c37 = arith.constant 37 : index
    %c0_38 = arith.constant 0 : index
    %41 = vector.load %arg2[%c0_37, %c37, %c0_38] : memref<1x326x3xbf16, #tpu.memory_space<vmem>>, vector<1x288x3xbf16>
    %42 = vector.shape_cast %41 : vector<1x288x3xbf16> to vector<288x3xbf16>
    %c7 = arith.constant 7 : index
    %c0_39 = arith.constant 0 : index
    %c0_40 = arith.constant 0 : index
    %43 = vector.load %arg3[%c7, %c0_39, %c0_40] : memref<9x3x128xbf16, #tpu.memory_space<vmem>>, vector<1x3x128xbf16>
    %44 = vector.shape_cast %43 : vector<1x3x128xbf16> to vector<3x128xbf16>
    %cst_41 = arith.constant dense<0.000000e+00> : vector<288x128xf32>
    %45 = tpu.matmul %42, %44, %cst_41 {dimension_numbers = #tpu.dot_dimension_numbers<[1], [0], [0], [1], [0, 0, 1, 1], [], []>} : vector<288x3xbf16>, vector<3x128xbf16>, vector<288x128xf32> -> vector<288x128xf32>
    %46 = arith.addf %40, %45 : vector<288x128xf32>
    %c0_42 = arith.constant 0 : index
    %c38 = arith.constant 38 : index
    %c0_43 = arith.constant 0 : index
    %47 = vector.load %arg2[%c0_42, %c38, %c0_43] : memref<1x326x3xbf16, #tpu.memory_space<vmem>>, vector<1x288x3xbf16>
    %48 = vector.shape_cast %47 : vector<1x288x3xbf16> to vector<288x3xbf16>
    %c8 = arith.constant 8 : index
    %c0_44 = arith.constant 0 : index
    %c0_45 = arith.constant 0 : index
    %49 = vector.load %arg3[%c8, %c0_44, %c0_45] : memref<9x3x128xbf16, #tpu.memory_space<vmem>>, vector<1x3x128xbf16>
    %50 = vector.shape_cast %49 : vector<1x3x128xbf16> to vector<3x128xbf16>
    %cst_46 = arith.constant dense<0.000000e+00> : vector<288x128xf32>
    %51 = tpu.matmul %48, %50, %cst_46 {dimension_numbers = #tpu.dot_dimension_numbers<[1], [0], [0], [1], [0, 0, 1, 1], [], []>} : vector<288x3xbf16>, vector<3x128xbf16>, vector<288x128xf32> -> vector<288x128xf32>
    %52 = arith.addf %46, %51 : vector<288x128xf32>
    %c0_47 = arith.constant 0 : index
    %c0_48 = arith.constant 0 : index
    %53 = vector.load %arg4[%c0_47, %c0_48] : memref<1x128xf32, #tpu.memory_space<vmem>>, vector<1x128xf32>
    %54 = vector.broadcast %53 : vector<1x128xf32> to vector<288x128xf32>
    %55 = arith.addf %52, %54 : vector<288x128xf32>
    %56 = arith.negf %55 : vector<288x128xf32>
    %57 = math.exp %56 : vector<288x128xf32>
    %cst_49 = arith.constant 1.000000e+00 : f32
    %58 = vector.broadcast %cst_49 : f32 to vector<288x128xf32>
    %59 = arith.addf %58, %57 : vector<288x128xf32>
    %60 = arith.divf %58, %59 : vector<288x128xf32>
    %61 = arith.mulf %55, %60 : vector<288x128xf32>
    %62 = arith.truncf %61 : vector<288x128xf32> to vector<288x128xbf16>
    %c0_50 = arith.constant 0 : index
    %c0_51 = arith.constant 0 : index
    %c0_52 = arith.constant 0 : index
    %63 = vector.load %arg5[%c0_50, %c0_51, %c0_52] : memref<1x288x128xbf16, #tpu.memory_space<vmem>>, vector<1x288x128xbf16>
    %64 = vector.shape_cast %63 : vector<1x288x128xbf16> to vector<288x128xbf16>
    %65 = vector.shape_cast %62 : vector<288x128xbf16> to vector<1x288x128xbf16>
    tpu.vector_store %arg5[%c0_50, %c0_51, %c0_52], %65 {strides = array<i32>} : memref<1x288x128xbf16, #tpu.memory_space<vmem>>, vector<1x288x128xbf16>,
    return
  }
  func.func @transform_0(%arg0: i32, %arg1: i32) -> (i32, i32, i32) {
    %c0_i32 = arith.constant 0 : i32
    %c0_i32_0 = arith.constant 0 : i32
    %c0_i32_1 = arith.constant 0 : i32
    return %arg0, %c0_i32, %c0_i32_0 : i32, i32, i32
  }
  func.func @transform_1(%arg0: i32, %arg1: i32) -> (i32, i32, i32) {
    %c0_i32 = arith.constant 0 : i32
    %c0_i32_0 = arith.constant 0 : i32
    %c0_i32_1 = arith.constant 0 : i32
    return %c0_i32, %c0_i32_0, %arg1 : i32, i32, i32
  }
  func.func @transform_2(%arg0: i32, %arg1: i32) -> (i32, i32) {
    %c0_i32 = arith.constant 0 : i32
    %c0_i32_0 = arith.constant 0 : i32
    return %c0_i32, %arg1 : i32, i32
  }
  func.func @transform_3(%arg0: i32, %arg1: i32) -> (i32, i32, i32) {
    %c0_i32 = arith.constant 0 : i32
    %c0_i32_0 = arith.constant 0 : i32
    return %arg0, %c0_i32, %arg1 : i32, i32, i32
  }
}

module attributes {stable_mosaic.version = 11 : i64} {
  func.func @_tapconv_kernel(%arg0: i32, %arg1: i32, %arg2: memref<1x102x128xbf16, #tpu.memory_space<vmem>>, %arg3: memref<9x128x128xbf16, #tpu.memory_space<vmem>>, %arg4: memref<1x128xf32, #tpu.memory_space<vmem>>, %arg5: memref<1x80x128xbf16, #tpu.memory_space<vmem>>, %arg6: memref<1x80x128xbf16, #tpu.memory_space<vmem>>) attributes {dimension_semantics = [#tpu.dimension_semantics<parallel>, #tpu.dimension_semantics<parallel>], iteration_bounds = array<i64: 2, 1>, scalar_prefetch = 0 : i64, scratch_operands = 0 : i64, tpu.core_type = #tpu.core_type<tc>, window_params = [{transform_indices = @transform_0, window_bounds = array<i64: 1, 102, 128>}, {transform_indices = @transform_1, window_bounds = array<i64: 9, 128, 128>}, {transform_indices = @transform_2, window_bounds = array<i64: 1, 128>}, {transform_indices = @transform_3, window_bounds = array<i64: 1, 80, 128>}, {transform_indices = @transform_4, window_bounds = array<i64: 1, 80, 128>}]} {
    %c0 = arith.constant 0 : index
    %c0_0 = arith.constant 0 : index
    %c0_1 = arith.constant 0 : index
    %0 = vector.load %arg2[%c0, %c0_0, %c0_1] : memref<1x102x128xbf16, #tpu.memory_space<vmem>>, vector<1x80x128xbf16>
    %1 = vector.shape_cast %0 : vector<1x80x128xbf16> to vector<80x128xbf16>
    %c0_2 = arith.constant 0 : index
    %c0_3 = arith.constant 0 : index
    %c0_4 = arith.constant 0 : index
    %2 = vector.load %arg3[%c0_2, %c0_3, %c0_4] : memref<9x128x128xbf16, #tpu.memory_space<vmem>>, vector<1x128x128xbf16>
    %3 = vector.shape_cast %2 : vector<1x128x128xbf16> to vector<128x128xbf16>
    %cst = arith.constant dense<0.000000e+00> : vector<80x128xf32>
    %4 = tpu.matmul %1, %3, %cst {dimension_numbers = #tpu.dot_dimension_numbers<[1], [0], [0], [1], [0, 0, 1, 1], [], []>} : vector<80x128xbf16>, vector<128x128xbf16>, vector<80x128xf32> -> vector<80x128xf32>
    %c0_5 = arith.constant 0 : index
    %c1 = arith.constant 1 : index
    %c0_6 = arith.constant 0 : index
    %5 = vector.load %arg2[%c0_5, %c1, %c0_6] : memref<1x102x128xbf16, #tpu.memory_space<vmem>>, vector<1x80x128xbf16>
    %6 = vector.shape_cast %5 : vector<1x80x128xbf16> to vector<80x128xbf16>
    %c1_7 = arith.constant 1 : index
    %c0_8 = arith.constant 0 : index
    %c0_9 = arith.constant 0 : index
    %7 = vector.load %arg3[%c1_7, %c0_8, %c0_9] : memref<9x128x128xbf16, #tpu.memory_space<vmem>>, vector<1x128x128xbf16>
    %8 = vector.shape_cast %7 : vector<1x128x128xbf16> to vector<128x128xbf16>
    %cst_10 = arith.constant dense<0.000000e+00> : vector<80x128xf32>
    %9 = tpu.matmul %6, %8, %cst_10 {dimension_numbers = #tpu.dot_dimension_numbers<[1], [0], [0], [1], [0, 0, 1, 1], [], []>} : vector<80x128xbf16>, vector<128x128xbf16>, vector<80x128xf32> -> vector<80x128xf32>
    %10 = arith.addf %4, %9 : vector<80x128xf32>
    %c0_11 = arith.constant 0 : index
    %c2 = arith.constant 2 : index
    %c0_12 = arith.constant 0 : index
    %11 = vector.load %arg2[%c0_11, %c2, %c0_12] : memref<1x102x128xbf16, #tpu.memory_space<vmem>>, vector<1x80x128xbf16>
    %12 = vector.shape_cast %11 : vector<1x80x128xbf16> to vector<80x128xbf16>
    %c2_13 = arith.constant 2 : index
    %c0_14 = arith.constant 0 : index
    %c0_15 = arith.constant 0 : index
    %13 = vector.load %arg3[%c2_13, %c0_14, %c0_15] : memref<9x128x128xbf16, #tpu.memory_space<vmem>>, vector<1x128x128xbf16>
    %14 = vector.shape_cast %13 : vector<1x128x128xbf16> to vector<128x128xbf16>
    %cst_16 = arith.constant dense<0.000000e+00> : vector<80x128xf32>
    %15 = tpu.matmul %12, %14, %cst_16 {dimension_numbers = #tpu.dot_dimension_numbers<[1], [0], [0], [1], [0, 0, 1, 1], [], []>} : vector<80x128xbf16>, vector<128x128xbf16>, vector<80x128xf32> -> vector<80x128xf32>
    %16 = arith.addf %10, %15 : vector<80x128xf32>
    %c0_17 = arith.constant 0 : index
    %c10 = arith.constant 10 : index
    %c0_18 = arith.constant 0 : index
    %17 = vector.load %arg2[%c0_17, %c10, %c0_18] : memref<1x102x128xbf16, #tpu.memory_space<vmem>>, vector<1x80x128xbf16>
    %18 = vector.shape_cast %17 : vector<1x80x128xbf16> to vector<80x128xbf16>
    %c3 = arith.constant 3 : index
    %c0_19 = arith.constant 0 : index
    %c0_20 = arith.constant 0 : index
    %19 = vector.load %arg3[%c3, %c0_19, %c0_20] : memref<9x128x128xbf16, #tpu.memory_space<vmem>>, vector<1x128x128xbf16>
    %20 = vector.shape_cast %19 : vector<1x128x128xbf16> to vector<128x128xbf16>
    %cst_21 = arith.constant dense<0.000000e+00> : vector<80x128xf32>
    %21 = tpu.matmul %18, %20, %cst_21 {dimension_numbers = #tpu.dot_dimension_numbers<[1], [0], [0], [1], [0, 0, 1, 1], [], []>} : vector<80x128xbf16>, vector<128x128xbf16>, vector<80x128xf32> -> vector<80x128xf32>
    %22 = arith.addf %16, %21 : vector<80x128xf32>
    %c0_22 = arith.constant 0 : index
    %c11 = arith.constant 11 : index
    %c0_23 = arith.constant 0 : index
    %23 = vector.load %arg2[%c0_22, %c11, %c0_23] : memref<1x102x128xbf16, #tpu.memory_space<vmem>>, vector<1x80x128xbf16>
    %24 = vector.shape_cast %23 : vector<1x80x128xbf16> to vector<80x128xbf16>
    %c4 = arith.constant 4 : index
    %c0_24 = arith.constant 0 : index
    %c0_25 = arith.constant 0 : index
    %25 = vector.load %arg3[%c4, %c0_24, %c0_25] : memref<9x128x128xbf16, #tpu.memory_space<vmem>>, vector<1x128x128xbf16>
    %26 = vector.shape_cast %25 : vector<1x128x128xbf16> to vector<128x128xbf16>
    %cst_26 = arith.constant dense<0.000000e+00> : vector<80x128xf32>
    %27 = tpu.matmul %24, %26, %cst_26 {dimension_numbers = #tpu.dot_dimension_numbers<[1], [0], [0], [1], [0, 0, 1, 1], [], []>} : vector<80x128xbf16>, vector<128x128xbf16>, vector<80x128xf32> -> vector<80x128xf32>
    %28 = arith.addf %22, %27 : vector<80x128xf32>
    %c0_27 = arith.constant 0 : index
    %c12 = arith.constant 12 : index
    %c0_28 = arith.constant 0 : index
    %29 = vector.load %arg2[%c0_27, %c12, %c0_28] : memref<1x102x128xbf16, #tpu.memory_space<vmem>>, vector<1x80x128xbf16>
    %30 = vector.shape_cast %29 : vector<1x80x128xbf16> to vector<80x128xbf16>
    %c5 = arith.constant 5 : index
    %c0_29 = arith.constant 0 : index
    %c0_30 = arith.constant 0 : index
    %31 = vector.load %arg3[%c5, %c0_29, %c0_30] : memref<9x128x128xbf16, #tpu.memory_space<vmem>>, vector<1x128x128xbf16>
    %32 = vector.shape_cast %31 : vector<1x128x128xbf16> to vector<128x128xbf16>
    %cst_31 = arith.constant dense<0.000000e+00> : vector<80x128xf32>
    %33 = tpu.matmul %30, %32, %cst_31 {dimension_numbers = #tpu.dot_dimension_numbers<[1], [0], [0], [1], [0, 0, 1, 1], [], []>} : vector<80x128xbf16>, vector<128x128xbf16>, vector<80x128xf32> -> vector<80x128xf32>
    %34 = arith.addf %28, %33 : vector<80x128xf32>
    %c0_32 = arith.constant 0 : index
    %c20 = arith.constant 20 : index
    %c0_33 = arith.constant 0 : index
    %35 = vector.load %arg2[%c0_32, %c20, %c0_33] : memref<1x102x128xbf16, #tpu.memory_space<vmem>>, vector<1x80x128xbf16>
    %36 = vector.shape_cast %35 : vector<1x80x128xbf16> to vector<80x128xbf16>
    %c6 = arith.constant 6 : index
    %c0_34 = arith.constant 0 : index
    %c0_35 = arith.constant 0 : index
    %37 = vector.load %arg3[%c6, %c0_34, %c0_35] : memref<9x128x128xbf16, #tpu.memory_space<vmem>>, vector<1x128x128xbf16>
    %38 = vector.shape_cast %37 : vector<1x128x128xbf16> to vector<128x128xbf16>
    %cst_36 = arith.constant dense<0.000000e+00> : vector<80x128xf32>
    %39 = tpu.matmul %36, %38, %cst_36 {dimension_numbers = #tpu.dot_dimension_numbers<[1], [0], [0], [1], [0, 0, 1, 1], [], []>} : vector<80x128xbf16>, vector<128x128xbf16>, vector<80x128xf32> -> vector<80x128xf32>
    %40 = arith.addf %34, %39 : vector<80x128xf32>
    %c0_37 = arith.constant 0 : index
    %c21 = arith.constant 21 : index
    %c0_38 = arith.constant 0 : index
    %41 = vector.load %arg2[%c0_37, %c21, %c0_38] : memref<1x102x128xbf16, #tpu.memory_space<vmem>>, vector<1x80x128xbf16>
    %42 = vector.shape_cast %41 : vector<1x80x128xbf16> to vector<80x128xbf16>
    %c7 = arith.constant 7 : index
    %c0_39 = arith.constant 0 : index
    %c0_40 = arith.constant 0 : index
    %43 = vector.load %arg3[%c7, %c0_39, %c0_40] : memref<9x128x128xbf16, #tpu.memory_space<vmem>>, vector<1x128x128xbf16>
    %44 = vector.shape_cast %43 : vector<1x128x128xbf16> to vector<128x128xbf16>
    %cst_41 = arith.constant dense<0.000000e+00> : vector<80x128xf32>
    %45 = tpu.matmul %42, %44, %cst_41 {dimension_numbers = #tpu.dot_dimension_numbers<[1], [0], [0], [1], [0, 0, 1, 1], [], []>} : vector<80x128xbf16>, vector<128x128xbf16>, vector<80x128xf32> -> vector<80x128xf32>
    %46 = arith.addf %40, %45 : vector<80x128xf32>
    %c0_42 = arith.constant 0 : index
    %c22 = arith.constant 22 : index
    %c0_43 = arith.constant 0 : index
    %47 = vector.load %arg2[%c0_42, %c22, %c0_43] : memref<1x102x128xbf16, #tpu.memory_space<vmem>>, vector<1x80x128xbf16>
    %48 = vector.shape_cast %47 : vector<1x80x128xbf16> to vector<80x128xbf16>
    %c8 = arith.constant 8 : index
    %c0_44 = arith.constant 0 : index
    %c0_45 = arith.constant 0 : index
    %49 = vector.load %arg3[%c8, %c0_44, %c0_45] : memref<9x128x128xbf16, #tpu.memory_space<vmem>>, vector<1x128x128xbf16>
    %50 = vector.shape_cast %49 : vector<1x128x128xbf16> to vector<128x128xbf16>
    %cst_46 = arith.constant dense<0.000000e+00> : vector<80x128xf32>
    %51 = tpu.matmul %48, %50, %cst_46 {dimension_numbers = #tpu.dot_dimension_numbers<[1], [0], [0], [1], [0, 0, 1, 1], [], []>} : vector<80x128xbf16>, vector<128x128xbf16>, vector<80x128xf32> -> vector<80x128xf32>
    %52 = arith.addf %46, %51 : vector<80x128xf32>
    %c0_47 = arith.constant 0 : index
    %c0_48 = arith.constant 0 : index
    %53 = vector.load %arg4[%c0_47, %c0_48] : memref<1x128xf32, #tpu.memory_space<vmem>>, vector<1x128xf32>
    %54 = vector.broadcast %53 : vector<1x128xf32> to vector<80x128xf32>
    %55 = arith.addf %52, %54 : vector<80x128xf32>
    %56 = arith.negf %55 : vector<80x128xf32>
    %57 = math.exp %56 : vector<80x128xf32>
    %cst_49 = arith.constant 1.000000e+00 : f32
    %58 = vector.broadcast %cst_49 : f32 to vector<80x128xf32>
    %59 = arith.addf %58, %57 : vector<80x128xf32>
    %60 = arith.divf %58, %59 : vector<80x128xf32>
    %61 = arith.mulf %55, %60 : vector<80x128xf32>
    %c0_50 = arith.constant 0 : index
    %c0_51 = arith.constant 0 : index
    %c0_52 = arith.constant 0 : index
    %62 = vector.load %arg5[%c0_50, %c0_51, %c0_52] : memref<1x80x128xbf16, #tpu.memory_space<vmem>>, vector<1x80x128xbf16>
    %63 = vector.shape_cast %62 : vector<1x80x128xbf16> to vector<80x128xbf16>
    %64 = arith.extf %63 : vector<80x128xbf16> to vector<80x128xf32>
    %65 = arith.addf %61, %64 : vector<80x128xf32>
    %66 = arith.truncf %65 : vector<80x128xf32> to vector<80x128xbf16>
    %c0_53 = arith.constant 0 : index
    %c0_54 = arith.constant 0 : index
    %c0_55 = arith.constant 0 : index
    %67 = vector.load %arg6[%c0_53, %c0_54, %c0_55] : memref<1x80x128xbf16, #tpu.memory_space<vmem>>, vector<1x80x128xbf16>
    %68 = vector.shape_cast %67 : vector<1x80x128xbf16> to vector<80x128xbf16>
    %69 = vector.shape_cast %66 : vector<80x128xbf16> to vector<1x80x128xbf16>
    tpu.vector_store %arg6[%c0_53, %c0_54, %c0_55], %69 {strides = array<i32>} : memref<1x80x128xbf16, #tpu.memory_space<vmem>>, vector<1x80x128xbf16>,
    return
  }
  func.func @transform_0(%arg0: i32, %arg1: i32) -> (i32, i32, i32) {
    %c0_i32 = arith.constant 0 : i32
    %c0_i32_0 = arith.constant 0 : i32
    %c0_i32_1 = arith.constant 0 : i32
    return %arg0, %c0_i32, %c0_i32_0 : i32, i32, i32
  }
  func.func @transform_1(%arg0: i32, %arg1: i32) -> (i32, i32, i32) {
    %c0_i32 = arith.constant 0 : i32
    %c0_i32_0 = arith.constant 0 : i32
    %c0_i32_1 = arith.constant 0 : i32
    return %c0_i32, %c0_i32_0, %arg1 : i32, i32, i32
  }
  func.func @transform_2(%arg0: i32, %arg1: i32) -> (i32, i32) {
    %c0_i32 = arith.constant 0 : i32
    %c0_i32_0 = arith.constant 0 : i32
    return %c0_i32, %arg1 : i32, i32
  }
  func.func @transform_3(%arg0: i32, %arg1: i32) -> (i32, i32, i32) {
    %c0_i32 = arith.constant 0 : i32
    %c0_i32_0 = arith.constant 0 : i32
    return %arg0, %c0_i32, %arg1 : i32, i32, i32
  }
  func.func @transform_4(%arg0: i32, %arg1: i32) -> (i32, i32, i32) {
    %c0_i32 = arith.constant 0 : i32
    %c0_i32_0 = arith.constant 0 : i32
    return %arg0, %c0_i32, %arg1 : i32, i32, i32
  }
}

module attributes {stable_mosaic.version = 11 : i64} {
  func.func @_mm_kernel(%arg0: i32, %arg1: i32, %arg2: i32, %arg3: memref<32x128xbf16, #tpu.memory_space<vmem>>, %arg4: memref<128x128xbf16, #tpu.memory_space<vmem>>, %arg5: memref<1x128xf32, #tpu.memory_space<vmem>>, %arg6: memref<32x128xbf16, #tpu.memory_space<vmem>>, %arg7: memref<32x128xf32, #tpu.memory_space<vmem>>) attributes {dimension_semantics = [#tpu.dimension_semantics<parallel>, #tpu.dimension_semantics<parallel>, #tpu.dimension_semantics<arbitrary>], iteration_bounds = array<i64: 1, 1, 1>, scalar_prefetch = 0 : i64, scratch_operands = 1 : i64, tpu.core_type = #tpu.core_type<tc>, window_params = [{transform_indices = @transform_0, window_bounds = array<i64: 32, 128>}, {transform_indices = @transform_1, window_bounds = array<i64: 128, 128>}, {transform_indices = @transform_2, window_bounds = array<i64: 1, 128>}, {transform_indices = @transform_3, window_bounds = array<i64: 32, 128>}]} {
    %c0_i32 = arith.constant 0 : i32
    %0 = arith.cmpi eq, %arg2, %c0_i32 : i32
    %1 = arith.extui %0 : i1 to i32
    %c0_i32_0 = arith.constant 0 : i32
    %2 = arith.cmpi ne, %1, %c0_i32_0 : i32
    scf.if %2 {
      %cst_10 = arith.constant 0.000000e+00 : f32
      %12 = vector.broadcast %cst_10 : f32 to vector<32x128xf32>
      %c0_11 = arith.constant 0 : index
      %c0_12 = arith.constant 0 : index
      %13 = vector.load %arg7[%c0_11, %c0_12] : memref<32x128xf32, #tpu.memory_space<vmem>>, vector<32x128xf32>
      tpu.vector_store %arg7[%c0_11, %c0_12], %12 {strides = array<i32>} : memref<32x128xf32, #tpu.memory_space<vmem>>, vector<32x128xf32>,
    } else {
    }
    %c0 = arith.constant 0 : index
    %c0_1 = arith.constant 0 : index
    %3 = vector.load %arg7[%c0, %c0_1] : memref<32x128xf32, #tpu.memory_space<vmem>>, vector<32x128xf32>
    %c0_2 = arith.constant 0 : index
    %c0_3 = arith.constant 0 : index
    %4 = vector.load %arg3[%c0_2, %c0_3] : memref<32x128xbf16, #tpu.memory_space<vmem>>, vector<32x128xbf16>
    %c0_4 = arith.constant 0 : index
    %c0_5 = arith.constant 0 : index
    %5 = vector.load %arg4[%c0_4, %c0_5] : memref<128x128xbf16, #tpu.memory_space<vmem>>, vector<128x128xbf16>
    %cst = arith.constant dense<0.000000e+00> : vector<32x128xf32>
    %6 = tpu.matmul %4, %5, %cst {dimension_numbers = #tpu.dot_dimension_numbers<[1], [0], [0], [1], [0, 0, 1, 1], [], []>} : vector<32x128xbf16>, vector<128x128xbf16>, vector<32x128xf32> -> vector<32x128xf32>
    %7 = arith.addf %3, %6 : vector<32x128xf32>
    %c0_6 = arith.constant 0 : index
    %c0_7 = arith.constant 0 : index
    %8 = vector.load %arg7[%c0_6, %c0_7] : memref<32x128xf32, #tpu.memory_space<vmem>>, vector<32x128xf32>
    tpu.vector_store %arg7[%c0_6, %c0_7], %7 {strides = array<i32>} : memref<32x128xf32, #tpu.memory_space<vmem>>, vector<32x128xf32>,
    %c0_i32_8 = arith.constant 0 : i32
    %9 = arith.cmpi eq, %arg2, %c0_i32_8 : i32
    %10 = arith.extui %9 : i1 to i32
    %c0_i32_9 = arith.constant 0 : i32
    %11 = arith.cmpi ne, %10, %c0_i32_9 : i32
    scf.if %11 {
      %c0_10 = arith.constant 0 : index
      %c0_11 = arith.constant 0 : index
      %12 = vector.load %arg7[%c0_10, %c0_11] : memref<32x128xf32, #tpu.memory_space<vmem>>, vector<32x128xf32>
      %c0_12 = arith.constant 0 : index
      %c0_13 = arith.constant 0 : index
      %13 = vector.load %arg5[%c0_12, %c0_13] : memref<1x128xf32, #tpu.memory_space<vmem>>, vector<1x128xf32>
      %14 = vector.broadcast %13 : vector<1x128xf32> to vector<32x128xf32>
      %15 = arith.addf %12, %14 : vector<32x128xf32>
      %16 = arith.truncf %15 : vector<32x128xf32> to vector<32x128xbf16>
      %c0_14 = arith.constant 0 : index
      %c0_15 = arith.constant 0 : index
      %17 = vector.load %arg6[%c0_14, %c0_15] : memref<32x128xbf16, #tpu.memory_space<vmem>>, vector<32x128xbf16>
      tpu.vector_store %arg6[%c0_14, %c0_15], %16 {strides = array<i32>} : memref<32x128xbf16, #tpu.memory_space<vmem>>, vector<32x128xbf16>,
    } else {
    }
    return
  }
  func.func @transform_0(%arg0: i32, %arg1: i32, %arg2: i32) -> (i32, i32) {
    %c0_i32 = arith.constant 0 : i32
    return %arg0, %arg2 : i32, i32
  }
  func.func @transform_1(%arg0: i32, %arg1: i32, %arg2: i32) -> (i32, i32) {
    %c0_i32 = arith.constant 0 : i32
    return %arg2, %arg1 : i32, i32
  }
  func.func @transform_2(%arg0: i32, %arg1: i32, %arg2: i32) -> (i32, i32) {
    %c0_i32 = arith.constant 0 : i32
    %c0_i32_0 = arith.constant 0 : i32
    return %c0_i32, %arg1 : i32, i32
  }
  func.func @transform_3(%arg0: i32, %arg1: i32, %arg2: i32) -> (i32, i32) {
    %c0_i32 = arith.constant 0 : i32
    return %arg0, %arg1 : i32, i32
  }
}

module attributes {stable_mosaic.version = 11 : i64} {
  func.func @_tapconv_kernel(%arg0: i32, %arg1: i32, %arg2: memref<1x102x128xbf16, #tpu.memory_space<vmem>>, %arg3: memref<9x128x128xbf16, #tpu.memory_space<vmem>>, %arg4: memref<1x128xf32, #tpu.memory_space<vmem>>, %arg5: memref<1x80x128xbf16, #tpu.memory_space<vmem>>) attributes {dimension_semantics = [#tpu.dimension_semantics<parallel>, #tpu.dimension_semantics<parallel>], iteration_bounds = array<i64: 2, 1>, scalar_prefetch = 0 : i64, scratch_operands = 0 : i64, tpu.core_type = #tpu.core_type<tc>, window_params = [{transform_indices = @transform_0, window_bounds = array<i64: 1, 102, 128>}, {transform_indices = @transform_1, window_bounds = array<i64: 9, 128, 128>}, {transform_indices = @transform_2, window_bounds = array<i64: 1, 128>}, {transform_indices = @transform_3, window_bounds = array<i64: 1, 80, 128>}]} {
    %c0 = arith.constant 0 : index
    %c0_0 = arith.constant 0 : index
    %c0_1 = arith.constant 0 : index
    %0 = vector.load %arg2[%c0, %c0_0, %c0_1] : memref<1x102x128xbf16, #tpu.memory_space<vmem>>, vector<1x80x128xbf16>
    %1 = vector.shape_cast %0 : vector<1x80x128xbf16> to vector<80x128xbf16>
    %c0_2 = arith.constant 0 : index
    %c0_3 = arith.constant 0 : index
    %c0_4 = arith.constant 0 : index
    %2 = vector.load %arg3[%c0_2, %c0_3, %c0_4] : memref<9x128x128xbf16, #tpu.memory_space<vmem>>, vector<1x128x128xbf16>
    %3 = vector.shape_cast %2 : vector<1x128x128xbf16> to vector<128x128xbf16>
    %cst = arith.constant dense<0.000000e+00> : vector<80x128xf32>
    %4 = tpu.matmul %1, %3, %cst {dimension_numbers = #tpu.dot_dimension_numbers<[1], [0], [0], [1], [0, 0, 1, 1], [], []>} : vector<80x128xbf16>, vector<128x128xbf16>, vector<80x128xf32> -> vector<80x128xf32>
    %c0_5 = arith.constant 0 : index
    %c1 = arith.constant 1 : index
    %c0_6 = arith.constant 0 : index
    %5 = vector.load %arg2[%c0_5, %c1, %c0_6] : memref<1x102x128xbf16, #tpu.memory_space<vmem>>, vector<1x80x128xbf16>
    %6 = vector.shape_cast %5 : vector<1x80x128xbf16> to vector<80x128xbf16>
    %c1_7 = arith.constant 1 : index
    %c0_8 = arith.constant 0 : index
    %c0_9 = arith.constant 0 : index
    %7 = vector.load %arg3[%c1_7, %c0_8, %c0_9] : memref<9x128x128xbf16, #tpu.memory_space<vmem>>, vector<1x128x128xbf16>
    %8 = vector.shape_cast %7 : vector<1x128x128xbf16> to vector<128x128xbf16>
    %cst_10 = arith.constant dense<0.000000e+00> : vector<80x128xf32>
    %9 = tpu.matmul %6, %8, %cst_10 {dimension_numbers = #tpu.dot_dimension_numbers<[1], [0], [0], [1], [0, 0, 1, 1], [], []>} : vector<80x128xbf16>, vector<128x128xbf16>, vector<80x128xf32> -> vector<80x128xf32>
    %10 = arith.addf %4, %9 : vector<80x128xf32>
    %c0_11 = arith.constant 0 : index
    %c2 = arith.constant 2 : index
    %c0_12 = arith.constant 0 : index
    %11 = vector.load %arg2[%c0_11, %c2, %c0_12] : memref<1x102x128xbf16, #tpu.memory_space<vmem>>, vector<1x80x128xbf16>
    %12 = vector.shape_cast %11 : vector<1x80x128xbf16> to vector<80x128xbf16>
    %c2_13 = arith.constant 2 : index
    %c0_14 = arith.constant 0 : index
    %c0_15 = arith.constant 0 : index
    %13 = vector.load %arg3[%c2_13, %c0_14, %c0_15] : memref<9x128x128xbf16, #tpu.memory_space<vmem>>, vector<1x128x128xbf16>
    %14 = vector.shape_cast %13 : vector<1x128x128xbf16> to vector<128x128xbf16>
    %cst_16 = arith.constant dense<0.000000e+00> : vector<80x128xf32>
    %15 = tpu.matmul %12, %14, %cst_16 {dimension_numbers = #tpu.dot_dimension_numbers<[1], [0], [0], [1], [0, 0, 1, 1], [], []>} : vector<80x128xbf16>, vector<128x128xbf16>, vector<80x128xf32> -> vector<80x128xf32>
    %16 = arith.addf %10, %15 : vector<80x128xf32>
    %c0_17 = arith.constant 0 : index
    %c10 = arith.constant 10 : index
    %c0_18 = arith.constant 0 : index
    %17 = vector.load %arg2[%c0_17, %c10, %c0_18] : memref<1x102x128xbf16, #tpu.memory_space<vmem>>, vector<1x80x128xbf16>
    %18 = vector.shape_cast %17 : vector<1x80x128xbf16> to vector<80x128xbf16>
    %c3 = arith.constant 3 : index
    %c0_19 = arith.constant 0 : index
    %c0_20 = arith.constant 0 : index
    %19 = vector.load %arg3[%c3, %c0_19, %c0_20] : memref<9x128x128xbf16, #tpu.memory_space<vmem>>, vector<1x128x128xbf16>
    %20 = vector.shape_cast %19 : vector<1x128x128xbf16> to vector<128x128xbf16>
    %cst_21 = arith.constant dense<0.000000e+00> : vector<80x128xf32>
    %21 = tpu.matmul %18, %20, %cst_21 {dimension_numbers = #tpu.dot_dimension_numbers<[1], [0], [0], [1], [0, 0, 1, 1], [], []>} : vector<80x128xbf16>, vector<128x128xbf16>, vector<80x128xf32> -> vector<80x128xf32>
    %22 = arith.addf %16, %21 : vector<80x128xf32>
    %c0_22 = arith.constant 0 : index
    %c11 = arith.constant 11 : index
    %c0_23 = arith.constant 0 : index
    %23 = vector.load %arg2[%c0_22, %c11, %c0_23] : memref<1x102x128xbf16, #tpu.memory_space<vmem>>, vector<1x80x128xbf16>
    %24 = vector.shape_cast %23 : vector<1x80x128xbf16> to vector<80x128xbf16>
    %c4 = arith.constant 4 : index
    %c0_24 = arith.constant 0 : index
    %c0_25 = arith.constant 0 : index
    %25 = vector.load %arg3[%c4, %c0_24, %c0_25] : memref<9x128x128xbf16, #tpu.memory_space<vmem>>, vector<1x128x128xbf16>
    %26 = vector.shape_cast %25 : vector<1x128x128xbf16> to vector<128x128xbf16>
    %cst_26 = arith.constant dense<0.000000e+00> : vector<80x128xf32>
    %27 = tpu.matmul %24, %26, %cst_26 {dimension_numbers = #tpu.dot_dimension_numbers<[1], [0], [0], [1], [0, 0, 1, 1], [], []>} : vector<80x128xbf16>, vector<128x128xbf16>, vector<80x128xf32> -> vector<80x128xf32>
    %28 = arith.addf %22, %27 : vector<80x128xf32>
    %c0_27 = arith.constant 0 : index
    %c12 = arith.constant 12 : index
    %c0_28 = arith.constant 0 : index
    %29 = vector.load %arg2[%c0_27, %c12, %c0_28] : memref<1x102x128xbf16, #tpu.memory_space<vmem>>, vector<1x80x128xbf16>
    %30 = vector.shape_cast %29 : vector<1x80x128xbf16> to vector<80x128xbf16>
    %c5 = arith.constant 5 : index
    %c0_29 = arith.constant 0 : index
    %c0_30 = arith.constant 0 : index
    %31 = vector.load %arg3[%c5, %c0_29, %c0_30] : memref<9x128x128xbf16, #tpu.memory_space<vmem>>, vector<1x128x128xbf16>
    %32 = vector.shape_cast %31 : vector<1x128x128xbf16> to vector<128x128xbf16>
    %cst_31 = arith.constant dense<0.000000e+00> : vector<80x128xf32>
    %33 = tpu.matmul %30, %32, %cst_31 {dimension_numbers = #tpu.dot_dimension_numbers<[1], [0], [0], [1], [0, 0, 1, 1], [], []>} : vector<80x128xbf16>, vector<128x128xbf16>, vector<80x128xf32> -> vector<80x128xf32>
    %34 = arith.addf %28, %33 : vector<80x128xf32>
    %c0_32 = arith.constant 0 : index
    %c20 = arith.constant 20 : index
    %c0_33 = arith.constant 0 : index
    %35 = vector.load %arg2[%c0_32, %c20, %c0_33] : memref<1x102x128xbf16, #tpu.memory_space<vmem>>, vector<1x80x128xbf16>
    %36 = vector.shape_cast %35 : vector<1x80x128xbf16> to vector<80x128xbf16>
    %c6 = arith.constant 6 : index
    %c0_34 = arith.constant 0 : index
    %c0_35 = arith.constant 0 : index
    %37 = vector.load %arg3[%c6, %c0_34, %c0_35] : memref<9x128x128xbf16, #tpu.memory_space<vmem>>, vector<1x128x128xbf16>
    %38 = vector.shape_cast %37 : vector<1x128x128xbf16> to vector<128x128xbf16>
    %cst_36 = arith.constant dense<0.000000e+00> : vector<80x128xf32>
    %39 = tpu.matmul %36, %38, %cst_36 {dimension_numbers = #tpu.dot_dimension_numbers<[1], [0], [0], [1], [0, 0, 1, 1], [], []>} : vector<80x128xbf16>, vector<128x128xbf16>, vector<80x128xf32> -> vector<80x128xf32>
    %40 = arith.addf %34, %39 : vector<80x128xf32>
    %c0_37 = arith.constant 0 : index
    %c21 = arith.constant 21 : index
    %c0_38 = arith.constant 0 : index
    %41 = vector.load %arg2[%c0_37, %c21, %c0_38] : memref<1x102x128xbf16, #tpu.memory_space<vmem>>, vector<1x80x128xbf16>
    %42 = vector.shape_cast %41 : vector<1x80x128xbf16> to vector<80x128xbf16>
    %c7 = arith.constant 7 : index
    %c0_39 = arith.constant 0 : index
    %c0_40 = arith.constant 0 : index
    %43 = vector.load %arg3[%c7, %c0_39, %c0_40] : memref<9x128x128xbf16, #tpu.memory_space<vmem>>, vector<1x128x128xbf16>
    %44 = vector.shape_cast %43 : vector<1x128x128xbf16> to vector<128x128xbf16>
    %cst_41 = arith.constant dense<0.000000e+00> : vector<80x128xf32>
    %45 = tpu.matmul %42, %44, %cst_41 {dimension_numbers = #tpu.dot_dimension_numbers<[1], [0], [0], [1], [0, 0, 1, 1], [], []>} : vector<80x128xbf16>, vector<128x128xbf16>, vector<80x128xf32> -> vector<80x128xf32>
    %46 = arith.addf %40, %45 : vector<80x128xf32>
    %c0_42 = arith.constant 0 : index
    %c22 = arith.constant 22 : index
    %c0_43 = arith.constant 0 : index
    %47 = vector.load %arg2[%c0_42, %c22, %c0_43] : memref<1x102x128xbf16, #tpu.memory_space<vmem>>, vector<1x80x128xbf16>
    %48 = vector.shape_cast %47 : vector<1x80x128xbf16> to vector<80x128xbf16>
    %c8 = arith.constant 8 : index
    %c0_44 = arith.constant 0 : index
    %c0_45 = arith.constant 0 : index
    %49 = vector.load %arg3[%c8, %c0_44, %c0_45] : memref<9x128x128xbf16, #tpu.memory_space<vmem>>, vector<1x128x128xbf16>
    %50 = vector.shape_cast %49 : vector<1x128x128xbf16> to vector<128x128xbf16>
    %cst_46 = arith.constant dense<0.000000e+00> : vector<80x128xf32>
    %51 = tpu.matmul %48, %50, %cst_46 {dimension_numbers = #tpu.dot_dimension_numbers<[1], [0], [0], [1], [0, 0, 1, 1], [], []>} : vector<80x128xbf16>, vector<128x128xbf16>, vector<80x128xf32> -> vector<80x128xf32>
    %52 = arith.addf %46, %51 : vector<80x128xf32>
    %c0_47 = arith.constant 0 : index
    %c0_48 = arith.constant 0 : index
    %53 = vector.load %arg4[%c0_47, %c0_48] : memref<1x128xf32, #tpu.memory_space<vmem>>, vector<1x128xf32>
    %54 = vector.broadcast %53 : vector<1x128xf32> to vector<80x128xf32>
    %55 = arith.addf %52, %54 : vector<80x128xf32>
    %56 = arith.negf %55 : vector<80x128xf32>
    %57 = math.exp %56 : vector<80x128xf32>
    %cst_49 = arith.constant 1.000000e+00 : f32
    %58 = vector.broadcast %cst_49 : f32 to vector<80x128xf32>
    %59 = arith.addf %58, %57 : vector<80x128xf32>
    %60 = arith.divf %58, %59 : vector<80x128xf32>
    %61 = arith.mulf %55, %60 : vector<80x128xf32>
    %62 = arith.truncf %61 : vector<80x128xf32> to vector<80x128xbf16>
    %c0_50 = arith.constant 0 : index
    %c0_51 = arith.constant 0 : index
    %c0_52 = arith.constant 0 : index
    %63 = vector.load %arg5[%c0_50, %c0_51, %c0_52] : memref<1x80x128xbf16, #tpu.memory_space<vmem>>, vector<1x80x128xbf16>
    %64 = vector.shape_cast %63 : vector<1x80x128xbf16> to vector<80x128xbf16>
    %65 = vector.shape_cast %62 : vector<80x128xbf16> to vector<1x80x128xbf16>
    tpu.vector_store %arg5[%c0_50, %c0_51, %c0_52], %65 {strides = array<i32>} : memref<1x80x128xbf16, #tpu.memory_space<vmem>>, vector<1x80x128xbf16>,
    return
  }
  func.func @transform_0(%arg0: i32, %arg1: i32) -> (i32, i32, i32) {
    %c0_i32 = arith.constant 0 : i32
    %c0_i32_0 = arith.constant 0 : i32
    %c0_i32_1 = arith.constant 0 : i32
    return %arg0, %c0_i32, %c0_i32_0 : i32, i32, i32
  }
  func.func @transform_1(%arg0: i32, %arg1: i32) -> (i32, i32, i32) {
    %c0_i32 = arith.constant 0 : i32
    %c0_i32_0 = arith.constant 0 : i32
    %c0_i32_1 = arith.constant 0 : i32
    return %c0_i32, %c0_i32_0, %arg1 : i32, i32, i32
  }
  func.func @transform_2(%arg0: i32, %arg1: i32) -> (i32, i32) {
    %c0_i32 = arith.constant 0 : i32
    %c0_i32_0 = arith.constant 0 : i32
    return %c0_i32, %arg1 : i32, i32
  }
  func.func @transform_3(%arg0: i32, %arg1: i32) -> (i32, i32, i32) {
    %c0_i32 = arith.constant 0 : i32
    %c0_i32_0 = arith.constant 0 : i32
    return %arg0, %c0_i32, %arg1 : i32, i32, i32
  }
}

module attributes {stable_mosaic.version = 11 : i64} {
  func.func @_mm_kernel(%arg0: i32, %arg1: i32, %arg2: i32, %arg3: memref<32x128xbf16, #tpu.memory_space<vmem>>, %arg4: memref<128x128xbf16, #tpu.memory_space<vmem>>, %arg5: memref<1x128xf32, #tpu.memory_space<vmem>>, %arg6: memref<32x128xbf16, #tpu.memory_space<vmem>>, %arg7: memref<32x128xf32, #tpu.memory_space<vmem>>) attributes {dimension_semantics = [#tpu.dimension_semantics<parallel>, #tpu.dimension_semantics<parallel>, #tpu.dimension_semantics<arbitrary>], iteration_bounds = array<i64: 1, 1, 1>, scalar_prefetch = 0 : i64, scratch_operands = 1 : i64, tpu.core_type = #tpu.core_type<tc>, window_params = [{transform_indices = @transform_0, window_bounds = array<i64: 32, 128>}, {transform_indices = @transform_1, window_bounds = array<i64: 128, 128>}, {transform_indices = @transform_2, window_bounds = array<i64: 1, 128>}, {transform_indices = @transform_3, window_bounds = array<i64: 32, 128>}]} {
    %c0_i32 = arith.constant 0 : i32
    %0 = arith.cmpi eq, %arg2, %c0_i32 : i32
    %1 = arith.extui %0 : i1 to i32
    %c0_i32_0 = arith.constant 0 : i32
    %2 = arith.cmpi ne, %1, %c0_i32_0 : i32
    scf.if %2 {
      %cst_10 = arith.constant 0.000000e+00 : f32
      %12 = vector.broadcast %cst_10 : f32 to vector<32x128xf32>
      %c0_11 = arith.constant 0 : index
      %c0_12 = arith.constant 0 : index
      %13 = vector.load %arg7[%c0_11, %c0_12] : memref<32x128xf32, #tpu.memory_space<vmem>>, vector<32x128xf32>
      tpu.vector_store %arg7[%c0_11, %c0_12], %12 {strides = array<i32>} : memref<32x128xf32, #tpu.memory_space<vmem>>, vector<32x128xf32>,
    } else {
    }
    %c0 = arith.constant 0 : index
    %c0_1 = arith.constant 0 : index
    %3 = vector.load %arg7[%c0, %c0_1] : memref<32x128xf32, #tpu.memory_space<vmem>>, vector<32x128xf32>
    %c0_2 = arith.constant 0 : index
    %c0_3 = arith.constant 0 : index
    %4 = vector.load %arg3[%c0_2, %c0_3] : memref<32x128xbf16, #tpu.memory_space<vmem>>, vector<32x128xbf16>
    %c0_4 = arith.constant 0 : index
    %c0_5 = arith.constant 0 : index
    %5 = vector.load %arg4[%c0_4, %c0_5] : memref<128x128xbf16, #tpu.memory_space<vmem>>, vector<128x128xbf16>
    %cst = arith.constant dense<0.000000e+00> : vector<32x128xf32>
    %6 = tpu.matmul %4, %5, %cst {dimension_numbers = #tpu.dot_dimension_numbers<[1], [0], [0], [1], [0, 0, 1, 1], [], []>} : vector<32x128xbf16>, vector<128x128xbf16>, vector<32x128xf32> -> vector<32x128xf32>
    %7 = arith.addf %3, %6 : vector<32x128xf32>
    %c0_6 = arith.constant 0 : index
    %c0_7 = arith.constant 0 : index
    %8 = vector.load %arg7[%c0_6, %c0_7] : memref<32x128xf32, #tpu.memory_space<vmem>>, vector<32x128xf32>
    tpu.vector_store %arg7[%c0_6, %c0_7], %7 {strides = array<i32>} : memref<32x128xf32, #tpu.memory_space<vmem>>, vector<32x128xf32>,
    %c0_i32_8 = arith.constant 0 : i32
    %9 = arith.cmpi eq, %arg2, %c0_i32_8 : i32
    %10 = arith.extui %9 : i1 to i32
    %c0_i32_9 = arith.constant 0 : i32
    %11 = arith.cmpi ne, %10, %c0_i32_9 : i32
    scf.if %11 {
      %c0_10 = arith.constant 0 : index
      %c0_11 = arith.constant 0 : index
      %12 = vector.load %arg7[%c0_10, %c0_11] : memref<32x128xf32, #tpu.memory_space<vmem>>, vector<32x128xf32>
      %c0_12 = arith.constant 0 : index
      %c0_13 = arith.constant 0 : index
      %13 = vector.load %arg5[%c0_12, %c0_13] : memref<1x128xf32, #tpu.memory_space<vmem>>, vector<1x128xf32>
      %14 = vector.broadcast %13 : vector<1x128xf32> to vector<32x128xf32>
      %15 = arith.addf %12, %14 : vector<32x128xf32>
      %16 = arith.negf %15 : vector<32x128xf32>
      %17 = math.exp %16 : vector<32x128xf32>
      %cst_14 = arith.constant 1.000000e+00 : f32
      %18 = vector.broadcast %cst_14 : f32 to vector<32x128xf32>
      %19 = arith.addf %18, %17 : vector<32x128xf32>
      %20 = arith.divf %18, %19 : vector<32x128xf32>
      %21 = arith.mulf %15, %20 : vector<32x128xf32>
      %22 = arith.truncf %21 : vector<32x128xf32> to vector<32x128xbf16>
      %c0_15 = arith.constant 0 : index
      %c0_16 = arith.constant 0 : index
      %23 = vector.load %arg6[%c0_15, %c0_16] : memref<32x128xbf16, #tpu.memory_space<vmem>>, vector<32x128xbf16>
      tpu.vector_store %arg6[%c0_15, %c0_16], %22 {strides = array<i32>} : memref<32x128xbf16, #tpu.memory_space<vmem>>, vector<32x128xbf16>,
    } else {
    }
    return
  }
  func.func @transform_0(%arg0: i32, %arg1: i32, %arg2: i32) -> (i32, i32) {
    %c0_i32 = arith.constant 0 : i32
    return %arg0, %arg2 : i32, i32
  }
  func.func @transform_1(%arg0: i32, %arg1: i32, %arg2: i32) -> (i32, i32) {
    %c0_i32 = arith.constant 0 : i32
    return %arg2, %arg1 : i32, i32
  }
  func.func @transform_2(%arg0: i32, %arg1: i32, %arg2: i32) -> (i32, i32) {
    %c0_i32 = arith.constant 0 : i32
    %c0_i32_0 = arith.constant 0 : i32
    return %c0_i32, %arg1 : i32, i32
  }
  func.func @transform_3(%arg0: i32, %arg1: i32, %arg2: i32) -> (i32, i32) {
    %c0_i32 = arith.constant 0 : i32
    return %arg0, %arg1 : i32, i32
  }
}

module attributes {stable_mosaic.version = 11 : i64} {
  func.func @_dwtap_kernel(%arg0: i32, %arg1: i32, %arg2: memref<1x38x128xbf16, #tpu.memory_space<vmem>>, %arg3: memref<9x1x128xf32, #tpu.memory_space<vmem>>, %arg4: memref<1x128xf32, #tpu.memory_space<vmem>>, %arg5: memref<24x1xf32, #tpu.memory_space<vmem>>, %arg6: memref<1x24x128xbf16, #tpu.memory_space<vmem>>, %arg7: memref<1x1x128xf32, #tpu.memory_space<vmem>>) attributes {dimension_semantics = [#tpu.dimension_semantics<parallel>, #tpu.dimension_semantics<parallel>], iteration_bounds = array<i64: 2, 1>, scalar_prefetch = 0 : i64, scratch_operands = 0 : i64, tpu.core_type = #tpu.core_type<tc>, window_params = [{transform_indices = @transform_0, window_bounds = array<i64: 1, 38, 128>}, {transform_indices = @transform_1, window_bounds = array<i64: 9, 1, 128>}, {transform_indices = @transform_2, window_bounds = array<i64: 1, 128>}, {pipeline_mode = #tpu.pipeline_mode<synchronous>, transform_indices = @transform_3, window_bounds = array<i64: 24, 1>}, {transform_indices = @transform_4, window_bounds = array<i64: 1, 24, 128>}, {transform_indices = @transform_5, window_bounds = array<i64: 1, 1, 128>}]} {
    %c0 = arith.constant 0 : index
    %c0_0 = arith.constant 0 : index
    %c0_1 = arith.constant 0 : index
    %0 = vector.load %arg2[%c0, %c0_0, %c0_1] : memref<1x38x128xbf16, #tpu.memory_space<vmem>>, vector<1x24x128xbf16>
    %1 = vector.shape_cast %0 : vector<1x24x128xbf16> to vector<24x128xbf16>
    %2 = arith.extf %1 : vector<24x128xbf16> to vector<24x128xf32>
    %c0_2 = arith.constant 0 : index
    %c0_3 = arith.constant 0 : index
    %c0_4 = arith.constant 0 : index
    %3 = vector.load %arg3[%c0_2, %c0_3, %c0_4] : memref<9x1x128xf32, #tpu.memory_space<vmem>>, vector<1x1x128xf32>
    %4 = vector.shape_cast %3 : vector<1x1x128xf32> to vector<1x128xf32>
    %5 = vector.broadcast %4 : vector<1x128xf32> to vector<24x128xf32>
    %6 = arith.mulf %2, %5 : vector<24x128xf32>
    %c0_5 = arith.constant 0 : index
    %c1 = arith.constant 1 : index
    %c0_6 = arith.constant 0 : index
    %7 = vector.load %arg2[%c0_5, %c1, %c0_6] : memref<1x38x128xbf16, #tpu.memory_space<vmem>>, vector<1x24x128xbf16>
    %8 = vector.shape_cast %7 : vector<1x24x128xbf16> to vector<24x128xbf16>
    %9 = arith.extf %8 : vector<24x128xbf16> to vector<24x128xf32>
    %c1_7 = arith.constant 1 : index
    %c0_8 = arith.constant 0 : index
    %c0_9 = arith.constant 0 : index
    %10 = vector.load %arg3[%c1_7, %c0_8, %c0_9] : memref<9x1x128xf32, #tpu.memory_space<vmem>>, vector<1x1x128xf32>
    %11 = vector.shape_cast %10 : vector<1x1x128xf32> to vector<1x128xf32>
    %12 = vector.broadcast %11 : vector<1x128xf32> to vector<24x128xf32>
    %13 = arith.mulf %9, %12 : vector<24x128xf32>
    %14 = arith.addf %6, %13 : vector<24x128xf32>
    %c0_10 = arith.constant 0 : index
    %c2 = arith.constant 2 : index
    %c0_11 = arith.constant 0 : index
    %15 = vector.load %arg2[%c0_10, %c2, %c0_11] : memref<1x38x128xbf16, #tpu.memory_space<vmem>>, vector<1x24x128xbf16>
    %16 = vector.shape_cast %15 : vector<1x24x128xbf16> to vector<24x128xbf16>
    %17 = arith.extf %16 : vector<24x128xbf16> to vector<24x128xf32>
    %c2_12 = arith.constant 2 : index
    %c0_13 = arith.constant 0 : index
    %c0_14 = arith.constant 0 : index
    %18 = vector.load %arg3[%c2_12, %c0_13, %c0_14] : memref<9x1x128xf32, #tpu.memory_space<vmem>>, vector<1x1x128xf32>
    %19 = vector.shape_cast %18 : vector<1x1x128xf32> to vector<1x128xf32>
    %20 = vector.broadcast %19 : vector<1x128xf32> to vector<24x128xf32>
    %21 = arith.mulf %17, %20 : vector<24x128xf32>
    %22 = arith.addf %14, %21 : vector<24x128xf32>
    %c0_15 = arith.constant 0 : index
    %c6 = arith.constant 6 : index
    %c0_16 = arith.constant 0 : index
    %23 = vector.load %arg2[%c0_15, %c6, %c0_16] : memref<1x38x128xbf16, #tpu.memory_space<vmem>>, vector<1x24x128xbf16>
    %24 = vector.shape_cast %23 : vector<1x24x128xbf16> to vector<24x128xbf16>
    %25 = arith.extf %24 : vector<24x128xbf16> to vector<24x128xf32>
    %c3 = arith.constant 3 : index
    %c0_17 = arith.constant 0 : index
    %c0_18 = arith.constant 0 : index
    %26 = vector.load %arg3[%c3, %c0_17, %c0_18] : memref<9x1x128xf32, #tpu.memory_space<vmem>>, vector<1x1x128xf32>
    %27 = vector.shape_cast %26 : vector<1x1x128xf32> to vector<1x128xf32>
    %28 = vector.broadcast %27 : vector<1x128xf32> to vector<24x128xf32>
    %29 = arith.mulf %25, %28 : vector<24x128xf32>
    %30 = arith.addf %22, %29 : vector<24x128xf32>
    %c0_19 = arith.constant 0 : index
    %c7 = arith.constant 7 : index
    %c0_20 = arith.constant 0 : index
    %31 = vector.load %arg2[%c0_19, %c7, %c0_20] : memref<1x38x128xbf16, #tpu.memory_space<vmem>>, vector<1x24x128xbf16>
    %32 = vector.shape_cast %31 : vector<1x24x128xbf16> to vector<24x128xbf16>
    %33 = arith.extf %32 : vector<24x128xbf16> to vector<24x128xf32>
    %c4 = arith.constant 4 : index
    %c0_21 = arith.constant 0 : index
    %c0_22 = arith.constant 0 : index
    %34 = vector.load %arg3[%c4, %c0_21, %c0_22] : memref<9x1x128xf32, #tpu.memory_space<vmem>>, vector<1x1x128xf32>
    %35 = vector.shape_cast %34 : vector<1x1x128xf32> to vector<1x128xf32>
    %36 = vector.broadcast %35 : vector<1x128xf32> to vector<24x128xf32>
    %37 = arith.mulf %33, %36 : vector<24x128xf32>
    %38 = arith.addf %30, %37 : vector<24x128xf32>
    %c0_23 = arith.constant 0 : index
    %c8 = arith.constant 8 : index
    %c0_24 = arith.constant 0 : index
    %39 = vector.load %arg2[%c0_23, %c8, %c0_24] : memref<1x38x128xbf16, #tpu.memory_space<vmem>>, vector<1x24x128xbf16>
    %40 = vector.shape_cast %39 : vector<1x24x128xbf16> to vector<24x128xbf16>
    %41 = arith.extf %40 : vector<24x128xbf16> to vector<24x128xf32>
    %c5 = arith.constant 5 : index
    %c0_25 = arith.constant 0 : index
    %c0_26 = arith.constant 0 : index
    %42 = vector.load %arg3[%c5, %c0_25, %c0_26] : memref<9x1x128xf32, #tpu.memory_space<vmem>>, vector<1x1x128xf32>
    %43 = vector.shape_cast %42 : vector<1x1x128xf32> to vector<1x128xf32>
    %44 = vector.broadcast %43 : vector<1x128xf32> to vector<24x128xf32>
    %45 = arith.mulf %41, %44 : vector<24x128xf32>
    %46 = arith.addf %38, %45 : vector<24x128xf32>
    %c0_27 = arith.constant 0 : index
    %c12 = arith.constant 12 : index
    %c0_28 = arith.constant 0 : index
    %47 = vector.load %arg2[%c0_27, %c12, %c0_28] : memref<1x38x128xbf16, #tpu.memory_space<vmem>>, vector<1x24x128xbf16>
    %48 = vector.shape_cast %47 : vector<1x24x128xbf16> to vector<24x128xbf16>
    %49 = arith.extf %48 : vector<24x128xbf16> to vector<24x128xf32>
    %c6_29 = arith.constant 6 : index
    %c0_30 = arith.constant 0 : index
    %c0_31 = arith.constant 0 : index
    %50 = vector.load %arg3[%c6_29, %c0_30, %c0_31] : memref<9x1x128xf32, #tpu.memory_space<vmem>>, vector<1x1x128xf32>
    %51 = vector.shape_cast %50 : vector<1x1x128xf32> to vector<1x128xf32>
    %52 = vector.broadcast %51 : vector<1x128xf32> to vector<24x128xf32>
    %53 = arith.mulf %49, %52 : vector<24x128xf32>
    %54 = arith.addf %46, %53 : vector<24x128xf32>
    %c0_32 = arith.constant 0 : index
    %c13 = arith.constant 13 : index
    %c0_33 = arith.constant 0 : index
    %55 = vector.load %arg2[%c0_32, %c13, %c0_33] : memref<1x38x128xbf16, #tpu.memory_space<vmem>>, vector<1x24x128xbf16>
    %56 = vector.shape_cast %55 : vector<1x24x128xbf16> to vector<24x128xbf16>
    %57 = arith.extf %56 : vector<24x128xbf16> to vector<24x128xf32>
    %c7_34 = arith.constant 7 : index
    %c0_35 = arith.constant 0 : index
    %c0_36 = arith.constant 0 : index
    %58 = vector.load %arg3[%c7_34, %c0_35, %c0_36] : memref<9x1x128xf32, #tpu.memory_space<vmem>>, vector<1x1x128xf32>
    %59 = vector.shape_cast %58 : vector<1x1x128xf32> to vector<1x128xf32>
    %60 = vector.broadcast %59 : vector<1x128xf32> to vector<24x128xf32>
    %61 = arith.mulf %57, %60 : vector<24x128xf32>
    %62 = arith.addf %54, %61 : vector<24x128xf32>
    %c0_37 = arith.constant 0 : index
    %c14 = arith.constant 14 : index
    %c0_38 = arith.constant 0 : index
    %63 = vector.load %arg2[%c0_37, %c14, %c0_38] : memref<1x38x128xbf16, #tpu.memory_space<vmem>>, vector<1x24x128xbf16>
    %64 = vector.shape_cast %63 : vector<1x24x128xbf16> to vector<24x128xbf16>
    %65 = arith.extf %64 : vector<24x128xbf16> to vector<24x128xf32>
    %c8_39 = arith.constant 8 : index
    %c0_40 = arith.constant 0 : index
    %c0_41 = arith.constant 0 : index
    %66 = vector.load %arg3[%c8_39, %c0_40, %c0_41] : memref<9x1x128xf32, #tpu.memory_space<vmem>>, vector<1x1x128xf32>
    %67 = vector.shape_cast %66 : vector<1x1x128xf32> to vector<1x128xf32>
    %68 = vector.broadcast %67 : vector<1x128xf32> to vector<24x128xf32>
    %69 = arith.mulf %65, %68 : vector<24x128xf32>
    %70 = arith.addf %62, %69 : vector<24x128xf32>
    %c0_42 = arith.constant 0 : index
    %c0_43 = arith.constant 0 : index
    %71 = vector.load %arg4[%c0_42, %c0_43] : memref<1x128xf32, #tpu.memory_space<vmem>>, vector<1x128xf32>
    %72 = vector.broadcast %71 : vector<1x128xf32> to vector<24x128xf32>
    %73 = arith.addf %70, %72 : vector<24x128xf32>
    %74 = arith.negf %73 : vector<24x128xf32>
    %75 = math.exp %74 : vector<24x128xf32>
    %cst = arith.constant 1.000000e+00 : f32
    %76 = vector.broadcast %cst : f32 to vector<24x128xf32>
    %77 = arith.addf %76, %75 : vector<24x128xf32>
    %78 = arith.divf %76, %77 : vector<24x128xf32>
    %79 = arith.mulf %73, %78 : vector<24x128xf32>
    %80 = arith.truncf %79 : vector<24x128xf32> to vector<24x128xbf16>
    %c0_44 = arith.constant 0 : index
    %c0_45 = arith.constant 0 : index
    %c0_46 = arith.constant 0 : index
    %81 = vector.load %arg6[%c0_44, %c0_45, %c0_46] : memref<1x24x128xbf16, #tpu.memory_space<vmem>>, vector<1x24x128xbf16>
    %82 = vector.shape_cast %81 : vector<1x24x128xbf16> to vector<24x128xbf16>
    %83 = vector.shape_cast %80 : vector<24x128xbf16> to vector<1x24x128xbf16>
    tpu.vector_store %arg6[%c0_44, %c0_45, %c0_46], %83 {strides = array<i32>} : memref<1x24x128xbf16, #tpu.memory_space<vmem>>, vector<1x24x128xbf16>,
    %c0_47 = arith.constant 0 : index
    %c0_48 = arith.constant 0 : index
    %84 = vector.load %arg5[%c0_47, %c0_48] : memref<24x1xf32, #tpu.memory_space<vmem>>, vector<24x1xf32>
    %85 = vector.broadcast %84 : vector<24x1xf32> to vector<24x128xf32>
    %86 = arith.mulf %79, %85 : vector<24x128xf32>
    %cst_49 = arith.constant dense<0.000000e+00> : vector<128xf32>
    %87 = vector.multi_reduction <add>, %86, %cst_49 [0] : vector<24x128xf32> to vector<128xf32>
    %88 = vector.shape_cast %87 : vector<128xf32> to vector<1x128xf32>
    %c0_50 = arith.constant 0 : index
    %c0_51 = arith.constant 0 : index
    %c0_52 = arith.constant 0 : index
    %89 = vector.load %arg7[%c0_50, %c0_51, %c0_52] : memref<1x1x128xf32, #tpu.memory_space<vmem>>, vector<1x1x128xf32>
    %90 = vector.shape_cast %89 : vector<1x1x128xf32> to vector<1x128xf32>
    %91 = vector.shape_cast %88 : vector<1x128xf32> to vector<1x1x128xf32>
    tpu.vector_store %arg7[%c0_50, %c0_51, %c0_52], %91 {strides = array<i32>} : memref<1x1x128xf32, #tpu.memory_space<vmem>>, vector<1x1x128xf32>,
    return
  }
  func.func @transform_0(%arg0: i32, %arg1: i32) -> (i32, i32, i32) {
    %c0_i32 = arith.constant 0 : i32
    %c0_i32_0 = arith.constant 0 : i32
    return %arg0, %c0_i32, %arg1 : i32, i32, i32
  }
  func.func @transform_1(%arg0: i32, %arg1: i32) -> (i32, i32, i32) {
    %c0_i32 = arith.constant 0 : i32
    %c0_i32_0 = arith.constant 0 : i32
    %c0_i32_1 = arith.constant 0 : i32
    return %c0_i32, %c0_i32_0, %arg1 : i32, i32, i32
  }
  func.func @transform_2(%arg0: i32, %arg1: i32) -> (i32, i32) {
    %c0_i32 = arith.constant 0 : i32
    %c0_i32_0 = arith.constant 0 : i32
    return %c0_i32, %arg1 : i32, i32
  }
  func.func @transform_3(%arg0: i32, %arg1: i32) -> (i32, i32) {
    %c0_i32 = arith.constant 0 : i32
    %c0_i32_0 = arith.constant 0 : i32
    %c0_i32_1 = arith.constant 0 : i32
    return %c0_i32, %c0_i32_0 : i32, i32
  }
  func.func @transform_4(%arg0: i32, %arg1: i32) -> (i32, i32, i32) {
    %c0_i32 = arith.constant 0 : i32
    %c0_i32_0 = arith.constant 0 : i32
    return %arg0, %c0_i32, %arg1 : i32, i32, i32
  }
  func.func @transform_5(%arg0: i32, %arg1: i32) -> (i32, i32, i32) {
    %c0_i32 = arith.constant 0 : i32
    %c0_i32_0 = arith.constant 0 : i32
    return %arg0, %c0_i32, %arg1 : i32, i32, i32
  }
}

module attributes {stable_mosaic.version = 11 : i64} {
  func.func @_gated_mm_kernel(%arg0: i32, %arg1: i32, %arg2: i32, %arg3: i32, %arg4: memref<1x8x128xbf16, #tpu.memory_space<vmem>>, %arg5: memref<1x1x128xf32, #tpu.memory_space<vmem>>, %arg6: memref<128x128xbf16, #tpu.memory_space<vmem>>, %arg7: memref<1x128xf32, #tpu.memory_space<vmem>>, %arg8: memref<1x8x128xbf16, #tpu.memory_space<vmem>>, %arg9: memref<8x128xf32, #tpu.memory_space<vmem>>) attributes {dimension_semantics = [#tpu.dimension_semantics<parallel>, #tpu.dimension_semantics<parallel>, #tpu.dimension_semantics<parallel>, #tpu.dimension_semantics<arbitrary>], iteration_bounds = array<i64: 2, 1, 1, 1>, scalar_prefetch = 0 : i64, scratch_operands = 1 : i64, tpu.core_type = #tpu.core_type<tc>, window_params = [{transform_indices = @transform_0, window_bounds = array<i64: 1, 8, 128>}, {transform_indices = @transform_1, window_bounds = array<i64: 1, 1, 128>}, {transform_indices = @transform_2, window_bounds = array<i64: 128, 128>}, {transform_indices = @transform_3, window_bounds = array<i64: 1, 128>}, {transform_indices = @transform_4, window_bounds = array<i64: 1, 8, 128>}]} {
    %c0_i32 = arith.constant 0 : i32
    %0 = arith.cmpi eq, %arg3, %c0_i32 : i32
    %1 = arith.extui %0 : i1 to i32
    %c0_i32_0 = arith.constant 0 : i32
    %2 = arith.cmpi ne, %1, %c0_i32_0 : i32
    scf.if %2 {
      %cst_14 = arith.constant 0.000000e+00 : f32
      %19 = vector.broadcast %cst_14 : f32 to vector<8x128xf32>
      %c0_15 = arith.constant 0 : index
      %c0_16 = arith.constant 0 : index
      %20 = vector.load %arg9[%c0_15, %c0_16] : memref<8x128xf32, #tpu.memory_space<vmem>>, vector<8x128xf32>
      tpu.vector_store %arg9[%c0_15, %c0_16], %19 {strides = array<i32>} : memref<8x128xf32, #tpu.memory_space<vmem>>, vector<8x128xf32>,
    } else {
    }
    %c0 = arith.constant 0 : index
    %c0_1 = arith.constant 0 : index
    %c0_2 = arith.constant 0 : index
    %3 = vector.load %arg4[%c0, %c0_1, %c0_2] : memref<1x8x128xbf16, #tpu.memory_space<vmem>>, vector<1x8x128xbf16>
    %4 = vector.shape_cast %3 : vector<1x8x128xbf16> to vector<8x128xbf16>
    %5 = arith.extf %4 : vector<8x128xbf16> to vector<8x128xf32>
    %c0_3 = arith.constant 0 : index
    %c0_4 = arith.constant 0 : index
    %c0_5 = arith.constant 0 : index
    %6 = vector.load %arg5[%c0_3, %c0_4, %c0_5] : memref<1x1x128xf32, #tpu.memory_space<vmem>>, vector<1x1x128xf32>
    %7 = vector.shape_cast %6 : vector<1x1x128xf32> to vector<1x128xf32>
    %8 = vector.broadcast %7 : vector<1x128xf32> to vector<8x128xf32>
    %9 = arith.mulf %5, %8 : vector<8x128xf32>
    %10 = arith.truncf %9 : vector<8x128xf32> to vector<8x128xbf16>
    %c0_6 = arith.constant 0 : index
    %c0_7 = arith.constant 0 : index
    %11 = vector.load %arg9[%c0_6, %c0_7] : memref<8x128xf32, #tpu.memory_space<vmem>>, vector<8x128xf32>
    %c0_8 = arith.constant 0 : index
    %c0_9 = arith.constant 0 : index
    %12 = vector.load %arg6[%c0_8, %c0_9] : memref<128x128xbf16, #tpu.memory_space<vmem>>, vector<128x128xbf16>
    %cst = arith.constant dense<0.000000e+00> : vector<8x128xf32>
    %13 = tpu.matmul %10, %12, %cst {dimension_numbers = #tpu.dot_dimension_numbers<[1], [0], [0], [1], [0, 0, 1, 1], [], []>} : vector<8x128xbf16>, vector<128x128xbf16>, vector<8x128xf32> -> vector<8x128xf32>
    %14 = arith.addf %11, %13 : vector<8x128xf32>
    %c0_10 = arith.constant 0 : index
    %c0_11 = arith.constant 0 : index
    %15 = vector.load %arg9[%c0_10, %c0_11] : memref<8x128xf32, #tpu.memory_space<vmem>>, vector<8x128xf32>
    tpu.vector_store %arg9[%c0_10, %c0_11], %14 {strides = array<i32>} : memref<8x128xf32, #tpu.memory_space<vmem>>, vector<8x128xf32>,
    %c0_i32_12 = arith.constant 0 : i32
    %16 = arith.cmpi eq, %arg3, %c0_i32_12 : i32
    %17 = arith.extui %16 : i1 to i32
    %c0_i32_13 = arith.constant 0 : i32
    %18 = arith.cmpi ne, %17, %c0_i32_13 : i32
    scf.if %18 {
      %c0_14 = arith.constant 0 : index
      %c0_15 = arith.constant 0 : index
      %19 = vector.load %arg9[%c0_14, %c0_15] : memref<8x128xf32, #tpu.memory_space<vmem>>, vector<8x128xf32>
      %c0_16 = arith.constant 0 : index
      %c0_17 = arith.constant 0 : index
      %20 = vector.load %arg7[%c0_16, %c0_17] : memref<1x128xf32, #tpu.memory_space<vmem>>, vector<1x128xf32>
      %21 = vector.broadcast %20 : vector<1x128xf32> to vector<8x128xf32>
      %22 = arith.addf %19, %21 : vector<8x128xf32>
      %23 = arith.truncf %22 : vector<8x128xf32> to vector<8x128xbf16>
      %c0_18 = arith.constant 0 : index
      %c0_19 = arith.constant 0 : index
      %c0_20 = arith.constant 0 : index
      %24 = vector.load %arg8[%c0_18, %c0_19, %c0_20] : memref<1x8x128xbf16, #tpu.memory_space<vmem>>, vector<1x8x128xbf16>
      %25 = vector.shape_cast %24 : vector<1x8x128xbf16> to vector<8x128xbf16>
      %26 = vector.shape_cast %23 : vector<8x128xbf16> to vector<1x8x128xbf16>
      tpu.vector_store %arg8[%c0_18, %c0_19, %c0_20], %26 {strides = array<i32>} : memref<1x8x128xbf16, #tpu.memory_space<vmem>>, vector<1x8x128xbf16>,
    } else {
    }
    return
  }
  func.func @transform_0(%arg0: i32, %arg1: i32, %arg2: i32, %arg3: i32) -> (i32, i32, i32) {
    %c0_i32 = arith.constant 0 : i32
    return %arg0, %arg1, %arg3 : i32, i32, i32
  }
  func.func @transform_1(%arg0: i32, %arg1: i32, %arg2: i32, %arg3: i32) -> (i32, i32, i32) {
    %c0_i32 = arith.constant 0 : i32
    %c0_i32_0 = arith.constant 0 : i32
    return %arg0, %c0_i32, %arg3 : i32, i32, i32
  }
  func.func @transform_2(%arg0: i32, %arg1: i32, %arg2: i32, %arg3: i32) -> (i32, i32) {
    %c0_i32 = arith.constant 0 : i32
    return %arg3, %arg2 : i32, i32
  }
  func.func @transform_3(%arg0: i32, %arg1: i32, %arg2: i32, %arg3: i32) -> (i32, i32) {
    %c0_i32 = arith.constant 0 : i32
    %c0_i32_0 = arith.constant 0 : i32
    return %c0_i32, %arg2 : i32, i32
  }
  func.func @transform_4(%arg0: i32, %arg1: i32, %arg2: i32, %arg3: i32) -> (i32, i32, i32) {
    %c0_i32 = arith.constant 0 : i32
    return %arg0, %arg1, %arg2 : i32, i32, i32
  }
}

module attributes {stable_mosaic.version = 11 : i64} {
  func.func @_se_fc_kernel(%arg0: i32, %arg1: memref<2x128xf32, #tpu.memory_space<vmem>>, %arg2: memref<128x4xf32, #tpu.memory_space<vmem>>, %arg3: memref<1x4xf32, #tpu.memory_space<vmem>>, %arg4: memref<4x128xf32, #tpu.memory_space<vmem>>, %arg5: memref<1x128xf32, #tpu.memory_space<vmem>>, %arg6: memref<2x128xf32, #tpu.memory_space<vmem>>) attributes {dimension_semantics = [#tpu.dimension_semantics<arbitrary>], iteration_bounds = array<i64: 1>, scalar_prefetch = 0 : i64, scratch_operands = 0 : i64, tpu.core_type = #tpu.core_type<tc>, window_params = [{pipeline_mode = #tpu.pipeline_mode<synchronous>, transform_indices = @transform_0, window_bounds = array<i64: 2, 128>}, {pipeline_mode = #tpu.pipeline_mode<synchronous>, transform_indices = @transform_1, window_bounds = array<i64: 128, 4>}, {pipeline_mode = #tpu.pipeline_mode<synchronous>, transform_indices = @transform_2, window_bounds = array<i64: 1, 4>}, {pipeline_mode = #tpu.pipeline_mode<synchronous>, transform_indices = @transform_3, window_bounds = array<i64: 4, 128>}, {pipeline_mode = #tpu.pipeline_mode<synchronous>, transform_indices = @transform_4, window_bounds = array<i64: 1, 128>}, {pipeline_mode = #tpu.pipeline_mode<synchronous>, transform_indices = @transform_5, window_bounds = array<i64: 2, 128>}]} {
    %c0 = arith.constant 0 : index
    %c0_0 = arith.constant 0 : index
    %0 = vector.load %arg1[%c0, %c0_0] : memref<2x128xf32, #tpu.memory_space<vmem>>, vector<2x128xf32>
    %c0_1 = arith.constant 0 : index
    %c0_2 = arith.constant 0 : index
    %1 = vector.load %arg2[%c0_1, %c0_2] : memref<128x4xf32, #tpu.memory_space<vmem>>, vector<128x4xf32>
    %cst = arith.constant dense<0.000000e+00> : vector<2x4xf32>
    %2 = tpu.matmul %0, %1, %cst {dimension_numbers = #tpu.dot_dimension_numbers<[1], [0], [0], [1], [0, 0, 1, 1], [], []>} : vector<2x128xf32>, vector<128x4xf32>, vector<2x4xf32> -> vector<2x4xf32>
    %c0_3 = arith.constant 0 : index
    %c0_4 = arith.constant 0 : index
    %3 = vector.load %arg3[%c0_3, %c0_4] : memref<1x4xf32, #tpu.memory_space<vmem>>, vector<1x4xf32>
    %4 = vector.broadcast %3 : vector<1x4xf32> to vector<2x4xf32>
    %5 = arith.addf %2, %4 : vector<2x4xf32>
    %6 = arith.negf %5 : vector<2x4xf32>
    %7 = math.exp %6 : vector<2x4xf32>
    %cst_5 = arith.constant 1.000000e+00 : f32
    %8 = vector.broadcast %cst_5 : f32 to vector<2x4xf32>
    %9 = arith.addf %8, %7 : vector<2x4xf32>
    %10 = arith.divf %8, %9 : vector<2x4xf32>
    %11 = arith.mulf %5, %10 : vector<2x4xf32>
    %c0_6 = arith.constant 0 : index
    %c0_7 = arith.constant 0 : index
    %12 = vector.load %arg4[%c0_6, %c0_7] : memref<4x128xf32, #tpu.memory_space<vmem>>, vector<4x128xf32>
    %cst_8 = arith.constant dense<0.000000e+00> : vector<2x128xf32>
    %13 = tpu.matmul %11, %12, %cst_8 {dimension_numbers = #tpu.dot_dimension_numbers<[1], [0], [0], [1], [0, 0, 1, 1], [], []>} : vector<2x4xf32>, vector<4x128xf32>, vector<2x128xf32> -> vector<2x128xf32>
    %c0_9 = arith.constant 0 : index
    %c0_10 = arith.constant 0 : index
    %14 = vector.load %arg5[%c0_9, %c0_10] : memref<1x128xf32, #tpu.memory_space<vmem>>, vector<1x128xf32>
    %15 = vector.broadcast %14 : vector<1x128xf32> to vector<2x128xf32>
    %16 = arith.addf %13, %15 : vector<2x128xf32>
    %17 = arith.negf %16 : vector<2x128xf32>
    %18 = math.exp %17 : vector<2x128xf32>
    %cst_11 = arith.constant 1.000000e+00 : f32
    %19 = vector.broadcast %cst_11 : f32 to vector<2x128xf32>
    %20 = arith.addf %19, %18 : vector<2x128xf32>
    %21 = arith.divf %19, %20 : vector<2x128xf32>
    %c0_12 = arith.constant 0 : index
    %c0_13 = arith.constant 0 : index
    %22 = vector.load %arg6[%c0_12, %c0_13] : memref<2x128xf32, #tpu.memory_space<vmem>>, vector<2x128xf32>
    tpu.vector_store %arg6[%c0_12, %c0_13], %21 {strides = array<i32>} : memref<2x128xf32, #tpu.memory_space<vmem>>, vector<2x128xf32>,
    return
  }
  func.func @transform_0(%arg0: i32) -> (i32, i32) {
    %c0_i32 = arith.constant 0 : i32
    %c0_i32_0 = arith.constant 0 : i32
    %c0_i32_1 = arith.constant 0 : i32
    return %c0_i32, %c0_i32_0 : i32, i32
  }
  func.func @transform_1(%arg0: i32) -> (i32, i32) {
    %c0_i32 = arith.constant 0 : i32
    %c0_i32_0 = arith.constant 0 : i32
    %c0_i32_1 = arith.constant 0 : i32
    return %c0_i32, %c0_i32_0 : i32, i32
  }
  func.func @transform_2(%arg0: i32) -> (i32, i32) {
    %c0_i32 = arith.constant 0 : i32
    %c0_i32_0 = arith.constant 0 : i32
    %c0_i32_1 = arith.constant 0 : i32
    return %c0_i32, %c0_i32_0 : i32, i32
  }
  func.func @transform_3(%arg0: i32) -> (i32, i32) {
    %c0_i32 = arith.constant 0 : i32
    %c0_i32_0 = arith.constant 0 : i32
    %c0_i32_1 = arith.constant 0 : i32
    return %c0_i32, %c0_i32_0 : i32, i32
  }
  func.func @transform_4(%arg0: i32) -> (i32, i32) {
    %c0_i32 = arith.constant 0 : i32
    %c0_i32_0 = arith.constant 0 : i32
    %c0_i32_1 = arith.constant 0 : i32
    return %c0_i32, %c0_i32_0 : i32, i32
  }
  func.func @transform_5(%arg0: i32) -> (i32, i32) {
    %c0_i32 = arith.constant 0 : i32
    %c0_i32_0 = arith.constant 0 : i32
    %c0_i32_1 = arith.constant 0 : i32
    return %c0_i32, %c0_i32_0 : i32, i32
  }
}

module attributes {stable_mosaic.version = 11 : i64} {
  func.func @_mm_kernel(%arg0: i32, %arg1: i32, %arg2: i32, %arg3: memref<8x128xbf16, #tpu.memory_space<vmem>>, %arg4: memref<128x256xbf16, #tpu.memory_space<vmem>>, %arg5: memref<1x256xf32, #tpu.memory_space<vmem>>, %arg6: memref<8x256xbf16, #tpu.memory_space<vmem>>, %arg7: memref<8x256xf32, #tpu.memory_space<vmem>>) attributes {dimension_semantics = [#tpu.dimension_semantics<parallel>, #tpu.dimension_semantics<parallel>, #tpu.dimension_semantics<arbitrary>], iteration_bounds = array<i64: 1, 1, 1>, scalar_prefetch = 0 : i64, scratch_operands = 1 : i64, tpu.core_type = #tpu.core_type<tc>, window_params = [{transform_indices = @transform_0, window_bounds = array<i64: 8, 128>}, {transform_indices = @transform_1, window_bounds = array<i64: 128, 256>}, {transform_indices = @transform_2, window_bounds = array<i64: 1, 256>}, {transform_indices = @transform_3, window_bounds = array<i64: 8, 256>}]} {
    %c0_i32 = arith.constant 0 : i32
    %0 = arith.cmpi eq, %arg2, %c0_i32 : i32
    %1 = arith.extui %0 : i1 to i32
    %c0_i32_0 = arith.constant 0 : i32
    %2 = arith.cmpi ne, %1, %c0_i32_0 : i32
    scf.if %2 {
      %cst_10 = arith.constant 0.000000e+00 : f32
      %12 = vector.broadcast %cst_10 : f32 to vector<8x256xf32>
      %c0_11 = arith.constant 0 : index
      %c0_12 = arith.constant 0 : index
      %13 = vector.load %arg7[%c0_11, %c0_12] : memref<8x256xf32, #tpu.memory_space<vmem>>, vector<8x256xf32>
      tpu.vector_store %arg7[%c0_11, %c0_12], %12 {strides = array<i32>} : memref<8x256xf32, #tpu.memory_space<vmem>>, vector<8x256xf32>,
    } else {
    }
    %c0 = arith.constant 0 : index
    %c0_1 = arith.constant 0 : index
    %3 = vector.load %arg7[%c0, %c0_1] : memref<8x256xf32, #tpu.memory_space<vmem>>, vector<8x256xf32>
    %c0_2 = arith.constant 0 : index
    %c0_3 = arith.constant 0 : index
    %4 = vector.load %arg3[%c0_2, %c0_3] : memref<8x128xbf16, #tpu.memory_space<vmem>>, vector<8x128xbf16>
    %c0_4 = arith.constant 0 : index
    %c0_5 = arith.constant 0 : index
    %5 = vector.load %arg4[%c0_4, %c0_5] : memref<128x256xbf16, #tpu.memory_space<vmem>>, vector<128x256xbf16>
    %cst = arith.constant dense<0.000000e+00> : vector<8x256xf32>
    %6 = tpu.matmul %4, %5, %cst {dimension_numbers = #tpu.dot_dimension_numbers<[1], [0], [0], [1], [0, 0, 1, 1], [], []>} : vector<8x128xbf16>, vector<128x256xbf16>, vector<8x256xf32> -> vector<8x256xf32>
    %7 = arith.addf %3, %6 : vector<8x256xf32>
    %c0_6 = arith.constant 0 : index
    %c0_7 = arith.constant 0 : index
    %8 = vector.load %arg7[%c0_6, %c0_7] : memref<8x256xf32, #tpu.memory_space<vmem>>, vector<8x256xf32>
    tpu.vector_store %arg7[%c0_6, %c0_7], %7 {strides = array<i32>} : memref<8x256xf32, #tpu.memory_space<vmem>>, vector<8x256xf32>,
    %c0_i32_8 = arith.constant 0 : i32
    %9 = arith.cmpi eq, %arg2, %c0_i32_8 : i32
    %10 = arith.extui %9 : i1 to i32
    %c0_i32_9 = arith.constant 0 : i32
    %11 = arith.cmpi ne, %10, %c0_i32_9 : i32
    scf.if %11 {
      %c0_10 = arith.constant 0 : index
      %c0_11 = arith.constant 0 : index
      %12 = vector.load %arg7[%c0_10, %c0_11] : memref<8x256xf32, #tpu.memory_space<vmem>>, vector<8x256xf32>
      %c0_12 = arith.constant 0 : index
      %c0_13 = arith.constant 0 : index
      %13 = vector.load %arg5[%c0_12, %c0_13] : memref<1x256xf32, #tpu.memory_space<vmem>>, vector<1x256xf32>
      %14 = vector.broadcast %13 : vector<1x256xf32> to vector<8x256xf32>
      %15 = arith.addf %12, %14 : vector<8x256xf32>
      %16 = arith.negf %15 : vector<8x256xf32>
      %17 = math.exp %16 : vector<8x256xf32>
      %cst_14 = arith.constant 1.000000e+00 : f32
      %18 = vector.broadcast %cst_14 : f32 to vector<8x256xf32>
      %19 = arith.addf %18, %17 : vector<8x256xf32>
      %20 = arith.divf %18, %19 : vector<8x256xf32>
      %21 = arith.mulf %15, %20 : vector<8x256xf32>
      %22 = arith.truncf %21 : vector<8x256xf32> to vector<8x256xbf16>
      %c0_15 = arith.constant 0 : index
      %c0_16 = arith.constant 0 : index
      %23 = vector.load %arg6[%c0_15, %c0_16] : memref<8x256xbf16, #tpu.memory_space<vmem>>, vector<8x256xbf16>
      tpu.vector_store %arg6[%c0_15, %c0_16], %22 {strides = array<i32>} : memref<8x256xbf16, #tpu.memory_space<vmem>>, vector<8x256xbf16>,
    } else {
    }
    return
  }
  func.func @transform_0(%arg0: i32, %arg1: i32, %arg2: i32) -> (i32, i32) {
    %c0_i32 = arith.constant 0 : i32
    return %arg0, %arg2 : i32, i32
  }
  func.func @transform_1(%arg0: i32, %arg1: i32, %arg2: i32) -> (i32, i32) {
    %c0_i32 = arith.constant 0 : i32
    return %arg2, %arg1 : i32, i32
  }
  func.func @transform_2(%arg0: i32, %arg1: i32, %arg2: i32) -> (i32, i32) {
    %c0_i32 = arith.constant 0 : i32
    %c0_i32_0 = arith.constant 0 : i32
    return %c0_i32, %arg1 : i32, i32
  }
  func.func @transform_3(%arg0: i32, %arg1: i32, %arg2: i32) -> (i32, i32) {
    %c0_i32 = arith.constant 0 : i32
    return %arg0, %arg1 : i32, i32
  }
}

module attributes {stable_mosaic.version = 11 : i64} {
  func.func @_gated_mm_kernel(%arg0: i32, %arg1: i32, %arg2: i32, %arg3: i32, %arg4: memref<1x8x256xbf16, #tpu.memory_space<vmem>>, %arg5: memref<1x1x256xf32, #tpu.memory_space<vmem>>, %arg6: memref<256x128xbf16, #tpu.memory_space<vmem>>, %arg7: memref<1x128xf32, #tpu.memory_space<vmem>>, %arg8: memref<1x8x128xbf16, #tpu.memory_space<vmem>>, %arg9: memref<1x8x128xbf16, #tpu.memory_space<vmem>>, %arg10: memref<8x128xf32, #tpu.memory_space<vmem>>) attributes {dimension_semantics = [#tpu.dimension_semantics<parallel>, #tpu.dimension_semantics<parallel>, #tpu.dimension_semantics<parallel>, #tpu.dimension_semantics<arbitrary>], iteration_bounds = array<i64: 2, 1, 1, 1>, scalar_prefetch = 0 : i64, scratch_operands = 1 : i64, tpu.core_type = #tpu.core_type<tc>, window_params = [{transform_indices = @transform_0, window_bounds = array<i64: 1, 8, 256>}, {transform_indices = @transform_1, window_bounds = array<i64: 1, 1, 256>}, {transform_indices = @transform_2, window_bounds = array<i64: 256, 128>}, {transform_indices = @transform_3, window_bounds = array<i64: 1, 128>}, {transform_indices = @transform_4, window_bounds = array<i64: 1, 8, 128>}, {transform_indices = @transform_5, window_bounds = array<i64: 1, 8, 128>}]} {
    %c0_i32 = arith.constant 0 : i32
    %0 = arith.cmpi eq, %arg3, %c0_i32 : i32
    %1 = arith.extui %0 : i1 to i32
    %c0_i32_0 = arith.constant 0 : i32
    %2 = arith.cmpi ne, %1, %c0_i32_0 : i32
    scf.if %2 {
      %cst_14 = arith.constant 0.000000e+00 : f32
      %19 = vector.broadcast %cst_14 : f32 to vector<8x128xf32>
      %c0_15 = arith.constant 0 : index
      %c0_16 = arith.constant 0 : index
      %20 = vector.load %arg10[%c0_15, %c0_16] : memref<8x128xf32, #tpu.memory_space<vmem>>, vector<8x128xf32>
      tpu.vector_store %arg10[%c0_15, %c0_16], %19 {strides = array<i32>} : memref<8x128xf32, #tpu.memory_space<vmem>>, vector<8x128xf32>,
    } else {
    }
    %c0 = arith.constant 0 : index
    %c0_1 = arith.constant 0 : index
    %c0_2 = arith.constant 0 : index
    %3 = vector.load %arg4[%c0, %c0_1, %c0_2] : memref<1x8x256xbf16, #tpu.memory_space<vmem>>, vector<1x8x256xbf16>
    %4 = vector.shape_cast %3 : vector<1x8x256xbf16> to vector<8x256xbf16>
    %5 = arith.extf %4 : vector<8x256xbf16> to vector<8x256xf32>
    %c0_3 = arith.constant 0 : index
    %c0_4 = arith.constant 0 : index
    %c0_5 = arith.constant 0 : index
    %6 = vector.load %arg5[%c0_3, %c0_4, %c0_5] : memref<1x1x256xf32, #tpu.memory_space<vmem>>, vector<1x1x256xf32>
    %7 = vector.shape_cast %6 : vector<1x1x256xf32> to vector<1x256xf32>
    %8 = vector.broadcast %7 : vector<1x256xf32> to vector<8x256xf32>
    %9 = arith.mulf %5, %8 : vector<8x256xf32>
    %10 = arith.truncf %9 : vector<8x256xf32> to vector<8x256xbf16>
    %c0_6 = arith.constant 0 : index
    %c0_7 = arith.constant 0 : index
    %11 = vector.load %arg10[%c0_6, %c0_7] : memref<8x128xf32, #tpu.memory_space<vmem>>, vector<8x128xf32>
    %c0_8 = arith.constant 0 : index
    %c0_9 = arith.constant 0 : index
    %12 = vector.load %arg6[%c0_8, %c0_9] : memref<256x128xbf16, #tpu.memory_space<vmem>>, vector<256x128xbf16>
    %cst = arith.constant dense<0.000000e+00> : vector<8x128xf32>
    %13 = tpu.matmul %10, %12, %cst {dimension_numbers = #tpu.dot_dimension_numbers<[1], [0], [0], [1], [0, 0, 1, 1], [], []>} : vector<8x256xbf16>, vector<256x128xbf16>, vector<8x128xf32> -> vector<8x128xf32>
    %14 = arith.addf %11, %13 : vector<8x128xf32>
    %c0_10 = arith.constant 0 : index
    %c0_11 = arith.constant 0 : index
    %15 = vector.load %arg10[%c0_10, %c0_11] : memref<8x128xf32, #tpu.memory_space<vmem>>, vector<8x128xf32>
    tpu.vector_store %arg10[%c0_10, %c0_11], %14 {strides = array<i32>} : memref<8x128xf32, #tpu.memory_space<vmem>>, vector<8x128xf32>,
    %c0_i32_12 = arith.constant 0 : i32
    %16 = arith.cmpi eq, %arg3, %c0_i32_12 : i32
    %17 = arith.extui %16 : i1 to i32
    %c0_i32_13 = arith.constant 0 : i32
    %18 = arith.cmpi ne, %17, %c0_i32_13 : i32
    scf.if %18 {
      %c0_14 = arith.constant 0 : index
      %c0_15 = arith.constant 0 : index
      %19 = vector.load %arg10[%c0_14, %c0_15] : memref<8x128xf32, #tpu.memory_space<vmem>>, vector<8x128xf32>
      %c0_16 = arith.constant 0 : index
      %c0_17 = arith.constant 0 : index
      %20 = vector.load %arg7[%c0_16, %c0_17] : memref<1x128xf32, #tpu.memory_space<vmem>>, vector<1x128xf32>
      %21 = vector.broadcast %20 : vector<1x128xf32> to vector<8x128xf32>
      %22 = arith.addf %19, %21 : vector<8x128xf32>
      %c0_18 = arith.constant 0 : index
      %c0_19 = arith.constant 0 : index
      %c0_20 = arith.constant 0 : index
      %23 = vector.load %arg8[%c0_18, %c0_19, %c0_20] : memref<1x8x128xbf16, #tpu.memory_space<vmem>>, vector<1x8x128xbf16>
      %24 = vector.shape_cast %23 : vector<1x8x128xbf16> to vector<8x128xbf16>
      %25 = arith.extf %24 : vector<8x128xbf16> to vector<8x128xf32>
      %26 = arith.addf %22, %25 : vector<8x128xf32>
      %27 = arith.truncf %26 : vector<8x128xf32> to vector<8x128xbf16>
      %c0_21 = arith.constant 0 : index
      %c0_22 = arith.constant 0 : index
      %c0_23 = arith.constant 0 : index
      %28 = vector.load %arg9[%c0_21, %c0_22, %c0_23] : memref<1x8x128xbf16, #tpu.memory_space<vmem>>, vector<1x8x128xbf16>
      %29 = vector.shape_cast %28 : vector<1x8x128xbf16> to vector<8x128xbf16>
      %30 = vector.shape_cast %27 : vector<8x128xbf16> to vector<1x8x128xbf16>
      tpu.vector_store %arg9[%c0_21, %c0_22, %c0_23], %30 {strides = array<i32>} : memref<1x8x128xbf16, #tpu.memory_space<vmem>>, vector<1x8x128xbf16>,
    } else {
    }
    return
  }
  func.func @transform_0(%arg0: i32, %arg1: i32, %arg2: i32, %arg3: i32) -> (i32, i32, i32) {
    %c0_i32 = arith.constant 0 : i32
    return %arg0, %arg1, %arg3 : i32, i32, i32
  }
  func.func @transform_1(%arg0: i32, %arg1: i32, %arg2: i32, %arg3: i32) -> (i32, i32, i32) {
    %c0_i32 = arith.constant 0 : i32
    %c0_i32_0 = arith.constant 0 : i32
    return %arg0, %c0_i32, %arg3 : i32, i32, i32
  }
  func.func @transform_2(%arg0: i32, %arg1: i32, %arg2: i32, %arg3: i32) -> (i32, i32) {
    %c0_i32 = arith.constant 0 : i32
    return %arg3, %arg2 : i32, i32
  }
  func.func @transform_3(%arg0: i32, %arg1: i32, %arg2: i32, %arg3: i32) -> (i32, i32) {
    %c0_i32 = arith.constant 0 : i32
    %c0_i32_0 = arith.constant 0 : i32
    return %c0_i32, %arg2 : i32, i32
  }
  func.func @transform_4(%arg0: i32, %arg1: i32, %arg2: i32, %arg3: i32) -> (i32, i32, i32) {
    %c0_i32 = arith.constant 0 : i32
    return %arg0, %arg1, %arg2 : i32, i32, i32
  }
  func.func @transform_5(%arg0: i32, %arg1: i32, %arg2: i32, %arg3: i32) -> (i32, i32, i32) {
    %c0_i32 = arith.constant 0 : i32
    return %arg0, %arg1, %arg2 : i32, i32, i32
  }
}

module attributes {stable_mosaic.version = 11 : i64} {
  func.func @_dwtap_kernel(%arg0: i32, %arg1: i32, %arg2: memref<1x18x256xbf16, #tpu.memory_space<vmem>>, %arg3: memref<9x1x256xf32, #tpu.memory_space<vmem>>, %arg4: memref<1x256xf32, #tpu.memory_space<vmem>>, %arg5: memref<8x1xf32, #tpu.memory_space<vmem>>, %arg6: memref<1x8x256xbf16, #tpu.memory_space<vmem>>, %arg7: memref<1x1x256xf32, #tpu.memory_space<vmem>>) attributes {dimension_semantics = [#tpu.dimension_semantics<parallel>, #tpu.dimension_semantics<parallel>], iteration_bounds = array<i64: 2, 1>, scalar_prefetch = 0 : i64, scratch_operands = 0 : i64, tpu.core_type = #tpu.core_type<tc>, window_params = [{transform_indices = @transform_0, window_bounds = array<i64: 1, 18, 256>}, {transform_indices = @transform_1, window_bounds = array<i64: 9, 1, 256>}, {transform_indices = @transform_2, window_bounds = array<i64: 1, 256>}, {pipeline_mode = #tpu.pipeline_mode<synchronous>, transform_indices = @transform_3, window_bounds = array<i64: 8, 1>}, {transform_indices = @transform_4, window_bounds = array<i64: 1, 8, 256>}, {transform_indices = @transform_5, window_bounds = array<i64: 1, 1, 256>}]} {
    %c0 = arith.constant 0 : index
    %c0_0 = arith.constant 0 : index
    %c0_1 = arith.constant 0 : index
    %0 = vector.load %arg2[%c0, %c0_0, %c0_1] : memref<1x18x256xbf16, #tpu.memory_space<vmem>>, vector<1x8x256xbf16>
    %1 = vector.shape_cast %0 : vector<1x8x256xbf16> to vector<8x256xbf16>
    %2 = arith.extf %1 : vector<8x256xbf16> to vector<8x256xf32>
    %c0_2 = arith.constant 0 : index
    %c0_3 = arith.constant 0 : index
    %c0_4 = arith.constant 0 : index
    %3 = vector.load %arg3[%c0_2, %c0_3, %c0_4] : memref<9x1x256xf32, #tpu.memory_space<vmem>>, vector<1x1x256xf32>
    %4 = vector.shape_cast %3 : vector<1x1x256xf32> to vector<1x256xf32>
    %5 = vector.broadcast %4 : vector<1x256xf32> to vector<8x256xf32>
    %6 = arith.mulf %2, %5 : vector<8x256xf32>
    %c0_5 = arith.constant 0 : index
    %c1 = arith.constant 1 : index
    %c0_6 = arith.constant 0 : index
    %7 = vector.load %arg2[%c0_5, %c1, %c0_6] : memref<1x18x256xbf16, #tpu.memory_space<vmem>>, vector<1x8x256xbf16>
    %8 = vector.shape_cast %7 : vector<1x8x256xbf16> to vector<8x256xbf16>
    %9 = arith.extf %8 : vector<8x256xbf16> to vector<8x256xf32>
    %c1_7 = arith.constant 1 : index
    %c0_8 = arith.constant 0 : index
    %c0_9 = arith.constant 0 : index
    %10 = vector.load %arg3[%c1_7, %c0_8, %c0_9] : memref<9x1x256xf32, #tpu.memory_space<vmem>>, vector<1x1x256xf32>
    %11 = vector.shape_cast %10 : vector<1x1x256xf32> to vector<1x256xf32>
    %12 = vector.broadcast %11 : vector<1x256xf32> to vector<8x256xf32>
    %13 = arith.mulf %9, %12 : vector<8x256xf32>
    %14 = arith.addf %6, %13 : vector<8x256xf32>
    %c0_10 = arith.constant 0 : index
    %c2 = arith.constant 2 : index
    %c0_11 = arith.constant 0 : index
    %15 = vector.load %arg2[%c0_10, %c2, %c0_11] : memref<1x18x256xbf16, #tpu.memory_space<vmem>>, vector<1x8x256xbf16>
    %16 = vector.shape_cast %15 : vector<1x8x256xbf16> to vector<8x256xbf16>
    %17 = arith.extf %16 : vector<8x256xbf16> to vector<8x256xf32>
    %c2_12 = arith.constant 2 : index
    %c0_13 = arith.constant 0 : index
    %c0_14 = arith.constant 0 : index
    %18 = vector.load %arg3[%c2_12, %c0_13, %c0_14] : memref<9x1x256xf32, #tpu.memory_space<vmem>>, vector<1x1x256xf32>
    %19 = vector.shape_cast %18 : vector<1x1x256xf32> to vector<1x256xf32>
    %20 = vector.broadcast %19 : vector<1x256xf32> to vector<8x256xf32>
    %21 = arith.mulf %17, %20 : vector<8x256xf32>
    %22 = arith.addf %14, %21 : vector<8x256xf32>
    %c0_15 = arith.constant 0 : index
    %c4 = arith.constant 4 : index
    %c0_16 = arith.constant 0 : index
    %23 = vector.load %arg2[%c0_15, %c4, %c0_16] : memref<1x18x256xbf16, #tpu.memory_space<vmem>>, vector<1x8x256xbf16>
    %24 = vector.shape_cast %23 : vector<1x8x256xbf16> to vector<8x256xbf16>
    %25 = arith.extf %24 : vector<8x256xbf16> to vector<8x256xf32>
    %c3 = arith.constant 3 : index
    %c0_17 = arith.constant 0 : index
    %c0_18 = arith.constant 0 : index
    %26 = vector.load %arg3[%c3, %c0_17, %c0_18] : memref<9x1x256xf32, #tpu.memory_space<vmem>>, vector<1x1x256xf32>
    %27 = vector.shape_cast %26 : vector<1x1x256xf32> to vector<1x256xf32>
    %28 = vector.broadcast %27 : vector<1x256xf32> to vector<8x256xf32>
    %29 = arith.mulf %25, %28 : vector<8x256xf32>
    %30 = arith.addf %22, %29 : vector<8x256xf32>
    %c0_19 = arith.constant 0 : index
    %c5 = arith.constant 5 : index
    %c0_20 = arith.constant 0 : index
    %31 = vector.load %arg2[%c0_19, %c5, %c0_20] : memref<1x18x256xbf16, #tpu.memory_space<vmem>>, vector<1x8x256xbf16>
    %32 = vector.shape_cast %31 : vector<1x8x256xbf16> to vector<8x256xbf16>
    %33 = arith.extf %32 : vector<8x256xbf16> to vector<8x256xf32>
    %c4_21 = arith.constant 4 : index
    %c0_22 = arith.constant 0 : index
    %c0_23 = arith.constant 0 : index
    %34 = vector.load %arg3[%c4_21, %c0_22, %c0_23] : memref<9x1x256xf32, #tpu.memory_space<vmem>>, vector<1x1x256xf32>
    %35 = vector.shape_cast %34 : vector<1x1x256xf32> to vector<1x256xf32>
    %36 = vector.broadcast %35 : vector<1x256xf32> to vector<8x256xf32>
    %37 = arith.mulf %33, %36 : vector<8x256xf32>
    %38 = arith.addf %30, %37 : vector<8x256xf32>
    %c0_24 = arith.constant 0 : index
    %c6 = arith.constant 6 : index
    %c0_25 = arith.constant 0 : index
    %39 = vector.load %arg2[%c0_24, %c6, %c0_25] : memref<1x18x256xbf16, #tpu.memory_space<vmem>>, vector<1x8x256xbf16>
    %40 = vector.shape_cast %39 : vector<1x8x256xbf16> to vector<8x256xbf16>
    %41 = arith.extf %40 : vector<8x256xbf16> to vector<8x256xf32>
    %c5_26 = arith.constant 5 : index
    %c0_27 = arith.constant 0 : index
    %c0_28 = arith.constant 0 : index
    %42 = vector.load %arg3[%c5_26, %c0_27, %c0_28] : memref<9x1x256xf32, #tpu.memory_space<vmem>>, vector<1x1x256xf32>
    %43 = vector.shape_cast %42 : vector<1x1x256xf32> to vector<1x256xf32>
    %44 = vector.broadcast %43 : vector<1x256xf32> to vector<8x256xf32>
    %45 = arith.mulf %41, %44 : vector<8x256xf32>
    %46 = arith.addf %38, %45 : vector<8x256xf32>
    %c0_29 = arith.constant 0 : index
    %c8 = arith.constant 8 : index
    %c0_30 = arith.constant 0 : index
    %47 = vector.load %arg2[%c0_29, %c8, %c0_30] : memref<1x18x256xbf16, #tpu.memory_space<vmem>>, vector<1x8x256xbf16>
    %48 = vector.shape_cast %47 : vector<1x8x256xbf16> to vector<8x256xbf16>
    %49 = arith.extf %48 : vector<8x256xbf16> to vector<8x256xf32>
    %c6_31 = arith.constant 6 : index
    %c0_32 = arith.constant 0 : index
    %c0_33 = arith.constant 0 : index
    %50 = vector.load %arg3[%c6_31, %c0_32, %c0_33] : memref<9x1x256xf32, #tpu.memory_space<vmem>>, vector<1x1x256xf32>
    %51 = vector.shape_cast %50 : vector<1x1x256xf32> to vector<1x256xf32>
    %52 = vector.broadcast %51 : vector<1x256xf32> to vector<8x256xf32>
    %53 = arith.mulf %49, %52 : vector<8x256xf32>
    %54 = arith.addf %46, %53 : vector<8x256xf32>
    %c0_34 = arith.constant 0 : index
    %c9 = arith.constant 9 : index
    %c0_35 = arith.constant 0 : index
    %55 = vector.load %arg2[%c0_34, %c9, %c0_35] : memref<1x18x256xbf16, #tpu.memory_space<vmem>>, vector<1x8x256xbf16>
    %56 = vector.shape_cast %55 : vector<1x8x256xbf16> to vector<8x256xbf16>
    %57 = arith.extf %56 : vector<8x256xbf16> to vector<8x256xf32>
    %c7 = arith.constant 7 : index
    %c0_36 = arith.constant 0 : index
    %c0_37 = arith.constant 0 : index
    %58 = vector.load %arg3[%c7, %c0_36, %c0_37] : memref<9x1x256xf32, #tpu.memory_space<vmem>>, vector<1x1x256xf32>
    %59 = vector.shape_cast %58 : vector<1x1x256xf32> to vector<1x256xf32>
    %60 = vector.broadcast %59 : vector<1x256xf32> to vector<8x256xf32>
    %61 = arith.mulf %57, %60 : vector<8x256xf32>
    %62 = arith.addf %54, %61 : vector<8x256xf32>
    %c0_38 = arith.constant 0 : index
    %c10 = arith.constant 10 : index
    %c0_39 = arith.constant 0 : index
    %63 = vector.load %arg2[%c0_38, %c10, %c0_39] : memref<1x18x256xbf16, #tpu.memory_space<vmem>>, vector<1x8x256xbf16>
    %64 = vector.shape_cast %63 : vector<1x8x256xbf16> to vector<8x256xbf16>
    %65 = arith.extf %64 : vector<8x256xbf16> to vector<8x256xf32>
    %c8_40 = arith.constant 8 : index
    %c0_41 = arith.constant 0 : index
    %c0_42 = arith.constant 0 : index
    %66 = vector.load %arg3[%c8_40, %c0_41, %c0_42] : memref<9x1x256xf32, #tpu.memory_space<vmem>>, vector<1x1x256xf32>
    %67 = vector.shape_cast %66 : vector<1x1x256xf32> to vector<1x256xf32>
    %68 = vector.broadcast %67 : vector<1x256xf32> to vector<8x256xf32>
    %69 = arith.mulf %65, %68 : vector<8x256xf32>
    %70 = arith.addf %62, %69 : vector<8x256xf32>
    %c0_43 = arith.constant 0 : index
    %c0_44 = arith.constant 0 : index
    %71 = vector.load %arg4[%c0_43, %c0_44] : memref<1x256xf32, #tpu.memory_space<vmem>>, vector<1x256xf32>
    %72 = vector.broadcast %71 : vector<1x256xf32> to vector<8x256xf32>
    %73 = arith.addf %70, %72 : vector<8x256xf32>
    %74 = arith.negf %73 : vector<8x256xf32>
    %75 = math.exp %74 : vector<8x256xf32>
    %cst = arith.constant 1.000000e+00 : f32
    %76 = vector.broadcast %cst : f32 to vector<8x256xf32>
    %77 = arith.addf %76, %75 : vector<8x256xf32>
    %78 = arith.divf %76, %77 : vector<8x256xf32>
    %79 = arith.mulf %73, %78 : vector<8x256xf32>
    %80 = arith.truncf %79 : vector<8x256xf32> to vector<8x256xbf16>
    %c0_45 = arith.constant 0 : index
    %c0_46 = arith.constant 0 : index
    %c0_47 = arith.constant 0 : index
    %81 = vector.load %arg6[%c0_45, %c0_46, %c0_47] : memref<1x8x256xbf16, #tpu.memory_space<vmem>>, vector<1x8x256xbf16>
    %82 = vector.shape_cast %81 : vector<1x8x256xbf16> to vector<8x256xbf16>
    %83 = vector.shape_cast %80 : vector<8x256xbf16> to vector<1x8x256xbf16>
    tpu.vector_store %arg6[%c0_45, %c0_46, %c0_47], %83 {strides = array<i32>} : memref<1x8x256xbf16, #tpu.memory_space<vmem>>, vector<1x8x256xbf16>,
    %c0_48 = arith.constant 0 : index
    %c0_49 = arith.constant 0 : index
    %84 = vector.load %arg5[%c0_48, %c0_49] : memref<8x1xf32, #tpu.memory_space<vmem>>, vector<8x1xf32>
    %85 = vector.broadcast %84 : vector<8x1xf32> to vector<8x256xf32>
    %86 = arith.mulf %79, %85 : vector<8x256xf32>
    %cst_50 = arith.constant dense<0.000000e+00> : vector<256xf32>
    %87 = vector.multi_reduction <add>, %86, %cst_50 [0] : vector<8x256xf32> to vector<256xf32>
    %88 = vector.shape_cast %87 : vector<256xf32> to vector<1x256xf32>
    %c0_51 = arith.constant 0 : index
    %c0_52 = arith.constant 0 : index
    %c0_53 = arith.constant 0 : index
    %89 = vector.load %arg7[%c0_51, %c0_52, %c0_53] : memref<1x1x256xf32, #tpu.memory_space<vmem>>, vector<1x1x256xf32>
    %90 = vector.shape_cast %89 : vector<1x1x256xf32> to vector<1x256xf32>
    %91 = vector.shape_cast %88 : vector<1x256xf32> to vector<1x1x256xf32>
    tpu.vector_store %arg7[%c0_51, %c0_52, %c0_53], %91 {strides = array<i32>} : memref<1x1x256xf32, #tpu.memory_space<vmem>>, vector<1x1x256xf32>,
    return
  }
  func.func @transform_0(%arg0: i32, %arg1: i32) -> (i32, i32, i32) {
    %c0_i32 = arith.constant 0 : i32
    %c0_i32_0 = arith.constant 0 : i32
    return %arg0, %c0_i32, %arg1 : i32, i32, i32
  }
  func.func @transform_1(%arg0: i32, %arg1: i32) -> (i32, i32, i32) {
    %c0_i32 = arith.constant 0 : i32
    %c0_i32_0 = arith.constant 0 : i32
    %c0_i32_1 = arith.constant 0 : i32
    return %c0_i32, %c0_i32_0, %arg1 : i32, i32, i32
  }
  func.func @transform_2(%arg0: i32, %arg1: i32) -> (i32, i32) {
    %c0_i32 = arith.constant 0 : i32
    %c0_i32_0 = arith.constant 0 : i32
    return %c0_i32, %arg1 : i32, i32
  }
  func.func @transform_3(%arg0: i32, %arg1: i32) -> (i32, i32) {
    %c0_i32 = arith.constant 0 : i32
    %c0_i32_0 = arith.constant 0 : i32
    %c0_i32_1 = arith.constant 0 : i32
    return %c0_i32, %c0_i32_0 : i32, i32
  }
  func.func @transform_4(%arg0: i32, %arg1: i32) -> (i32, i32, i32) {
    %c0_i32 = arith.constant 0 : i32
    %c0_i32_0 = arith.constant 0 : i32
    return %arg0, %c0_i32, %arg1 : i32, i32, i32
  }
  func.func @transform_5(%arg0: i32, %arg1: i32) -> (i32, i32, i32) {
    %c0_i32 = arith.constant 0 : i32
    %c0_i32_0 = arith.constant 0 : i32
    return %arg0, %c0_i32, %arg1 : i32, i32, i32
  }
}

module attributes {stable_mosaic.version = 11 : i64} {
  func.func @_se_fc_kernel(%arg0: i32, %arg1: memref<2x256xf32, #tpu.memory_space<vmem>>, %arg2: memref<256x6xf32, #tpu.memory_space<vmem>>, %arg3: memref<1x6xf32, #tpu.memory_space<vmem>>, %arg4: memref<6x256xf32, #tpu.memory_space<vmem>>, %arg5: memref<1x256xf32, #tpu.memory_space<vmem>>, %arg6: memref<2x256xf32, #tpu.memory_space<vmem>>) attributes {dimension_semantics = [#tpu.dimension_semantics<arbitrary>], iteration_bounds = array<i64: 1>, scalar_prefetch = 0 : i64, scratch_operands = 0 : i64, tpu.core_type = #tpu.core_type<tc>, window_params = [{pipeline_mode = #tpu.pipeline_mode<synchronous>, transform_indices = @transform_0, window_bounds = array<i64: 2, 256>}, {pipeline_mode = #tpu.pipeline_mode<synchronous>, transform_indices = @transform_1, window_bounds = array<i64: 256, 6>}, {pipeline_mode = #tpu.pipeline_mode<synchronous>, transform_indices = @transform_2, window_bounds = array<i64: 1, 6>}, {pipeline_mode = #tpu.pipeline_mode<synchronous>, transform_indices = @transform_3, window_bounds = array<i64: 6, 256>}, {pipeline_mode = #tpu.pipeline_mode<synchronous>, transform_indices = @transform_4, window_bounds = array<i64: 1, 256>}, {pipeline_mode = #tpu.pipeline_mode<synchronous>, transform_indices = @transform_5, window_bounds = array<i64: 2, 256>}]} {
    %c0 = arith.constant 0 : index
    %c0_0 = arith.constant 0 : index
    %0 = vector.load %arg1[%c0, %c0_0] : memref<2x256xf32, #tpu.memory_space<vmem>>, vector<2x256xf32>
    %c0_1 = arith.constant 0 : index
    %c0_2 = arith.constant 0 : index
    %1 = vector.load %arg2[%c0_1, %c0_2] : memref<256x6xf32, #tpu.memory_space<vmem>>, vector<256x6xf32>
    %cst = arith.constant dense<0.000000e+00> : vector<2x6xf32>
    %2 = tpu.matmul %0, %1, %cst {dimension_numbers = #tpu.dot_dimension_numbers<[1], [0], [0], [1], [0, 0, 1, 1], [], []>} : vector<2x256xf32>, vector<256x6xf32>, vector<2x6xf32> -> vector<2x6xf32>
    %c0_3 = arith.constant 0 : index
    %c0_4 = arith.constant 0 : index
    %3 = vector.load %arg3[%c0_3, %c0_4] : memref<1x6xf32, #tpu.memory_space<vmem>>, vector<1x6xf32>
    %4 = vector.broadcast %3 : vector<1x6xf32> to vector<2x6xf32>
    %5 = arith.addf %2, %4 : vector<2x6xf32>
    %6 = arith.negf %5 : vector<2x6xf32>
    %7 = math.exp %6 : vector<2x6xf32>
    %cst_5 = arith.constant 1.000000e+00 : f32
    %8 = vector.broadcast %cst_5 : f32 to vector<2x6xf32>
    %9 = arith.addf %8, %7 : vector<2x6xf32>
    %10 = arith.divf %8, %9 : vector<2x6xf32>
    %11 = arith.mulf %5, %10 : vector<2x6xf32>
    %c0_6 = arith.constant 0 : index
    %c0_7 = arith.constant 0 : index
    %12 = vector.load %arg4[%c0_6, %c0_7] : memref<6x256xf32, #tpu.memory_space<vmem>>, vector<6x256xf32>
    %cst_8 = arith.constant dense<0.000000e+00> : vector<2x256xf32>
    %13 = tpu.matmul %11, %12, %cst_8 {dimension_numbers = #tpu.dot_dimension_numbers<[1], [0], [0], [1], [0, 0, 1, 1], [], []>} : vector<2x6xf32>, vector<6x256xf32>, vector<2x256xf32> -> vector<2x256xf32>
    %c0_9 = arith.constant 0 : index
    %c0_10 = arith.constant 0 : index
    %14 = vector.load %arg5[%c0_9, %c0_10] : memref<1x256xf32, #tpu.memory_space<vmem>>, vector<1x256xf32>
    %15 = vector.broadcast %14 : vector<1x256xf32> to vector<2x256xf32>
    %16 = arith.addf %13, %15 : vector<2x256xf32>
    %17 = arith.negf %16 : vector<2x256xf32>
    %18 = math.exp %17 : vector<2x256xf32>
    %cst_11 = arith.constant 1.000000e+00 : f32
    %19 = vector.broadcast %cst_11 : f32 to vector<2x256xf32>
    %20 = arith.addf %19, %18 : vector<2x256xf32>
    %21 = arith.divf %19, %20 : vector<2x256xf32>
    %c0_12 = arith.constant 0 : index
    %c0_13 = arith.constant 0 : index
    %22 = vector.load %arg6[%c0_12, %c0_13] : memref<2x256xf32, #tpu.memory_space<vmem>>, vector<2x256xf32>
    tpu.vector_store %arg6[%c0_12, %c0_13], %21 {strides = array<i32>} : memref<2x256xf32, #tpu.memory_space<vmem>>, vector<2x256xf32>,
    return
  }
  func.func @transform_0(%arg0: i32) -> (i32, i32) {
    %c0_i32 = arith.constant 0 : i32
    %c0_i32_0 = arith.constant 0 : i32
    %c0_i32_1 = arith.constant 0 : i32
    return %c0_i32, %c0_i32_0 : i32, i32
  }
  func.func @transform_1(%arg0: i32) -> (i32, i32) {
    %c0_i32 = arith.constant 0 : i32
    %c0_i32_0 = arith.constant 0 : i32
    %c0_i32_1 = arith.constant 0 : i32
    return %c0_i32, %c0_i32_0 : i32, i32
  }
  func.func @transform_2(%arg0: i32) -> (i32, i32) {
    %c0_i32 = arith.constant 0 : i32
    %c0_i32_0 = arith.constant 0 : i32
    %c0_i32_1 = arith.constant 0 : i32
    return %c0_i32, %c0_i32_0 : i32, i32
  }
  func.func @transform_3(%arg0: i32) -> (i32, i32) {
    %c0_i32 = arith.constant 0 : i32
    %c0_i32_0 = arith.constant 0 : i32
    %c0_i32_1 = arith.constant 0 : i32
    return %c0_i32, %c0_i32_0 : i32, i32
  }
  func.func @transform_4(%arg0: i32) -> (i32, i32) {
    %c0_i32 = arith.constant 0 : i32
    %c0_i32_0 = arith.constant 0 : i32
    %c0_i32_1 = arith.constant 0 : i32
    return %c0_i32, %c0_i32_0 : i32, i32
  }
  func.func @transform_5(%arg0: i32) -> (i32, i32) {
    %c0_i32 = arith.constant 0 : i32
    %c0_i32_0 = arith.constant 0 : i32
    %c0_i32_1 = arith.constant 0 : i32
    return %c0_i32, %c0_i32_0 : i32, i32
  }
}

module attributes {stable_mosaic.version = 11 : i64} {
  func.func @_mm_kernel(%arg0: i32, %arg1: i32, %arg2: i32, %arg3: memref<8x128xbf16, #tpu.memory_space<vmem>>, %arg4: memref<128x128xbf16, #tpu.memory_space<vmem>>, %arg5: memref<1x128xf32, #tpu.memory_space<vmem>>, %arg6: memref<8x128xbf16, #tpu.memory_space<vmem>>, %arg7: memref<8x128xf32, #tpu.memory_space<vmem>>) attributes {dimension_semantics = [#tpu.dimension_semantics<parallel>, #tpu.dimension_semantics<parallel>, #tpu.dimension_semantics<arbitrary>], iteration_bounds = array<i64: 1, 1, 1>, scalar_prefetch = 0 : i64, scratch_operands = 1 : i64, tpu.core_type = #tpu.core_type<tc>, window_params = [{transform_indices = @transform_0, window_bounds = array<i64: 8, 128>}, {transform_indices = @transform_1, window_bounds = array<i64: 128, 128>}, {transform_indices = @transform_2, window_bounds = array<i64: 1, 128>}, {transform_indices = @transform_3, window_bounds = array<i64: 8, 128>}]} {
    %c0_i32 = arith.constant 0 : i32
    %0 = arith.cmpi eq, %arg2, %c0_i32 : i32
    %1 = arith.extui %0 : i1 to i32
    %c0_i32_0 = arith.constant 0 : i32
    %2 = arith.cmpi ne, %1, %c0_i32_0 : i32
    scf.if %2 {
      %cst_10 = arith.constant 0.000000e+00 : f32
      %12 = vector.broadcast %cst_10 : f32 to vector<8x128xf32>
      %c0_11 = arith.constant 0 : index
      %c0_12 = arith.constant 0 : index
      %13 = vector.load %arg7[%c0_11, %c0_12] : memref<8x128xf32, #tpu.memory_space<vmem>>, vector<8x128xf32>
      tpu.vector_store %arg7[%c0_11, %c0_12], %12 {strides = array<i32>} : memref<8x128xf32, #tpu.memory_space<vmem>>, vector<8x128xf32>,
    } else {
    }
    %c0 = arith.constant 0 : index
    %c0_1 = arith.constant 0 : index
    %3 = vector.load %arg7[%c0, %c0_1] : memref<8x128xf32, #tpu.memory_space<vmem>>, vector<8x128xf32>
    %c0_2 = arith.constant 0 : index
    %c0_3 = arith.constant 0 : index
    %4 = vector.load %arg3[%c0_2, %c0_3] : memref<8x128xbf16, #tpu.memory_space<vmem>>, vector<8x128xbf16>
    %c0_4 = arith.constant 0 : index
    %c0_5 = arith.constant 0 : index
    %5 = vector.load %arg4[%c0_4, %c0_5] : memref<128x128xbf16, #tpu.memory_space<vmem>>, vector<128x128xbf16>
    %cst = arith.constant dense<0.000000e+00> : vector<8x128xf32>
    %6 = tpu.matmul %4, %5, %cst {dimension_numbers = #tpu.dot_dimension_numbers<[1], [0], [0], [1], [0, 0, 1, 1], [], []>} : vector<8x128xbf16>, vector<128x128xbf16>, vector<8x128xf32> -> vector<8x128xf32>
    %7 = arith.addf %3, %6 : vector<8x128xf32>
    %c0_6 = arith.constant 0 : index
    %c0_7 = arith.constant 0 : index
    %8 = vector.load %arg7[%c0_6, %c0_7] : memref<8x128xf32, #tpu.memory_space<vmem>>, vector<8x128xf32>
    tpu.vector_store %arg7[%c0_6, %c0_7], %7 {strides = array<i32>} : memref<8x128xf32, #tpu.memory_space<vmem>>, vector<8x128xf32>,
    %c0_i32_8 = arith.constant 0 : i32
    %9 = arith.cmpi eq, %arg2, %c0_i32_8 : i32
    %10 = arith.extui %9 : i1 to i32
    %c0_i32_9 = arith.constant 0 : i32
    %11 = arith.cmpi ne, %10, %c0_i32_9 : i32
    scf.if %11 {
      %c0_10 = arith.constant 0 : index
      %c0_11 = arith.constant 0 : index
      %12 = vector.load %arg7[%c0_10, %c0_11] : memref<8x128xf32, #tpu.memory_space<vmem>>, vector<8x128xf32>
      %c0_12 = arith.constant 0 : index
      %c0_13 = arith.constant 0 : index
      %13 = vector.load %arg5[%c0_12, %c0_13] : memref<1x128xf32, #tpu.memory_space<vmem>>, vector<1x128xf32>
      %14 = vector.broadcast %13 : vector<1x128xf32> to vector<8x128xf32>
      %15 = arith.addf %12, %14 : vector<8x128xf32>
      %16 = arith.negf %15 : vector<8x128xf32>
      %17 = math.exp %16 : vector<8x128xf32>
      %cst_14 = arith.constant 1.000000e+00 : f32
      %18 = vector.broadcast %cst_14 : f32 to vector<8x128xf32>
      %19 = arith.addf %18, %17 : vector<8x128xf32>
      %20 = arith.divf %18, %19 : vector<8x128xf32>
      %21 = arith.mulf %15, %20 : vector<8x128xf32>
      %22 = arith.truncf %21 : vector<8x128xf32> to vector<8x128xbf16>
      %c0_15 = arith.constant 0 : index
      %c0_16 = arith.constant 0 : index
      %23 = vector.load %arg6[%c0_15, %c0_16] : memref<8x128xbf16, #tpu.memory_space<vmem>>, vector<8x128xbf16>
      tpu.vector_store %arg6[%c0_15, %c0_16], %22 {strides = array<i32>} : memref<8x128xbf16, #tpu.memory_space<vmem>>, vector<8x128xbf16>,
    } else {
    }
    return
  }
  func.func @transform_0(%arg0: i32, %arg1: i32, %arg2: i32) -> (i32, i32) {
    %c0_i32 = arith.constant 0 : i32
    return %arg0, %arg2 : i32, i32
  }
  func.func @transform_1(%arg0: i32, %arg1: i32, %arg2: i32) -> (i32, i32) {
    %c0_i32 = arith.constant 0 : i32
    return %arg2, %arg1 : i32, i32
  }
  func.func @transform_2(%arg0: i32, %arg1: i32, %arg2: i32) -> (i32, i32) {
    %c0_i32 = arith.constant 0 : i32
    %c0_i32_0 = arith.constant 0 : i32
    return %c0_i32, %arg1 : i32, i32
  }
  func.func @transform_3(%arg0: i32, %arg1: i32, %arg2: i32) -> (i32, i32) {
    %c0_i32 = arith.constant 0 : i32
    return %arg0, %arg1 : i32, i32
  }
}

module attributes {stable_mosaic.version = 11 : i64} {
  func.func @_pool_fc_kernel(%arg0: i32, %arg1: memref<2x8x128xbf16, #tpu.memory_space<vmem>>, %arg2: memref<128x10xf32, #tpu.memory_space<vmem>>, %arg3: memref<1x10xf32, #tpu.memory_space<vmem>>, %arg4: memref<2x10xf32, #tpu.memory_space<vmem>>, %arg5: memref<2x128xf32, #tpu.memory_space<vmem>>) attributes {dimension_semantics = [#tpu.dimension_semantics<arbitrary>], iteration_bounds = array<i64: 1>, scalar_prefetch = 0 : i64, scratch_operands = 1 : i64, tpu.core_type = #tpu.core_type<tc>, window_params = [{transform_indices = @transform_0, window_bounds = array<i64: 2, 8, 128>}, {pipeline_mode = #tpu.pipeline_mode<synchronous>, transform_indices = @transform_1, window_bounds = array<i64: 128, 10>}, {pipeline_mode = #tpu.pipeline_mode<synchronous>, transform_indices = @transform_2, window_bounds = array<i64: 1, 10>}, {pipeline_mode = #tpu.pipeline_mode<synchronous>, transform_indices = @transform_3, window_bounds = array<i64: 2, 10>}]} {
    %c0_i32 = arith.constant 0 : i32
    %0 = arith.cmpi eq, %arg0, %c0_i32 : i32
    %1 = arith.extui %0 : i1 to i32
    %c0_i32_0 = arith.constant 0 : i32
    %2 = arith.cmpi ne, %1, %c0_i32_0 : i32
    scf.if %2 {
      %cst_9 = arith.constant 0.000000e+00 : f32
      %12 = vector.broadcast %cst_9 : f32 to vector<2x128xf32>
      %c0_10 = arith.constant 0 : index
      %c0_11 = arith.constant 0 : index
      %13 = vector.load %arg5[%c0_10, %c0_11] : memref<2x128xf32, #tpu.memory_space<vmem>>, vector<2x128xf32>
      tpu.vector_store %arg5[%c0_10, %c0_11], %12 {strides = array<i32>} : memref<2x128xf32, #tpu.memory_space<vmem>>, vector<2x128xf32>,
    } else {
    }
    %c0 = arith.constant 0 : index
    %c0_1 = arith.constant 0 : index
    %3 = vector.load %arg5[%c0, %c0_1] : memref<2x128xf32, #tpu.memory_space<vmem>>, vector<2x128xf32>
    %c0_2 = arith.constant 0 : index
    %c0_3 = arith.constant 0 : index
    %c0_4 = arith.constant 0 : index
    %4 = vector.load %arg1[%c0_2, %c0_3, %c0_4] : memref<2x8x128xbf16, #tpu.memory_space<vmem>>, vector<2x8x128xbf16>
    %5 = arith.extf %4 : vector<2x8x128xbf16> to vector<2x8x128xf32>
    %cst = arith.constant dense<0.000000e+00> : vector<2x128xf32>
    %6 = vector.multi_reduction <add>, %5, %cst [1] : vector<2x8x128xf32> to vector<2x128xf32>
    %7 = arith.addf %3, %6 : vector<2x128xf32>
    %c0_5 = arith.constant 0 : index
    %c0_6 = arith.constant 0 : index
    %8 = vector.load %arg5[%c0_5, %c0_6] : memref<2x128xf32, #tpu.memory_space<vmem>>, vector<2x128xf32>
    tpu.vector_store %arg5[%c0_5, %c0_6], %7 {strides = array<i32>} : memref<2x128xf32, #tpu.memory_space<vmem>>, vector<2x128xf32>,
    %c0_i32_7 = arith.constant 0 : i32
    %9 = arith.cmpi eq, %arg0, %c0_i32_7 : i32
    %10 = arith.extui %9 : i1 to i32
    %c0_i32_8 = arith.constant 0 : i32
    %11 = arith.cmpi ne, %10, %c0_i32_8 : i32
    scf.if %11 {
      %c0_9 = arith.constant 0 : index
      %c0_10 = arith.constant 0 : index
      %12 = vector.load %arg5[%c0_9, %c0_10] : memref<2x128xf32, #tpu.memory_space<vmem>>, vector<2x128xf32>
      %cst_11 = arith.constant 2.500000e-01 : f32
      %13 = vector.broadcast %cst_11 : f32 to vector<2x128xf32>
      %14 = arith.mulf %12, %13 : vector<2x128xf32>
      %c0_12 = arith.constant 0 : index
      %c0_13 = arith.constant 0 : index
      %15 = vector.load %arg2[%c0_12, %c0_13] : memref<128x10xf32, #tpu.memory_space<vmem>>, vector<128x10xf32>
      %cst_14 = arith.constant dense<0.000000e+00> : vector<2x10xf32>
      %16 = tpu.matmul %14, %15, %cst_14 {dimension_numbers = #tpu.dot_dimension_numbers<[1], [0], [0], [1], [0, 0, 1, 1], [], []>} : vector<2x128xf32>, vector<128x10xf32>, vector<2x10xf32> -> vector<2x10xf32>
      %c0_15 = arith.constant 0 : index
      %c0_16 = arith.constant 0 : index
      %17 = vector.load %arg3[%c0_15, %c0_16] : memref<1x10xf32, #tpu.memory_space<vmem>>, vector<1x10xf32>
      %18 = vector.broadcast %17 : vector<1x10xf32> to vector<2x10xf32>
      %19 = arith.addf %16, %18 : vector<2x10xf32>
      %c0_17 = arith.constant 0 : index
      %c0_18 = arith.constant 0 : index
      %20 = vector.load %arg4[%c0_17, %c0_18] : memref<2x10xf32, #tpu.memory_space<vmem>>, vector<2x10xf32>
      tpu.vector_store %arg4[%c0_17, %c0_18], %19 {strides = array<i32>} : memref<2x10xf32, #tpu.memory_space<vmem>>, vector<2x10xf32>,
    } else {
    }
    return
  }
  func.func @transform_0(%arg0: i32) -> (i32, i32, i32) {
    %c0_i32 = arith.constant 0 : i32
    %c0_i32_0 = arith.constant 0 : i32
    %c0_i32_1 = arith.constant 0 : i32
    return %c0_i32, %arg0, %c0_i32_0 : i32, i32, i32
  }
  func.func @transform_1(%arg0: i32) -> (i32, i32) {
    %c0_i32 = arith.constant 0 : i32
    %c0_i32_0 = arith.constant 0 : i32
    %c0_i32_1 = arith.constant 0 : i32
    return %c0_i32, %c0_i32_0 : i32, i32
  }
  func.func @transform_2(%arg0: i32) -> (i32, i32) {
    %c0_i32 = arith.constant 0 : i32
    %c0_i32_0 = arith.constant 0 : i32
    %c0_i32_1 = arith.constant 0 : i32
    return %c0_i32, %c0_i32_0 : i32, i32
  }
  func.func @transform_3(%arg0: i32) -> (i32, i32) {
    %c0_i32 = arith.constant 0 : i32
    %c0_i32_0 = arith.constant 0 : i32
    %c0_i32_1 = arith.constant 0 : i32
    return %c0_i32, %c0_i32_0 : i32, i32
  }
}

</mosaic_0001>

<bundles_post_ra>
// kernel: _lambda_.17
= control target key start
LH: loop header
LB: loop body
LE: loop exit
PB: predicated region body
PF: predicated region fallthrough
CT: control target
= control target key end

     0   :  { %s335_s1 = inlined_call_operand.vmem [shape: bf16[128,128], index: 1, kind: input, shape index: {}]   ;;  %s336_s0 = inlined_call_operand.vmem [shape: bf16[32,128], index: 0, kind: input, shape index: {}]   ;;  %s337_s2 = inlined_call_operand.vmem [shape: f32[1,128], index: 2, kind: input, shape index: {}]   ;;  %s338_s3 = inlined_call_operand.vmem [shape: bf16[32,128], index: 3, kind: output, shape index: {}]  }
   0x1   :  { %v266_v0 = vld [vmem:[%s335_s1] sm:$0xff]   ;;  %v267_v1 = vld [vmem:[%s335_s1 + $0x8] sm:$0xff]   ;;  %v268_v2 = vld [vmem:[%s335_s1 + $0x10] sm:$0xff]  }
   0x2   :  { %246 = vmatprep.subr.bf16.mxu0 %v266_v0  ;;  %v269_v3 = vld [vmem:[%s335_s1 + $0x18] sm:$0xff]   ;;  %v274_v4 = vld [vmem:[%s336_s0] sm:$0xff]   ;;  %v271_v6 = vld [vmem:[%s335_s1 + $0x28] sm:$0xff]  }
   0x3   :  { %247 = vmatpush3.bf16.msra.mxu0 %v266_v0  ;;  %262 = vmatprep.mubr.bf16.mxu0 %v274_v4  ;;  %v270_v5 = vld [vmem:[%s335_s1 + $0x20] sm:$0xff]   ;;  %v272_v7 = vld [vmem:[%s335_s1 + $0x30] sm:$0xff]   ;;  %v273_v8 = vld [vmem:[%s335_s1 + $0x38] sm:$0xff]  }
   0x4   :  { %248 = vmatprep.subr.bf16.mxu0 %v267_v1  ;;  %v275_v9 = vld [vmem:[%s336_s0 + $0x8] sm:$0xff]   ;;  %v216_v11 = vld [vmem:[%s337_s2] ss:$0 sm:$0xff] }
   0x7   :  { %249 = vmatpush3.bf16.msra.mxu0 %v267_v1 }
   0x8   :  { %250 = vmatprep.subr.bf16.mxu0 %v268_v2 }
   0xb   :  { %251 = vmatpush3.bf16.msra.mxu0 %v268_v2 }
   0xc   :  { %252 = vmatprep.subr.bf16.mxu0 %v269_v3 }
   0xf   :  { %253 = vmatpush3.bf16.msra.mxu0 %v269_v3 }
  0x10   :  { %254 = vmatprep.subr.bf16.mxu0 %v270_v5 }
  0x13   :  { %255 = vmatpush3.bf16.msra.mxu0 %v270_v5 }
  0x14   :  { %256 = vmatprep.subr.bf16.mxu0 %v271_v6 }
  0x17   :  { %257 = vmatpush3.bf16.msra.mxu0 %v271_v6 }
  0x18   :  { %258 = vmatprep.subr.bf16.mxu0 %v272_v7 }
  0x1b   :  { %259 = vmatpush3.bf16.msra.mxu0 %v272_v7 }
  0x1c   :  { %260 = vmatprep.subr.bf16.mxu0 %v273_v8 }
  0x1f   :  { %261 = vmatpush3.bf16.msra.mxu0 %v273_v8 }
  0x22   :  { %263 = vmatmul.mubr.bf16.vlgmr.msra.gmra.mrb[0].mxu0 %v275_v9 }
  0xf5   :  { %v264_v10 = vpop.f32.mrb[0].mxu0 }
  0xf6   :  { %v141_v12 = vpop.f32.mrb[1].mxu0  ;;  %v180_v14 = vadd.f32 %v264_v10, %v216_v11 }
  0xf7   :  { %v265_v13 = vpop.f32.mrb[2].mxu0  ;;  %v178_v17 = vadd.f32 %v216_v11, %v141_v12 }
  0xf8   :  { %v181_v15 = vadd.f32 %v265_v13, %v216_v11  ;;  %v144_v16 = vpop.f32.mrb[3].mxu0 }
  0xf9   :  { %v179_v18 = vadd.f32 %v216_v11, %v144_v16 }
  0xfa   :  { %v233_v19 = vpack.c.bf16 %v181_v15, %v180_v14 }
  0xfb   :  { %v228_v20 = vpack.c.bf16 %v179_v18, %v178_v17 }
  0xfc   :  { %235 = vst [vmem:[%s338_s3 + $0x8] sm:$0xff] %v233_v19  }
  0xfd   :  { %229 = vst [vmem:[%s338_s3] sm:$0xff] %v228_v20  }

// kernel: _lambda_.15
= control target key start
LH: loop header
LB: loop body
LE: loop exit
PB: predicated region body
PF: predicated region fallthrough
CT: control target
= control target key end

     0   :  { %s3265_s15 = smov 0   ;;  %s3267_s16 = smov 0   ;;  %s3942_s0 = inlined_call_operand.vmem [shape: bf16[2,102,128], index: 0, kind: input, shape index: {}]   ;;  %s3943_s1 = inlined_call_operand.vmem [shape: bf16[9,128,128], index: 1, kind: input, shape index: {}]   ;;  %s3944_s2 = inlined_call_operand.vmem [shape: f32[1,128], index: 2, kind: input, shape index: {}]   ;;  %s3945_s3 = inlined_call_operand.vmem [shape: bf16[2,80,128], index: 3, kind: input, shape index: {}]   ;;  %s3946_s4 = inlined_call_operand.vmem [shape: bf16[2,80,128], index: 4, kind: output, shape index: {}]  }
   0x1   :  { %s3269_s17 = smov 0  }
   0x2 LB: > { %s26_s18 = sadd.s32 1, %s3232_s16  ;;  %p2281_p0 = scmp.ge.s32.totalorder %s3236_s17, 1  ;;  %s3236_s17 = sphi %s3269_s17, %s14_s17   ;;  %s3232_s16 = sphi %s3267_s16, %s3948_s16   ;;  %s3228_s15 = sphi %s3265_s15, %s3947_s15  }
   0x3   : > { %p28_p1 = scmp.ge.s32.totalorder %s26_s18, 2  ;;  %p208_p2 = scmp.lt.s32.totalorder %s3236_s17, 3 }
   0x5   : > { %s3950_s18 = smov (%p28_p1, %s26_s18), 0  ;;  %p209_p3 = pnand %p2281_p0, %p208_p2 }
   0x6   : > { %v3079_v0 = vld [vmem:[%s3943_s1 + $0x40] sm:$0xff] (!%p209_p3)   ;;  %v3238_v1 = vmov (!%p209_p3), 0.0   ;;  %v3081_v3 = vld [vmem:[%s3943_s1 + $0x48] sm:$0xff] (!%p209_p3)   ;;  %vm3239_vm0 = vmmov (!%p209_p3), 0   ;;  %p252_p4 = scmp.lt.s32.totalorder (!%p209_p3), %s3228_s15, 1  ;;  %v3083_v5 = vld [vmem:[%s3943_s1 + $0x50] sm:$0xff] (!%p209_p3)  }
   0x7   : > { %212 = sbr.rel (%p209_p3) target bundleno = 466 (0x1d2), region = 36  ;;  %2711 = vmatprep.subr.bf16.mxu0 (!%p209_p3), %v3238_v1  ;;  %2747 = vmatprep.subr.bf16.mxu1 (!%p209_p3), %v3238_v1  ;;  %v3080_v2 = vld [vmem:[%s3943_s1] sm:$0xff] (!%p209_p3)   ;;  %v3082_v4 = vld [vmem:[%s3943_s1 + $0x8] sm:$0xff] (!%p209_p3)   ;;  %v3084_v6 = vld [vmem:[%s3943_s1 + $0x10] sm:$0xff] (!%p209_p3)   ;;  %vm353_vm1 = vsmask.f32 (!%p209_p3), 7424 }
   0x8   : > { %2712 = vmatpush3.bf16.msra.mxu0 (!%p209_p3), %v3079_v0  ;;  %2727 = vmatprep.mubr.msk.bf16.mxu0 (!%p209_p3), %vm3239_vm0, %v3238_v1  ;;  %v3085_v7 = vld [vmem:[%s3943_s1 + $0x58] sm:$0xff] (!%p209_p3)   ;;  %v3087_v9 = vld [vmem:[%s3943_s1 + $0x60] sm:$0xff] (!%p209_p3)   ;;  %v3089_v13 = vld [vmem:[%s3943_s1 + $0x68] sm:$0xff] (!%p209_p3)   ;;  %vm671_vm2 = vcmask (!%p209_p3), 1046528   ;;  %vm1043_vm3 = vsmask.f32 (!%p209_p3), 6400 }
   0x9   : > { %2748 = vmatpush3.bf16.msra.mxu1 (!%p209_p3), %v3080_v2  ;;  %2713 = vmatprep.subr.bf16.mxu0 (!%p209_p3), %v3238_v1  ;;  %v3086_v8 = vld [vmem:[%s3943_s1 + $0x18] sm:$0xff] (!%p209_p3)   ;;  %v3088_v10 = vld [vmem:[%s3943_s1 + $0x20] sm:$0xff] (!%p209_p3)   ;;  %v3090_v16 = vld [vmem:[%s3943_s1 + $0x28] sm:$0xff] (!%p209_p3)   ;;  %vm1254_vm4 = vcmask (!%p209_p3), 1045504   ;;  %vm1626_vm5 = vsmask.f32 (!%p209_p3), 5376 }
   0xa   : > { %2749 = vmatprep.subr.bf16.mxu1 (!%p209_p3), %v3238_v1  ;;  %2763 = vmatprep.mubr.msk.bf16.mxu1 (!%p209_p3), %vm3239_vm0, %v3238_v1  ;;  %v3091_v18 = vld [vmem:[%s3943_s1 + $0x70] sm:$0xff] (!%p209_p3)   ;;  %v3093_v23 = vld [vmem:[%s3943_s1 + $0x78] sm:$0xff] (!%p209_p3)   ;;  %v3097_v28 = vld [vmem:[%s3943_s1 + $0x80] sm:$0xff] (!%p209_p3)   ;;  %vm1837_vm6 = vcmask (!%p209_p3), 1044480  }
   0xb   : > { %v3092_v22 = vld [vmem:[%s3943_s1 + $0x30] sm:$0xff] (!%p209_p3)   ;;  %v3094_v24 = vld [vmem:[%s3943_s1 + $0x38] sm:$0xff] (!%p209_p3)   ;;  %v3100_v32 = vld [vmem:[%s3943_s1 + $0xc0] sm:$0xff] (!%p209_p3)  }
   0xc   : > { %2714 = vmatpush3.bf16.msra.mxu0 (!%p209_p3), %v3081_v3  ;;  %v3098_v34 = vld [vmem:[%s3943_s1 + $0x88] sm:$0xff] (!%p209_p3)   ;;  %v3101_v40 = vld [vmem:[%s3943_s1 + $0x90] sm:$0xff] (!%p209_p3)   ;;  %v3104_v44 = vld [vmem:[%s3943_s1 + $0x98] sm:$0xff] (!%p209_p3)  }
   0xd   : > { %2750 = vmatpush3.bf16.msra.mxu1 (!%p209_p3), %v3082_v4  ;;  %2715 = vmatprep.subr.bf16.mxu0 (!%p209_p3), %v3238_v1  ;;  %v3102_v37 = vld [vmem:[%s3943_s1 + $0xc8] sm:$0xff] (!%p209_p3)   ;;  %v3105_v42 = vld [vmem:[%s3943_s1 + $0xd0] sm:$0xff] (!%p209_p3)   ;;  %v3107_v47 = vld [vmem:[%s3943_s1 + $0xd8] sm:$0xff] (!%p209_p3)  }
   0xe   : > { %s3952_s15 = smov (!%p252_p4, %s3228_s15), 1  ;;  %2751 = vmatprep.subr.bf16.mxu1 %v3238_v1  ;;  %v3106_v48 = vld [vmem:[%s3943_s1 + $0xa0] sm:$0xff]   ;;  %v3110_v56 = vld [vmem:[%s3943_s1 + $0xa8] sm:$0xff]   ;;  %v3112_v61 = vld [vmem:[%s3943_s1 + $0xb0] sm:$0xff]  }
   0xf   : > { %s3051_s5 = smul.u32 52, %s3952_s15  ;;  %v3109_v52 = vld [vmem:[%s3943_s1 + $0xe0] sm:$0xff]   ;;  %v3111_v57 = vld [vmem:[%s3943_s1 + $0xe8] sm:$0xff]   ;;  %v3114_v62 = vld [vmem:[%s3943_s1 + $0xf0] sm:$0xff]  }
  0x10   : > { %2716 = vmatpush3.bf16.msra.mxu0 %v3083_v5  ;;  %v3115_v63 = vld [vmem:[%s3943_s1 + $0xb8] sm:$0xff]   ;;  %s3052_s20 = smul.u32 40, %s3952_s15 }
  0x11   : > { %2752 = vmatpush3.bf16.msra.mxu1 %v3084_v6  ;;  %2717 = vmatprep.subr.bf16.mxu0 %v3238_v1  ;;  %s3325_s12 = scalar_lea.vmem %s3942_s0, %s3051_s5  ;;  %v3116_v3 = vld [vmem:[%s3943_s1 + $0xf8] sm:$0xff]  }
  0x12   : > { %2753 = vmatprep.subr.bf16.mxu1 %v3238_v1  ;;  %v281_v11 = vld [vmem:[%s3325_s12] sm:$0xf]  ;;  %v3337_v12 = vld [vmem:[%s3325_s12 + $0x4] sm:$0xf]  ;;  %v3344_v15 = vld [vmem:[%s3325_s12 + $0x8] sm:$0xff]   ;;  %s3904_s23 = scalar_lea.vmem %s3945_s3, %s3052_s20  ;;  %s3917_s26 = scalar_lea.vmem %s3946_s4, %s3052_s20 }
  0x13   : > { %v2301_v14 = vcombine.low %v281_v11, %v3337_v12  ;;  %v362_v21 = vshll.u32 %v3344_v15, 16  ;;  %v3367_v27 = vld [vmem:[%s3325_s12 + $0x10] sm:$0xff]   ;;  %v366_v30 = vshrl.u32 %v3344_v15, 16  ;;  %v3383_v33 = vld [vmem:[%s3325_s12 + $0x18] sm:$0xff]   ;;  %v3412_v45 = vld [vmem:[%s3325_s12 + $0x20] sm:$0xff]  }
  0x14   : > { %2718 = vmatpush3.bf16.msra.mxu0 %v3085_v7  ;;  %v370_v31 = vshll.u32 %v3367_v27, 16  ;;  %v378_v38 = vshll.u32 %v3383_v33, 16  ;;  %v374_v41 = vshrl.u32 %v3367_v27, 16  ;;  %v382_v50 = vshrl.u32 %v3383_v33, 16  ;;  %v650_v4 = vld [vmem:[%s3325_s12] sm:$0xe] }
  0x15   : > { %2754 = vmatpush3.bf16.msra.mxu1 %v3086_v8  ;;  %2719 = vmatprep.subr.bf16.mxu0 %v3238_v1  ;;  %v357_v17 = vshll.u32 %v2301_v14, 16  ;;  %v355_v19 = vshrl.u32 %v2301_v14, 16  ;;  %v364_v26 = vrot.slane %v362_v21, 1  ;;  %v386_v51 = vshll.u32 %v3412_v45, 16  ;;  %v819_v5 = vld [vmem:[%s3325_s12 + $0x4] sm:$0xe] }
  0x16   : > { %2755 = vmatprep.subr.bf16.mxu1 %v3238_v1  ;;  %v372_v36 = vrot.slane %v370_v31, 1  ;;  %v380_v43 = vrot.slane %v378_v38, 1  ;;  %v3435_v53 = vld [vmem:[%s3325_s12 + $0x28] ss:$0 sps:$4 sm:$0x11]   ;;  %v390_v59 = vshrl.u32 %v3412_v45, 16  ;;  %v2339_v8 = vcombine.low %v650_v4, %v3337_v12 }
  0x17   : > { %v359_v20 = vrot.slane %v357_v17, 1  ;;  %v368_v35 = vor.u32 %v366_v30, %v364_v26  ;;  %v388_v55 = vrot.slane %v386_v51, 1  ;;  %v394_v60 = vshll.u32 %v3435_v53, 16  ;;  %v3477_v6 = vld [vmem:[%s3325_s12 + $0x8] sm:$0xf]  ;;  %v3120_v17 = vld [vmem:[%s3943_s1 + $0x100] sm:$0xff]  }
  0x18   : > { %2720 = vmatpush3.bf16.msra.mxu0 %v3087_v9  ;;  %v376_v46 = vor.u32 %v374_v41, %v372_v36  ;;  %v384_v54 = vor.u32 %v382_v50, %v380_v43  ;;  %v3483_v9 = vcombine.low %v819_v5, %v3477_v6  ;;  %v672_v11 = vrot.slane %v2339_v8, 1  ;;  %v3127_v30 = vld [vmem:[%s3943_s1 + $0x118] sm:$0xff]   ;;  %v3134_v41 = vld [vmem:[%s3943_s1 + $0x168] sm:$0xff]  }
  0x19   : > { %2756 = vmatpush3.bf16.msra.mxu1 %v3088_v10  ;;  %2721 = vmatprep.subr.bf16.mxu0 %v3238_v1  ;;  %v360_v25 = vor.u32 %v359_v20, %v355_v19  ;;  %v373_v39 = vsel %vm353_vm1, %v368_v35, %v372_v36  ;;  %v392_v0 = vor.u32 %v390_v59, %v388_v55  ;;  %v396_v2 = vrot.slane %v394_v60, 1  ;;  %v3486_v10 = vld [vmem:[%s3325_s12 + $0xc] sm:$0xff]   ;;  %v3504_v19 = vld [vmem:[%s3325_s12 + $0x14] sm:$0xff]   ;;  %v3557_v36 = vld [vmem:[%s3325_s12 + $0x24] sm:$0xff]  }
  0x1a   : > { %2757 = vmatprep.subr.bf16.mxu1 %v3238_v1  ;;  %v381_v49 = vsel %vm353_vm1, %v376_v46, %v380_v43  ;;  %v389_v58 = vsel %vm353_vm1, %v384_v54, %v388_v55  ;;  %v673_v12 = vrot.slane %v3344_v15, 1  ;;  %v3121_v20 = vld [vmem:[%s3943_s1 + $0x108] sm:$0xff]   ;;  %v675_v21 = vrot.slane %v3367_v27, 1  ;;  %v3137_v46 = vld [vmem:[%s3943_s1 + $0x170] sm:$0xff]   ;;  %v3139_v54 = vld [vmem:[%s3943_s1 + $0x178] sm:$0xff]  }
  0x1b   : > { %v365_v29 = vsel %vm353_vm1, %v360_v25, %v364_v26  ;;  %v397_v7 = vsel %vm353_vm1, %v392_v0, %v396_v2  ;;  %v3124_v25 = vld [vmem:[%s3943_s1 + $0x110] sm:$0xff]   ;;  %v679_v38 = vrot.slane %v3412_v45, 1  ;;  %v3136_v43 = vld [vmem:[%s3325_s12 + $0x2c] ss:$0 sps:$4 sm:$0x11]   ;;  %v1053_v50 = vshrl.u32 %v3486_v10, 16 }
  0x1c   : > { %2722 = vmatpush3.bf16.msra.mxu0 %v3089_v13  ;;  %v875_v13 = vrot.slane %v3483_v9, 1  ;;  %v1056_v51 = vshll.u32 %v3486_v10, 16  ;;  %v1233_v55 = vld [vmem:[%s3325_s12 + $0x4] sm:$0xc]  ;;  %v1062_v2 = vshrl.u32 %v3504_v19, 16  ;;  %v1256_v5 = vrot.slane %v3486_v10, 2 }
  0x1d   : > { %2758 = vmatpush3.bf16.msra.mxu1 %v3090_v16  ;;  %2723 = vmatprep.subr.bf16.mxu0 %v3238_v1  ;;  %v674_v16 = vsel %vm671_vm2, %v672_v11, %v673_v12  ;;  %v1055_v59 = vrot.slane %v1053_v50, 1 }
  0x1e   : > { %2759 = vmatprep.subr.bf16.mxu1 %v3238_v1  ;;  %v1058_v60 = vrot.slane %v1056_v51, 2  ;;  %v1064_v8 = vrot.slane %v1062_v2, 1  ;;  %v3702_v51 = vld [vmem:[%s3325_s12 + $0x10] sm:$0xff]  }
  0x20   : > { %2724 = vmatpush3.bf16.msra.mxu0 %v3091_v18  ;;  %v1059_v0 = vor.u32 %v1058_v60, %v1055_v59  ;;  %v1639_v59 = vshll.u32 %v3702_v51, 16  ;;  %v3157_v60 = vld [vmem:[%s3943_s1 + $0x1f8] sm:$0xff]  }
  0x21   : > { %2760 = vmatpush3.bf16.msra.mxu1 %v3092_v22  ;;  %2725 = vmatprep.subr.bf16.mxu0 %v3238_v1  ;;  %v878_v22 = vrot.slane %v3504_v19, 1 }
  0x22   : > { %2761 = vmatprep.subr.bf16.mxu1 %v3238_v1 }
  0x24   : > { %2726 = vmatpush3.bf16.msra.mxu0 %v3093_v23  ;;  %v3125_v23 = vld [vmem:[%s3943_s1 + $0x148] sm:$0xff]  }
  0x25   : > { %2762 = vmatpush3.bf16.msra.mxu1 %v3094_v24  ;;  %2783 = vmatprep.subr.bf16.mxu0 %v3238_v1  ;;  %v676_v24 = vsel %vm671_vm2, %v673_v12, %v675_v21  ;;  %v3143_v12 = vld [vmem:[%s3943_s1 + $0x1c0] sm:$0xff]  }
  0x26   : > { %2819 = vmatprep.subr.bf16.mxu1 %v3238_v1 }
  0x27   : > { %2728 = vmatmul.mubr.bf16.vlgmr.msra.gmra.mrb[0].mxu0 %v365_v29  ;;  %v677_v29 = vrot.slane %v3383_v33, 1 }
  0x28   : > { %2764 = vmatmul.mubr.bf16.vlgmr.msra.gmra.mrb[0].mxu1 %v2301_v14  ;;  %2784 = vmatpush3.bf16.msra.mxu0 %v3097_v28  ;;  %v876_v14 = vrot.slane %v3486_v10, 1  ;;  %v3128_v28 = vld [vmem:[%s3943_s1 + $0x150] sm:$0xff]   ;;  %v3142_v10 = vld [vmem:[%s3943_s1 + $0x188] sm:$0xff]  }
  0x29   : > { %2785 = vmatprep.subr.bf16.mxu0 %v3238_v1  ;;  %2731 = vmatprep.mubr.msk.bf16.mxu0 %vm3239_vm0, %v3238_v1 }
  0x2a   : > { %2767 = vmatprep.mubr.msk.bf16.mxu1 %vm3239_vm0, %v3238_v1  ;;  %2820 = vmatpush3.bf16.msra.mxu1 %v3100_v32  ;;  %v877_v18 = vsel %vm671_vm2, %v875_v13, %v876_v14  ;;  %v879_v26 = vsel %vm671_vm2, %v876_v14, %v878_v22  ;;  %v3130_v32 = vld [vmem:[%s3943_s1 + $0x158] sm:$0xff]  }
  0x2b   : > { %2821 = vmatprep.subr.bf16.mxu1 %v3238_v1 }
  0x2c   : > { %2786 = vmatpush3.bf16.msra.mxu0 %v3098_v34  ;;  %v3129_v34 = vld [vmem:[%s3943_s1 + $0x120] sm:$0xff]  }
  0x2d   : > { %2787 = vmatprep.subr.bf16.mxu0 %v3238_v1 }
  0x2e   : > { %2822 = vmatpush3.bf16.msra.mxu1 %v3102_v37  ;;  %v3132_v37 = vld [vmem:[%s3943_s1 + $0x160] sm:$0xff]  }
  0x2f   : > { %2732 = vmatmul.mubr.bf16.gmra.mrb[4].mxu0 %v373_v39  ;;  %2823 = vmatprep.subr.bf16.mxu1 %v3238_v1  ;;  %v3133_v39 = vld [vmem:[%s3943_s1 + $0x128] sm:$0xff]  }
  0x30   : > { %2768 = vmatmul.mubr.bf16.gmra.mrb[4].mxu1 %v3344_v15  ;;  %2788 = vmatpush3.bf16.msra.mxu0 %v3101_v40  ;;  %v3123_v15 = vld [vmem:[%s3943_s1 + $0x140] sm:$0xff]   ;;  %v882_v40 = vrot.slane %v3557_v36, 1 }
  0x31   : > { %2735 = vmatprep.mubr.msk.bf16.mxu0 %vm3239_vm0, %v3238_v1  ;;  %2771 = vmatprep.mubr.msk.bf16.mxu1 %vm3239_vm0, %v3238_v1 }
  0x32   : > { %2789 = vmatprep.subr.bf16.mxu0 %v3238_v1  ;;  %2824 = vmatpush3.bf16.msra.mxu1 %v3105_v42  ;;  %v680_v42 = vsel %vm671_vm2, %v677_v29, %v679_v38 }
  0x33   : > { %2825 = vmatprep.subr.bf16.mxu1 %v3238_v1 }
  0x34   : > { %2790 = vmatpush3.bf16.msra.mxu0 %v3104_v44 }
  0x35   : > { %2791 = vmatprep.subr.bf16.mxu0 %v3238_v1 }
  0x36   : > { %2826 = vmatpush3.bf16.msra.mxu1 %v3107_v47  ;;  %v681_v47 = vrot.slane %v3435_v53, 1  ;;  %v3138_v53 = vld [vmem:[%s3943_s1 + $0x138] sm:$0xff]  }
  0x37   : > { %2736 = vmatmul.mubr.bf16.gmra.mrb[8].mxu0 %v381_v49  ;;  %2827 = vmatprep.subr.bf16.mxu1 %v3238_v1  ;;  %v1048_v49 = vshll.u32 %v3483_v9, 16 }
  0x38   : > { %2772 = vmatmul.mubr.bf16.gmra.mrb[8].mxu1 %v3367_v27  ;;  %2792 = vmatpush3.bf16.msra.mxu0 %v3106_v48  ;;  %v3530_v27 = vld [vmem:[%s3325_s12 + $0x1c] sm:$0xff]   ;;  %v1045_v48 = vshrl.u32 %v3483_v9, 16 }
  0x39   : > { %2739 = vmatprep.mubr.msk.bf16.mxu0 %vm3239_vm0, %v3238_v1  ;;  %2775 = vmatprep.mubr.msk.bf16.mxu1 %vm3239_vm0, %v3238_v1  ;;  %v880_v31 = vrot.slane %v3530_v27, 1  ;;  %v1071_v14 = vshrl.u32 %v3530_v27, 16 }
  0x3a   : > { %2793 = vmatprep.subr.bf16.mxu0 %v3238_v1  ;;  %2828 = vmatpush3.bf16.msra.mxu1 %v3109_v52  ;;  %v884_v52 = vrot.slane %v3136_v43, 1  ;;  %v3152_v43 = vld [vmem:[%s3943_s1 + $0x1e8] sm:$0xff]  }
  0x3b   : > { %2829 = vmatprep.subr.bf16.mxu1 %v3238_v1  ;;  %v881_v35 = vsel %vm671_vm2, %v878_v22, %v880_v31  ;;  %v883_v44 = vsel %vm671_vm2, %v880_v31, %v882_v40 }
  0x3c   : > { %2794 = vmatpush3.bf16.msra.mxu0 %v3110_v56  ;;  %v682_v56 = vsel %vm671_vm2, %v679_v38, %v681_v47 }
  0x3d   : > { %2795 = vmatprep.subr.bf16.mxu0 %v3238_v1 }
  0x3e   : > { %2830 = vmatpush3.bf16.msra.mxu1 %v3111_v57  ;;  %v1047_v57 = vrot.slane %v1045_v48, 1 }
  0x3f   : > { %2740 = vmatmul.mubr.bf16.gmra.mrb[12].mxu0 %v389_v58  ;;  %2831 = vmatprep.subr.bf16.mxu1 %v3238_v1  ;;  %v1050_v58 = vrot.slane %v1048_v49, 2 }
  0x40   : > { %2776 = vmatmul.mubr.bf16.gmra.mrb[12].mxu1 %v3383_v33  ;;  %2743 = vmatprep.mubr.msk.bf16.mxu0 %vm3239_vm0, %v3238_v1  ;;  %v678_v33 = vsel %vm671_vm2, %v675_v21, %v677_v29  ;;  %v1073_v21 = vrot.slane %v1071_v14, 1  ;;  %v1260_v29 = vrot.slane %v3530_v27, 2 }
  0x41   : > { %2779 = vmatprep.mubr.msk.bf16.mxu1 %vm3239_vm0, %v3238_v1  ;;  %2796 = vmatpush3.bf16.msra.mxu0 %v3112_v61  ;;  %v885_v61 = vsel %vm671_vm2, %v882_v40, %v884_v52  ;;  %v3155_v52 = vld [vmem:[%s3943_s1 + $0x1f0] sm:$0xff]  }
  0x42   : > { %2832 = vmatpush3.bf16.msra.mxu1 %v3114_v62  ;;  %2797 = vmatprep.subr.bf16.mxu0 %v3238_v1  ;;  %v2419_v62 = vcombine.low %v1233_v55, %v3477_v6  ;;  %v3156_v55 = vld [vmem:[%s3943_s1 + $0x1b8] sm:$0xff]  }
  0x43   : > { %2833 = vmatprep.subr.bf16.mxu1 %v3238_v1 }
  0x44   : > { %v1255_v4 = vrot.slane %v2419_v62, 2 }
  0x45   : > { %2798 = vmatpush3.bf16.msra.mxu0 %v3115_v63  ;;  %v1051_v63 = vor.u32 %v1050_v58, %v1047_v57  ;;  %v1636_v58 = vshrl.u32 %v3702_v51, 16 }
  0x46   : > { %2834 = vmatpush3.bf16.msra.mxu1 %v3116_v3  ;;  %2855 = vmatprep.subr.bf16.mxu0 %v3238_v1  ;;  %v1065_v3 = vshll.u32 %v3504_v19, 16  ;;  %v1257_v11 = vsel %vm1254_vm4, %v1255_v4, %v1256_v5  ;;  %v3725_v4 = vld [vmem:[%s3325_s12 + $0x18] sm:$0xff]  }
  0x47   : > { %2744 = vmatmul.mubr.bf16.gmra.mrb[16].mxu0 %v397_v7  ;;  %2891 = vmatprep.subr.bf16.mxu1 %v3238_v1  ;;  %v1060_v6 = vsel %vm1043_vm3, %v1051_v63, %v1059_v0  ;;  %v3141_v7 = vld [vmem:[%s3943_s1 + $0x180] sm:$0xff]   ;;  %v1638_v2 = vrot.slane %v1636_v58, 2 }
  0x48   : > { %2780 = vmatmul.mubr.bf16.gmra.mrb[16].mxu1 %v3412_v45  ;;  %2799 = vmatprep.mubr.msk.bf16.mxu0 %vm3239_vm0, %v3238_v1  ;;  %v3135_v45 = vld [vmem:[%s3943_s1 + $0x130] sm:$0xff]   ;;  %v1067_v9 = vrot.slane %v1065_v3, 2  ;;  %v1641_v3 = vrot.slane %v1639_v59, 3 }
  0x49   : > { %2835 = vmatprep.mubr.msk.bf16.mxu1 %vm3239_vm0, %v3238_v1 }
  0x4a   : > { %v1068_v13 = vor.u32 %v1067_v9, %v1064_v8  ;;  %v1642_v8 = vor.u32 %v1641_v3, %v1638_v2  ;;  %v1645_v9 = vshrl.u32 %v3725_v4, 16 }
  0x4c   : > { %v1647_v14 = vrot.slane %v1645_v9, 2 }
  0x4f   : > { %2800 = vmatmul.mubr.bf16.vlgmr.msra.gmra.mrb[20].mxu0 %v674_v16  ;;  %v1074_v16 = vshll.u32 %v3530_v27, 16 }
  0x50   : > { %2836 = vmatmul.mubr.bf16.vlgmr.msra.gmra.mrb[20].mxu1 %v877_v18  ;;  %2856 = vmatpush3.bf16.msra.mxu0 %v3120_v17  ;;  %v1258_v17 = vrot.slane %v3504_v19, 2  ;;  %v3145_v18 = vld [vmem:[%s3943_s1 + $0x1c8] sm:$0xff]  }
  0x51   : > { %2857 = vmatprep.subr.bf16.mxu0 %v3238_v1  ;;  %2803 = vmatprep.mubr.msk.bf16.mxu0 %vm3239_vm0, %v3238_v1  ;;  %v1076_v22 = vrot.slane %v1074_v16, 2 }
  0x52   : > { %2839 = vmatprep.mubr.msk.bf16.mxu1 %vm3239_vm0, %v3238_v1  ;;  %2892 = vmatpush3.bf16.msra.mxu1 %v3123_v15  ;;  %v1069_v15 = vsel %vm1043_vm3, %v1059_v0, %v1068_v13  ;;  %v1259_v19 = vsel %vm1254_vm4, %v1256_v5, %v1258_v17  ;;  %v1261_v27 = vsel %vm1254_vm4, %v1258_v17, %v1260_v29  ;;  %v3742_v17 = vld [vmem:[%s3325_s12 + $0x20] sm:$0xff]  }
  0x53   : > { %2893 = vmatprep.subr.bf16.mxu1 %v3238_v1 }
  0x54   : > { %2858 = vmatpush3.bf16.msra.mxu0 %v3121_v20  ;;  %v3144_v20 = vld [vmem:[%s3943_s1 + $0x190] sm:$0xff]  }
  0x55   : > { %2859 = vmatprep.subr.bf16.mxu0 %v3238_v1 }
  0x56   : > { %2894 = vmatpush3.bf16.msra.mxu1 %v3125_v23  ;;  %v3147_v23 = vld [vmem:[%s3943_s1 + $0x1d0] sm:$0xff]  }
  0x57   : > { %2804 = vmatmul.mubr.bf16.gmra.mrb[24].mxu0 %v676_v24  ;;  %2895 = vmatprep.subr.bf16.mxu1 %v3238_v1  ;;  %v1077_v24 = vor.u32 %v1076_v22, %v1073_v21  ;;  %v1654_v21 = vshrl.u32 %v3742_v17, 16  ;;  %v1657_v22 = vshll.u32 %v3742_v17, 16 }
  0x58   : > { %2840 = vmatmul.mubr.bf16.gmra.mrb[24].mxu1 %v879_v26  ;;  %2860 = vmatpush3.bf16.msra.mxu0 %v3124_v25  ;;  %v3146_v25 = vld [vmem:[%s3943_s1 + $0x198] sm:$0xff]   ;;  %v1080_v26 = vshrl.u32 %v3557_v36, 16 }
  0x59   : > { %2807 = vmatprep.mubr.msk.bf16.mxu0 %vm3239_vm0, %v3238_v1  ;;  %2843 = vmatprep.mubr.msk.bf16.mxu1 %vm3239_vm0, %v3238_v1  ;;  %v1078_v31 = vsel %vm1043_vm3, %v1068_v13, %v1077_v24 }
  0x5a   : > { %2861 = vmatprep.subr.bf16.mxu0 %v3238_v1  ;;  %2896 = vmatpush3.bf16.msra.mxu1 %v3128_v28  ;;  %v1083_v28 = vshll.u32 %v3557_v36, 16 }
  0x5b   : > { %2897 = vmatprep.subr.bf16.mxu1 %v3238_v1 }
  0x5c   : > { %2862 = vmatpush3.bf16.msra.mxu0 %v3127_v30  ;;  %v3149_v30 = vld [vmem:[%s3943_s1 + $0x1d8] sm:$0xff]  }
  0x5d   : > { %2863 = vmatprep.subr.bf16.mxu0 %v3238_v1 }
  0x5e   : > { %2898 = vmatpush3.bf16.msra.mxu1 %v3130_v32  ;;  %v3148_v32 = vld [vmem:[%s3943_s1 + $0x1a0] sm:$0xff]  }
  0x5f   : > { %2808 = vmatmul.mubr.bf16.gmra.mrb[28].mxu0 %v678_v33  ;;  %2899 = vmatprep.subr.bf16.mxu1 %v3238_v1  ;;  %v1082_v33 = vrot.slane %v1080_v26, 1  ;;  %v1659_v26 = vrot.slane %v1657_v22, 3 }
  0x60   : > { %2844 = vmatmul.mubr.bf16.gmra.mrb[28].mxu1 %v881_v35  ;;  %2864 = vmatpush3.bf16.msra.mxu0 %v3129_v34  ;;  %v1085_v34 = vrot.slane %v1083_v28, 2  ;;  %v3154_v35 = vld [vmem:[%s3325_s12 + $0x2c] ss:$0 sps:$4 sm:$0x33]  }
  0x61   : > { %2811 = vmatprep.mubr.msk.bf16.mxu0 %vm3239_vm0, %v3238_v1  ;;  %2847 = vmatprep.mubr.msk.bf16.mxu1 %vm3239_vm0, %v3238_v1  ;;  %v1089_v40 = vshrl.u32 %v3154_v35, 16  ;;  %v3763_v28 = vld [vmem:[%s3325_s12 + $0x28] sm:$0xff]  }
  0x62   : > { %2865 = vmatprep.subr.bf16.mxu0 %v3238_v1  ;;  %2900 = vmatpush3.bf16.msra.mxu1 %v3132_v37  ;;  %v3150_v37 = vld [vmem:[%s3943_s1 + $0x1e0] sm:$0xff]   ;;  %v1086_v38 = vor.u32 %v1085_v34, %v1082_v33  ;;  %v1666_v33 = vshll.u32 %v3763_v28, 16 }
  0x63   : > { %2901 = vmatprep.subr.bf16.mxu1 %v3238_v1  ;;  %v1091_v47 = vrot.slane %v1089_v40, 1  ;;  %v1465_v40 = vrot.slane %v3763_v28, 2 }
  0x64   : > { %2866 = vmatpush3.bf16.msra.mxu0 %v3133_v39  ;;  %v3151_v39 = vld [vmem:[%s3943_s1 + $0x1a8] sm:$0xff]  }
  0x65   : > { %2867 = vmatprep.subr.bf16.mxu0 %v3238_v1 }
  0x66   : > { %2902 = vmatpush3.bf16.msra.mxu1 %v3134_v41  ;;  %v1092_v41 = vshll.u32 %v3154_v35, 16 }
  0x67   : > { %2812 = vmatmul.mubr.bf16.gmra.mrb[32].mxu0 %v680_v42  ;;  %2903 = vmatprep.subr.bf16.mxu1 %v3238_v1  ;;  %v1262_v42 = vrot.slane %v3557_v36, 2  ;;  %v3153_v36 = vld [vmem:[%s3943_s1 + $0x1b0] sm:$0xff]  }
  0x68   : > { %2848 = vmatmul.mubr.bf16.gmra.mrb[32].mxu1 %v883_v44  ;;  %2815 = vmatprep.mubr.msk.bf16.mxu0 %vm3239_vm0, %v3238_v1  ;;  %v1402_v44 = vld [vmem:[%s3325_s12 + $0x8] sm:$0xc]  ;;  %v1094_v48 = vrot.slane %v1092_v41, 2 }
  0x69   : > { %2851 = vmatprep.mubr.msk.bf16.mxu1 %vm3239_vm0, %v3238_v1  ;;  %2868 = vmatpush3.bf16.msra.mxu0 %v3135_v45  ;;  %v3691_v45 = vld [vmem:[%s3325_s12 + $0xc] sm:$0xf]  ;;  %v1263_v49 = vsel %vm1254_vm4, %v1260_v29, %v1262_v42  ;;  %v1463_v29 = vrot.slane %v3742_v17, 2 }
  0x6a   : > { %2904 = vmatpush3.bf16.msra.mxu1 %v3137_v46  ;;  %2869 = vmatprep.subr.bf16.mxu0 %v3238_v1  ;;  %v1087_v46 = vsel %vm1043_vm3, %v1077_v24, %v1086_v38  ;;  %v2444_v50 = vcombine.low %v1402_v44, %v3691_v45  ;;  %v3168_v41 = vld [vmem:[%s3943_s1 + $0x228] sm:$0xff]  }
  0x6b   : > { %2905 = vmatprep.subr.bf16.mxu1 %v3238_v1 }
  0x6c   : > { %v1631_v57 = vshll.u32 %v2444_v50, 16  ;;  %v1458_v5 = vrot.slane %v2444_v50, 2 }
  0x6d   : > { %2870 = vmatpush3.bf16.msra.mxu0 %v3138_v53  ;;  %v1095_v53 = vor.u32 %v1094_v48, %v1091_v47  ;;  %v3170_v47 = vld [vmem:[%s3325_s12 + $0x30] ss:$0 sps:$4 sm:$0x33]  }
  0x6e   : > { %2906 = vmatpush3.bf16.msra.mxu1 %v3139_v54  ;;  %2927 = vmatprep.subr.bf16.mxu0 %v3238_v1  ;;  %v1264_v54 = vrot.slane %v3154_v35, 2  ;;  %v1633_v0 = vrot.slane %v1631_v57, 3  ;;  %v3166_v35 = vld [vmem:[%s3943_s1 + $0x220] sm:$0xff]  }
  0x6f   : > { %2816 = vmatmul.mubr.bf16.gmra.mrb[36].mxu0 %v682_v56  ;;  %2963 = vmatprep.subr.bf16.mxu1 %v3238_v1  ;;  %v1628_v56 = vshrl.u32 %v2444_v50, 16 }
  0x70   : > { %2852 = vmatmul.mubr.bf16.gmra.mrb[36].mxu1 %v885_v61  ;;  %2871 = vmatprep.mubr.msk.bf16.mxu0 %vm3239_vm0, %v3238_v1  ;;  %v1096_v61 = vsel %vm1043_vm3, %v1086_v38, %v1095_v53  ;;  %v1265_v62 = vsel %vm1254_vm4, %v1262_v42, %v1264_v54  ;;  %v1668_v38 = vrot.slane %v1666_v33, 3  ;;  %v3172_v54 = vld [vmem:[%s3943_s1 + $0x238] sm:$0xff]  }
  0x71   : > { %2907 = vmatprep.mubr.msk.bf16.mxu1 %vm3239_vm0, %v3238_v1  ;;  %v1630_v63 = vrot.slane %v1628_v56, 2 }
  0x77   : > { %2872 = vmatmul.mubr.bf16.vlgmr.msra.gmra.mrb[40].mxu0 %v1060_v6  ;;  %v1459_v6 = vrot.slane %v3702_v51, 2 }
  0x78   : > { %2908 = vmatmul.mubr.bf16.vlgmr.msra.gmra.mrb[40].mxu1 %v1257_v11  ;;  %2928 = vmatpush3.bf16.msra.mxu0 %v3141_v7  ;;  %v1634_v7 = vor.u32 %v1633_v0, %v1630_v63  ;;  %v1648_v11 = vshll.u32 %v3725_v4, 16  ;;  %v1841_v0 = vrot.slane %v3725_v4, 3 }
  0x79   : > { %2929 = vmatprep.subr.bf16.mxu0 %v3238_v1  ;;  %2875 = vmatprep.mubr.msk.bf16.mxu0 %vm3239_vm0, %v3238_v1 }
  0x7a   : > { %2911 = vmatprep.mubr.msk.bf16.mxu1 %vm3239_vm0, %v3238_v1  ;;  %2964 = vmatpush3.bf16.msra.mxu1 %v3143_v12  ;;  %v1460_v12 = vsel %vm1254_vm4, %v1458_v5, %v1459_v6  ;;  %v1643_v13 = vsel %vm1626_vm5, %v1634_v7, %v1642_v8  ;;  %v1650_v16 = vrot.slane %v1648_v11, 3 }
  0x7b   : > { %2965 = vmatprep.subr.bf16.mxu1 %v3238_v1 }
  0x7c   : > { %2930 = vmatpush3.bf16.msra.mxu0 %v3142_v10  ;;  %v3160_v10 = vld [vmem:[%s3943_s1 + $0x200] sm:$0xff]  }
  0x7d   : > { %2931 = vmatprep.subr.bf16.mxu0 %v3238_v1 }
  0x7e   : > { %2966 = vmatpush3.bf16.msra.mxu1 %v3145_v18  ;;  %v3161_v18 = vld [vmem:[%s3943_s1 + $0x208] sm:$0xff]  }
  0x7f   : > { %2876 = vmatmul.mubr.bf16.gmra.mrb[44].mxu0 %v1069_v15  ;;  %2967 = vmatprep.subr.bf16.mxu1 %v3238_v1  ;;  %v1461_v15 = vrot.slane %v3725_v4, 2 }
  0x80   : > { %2912 = vmatmul.mubr.bf16.gmra.mrb[44].mxu1 %v1259_v19  ;;  %2932 = vmatpush3.bf16.msra.mxu0 %v3144_v20  ;;  %v1651_v20 = vor.u32 %v1650_v16, %v1647_v14 }
  0x81   : > { %2879 = vmatprep.mubr.msk.bf16.mxu0 %vm3239_vm0, %v3238_v1  ;;  %2915 = vmatprep.mubr.msk.bf16.mxu1 %vm3239_vm0, %v3238_v1  ;;  %v1462_v19 = vsel %vm1254_vm4, %v1459_v6, %v1461_v15  ;;  %v1464_v34 = vsel %vm1254_vm4, %v1461_v15, %v1463_v29 }
  0x82   : > { %2933 = vmatprep.subr.bf16.mxu0 %v3238_v1  ;;  %2968 = vmatpush3.bf16.msra.mxu1 %v3147_v23  ;;  %v3163_v23 = vld [vmem:[%s3943_s1 + $0x210] sm:$0xff]   ;;  %v1652_v24 = vsel %vm1626_vm5, %v1642_v8, %v1651_v20 }
  0x83   : > { %2969 = vmatprep.subr.bf16.mxu1 %v3238_v1 }
  0x84   : > { %2934 = vmatpush3.bf16.msra.mxu0 %v3146_v25  ;;  %v1656_v25 = vrot.slane %v1654_v21, 2 }
  0x85   : > { %2935 = vmatprep.subr.bf16.mxu0 %v3238_v1 }
  0x86   : > { %2970 = vmatpush3.bf16.msra.mxu1 %v3149_v30  ;;  %v3165_v30 = vld [vmem:[%s3943_s1 + $0x218] sm:$0xff]  }
  0x87   : > { %2880 = vmatmul.mubr.bf16.gmra.mrb[48].mxu0 %v1078_v31  ;;  %2971 = vmatprep.subr.bf16.mxu1 %v3238_v1  ;;  %v1660_v31 = vor.u32 %v1659_v26, %v1656_v25 }
  0x88   : > { %2916 = vmatmul.mubr.bf16.gmra.mrb[48].mxu1 %v1261_v27  ;;  %2936 = vmatpush3.bf16.msra.mxu0 %v3148_v32  ;;  %v1663_v32 = vshrl.u32 %v3763_v28, 16 }
  0x89   : > { %2883 = vmatprep.mubr.msk.bf16.mxu0 %vm3239_vm0, %v3238_v1  ;;  %2919 = vmatprep.mubr.msk.bf16.mxu1 %vm3239_vm0, %v3238_v1  ;;  %v1661_v27 = vsel %vm1626_vm5, %v1651_v20, %v1660_v31 }
  0x8a   : > { %2937 = vmatprep.subr.bf16.mxu0 %v3238_v1  ;;  %2972 = vmatpush3.bf16.msra.mxu1 %v3150_v37  ;;  %v1665_v37 = vrot.slane %v1663_v32, 2 }
  0x8b   : > { %2973 = vmatprep.subr.bf16.mxu1 %v3238_v1 }
  0x8c   : > { %2938 = vmatpush3.bf16.msra.mxu0 %v3151_v39  ;;  %v3785_v39 = vld [vmem:[%s3325_s12 + $0x30] ss:$0 sps:$4 sm:$0x77]   ;;  %v1669_v42 = vor.u32 %v1668_v38, %v1665_v37 }
  0x8d   : > { %2939 = vmatprep.subr.bf16.mxu0 %v3238_v1  ;;  %v1675_v44 = vshll.u32 %v3785_v39, 16 }
  0x8e   : > { %2974 = vmatpush3.bf16.msra.mxu1 %v3152_v43  ;;  %v1672_v43 = vshrl.u32 %v3785_v39, 16  ;;  %v1670_v48 = vsel %vm1626_vm5, %v1660_v31, %v1669_v42 }
  0x8f   : > { %2884 = vmatmul.mubr.bf16.gmra.mrb[52].mxu0 %v1087_v46  ;;  %2975 = vmatprep.subr.bf16.mxu1 %v3238_v1  ;;  %v1466_v46 = vsel %vm1254_vm4, %v1463_v29, %v1465_v40  ;;  %v1677_v50 = vrot.slane %v1675_v44, 3 }
  0x90   : > { %2920 = vmatmul.mubr.bf16.gmra.mrb[52].mxu1 %v1263_v49  ;;  %2887 = vmatprep.mubr.msk.bf16.mxu0 %vm3239_vm0, %v3238_v1  ;;  %v3169_v49 = vld [vmem:[%s3943_s1 + $0x230] sm:$0xff]  }
  0x91   : > { %2923 = vmatprep.mubr.msk.bf16.mxu1 %vm3239_vm0, %v3238_v1  ;;  %2940 = vmatpush3.bf16.msra.mxu0 %v3153_v36  ;;  %v1674_v36 = vrot.slane %v1672_v43, 2 }
  0x92   : > { %2976 = vmatpush3.bf16.msra.mxu1 %v3155_v52  ;;  %2941 = vmatprep.subr.bf16.mxu0 %v3238_v1  ;;  %v1467_v52 = vrot.slane %v3170_v47, 2 }
  0x93   : > { %2977 = vmatprep.subr.bf16.mxu1 %v3238_v1  ;;  %v1678_v53 = vor.u32 %v1677_v50, %v1674_v36 }
  0x94   : > { %v1468_v56 = vsel %vm1254_vm4, %v1465_v40, %v1467_v52 }
  0x95   : > { %2942 = vmatpush3.bf16.msra.mxu0 %v3156_v55  ;;  %v1816_v55 = vld [vmem:[%s3325_s12 + $0x8] sm:$0x8]  ;;  %v1679_v58 = vsel %vm1626_vm5, %v1669_v42, %v1678_v53 }
  0x96   : > { %2978 = vmatpush3.bf16.msra.mxu1 %v3157_v60  ;;  %2999 = vmatprep.subr.bf16.mxu0 %v3238_v1  ;;  %v2499_v57 = vcombine.low %v1816_v55, %v3691_v45  ;;  %v1839_v60 = vrot.slane %v3702_v51, 3  ;;  %v1845_v45 = vrot.slane %v3763_v28, 3  ;;  %v1847_v51 = vrot.slane %v3785_v39, 3 }
  0x97   : > { %2888 = vmatmul.mubr.bf16.gmra.mrb[56].mxu0 %v1096_v61  ;;  %3035 = vmatprep.subr.bf16.mxu1 %v3238_v1  ;;  %v1843_v61 = vrot.slane %v3742_v17, 3 }
  0x98   : > { %2924 = vmatmul.mubr.bf16.gmra.mrb[56].mxu1 %v1265_v62  ;;  %2943 = vmatprep.mubr.msk.bf16.mxu0 %vm3239_vm0, %v3238_v1  ;;  %v1838_v59 = vrot.slane %v2499_v57, 3  ;;  %v1842_v2 = vsel %vm1837_vm6, %v1839_v60, %v1841_v0  ;;  %v1848_v3 = vsel %vm1837_vm6, %v1845_v45, %v1847_v51 }
  0x99   : > { %2979 = vmatprep.mubr.msk.bf16.mxu1 %vm3239_vm0, %v3238_v1  ;;  %v1846_v63 = vsel %vm1837_vm6, %v1843_v61, %v1845_v45  ;;  %v1844_v5 = vsel %vm1837_vm6, %v1841_v0, %v1843_v61 }
  0x9a   : > { %v1840_v62 = vsel %vm1837_vm6, %v1838_v59, %v1839_v60 }
  0x9f   : > { %2944 = vmatmul.mubr.bf16.vlgmr.msra.gmra.mrb[60].mxu0 %v1460_v12 }
  0xa0   : > { %2980 = vmatmul.mubr.bf16.vlgmr.msra.gmra.mrb[60].mxu1 %v1643_v13  ;;  %3000 = vmatpush3.bf16.msra.mxu0 %v3160_v10 }
  0xa1   : > { %3001 = vmatprep.subr.bf16.mxu0 %v3238_v1  ;;  %2947 = vmatprep.mubr.msk.bf16.mxu0 %vm3239_vm0, %v3238_v1 }
  0xa2   : > { %2983 = vmatprep.mubr.msk.bf16.mxu1 %vm3239_vm0, %v3238_v1  ;;  %3043 = vmatpush3.bf16.msra.mxu1 %v3160_v10 }
  0xa3   : > { %3036 = vmatprep.subr.bf16.mxu1 %v3238_v1 }
  0xa4   : > { %3002 = vmatpush3.bf16.msra.mxu0 %v3161_v18 }
  0xa5   : > { %3003 = vmatprep.subr.bf16.mxu0 %v3238_v1 }
  0xa6   : > { %3044 = vmatpush3.bf16.msra.mxu1 %v3161_v18 }
  0xa7   : > { %2948 = vmatmul.mubr.bf16.gmra.mrb[64].mxu0 %v1462_v19  ;;  %3037 = vmatprep.subr.bf16.mxu1 %v3238_v1 }
  0xa8   : > { %2984 = vmatmul.mubr.bf16.gmra.mrb[64].mxu1 %v1652_v24  ;;  %3004 = vmatpush3.bf16.msra.mxu0 %v3163_v23 }
  0xa9   : > { %2951 = vmatprep.mubr.msk.bf16.mxu0 %vm3239_vm0, %v3238_v1  ;;  %2987 = vmatprep.mubr.msk.bf16.mxu1 %vm3239_vm0, %v3238_v1 }
  0xaa   : > { %3005 = vmatprep.subr.bf16.mxu0 %v3238_v1  ;;  %3045 = vmatpush3.bf16.msra.mxu1 %v3163_v23 }
  0xab   : > { %3038 = vmatprep.subr.bf16.mxu1 %v3238_v1 }
  0xac   : > { %3006 = vmatpush3.bf16.msra.mxu0 %v3165_v30 }
  0xad   : > { %3007 = vmatprep.subr.bf16.mxu0 %v3238_v1 }
  0xae   : > { %3046 = vmatpush3.bf16.msra.mxu1 %v3165_v30 }
  0xaf   : > { %2952 = vmatmul.mubr.bf16.gmra.mrb[68].mxu0 %v1464_v34  ;;  %3039 = vmatprep.subr.bf16.mxu1 %v3238_v1 }
  0xb0   : > { %2988 = vmatmul.mubr.bf16.gmra.mrb[68].mxu1 %v1661_v27  ;;  %3008 = vmatpush3.bf16.msra.mxu0 %v3166_v35 }
  0xb1   : > { %2955 = vmatprep.mubr.msk.bf16.mxu0 %vm3239_vm0, %v3238_v1  ;;  %2991 = vmatprep.mubr.msk.bf16.mxu1 %vm3239_vm0, %v3238_v1 }
  0xb2   : > { %3047 = vmatpush3.bf16.msra.mxu1 %v3166_v35  ;;  %3009 = vmatprep.subr.bf16.mxu0 %v3238_v1 }
  0xb3   : > { %3040 = vmatprep.subr.bf16.mxu1 %v3238_v1 }
  0xb4   : > { %3010 = vmatpush3.bf16.msra.mxu0 %v3168_v41 }
  0xb5   : > { %3011 = vmatprep.subr.bf16.mxu0 %v3238_v1 }
  0xb6   : > { %3048 = vmatpush3.bf16.msra.mxu1 %v3168_v41 }
  0xb7   : > { %2956 = vmatmul.mubr.bf16.gmra.mrb[72].mxu0 %v1466_v46  ;;  %3041 = vmatprep.subr.bf16.mxu1 %v3238_v1 }
  0xb8   : > { %2992 = vmatmul.mubr.bf16.gmra.mrb[72].mxu1 %v1670_v48  ;;  %2959 = vmatprep.mubr.msk.bf16.mxu0 %vm3239_vm0, %v3238_v1 }
  0xb9   : > { %2995 = vmatprep.mubr.msk.bf16.mxu1 %vm3239_vm0, %v3238_v1  ;;  %3012 = vmatpush3.bf16.msra.mxu0 %v3169_v49 }
  0xba   : > { %3049 = vmatpush3.bf16.msra.mxu1 %v3169_v49  ;;  %3013 = vmatprep.subr.bf16.mxu0 %v3238_v1 }
  0xbb   : > { %3042 = vmatprep.subr.bf16.mxu1 %v3238_v1 }
  0xbd   : > { %3014 = vmatpush3.bf16.msra.mxu0 %v3172_v54 }
  0xbe   : > { %3050 = vmatpush3.bf16.msra.mxu1 %v3172_v54 }
  0xbf   : > { %2960 = vmatmul.mubr.bf16.gmra.mrb[76].mxu0 %v1468_v56 }
  0xc0   : > { %2996 = vmatmul.mubr.bf16.gmra.mrb[76].mxu1 %v1679_v58  ;;  %3015 = vmatprep.mubr.msk.bf16.mxu0 %vm3239_vm0, %v3238_v1 }
  0xc1   : > { %3027 = vmatprep.mubr.msk.bf16.mxu1 %vm3239_vm0, %v3238_v1 }
  0xc7   : > { %3016 = vmatmul.mubr.bf16.vlgmr.msra.gmra.mrb[80].mxu0 %v1840_v62 }
  0xc8   : > { %3028 = vmatmul.mubr.bf16.vlgmr.msra.gmra.mrb[80].mxu1 %v1846_v63  ;;  %3019 = vmatprep.mubr.msk.bf16.mxu0 %vm3239_vm0, %v3238_v1 }
  0xc9   : > { %3031 = vmatprep.mubr.msk.bf16.mxu1 %vm3239_vm0, %v3238_v1 }
  0xcf   : > { %3020 = vmatmul.mubr.bf16.gmra.mrb[84].mxu0 %v1842_v2 }
  0xd0   : > { %3032 = vmatmul.mubr.bf16.gmra.mrb[84].mxu1 %v1848_v3  ;;  %3023 = vmatprep.mubr.msk.bf16.mxu0 %vm3239_vm0, %v3238_v1 }
  0xd7   : > { %3024 = vmatmul.mubr.bf16.gmra.mrb[88].mxu0 %v1844_v5 }
  0xfa   : > { %v485_v6 = vpop.f32.mrb[0].mxu0 }
  0xfb   : > { %v611_v7 = vpop.f32.mrb[0].mxu1  ;;  %v2729_v4 = vpop.f32.mrb[1].mxu0 }
  0xfc   : > { %v612_v8 = vadd.f32 %v611_v7, %v485_v6  ;;  %v2765_v9 = vpop.f32.mrb[1].mxu1  ;;  %v488_v11 = vpop.f32.mrb[2].mxu0 }
  0xfd   : > { %v614_v12 = vpop.f32.mrb[2].mxu1  ;;  %v2730_v10 = vpop.f32.mrb[3].mxu0 }
  0xfe   : > { %v615_v13 = vadd.f32 %v614_v12, %v488_v11  ;;  %v2766_v14 = vpop.f32.mrb[3].mxu1 }
 0x102   : > { %v493_v16 = vpop.f32.mrb[4].mxu0 }
 0x103   : > { %v619_v17 = vpop.f32.mrb[4].mxu1  ;;  %v2733_v18 = vpop.f32.mrb[5].mxu0 }
 0x104   : > { %v620_v15 = vadd.f32 %v619_v17, %v493_v16  ;;  %v2769_v20 = vpop.f32.mrb[5].mxu1  ;;  %v496_v21 = vpop.f32.mrb[6].mxu0 }
 0x105   : > { %v622_v1 = vpop.f32.mrb[6].mxu1  ;;  %v2734_v22 = vpop.f32.mrb[7].mxu0 }
 0x106   : > { %v623_v19 = vadd.f32 %v622_v1, %v496_v21  ;;  %v2770_v23 = vpop.f32.mrb[7].mxu1 }
 0x10a   : > { %v501_v24 = vpop.f32.mrb[8].mxu0 }
 0x10b   : > { %v627_v25 = vpop.f32.mrb[8].mxu1  ;;  %v2737_v26 = vpop.f32.mrb[9].mxu0 }
 0x10c   : > { %v628_v28 = vadd.f32 %v627_v25, %v501_v24  ;;  %v2773_v29 = vpop.f32.mrb[9].mxu1  ;;  %v504_v30 = vpop.f32.mrb[10].mxu0 }
 0x10d   : > { %v630_v31 = vpop.f32.mrb[10].mxu1  ;;  %v2738_v32 = vpop.f32.mrb[11].mxu0 }
 0x10e   : > { %v631_v33 = vadd.f32 %v630_v31, %v504_v30  ;;  %v2774_v34 = vpop.f32.mrb[11].mxu1 }
 0x112   : > { %v509_v35 = vpop.f32.mrb[12].mxu0 }
 0x113   : > { %v635_v27 = vpop.f32.mrb[12].mxu1  ;;  %v2741_v37 = vpop.f32.mrb[13].mxu0 }
 0x114   : > { %v636_v38 = vadd.f32 %v635_v27, %v509_v35  ;;  %v2777_v39 = vpop.f32.mrb[13].mxu1  ;;  %v512_v40 = vpop.f32.mrb[14].mxu0 }
 0x115   : > { %v638_v41 = vpop.f32.mrb[14].mxu1  ;;  %v2742_v42 = vpop.f32.mrb[15].mxu0 }
 0x116   : > { %v639_v43 = vadd.f32 %v638_v41, %v512_v40  ;;  %v2778_v44 = vpop.f32.mrb[15].mxu1 }
 0x11a   : > { %v517_v46 = vpop.f32.mrb[16].mxu0 }
 0x11b   : > { %v643_v47 = vpop.f32.mrb[16].mxu1  ;;  %v2745_v48 = vpop.f32.mrb[17].mxu0 }
 0x11c   : > { %v644_v49 = vadd.f32 %v643_v47, %v517_v46  ;;  %v2781_v36 = vpop.f32.mrb[17].mxu1  ;;  %v520_v50 = vpop.f32.mrb[18].mxu0 }
 0x11d   : > { %v646_v52 = vpop.f32.mrb[18].mxu1  ;;  %v2746_v53 = vpop.f32.mrb[19].mxu0 }
 0x11e   : > { %v647_v54 = vadd.f32 %v646_v52, %v520_v50  ;;  %v2782_v55 = vpop.f32.mrb[19].mxu1 }
 0x122   : > { %v770_v56 = vpop.f32.mrb[20].mxu0 }
 0x123   : > { %v809_v57 = vadd.f32 %v770_v56, %v612_v8  ;;  %v2801_v58 = vpop.f32.mrb[21].mxu0  ;;  %v973_v59 = vpop.f32.mrb[20].mxu1 }
 0x124   : > { %v773_v60 = vpop.f32.mrb[22].mxu0  ;;  %v2837_v61 = vpop.f32.mrb[21].mxu1 }
 0x125   : > { %v810_v45 = vadd.f32 %v773_v60, %v615_v13  ;;  %v1012_v62 = vadd.f32 %v973_v59, %v809_v57  ;;  %v2802_v63 = vpop.f32.mrb[23].mxu0  ;;  %v976_v0 = vpop.f32.mrb[22].mxu1 }
 0x126   : > { %v2838_v51 = vpop.f32.mrb[23].mxu1 }
 0x127   : > { %v1013_v2 = vadd.f32 %v976_v0, %v810_v45 }
 0x12a   : > { %v778_v3 = vpop.f32.mrb[24].mxu0 }
 0x12b   : > { %v811_v5 = vadd.f32 %v778_v3, %v620_v15  ;;  %v2805_v6 = vpop.f32.mrb[25].mxu0  ;;  %v981_v7 = vpop.f32.mrb[24].mxu1 }
 0x12c   : > { %v781_v4 = vpop.f32.mrb[26].mxu0  ;;  %v2841_v9 = vpop.f32.mrb[25].mxu1 }
 0x12d   : > { %v812_v11 = vadd.f32 %v781_v4, %v623_v19  ;;  %v1014_v12 = vadd.f32 %v981_v7, %v811_v5  ;;  %v2806_v10 = vpop.f32.mrb[27].mxu0  ;;  %v984_v8 = vpop.f32.mrb[26].mxu1 }
 0x12e   : > { %v2842_v14 = vpop.f32.mrb[27].mxu1 }
 0x12f   : > { %v1015_v16 = vadd.f32 %v984_v8, %v812_v11 }
 0x132   : > { %v786_v17 = vpop.f32.mrb[28].mxu0 }
 0x133   : > { %v813_v18 = vadd.f32 %v786_v17, %v628_v28  ;;  %v2809_v13 = vpop.f32.mrb[29].mxu0  ;;  %v989_v20 = vpop.f32.mrb[28].mxu1 }
 0x134   : > { %v789_v21 = vpop.f32.mrb[30].mxu0  ;;  %v2845_v1 = vpop.f32.mrb[29].mxu1 }
 0x135   : > { %v814_v22 = vadd.f32 %v789_v21, %v631_v33  ;;  %v1016_v23 = vadd.f32 %v989_v20, %v813_v18  ;;  %v2810_v24 = vpop.f32.mrb[31].mxu0  ;;  %v992_v15 = vpop.f32.mrb[30].mxu1 }
 0x136   : > { %v2846_v25 = vpop.f32.mrb[31].mxu1 }
 0x137   : > { %v1017_v26 = vadd.f32 %v992_v15, %v814_v22 }
 0x13a   : > { %v794_v29 = vpop.f32.mrb[32].mxu0 }
 0x13b   : > { %v815_v30 = vadd.f32 %v794_v29, %v636_v38  ;;  %v2813_v19 = vpop.f32.mrb[33].mxu0  ;;  %v997_v31 = vpop.f32.mrb[32].mxu1 }
 0x13c   : > { %v797_v32 = vpop.f32.mrb[34].mxu0  ;;  %v2849_v34 = vpop.f32.mrb[33].mxu1 }
 0x13d   : > { %v816_v35 = vadd.f32 %v797_v32, %v639_v43  ;;  %v1018_v27 = vadd.f32 %v997_v31, %v815_v30  ;;  %v2814_v37 = vpop.f32.mrb[35].mxu0  ;;  %v1000_v28 = vpop.f32.mrb[34].mxu1 }
 0x13e   : > { %v2850_v39 = vpop.f32.mrb[35].mxu1 }
 0x13f   : > { %v1019_v40 = vadd.f32 %v1000_v28, %v816_v35 }
 0x142   : > { %v802_v41 = vpop.f32.mrb[36].mxu0 }
 0x143   : > { %v817_v42 = vadd.f32 %v802_v41, %v644_v49  ;;  %v2817_v33 = vpop.f32.mrb[37].mxu0  ;;  %v1005_v44 = vpop.f32.mrb[36].mxu1 }
 0x144   : > { %v805_v46 = vpop.f32.mrb[38].mxu0  ;;  %v2853_v47 = vpop.f32.mrb[37].mxu1 }
 0x145   : > { %v818_v48 = vadd.f32 %v805_v46, %v647_v54  ;;  %v1020_v36 = vadd.f32 %v1005_v44, %v817_v42  ;;  %v2818_v50 = vpop.f32.mrb[39].mxu0  ;;  %v1008_v38 = vpop.f32.mrb[38].mxu1 }
 0x146   : > { %v2854_v52 = vpop.f32.mrb[39].mxu1 }
 0x147   : > { %v1021_v53 = vadd.f32 %v1008_v38, %v818_v48 }
 0x14a   : > { %v1184_v55 = vpop.f32.mrb[40].mxu0 }
 0x14b   : > { %v1223_v56 = vadd.f32 %v1184_v55, %v1012_v62  ;;  %v2873_v43 = vpop.f32.mrb[41].mxu0  ;;  %v1353_v57 = vpop.f32.mrb[40].mxu1 }
 0x14c   : > { %v1187_v58 = vpop.f32.mrb[42].mxu0  ;;  %v2909_v59 = vpop.f32.mrb[41].mxu1 }
 0x14d   : > { %v1224_v60 = vadd.f32 %v1187_v58, %v1013_v2  ;;  %v1392_v61 = vadd.f32 %v1353_v57, %v1223_v56  ;;  %v2874_v45 = vpop.f32.mrb[43].mxu0  ;;  %v1356_v49 = vpop.f32.mrb[42].mxu1 }
 0x14e   : > { %v2910_v63 = vpop.f32.mrb[43].mxu1 }
 0x14f   : > { %v1393_v0 = vadd.f32 %v1356_v49, %v1224_v60 }
 0x152   : > { %v1192_v51 = vpop.f32.mrb[44].mxu0 }
 0x153   : > { %v1225_v3 = vadd.f32 %v1192_v51, %v1014_v12  ;;  %v2877_v54 = vpop.f32.mrb[45].mxu0  ;;  %v1361_v5 = vpop.f32.mrb[44].mxu1 }
 0x154   : > { %v1195_v6 = vpop.f32.mrb[46].mxu0  ;;  %v2913_v7 = vpop.f32.mrb[45].mxu1 }
 0x155   : > { %v1226_v4 = vadd.f32 %v1195_v6, %v1015_v16  ;;  %v1394_v9 = vadd.f32 %v1361_v5, %v1225_v3  ;;  %v2878_v11 = vpop.f32.mrb[47].mxu0  ;;  %v1364_v62 = vpop.f32.mrb[46].mxu1 }
 0x156   : > { %v2914_v10 = vpop.f32.mrb[47].mxu1 }
 0x157   : > { %v1395_v8 = vadd.f32 %v1364_v62, %v1226_v4 }
 0x15a   : > { %v1200_v14 = vpop.f32.mrb[48].mxu0 }
 0x15b   : > { %v1227_v17 = vadd.f32 %v1200_v14, %v1016_v23  ;;  %v2881_v2 = vpop.f32.mrb[49].mxu0  ;;  %v1369_v18 = vpop.f32.mrb[48].mxu1 }
 0x15c   : > { %v1203_v13 = vpop.f32.mrb[50].mxu0  ;;  %v2917_v20 = vpop.f32.mrb[49].mxu1 }
 0x15d   : > { %v1228_v21 = vadd.f32 %v1203_v13, %v1017_v26  ;;  %v1396_v1 = vadd.f32 %v1369_v18, %v1227_v17  ;;  %v2882_v22 = vpop.f32.mrb[51].mxu0  ;;  %v1372_v12 = vpop.f32.mrb[50].mxu1 }
 0x15e   : > { %v2918_v24 = vpop.f32.mrb[51].mxu1 }
 0x15f   : > { %v1397_v15 = vadd.f32 %v1372_v12, %v1228_v21 }
 0x162   : > { %v1208_v25 = vpop.f32.mrb[52].mxu0 }
 0x163   : > { %v1229_v29 = vadd.f32 %v1208_v25, %v1018_v27  ;;  %v2885_v16 = vpop.f32.mrb[53].mxu0  ;;  %v1377_v30 = vpop.f32.mrb[52].mxu1 }
 0x164   : > { %v1211_v19 = vpop.f32.mrb[54].mxu0  ;;  %v2921_v31 = vpop.f32.mrb[53].mxu1 }
 0x165   : > { %v1230_v32 = vadd.f32 %v1211_v19, %v1019_v40  ;;  %v1398_v34 = vadd.f32 %v1377_v30, %v1229_v29  ;;  %v2886_v35 = vpop.f32.mrb[55].mxu0  ;;  %v1380_v23 = vpop.f32.mrb[54].mxu1 }
 0x166   : > { %v2922_v37 = vpop.f32.mrb[55].mxu1 }
 0x167   : > { %v1399_v28 = vadd.f32 %v1380_v23, %v1230_v32 }
 0x16a   : > { %v1216_v39 = vpop.f32.mrb[56].mxu0 }
 0x16b   : > { %v1231_v41 = vadd.f32 %v1216_v39, %v1020_v36  ;;  %v2889_v26 = vpop.f32.mrb[57].mxu0  ;;  %v1385_v42 = vpop.f32.mrb[56].mxu1 }
 0x16c   : > { %v1219_v33 = vpop.f32.mrb[58].mxu0  ;;  %v2925_v44 = vpop.f32.mrb[57].mxu1 }
 0x16d   : > { %v1232_v46 = vadd.f32 %v1219_v33, %v1021_v53  ;;  %v1400_v47 = vadd.f32 %v1385_v42, %v1231_v41  ;;  %v2890_v48 = vpop.f32.mrb[59].mxu0  ;;  %v1388_v27 = vpop.f32.mrb[58].mxu1 }
 0x16e   : > { %v2926_v50 = vpop.f32.mrb[59].mxu1 }
 0x16f   : > { %v1401_v38 = vadd.f32 %v1388_v27, %v1232_v46 }
 0x172   : > { %v1556_v52 = vpop.f32.mrb[60].mxu0 }
 0x173   : > { %v1595_v55 = vadd.f32 %v1556_v52, %v1392_v61  ;;  %v2945_v40 = vpop.f32.mrb[61].mxu0  ;;  %v1767_v56 = vpop.f32.mrb[60].mxu1 }
 0x174   : > { %v1559_v43 = vpop.f32.mrb[62].mxu0  ;;  %v2981_v57 = vpop.f32.mrb[61].mxu1 }
 0x175   : > { %v1596_v58 = vadd.f32 %v1559_v43, %v1393_v0  ;;  %v1806_v59 = vadd.f32 %v1767_v56, %v1595_v55  ;;  %v2946_v60 = vpop.f32.mrb[63].mxu0  ;;  %v1770_v36 = vpop.f32.mrb[62].mxu1 }
 0x176   : > { %v2982_v45 = vpop.f32.mrb[63].mxu1 }
 0x177   : > { %v1807_v49 = vadd.f32 %v1770_v36, %v1596_v58 }
 0x17a   : > { %v1564_v63 = vpop.f32.mrb[64].mxu0 }
 0x17b   : > { %v1597_v51 = vadd.f32 %v1564_v63, %v1394_v9  ;;  %v2949_v53 = vpop.f32.mrb[65].mxu0  ;;  %v1775_v3 = vpop.f32.mrb[64].mxu1 }
 0x17c   : > { %v1567_v54 = vpop.f32.mrb[66].mxu0  ;;  %v2985_v5 = vpop.f32.mrb[65].mxu1 }
 0x17d   : > { %v1598_v6 = vadd.f32 %v1567_v54, %v1395_v8  ;;  %v3841_v7 = vadd.f32 %v1775_v3, %v1597_v51  ;;  %v2950_v61 = vpop.f32.mrb[67].mxu0  ;;  %v1778_v4 = vpop.f32.mrb[66].mxu1 }
 0x17e   : > { %v2986_v11 = vpop.f32.mrb[67].mxu1 }
 0x17f   : > { %v3843_v62 = vadd.f32 %v1778_v4, %v1598_v6 }
 0x182   : > { %v1572_v0 = vpop.f32.mrb[68].mxu0 }
 0x183   : > { %v1599_v10 = vadd.f32 %v1572_v0, %v1396_v1  ;;  %v2953_v14 = vpop.f32.mrb[69].mxu0  ;;  %v1783_v17 = vpop.f32.mrb[68].mxu1 }
 0x184   : > { %v1575_v2 = vpop.f32.mrb[70].mxu0  ;;  %v2989_v18 = vpop.f32.mrb[69].mxu1 }
 0x185   : > { %v1600_v13 = vadd.f32 %v1575_v2, %v1397_v15  ;;  %v3845_v9 = vadd.f32 %v1783_v17, %v1599_v10  ;;  %v2954_v20 = vpop.f32.mrb[71].mxu0  ;;  %v1786_v21 = vpop.f32.mrb[70].mxu1 }
 0x186   : > { %v2990_v22 = vpop.f32.mrb[71].mxu1 }
 0x187   : > { %v3847_v8 = vadd.f32 %v1786_v21, %v1600_v13 }
 0x18a   : > { %v1580_v12 = vpop.f32.mrb[72].mxu0 }
 0x18b   : > { %v1601_v24 = vadd.f32 %v1580_v12, %v1398_v34  ;;  %v2957_v25 = vpop.f32.mrb[73].mxu0  ;;  %v1791_v29 = vpop.f32.mrb[72].mxu1 }
 0x18c   : > { %v1583_v16 = vpop.f32.mrb[74].mxu0  ;;  %v2993_v30 = vpop.f32.mrb[73].mxu1 }
 0x18d   : > { %v1602_v19 = vadd.f32 %v1583_v16, %v1399_v28  ;;  %v1812_v1 = vadd.f32 %v1791_v29, %v1601_v24  ;;  %v2958_v31 = vpop.f32.mrb[75].mxu0  ;;  %v1794_v32 = vpop.f32.mrb[74].mxu1  ;;  %v3852_v28 = vld [vmem:[%s3944_s2] ss:$0 sm:$0xff] }
 0x18e   : > { %v2994_v35 = vpop.f32.mrb[75].mxu1 }
 0x18f   : > { %v1813_v23 = vadd.f32 %v1794_v32, %v1602_v19 }
 0x192   : > { %v1588_v15 = vpop.f32.mrb[76].mxu0 }
 0x193   : > { %v1603_v37 = vadd.f32 %v1588_v15, %v1400_v47  ;;  %v2961_v39 = vpop.f32.mrb[77].mxu0  ;;  %v1799_v41 = vpop.f32.mrb[76].mxu1 }
 0x194   : > { %v1591_v26 = vpop.f32.mrb[78].mxu0  ;;  %v2997_v42 = vpop.f32.mrb[77].mxu1 }
 0x195   : > { %v1604_v33 = vadd.f32 %v1591_v26, %v1401_v38  ;;  %v1814_v44 = vadd.f32 %v1799_v41, %v1603_v37  ;;  %v2962_v46 = vpop.f32.mrb[79].mxu0  ;;  %v1802_v34 = vpop.f32.mrb[78].mxu1 }
 0x196   : > { %v2998_v48 = vpop.f32.mrb[79].mxu1 }
 0x197   : > { %v1815_v27 = vadd.f32 %v1802_v34, %v1604_v33 }
 0x19a   : > { %v1936_v50 = vpop.f32.mrb[80].mxu0 }
 0x19b   : > { %v1975_v52 = vadd.f32 %v1936_v50, %v1806_v59  ;;  %v1960_v55 = vpop.f32.mrb[80].mxu1  ;;  %v3017_v40 = vpop.f32.mrb[81].mxu0 }
 0x19c   : > { %v1981_v47 = vadd.f32 %v1960_v55, %v1812_v1  ;;  %v3029_v56 = vpop.f32.mrb[81].mxu1  ;;  %v1939_v43 = vpop.f32.mrb[82].mxu0  ;;  %v2588_v55 = vld [vmem:[%s3904_s23 + $0x18] sm:$0xff]  }
 0x19d   : > { %v3855_v57 = vadd.f32 %v3852_v28, %v1975_v52  ;;  %v1976_v38 = vadd.f32 %v1939_v43, %v1807_v49  ;;  %v1963_v58 = vpop.f32.mrb[82].mxu1  ;;  %v3018_v60 = vpop.f32.mrb[83].mxu0 }
 0x19e   : > { %v3858_v36 = vadd.f32 %v3852_v28, %v1981_v47  ;;  %v1982_v45 = vadd.f32 %v1963_v58, %v1813_v23  ;;  %v3030_v63 = vpop.f32.mrb[83].mxu1 }
 0x19f   : > { %v2509_v51 = vmul.f32 -1.442695, %v3855_v57  ;;  %v3862_v59 = vadd.f32 %v3852_v28, %v1976_v38  ;;  %v2555_v63 = vunpack.c.l.bf16 %v2588_v55 }
 0x1a0   : > { %v2515_v53 = vmul.f32 -1.442695, %v3858_v36  ;;  %v3866_v3 = vadd.f32 %v3852_v28, %v1982_v45 }
 0x1a1   : > { %3174 = vpow2.f32 %v2509_v51  ;;  %v2510_v49 = vmul.f32 -1.442695, %v3862_v59  ;;  %v2556_v51 = vunpack.c.h.bf16 %v2588_v55 }
 0x1a2   : > { %3176 = vpow2.f32 %v2515_v53  ;;  %v2516_v54 = vmul.f32 -1.442695, %v3866_v3  ;;  %v1944_v5 = vpop.f32.mrb[84].mxu0 }
 0x1a3   : > { %3178 = vpow2.f32 %v2510_v49  ;;  %v1977_v6 = vadd.f32 %v1944_v5, %v3841_v7  ;;  %v1968_v61 = vpop.f32.mrb[84].mxu1  ;;  %v3021_v4 = vpop.f32.mrb[85].mxu0 }
 0x1a4   : > { %3180 = vpow2.f32 %v2516_v54  ;;  %v1983_v11 = vadd.f32 %v1968_v61, %v1814_v44  ;;  %v3033_v0 = vpop.f32.mrb[85].mxu1  ;;  %v1947_v10 = vpop.f32.mrb[86].mxu0 }
 0x1a5   : > { %v3872_v14 = vadd.f32 %v3852_v28, %v1977_v6  ;;  %v1978_v17 = vadd.f32 %v1947_v10, %v3843_v62  ;;  %v1971_v2 = vpop.f32.mrb[86].mxu1  ;;  %v3022_v18 = vpop.f32.mrb[87].mxu0  ;;  %v2586_v0 = vld [vmem:[%s3904_s23 + $0x8] sm:$0xff]  }
 0x1a6   : > { %v3876_v13 = vadd.f32 %v3852_v28, %v1983_v11  ;;  %v1984_v20 = vadd.f32 %v1971_v2, %v1815_v27  ;;  %v3034_v21 = vpop.f32.mrb[87].mxu1 }
 0x1a7   : > { %v2511_v7 = vmul.f32 -1.442695, %v3872_v14  ;;  %v3880_v22 = vadd.f32 %v3852_v28, %v1978_v17  ;;  %v2589_v17 = vld [vmem:[%s3904_s23 + $0x20] sm:$0xff]   ;;  %v2547_v21 = vunpack.c.l.bf16 %v2586_v0 }
 0x1a8   : > { %v2517_v12 = vmul.f32 -1.442695, %v3876_v13  ;;  %v3884_v24 = vadd.f32 %v3852_v28, %v1984_v20 }
 0x1a9   : > { %3182 = vpow2.f32 %v2511_v7  ;;  %v2512_v62 = vmul.f32 -1.442695, %v3880_v22  ;;  %v2548_v7 = vunpack.c.h.bf16 %v2586_v0 }
 0x1aa   : > { %3184 = vpow2.f32 %v2517_v12  ;;  %v2518_v25 = vmul.f32 -1.442695, %v3884_v24  ;;  %v1952_v29 = vpop.f32.mrb[88].mxu0 }
 0x1ab   : > { %v3175_v16 = vpop.eup %3174  ;;  %3186 = vpow2.f32 %v2512_v62  ;;  %v1979_v30 = vadd.f32 %v1952_v29, %v3845_v9  ;;  %v3025_v19 = vpop.f32.mrb[89].mxu0  ;;  %v2560_v29 = vunpack.c.h.bf16 %v2589_v17 }
 0x1ac   : > { %v3177_v1 = vpop.eup %3176  ;;  %v2032_v31 = vadd.f32 1.0, %v3175_v16  ;;  %3188 = vpow2.f32 %v2518_v25  ;;  %v1955_v32 = vpop.f32.mrb[90].mxu0  ;;  %v2559_v25 = vunpack.c.l.bf16 %v2589_v17 }
 0x1ad   : > { %v3179_v35 = vpop.eup %3178  ;;  %v2038_v23 = vadd.f32 1.0, %v3177_v1  ;;  %v3890_v15 = vadd.f32 %v3852_v28, %v1979_v30  ;;  %v1980_v37 = vadd.f32 %v1955_v32, %v3847_v8  ;;  %v3026_v39 = vpop.f32.mrb[91].mxu0 }
 0x1ae   : > { %v3181_v41 = vpop.eup %3180  ;;  %3190 = vrcp.f32 %v2032_v31  ;;  %v2033_v26 = vadd.f32 1.0, %v3179_v35  ;;  %v2587_v35 = vld [vmem:[%s3904_s23 + $0x10] sm:$0xff]  }
 0x1af   : > { %3192 = vrcp.f32 %v2038_v23  ;;  %v2039_v9 = vadd.f32 1.0, %v3181_v41  ;;  %v2513_v42 = vmul.f32 -1.442695, %v3890_v15  ;;  %v3896_v33 = vadd.f32 %v3852_v28, %v1980_v37  ;;  %v2542_v28 = vld [vmem:[%s3904_s23] sm:$0xff]  }
 0x1b0   : > { %3194 = vrcp.f32 %v2033_v26  ;;  %v2543_v38 = vunpack.c.l.bf16 %v2542_v28  ;;  %v2544_v58 = vunpack.c.h.bf16 %v2542_v28  ;;  %v2551_v41 = vunpack.c.l.bf16 %v2587_v35 }
 0x1b1   : > { %3196 = vrcp.f32 %v2039_v9  ;;  %v2514_v44 = vmul.f32 -1.442695, %v3896_v33 }
 0x1b2   : > { %3198 = vpow2.f32 %v2513_v42 }
 0x1b3   : > { %v3183_v46 = vpop.eup %3182  ;;  %3200 = vpow2.f32 %v2514_v44 }
 0x1b4   : > { %v3185_v8 = vpop.eup %3184  ;;  %v2034_v34 = vadd.f32 1.0, %v3183_v46 }
 0x1b5   : > { %v3187_v48 = vpop.eup %3186  ;;  %v2040_v27 = vadd.f32 1.0, %v3185_v8 }
 0x1b6   : > { %v3189_v50 = vpop.eup %3188  ;;  %3202 = vrcp.f32 %v2034_v34  ;;  %v2035_v52 = vadd.f32 1.0, %v3187_v48 }
 0x1b7   : > { %3204 = vrcp.f32 %v2040_v27  ;;  %v2041_v40 = vadd.f32 1.0, %v3189_v50 }
 0x1b8   : > { %v3191_v47 = vpop.eup %3190  ;;  %3206 = vrcp.f32 %v2035_v52 }
 0x1b9   : > { %v3193_v56 = vpop.eup %3192  ;;  %v2062_v43 = vmul.f32 %v3191_v47, %v3855_v57  ;;  %3208 = vrcp.f32 %v2041_v40 }
 0x1ba   : > { %v3195_v60 = vpop.eup %3194  ;;  %v2068_v45 = vmul.f32 %v3193_v56, %v3858_v36 }
 0x1bb   : > { %v3197_v53 = vpop.eup %3196  ;;  %v2063_v49 = vmul.f32 %v3195_v60, %v3862_v59  ;;  %v2092_v61 = vadd.f32 %v2543_v38, %v2062_v43 }
 0x1bc   : > { %v3199_v54 = vpop.eup %3198  ;;  %v2069_v5 = vmul.f32 %v3197_v53, %v3866_v3  ;;  %v2098_v11 = vadd.f32 %v2555_v63, %v2068_v45 }
 0x1bd   : > { %v3201_v6 = vpop.eup %3200  ;;  %v2093_v57 = vadd.f32 %v2544_v58, %v2063_v49  ;;  %v2036_v4 = vadd.f32 1.0, %v3199_v54 }
 0x1be   : > { %v2099_v36 = vadd.f32 %v2556_v51, %v2069_v5  ;;  %v2037_v10 = vadd.f32 1.0, %v3201_v6 }
 0x1bf   : > { %v2564_v59 = vpack.c.bf16 %v2093_v57, %v2092_v61  ;;  %3210 = vrcp.f32 %v2036_v4 }
 0x1c0   : > { %v3203_v3 = vpop.eup %3202  ;;  %v2579_v2 = vpack.c.bf16 %v2099_v36, %v2098_v11  ;;  %3212 = vrcp.f32 %v2037_v10 }
 0x1c1   : > { %v3205_v18 = vpop.eup %3204  ;;  %2565 = vst [vmem:[%s3917_s26] sm:$0xff] %v2564_v59   ;;  %v2064_v20 = vmul.f32 %v3203_v3, %v3872_v14 }
 0x1c2   : > { %v3207_v12 = vpop.eup %3206  ;;  %2592 = vst [vmem:[%s3917_s26 + $0x18] sm:$0xff] %v2579_v2   ;;  %v2070_v62 = vmul.f32 %v3205_v18, %v3876_v13  ;;  %v2552_v13 = vunpack.c.h.bf16 %v2587_v35 }
 0x1c3   : > { %v3209_v16 = vpop.eup %3208  ;;  %v2065_v30 = vmul.f32 %v3207_v12, %v3880_v22  ;;  %v2094_v1 = vadd.f32 %v2547_v21, %v2064_v20 }
 0x1c4   : > { %v2071_v19 = vmul.f32 %v3209_v16, %v3884_v24  ;;  %v2100_v32 = vadd.f32 %v2559_v25, %v2070_v62 }
 0x1c5   : > { %v2095_v31 = vadd.f32 %v2548_v7, %v2065_v30 }
 0x1c6   : > { %v2101_v14 = vadd.f32 %v2560_v29, %v2071_v19 }
 0x1c7   : > { %v2569_v23 = vpack.c.bf16 %v2095_v31, %v2094_v1 }
 0x1c8   : > { %v2584_v37 = vpack.c.bf16 %v2101_v14, %v2100_v32 }
 0x1c9   : > { %v3211_v39 = vpop.eup %3210  ;;  %2590 = vst [vmem:[%s3917_s26 + $0x8] sm:$0xff] %v2569_v23  }
 0x1ca   : > { %v3213_v26 = vpop.eup %3212  ;;  %2593 = vst [vmem:[%s3917_s26 + $0x20] sm:$0xff] %v2584_v37   ;;  %v2066_v9 = vmul.f32 %v3211_v39, %v3890_v15 }
 0x1cb   : > { %v2067_v22 = vmul.f32 %v3213_v26, %v3896_v33 }
 0x1cc   : > { %v2096_v42 = vadd.f32 %v2551_v41, %v2066_v9 }
 0x1cd   : > { %v2097_v24 = vadd.f32 %v2552_v13, %v2067_v22 }
 0x1cf   : > { %v2574_v44 = vpack.c.bf16 %v2097_v24, %v2096_v42 }
 0x1d1   : > { %2591 = vst [vmem:[%s3917_s26 + $0x10] sm:$0xff] %v2574_v44  }
 0x1d2 PF: > { %s14_s17 = sadd.s32 1, %s3236_s17   ;;  %s3947_s15 = smov %s3232_s16 }
 0x1d3   : > { %p11_p5 = scmp.ge.s32.totalorder %s14_s17, 4   ;;  %s3948_s16 = smov %s3950_s18 }
 0x1d5   :  { %13 = sbr.rel (!%p11_p5) target bundleno = 2 (0x2), region = 83 }

// kernel: _lambda_.18
= control target key start
LH: loop header
LB: loop body
LE: loop exit
PB: predicated region body
PF: predicated region fallthrough
CT: control target
= control target key end

     0   :  { %s383_s1 = inlined_call_operand.vmem [shape: bf16[128,128], index: 1, kind: input, shape index: {}]   ;;  %s384_s0 = inlined_call_operand.vmem [shape: bf16[32,128], index: 0, kind: input, shape index: {}]   ;;  %s385_s2 = inlined_call_operand.vmem [shape: f32[1,128], index: 2, kind: input, shape index: {}]   ;;  %s386_s3 = inlined_call_operand.vmem [shape: bf16[32,128], index: 3, kind: output, shape index: {}]  }
   0x1   :  { %v298_v0 = vld [vmem:[%s383_s1] sm:$0xff]   ;;  %v299_v1 = vld [vmem:[%s383_s1 + $0x8] sm:$0xff]   ;;  %v300_v2 = vld [vmem:[%s383_s1 + $0x10] sm:$0xff]  }
   0x2   :  { %278 = vmatprep.subr.bf16.mxu0 %v298_v0  ;;  %v301_v3 = vld [vmem:[%s383_s1 + $0x18] sm:$0xff]   ;;  %v306_v4 = vld [vmem:[%s384_s0] sm:$0xff]   ;;  %v303_v6 = vld [vmem:[%s383_s1 + $0x28] sm:$0xff]  }
   0x3   :  { %279 = vmatpush3.bf16.msra.mxu0 %v298_v0  ;;  %294 = vmatprep.mubr.bf16.mxu0 %v306_v4  ;;  %v302_v5 = vld [vmem:[%s383_s1 + $0x20] sm:$0xff]   ;;  %v304_v7 = vld [vmem:[%s383_s1 + $0x30] sm:$0xff]   ;;  %v305_v8 = vld [vmem:[%s383_s1 + $0x38] sm:$0xff]  }
   0x4   :  { %280 = vmatprep.subr.bf16.mxu0 %v299_v1  ;;  %v307_v9 = vld [vmem:[%s384_s0 + $0x8] sm:$0xff]   ;;  %v244_v10 = vld [vmem:[%s385_s2] ss:$0 sm:$0xff] }
   0x7   :  { %281 = vmatpush3.bf16.msra.mxu0 %v299_v1 }
   0x8   :  { %282 = vmatprep.subr.bf16.mxu0 %v300_v2 }
   0xb   :  { %283 = vmatpush3.bf16.msra.mxu0 %v300_v2 }
   0xc   :  { %284 = vmatprep.subr.bf16.mxu0 %v301_v3 }
   0xf   :  { %285 = vmatpush3.bf16.msra.mxu0 %v301_v3 }
  0x10   :  { %286 = vmatprep.subr.bf16.mxu0 %v302_v5 }
  0x13   :  { %287 = vmatpush3.bf16.msra.mxu0 %v302_v5 }
  0x14   :  { %288 = vmatprep.subr.bf16.mxu0 %v303_v6 }
  0x17   :  { %289 = vmatpush3.bf16.msra.mxu0 %v303_v6 }
  0x18   :  { %290 = vmatprep.subr.bf16.mxu0 %v304_v7 }
  0x1b   :  { %291 = vmatpush3.bf16.msra.mxu0 %v304_v7 }
  0x1c   :  { %292 = vmatprep.subr.bf16.mxu0 %v305_v8 }
  0x1f   :  { %293 = vmatpush3.bf16.msra.mxu0 %v305_v8 }
  0x22   :  { %295 = vmatmul.mubr.bf16.vlgmr.msra.gmra.mrb[0].mxu0 %v307_v9 }
  0xf5   :  { %v296_v11 = vpop.f32.mrb[0].mxu0 }
  0xf6   :  { %v180_v12 = vadd.f32 %v296_v11, %v244_v10  ;;  %v141_v13 = vpop.f32.mrb[1].mxu0 }
  0xf7   :  { %v178_v14 = vadd.f32 %v244_v10, %v141_v13  ;;  %v297_v15 = vpop.f32.mrb[2].mxu0 }
  0xf8   :  { %v247_v16 = vmul.f32 -1.442695, %v180_v12  ;;  %v181_v17 = vadd.f32 %v297_v15, %v244_v10  ;;  %v144_v18 = vpop.f32.mrb[3].mxu0 }
  0xf9   :  { %v245_v19 = vmul.f32 -1.442695, %v178_v14  ;;  %v179_v20 = vadd.f32 %v244_v10, %v144_v18 }
  0xfa   :  { %308 = vpow2.f32 %v247_v16  ;;  %v248_v21 = vmul.f32 -1.442695, %v181_v17 }
  0xfb   :  { %310 = vpow2.f32 %v245_v19  ;;  %v246_v22 = vmul.f32 -1.442695, %v179_v20 }
  0xfc   :  { %312 = vpow2.f32 %v248_v21 }
  0xfd   :  { %314 = vpow2.f32 %v246_v22 }
 0x104   :  { %v309_v23 = vpop.eup %308 }
 0x105   :  { %v311_v24 = vpop.eup %310  ;;  %v196_v25 = vadd.f32 1.0, %v309_v23 }
 0x106   :  { %v313_v26 = vpop.eup %312  ;;  %v194_v27 = vadd.f32 1.0, %v311_v24 }
 0x107   :  { %v315_v28 = vpop.eup %314  ;;  %316 = vrcp.f32 %v196_v25  ;;  %v197_v29 = vadd.f32 1.0, %v313_v26 }
 0x108   :  { %318 = vrcp.f32 %v194_v27  ;;  %v195_v30 = vadd.f32 1.0, %v315_v28 }
 0x109   :  { %320 = vrcp.f32 %v197_v29 }
 0x10a   :  { %322 = vrcp.f32 %v195_v30 }
 0x111   :  { %v317_v31 = vpop.eup %316 }
 0x112   :  { %v319_v32 = vpop.eup %318  ;;  %v208_v35 = vmul.f32 %v317_v31, %v180_v12 }
 0x113   :  { %v321_v33 = vpop.eup %320  ;;  %v206_v37 = vmul.f32 %v319_v32, %v178_v14 }
 0x114   :  { %v323_v34 = vpop.eup %322  ;;  %v209_v36 = vmul.f32 %v321_v33, %v181_v17 }
 0x115   :  { %v207_v38 = vmul.f32 %v323_v34, %v179_v20 }
 0x116   :  { %v265_v39 = vpack.c.bf16 %v209_v36, %v208_v35 }
 0x117   :  { %v260_v40 = vpack.c.bf16 %v207_v38, %v206_v37 }
 0x118   :  { %267 = vst [vmem:[%s386_s3 + $0x8] sm:$0xff] %v265_v39  }
 0x119   :  { %261 = vst [vmem:[%s386_s3] sm:$0xff] %v260_v40  }

// kernel: _lambda_.16
= control target key start
LH: loop header
LB: loop body
LE: loop exit
PB: predicated region body
PF: predicated region fallthrough
CT: control target
= control target key end

     0   :  { %s3129_s12 = smov 0   ;;  %s3131_s13 = smov 0   ;;  %s3777_s0 = inlined_call_operand.vmem [shape: bf16[2,102,128], index: 0, kind: input, shape index: {}]   ;;  %s3778_s1 = inlined_call_operand.vmem [shape: bf16[9,128,128], index: 1, kind: input, shape index: {}]   ;;  %s3779_s2 = inlined_call_operand.vmem [shape: f32[1,128], index: 2, kind: input, shape index: {}]   ;;  %s3780_s3 = inlined_call_operand.vmem [shape: bf16[2,80,128], index: 3, kind: output, shape index: {}]  }
   0x1   :  { %s3133_s14 = smov 0  }
   0x2 LB: > { %s25_s15 = sadd.s32 1, %s3101_s13  ;;  %p2175_p0 = scmp.ge.s32.totalorder %s3105_s14, 1  ;;  %s3105_s14 = sphi %s3133_s14, %s13_s14   ;;  %s3101_s13 = sphi %s3131_s13, %s3782_s13   ;;  %s3097_s12 = sphi %s3129_s12, %s3781_s12  }
   0x3   : > { %p27_p1 = scmp.ge.s32.totalorder %s25_s15, 2  ;;  %p168_p2 = scmp.lt.s32.totalorder %s3105_s14, 3 }
   0x5   : > { %s3784_s15 = smov (%p27_p1, %s25_s15), 0  ;;  %p169_p3 = pnand %p2175_p0, %p168_p2 }
   0x6   : > { %v2948_v0 = vld [vmem:[%s3778_s1 + $0x40] sm:$0xff] (!%p169_p3)   ;;  %v3107_v1 = vmov (!%p169_p3), 0.0   ;;  %v2950_v3 = vld [vmem:[%s3778_s1 + $0x48] sm:$0xff] (!%p169_p3)   ;;  %vm3108_vm0 = vmmov (!%p169_p3), 0   ;;  %p202_p4 = scmp.lt.s32.totalorder (!%p169_p3), %s3097_s12, 1  ;;  %v2952_v5 = vld [vmem:[%s3778_s1 + $0x50] sm:$0xff] (!%p169_p3)  }
   0x7   : > { %172 = sbr.rel (%p169_p3) target bundleno = 464 (0x1d0), region = 32  ;;  %2580 = vmatprep.subr.bf16.mxu0 (!%p169_p3), %v3107_v1  ;;  %2616 = vmatprep.subr.bf16.mxu1 (!%p169_p3), %v3107_v1  ;;  %v2949_v2 = vld [vmem:[%s3778_s1] sm:$0xff] (!%p169_p3)   ;;  %v2951_v4 = vld [vmem:[%s3778_s1 + $0x8] sm:$0xff] (!%p169_p3)   ;;  %v2953_v6 = vld [vmem:[%s3778_s1 + $0x10] sm:$0xff] (!%p169_p3)   ;;  %vm295_vm1 = vsmask.f32 (!%p169_p3), 7424 }
   0x8   : > { %2581 = vmatpush3.bf16.msra.mxu0 (!%p169_p3), %v2948_v0  ;;  %2596 = vmatprep.mubr.msk.bf16.mxu0 (!%p169_p3), %vm3108_vm0, %v3107_v1  ;;  %v2954_v7 = vld [vmem:[%s3778_s1 + $0x58] sm:$0xff] (!%p169_p3)   ;;  %v2956_v9 = vld [vmem:[%s3778_s1 + $0x60] sm:$0xff] (!%p169_p3)   ;;  %v2958_v13 = vld [vmem:[%s3778_s1 + $0x68] sm:$0xff] (!%p169_p3)   ;;  %vm613_vm2 = vcmask (!%p169_p3), 1046528   ;;  %vm985_vm3 = vsmask.f32 (!%p169_p3), 6400 }
   0x9   : > { %2617 = vmatpush3.bf16.msra.mxu1 (!%p169_p3), %v2949_v2  ;;  %2582 = vmatprep.subr.bf16.mxu0 (!%p169_p3), %v3107_v1  ;;  %v2955_v8 = vld [vmem:[%s3778_s1 + $0x18] sm:$0xff] (!%p169_p3)   ;;  %v2957_v10 = vld [vmem:[%s3778_s1 + $0x20] sm:$0xff] (!%p169_p3)   ;;  %v2959_v16 = vld [vmem:[%s3778_s1 + $0x28] sm:$0xff] (!%p169_p3)   ;;  %vm1196_vm4 = vcmask (!%p169_p3), 1045504   ;;  %vm1568_vm5 = vsmask.f32 (!%p169_p3), 5376 }
   0xa   : > { %2618 = vmatprep.subr.bf16.mxu1 (!%p169_p3), %v3107_v1  ;;  %2632 = vmatprep.mubr.msk.bf16.mxu1 (!%p169_p3), %vm3108_vm0, %v3107_v1  ;;  %v2960_v18 = vld [vmem:[%s3778_s1 + $0x70] sm:$0xff] (!%p169_p3)   ;;  %v2962_v23 = vld [vmem:[%s3778_s1 + $0x78] sm:$0xff] (!%p169_p3)   ;;  %v2966_v28 = vld [vmem:[%s3778_s1 + $0x80] sm:$0xff] (!%p169_p3)   ;;  %vm1779_vm6 = vcmask (!%p169_p3), 1044480  }
   0xb   : > { %v2961_v22 = vld [vmem:[%s3778_s1 + $0x30] sm:$0xff] (!%p169_p3)   ;;  %v2963_v24 = vld [vmem:[%s3778_s1 + $0x38] sm:$0xff] (!%p169_p3)   ;;  %v2969_v32 = vld [vmem:[%s3778_s1 + $0xc0] sm:$0xff] (!%p169_p3)  }
   0xc   : > { %2583 = vmatpush3.bf16.msra.mxu0 (!%p169_p3), %v2950_v3  ;;  %v2967_v34 = vld [vmem:[%s3778_s1 + $0x88] sm:$0xff] (!%p169_p3)   ;;  %v2970_v40 = vld [vmem:[%s3778_s1 + $0x90] sm:$0xff] (!%p169_p3)   ;;  %v2973_v44 = vld [vmem:[%s3778_s1 + $0x98] sm:$0xff] (!%p169_p3)  }
   0xd   : > { %2619 = vmatpush3.bf16.msra.mxu1 (!%p169_p3), %v2951_v4  ;;  %2584 = vmatprep.subr.bf16.mxu0 (!%p169_p3), %v3107_v1  ;;  %v2971_v37 = vld [vmem:[%s3778_s1 + $0xc8] sm:$0xff] (!%p169_p3)   ;;  %v2974_v42 = vld [vmem:[%s3778_s1 + $0xd0] sm:$0xff] (!%p169_p3)   ;;  %v2976_v47 = vld [vmem:[%s3778_s1 + $0xd8] sm:$0xff] (!%p169_p3)  }
   0xe   : > { %s3786_s12 = smov (!%p202_p4, %s3097_s12), 1  ;;  %2620 = vmatprep.subr.bf16.mxu1 %v3107_v1  ;;  %v2975_v48 = vld [vmem:[%s3778_s1 + $0xa0] sm:$0xff]   ;;  %v2979_v56 = vld [vmem:[%s3778_s1 + $0xa8] sm:$0xff]   ;;  %v2981_v61 = vld [vmem:[%s3778_s1 + $0xb0] sm:$0xff]  }
   0xf   : > { %s2920_s28 = smul.u32 52, %s3786_s12  ;;  %v2978_v52 = vld [vmem:[%s3778_s1 + $0xe0] sm:$0xff]   ;;  %v2980_v57 = vld [vmem:[%s3778_s1 + $0xe8] sm:$0xff]   ;;  %v2983_v62 = vld [vmem:[%s3778_s1 + $0xf0] sm:$0xff]  }
  0x10   : > { %2585 = vmatpush3.bf16.msra.mxu0 %v2952_v5  ;;  %v2984_v63 = vld [vmem:[%s3778_s1 + $0xb8] sm:$0xff]   ;;  %s2921_s5 = smul.u32 40, %s3786_s12 }
  0x11   : > { %2621 = vmatpush3.bf16.msra.mxu1 %v2953_v6  ;;  %2586 = vmatprep.subr.bf16.mxu0 %v3107_v1  ;;  %s3189_s8 = scalar_lea.vmem %s3777_s0, %s2920_s28  ;;  %v2985_v3 = vld [vmem:[%s3778_s1 + $0xf8] sm:$0xff]  }
  0x12   : > { %2622 = vmatprep.subr.bf16.mxu1 %v3107_v1  ;;  %v223_v11 = vld [vmem:[%s3189_s8] sm:$0xf]  ;;  %v3201_v12 = vld [vmem:[%s3189_s8 + $0x4] sm:$0xf]  ;;  %v3208_v15 = vld [vmem:[%s3189_s8 + $0x8] sm:$0xff]   ;;  %s221_s9 = scalar_lea.vmem %s3780_s3, %s2921_s5 }
  0x13   : > { %v2194_v14 = vcombine.low %v223_v11, %v3201_v12  ;;  %v304_v21 = vshll.u32 %v3208_v15, 16  ;;  %v3231_v27 = vld [vmem:[%s3189_s8 + $0x10] sm:$0xff]   ;;  %v308_v30 = vshrl.u32 %v3208_v15, 16  ;;  %v3247_v33 = vld [vmem:[%s3189_s8 + $0x18] sm:$0xff]   ;;  %v3276_v45 = vld [vmem:[%s3189_s8 + $0x20] sm:$0xff]  }
  0x14   : > { %2587 = vmatpush3.bf16.msra.mxu0 %v2954_v7  ;;  %v312_v31 = vshll.u32 %v3231_v27, 16  ;;  %v320_v38 = vshll.u32 %v3247_v33, 16  ;;  %v316_v41 = vshrl.u32 %v3231_v27, 16  ;;  %v324_v50 = vshrl.u32 %v3247_v33, 16  ;;  %v592_v4 = vld [vmem:[%s3189_s8] sm:$0xe] }
  0x15   : > { %2623 = vmatpush3.bf16.msra.mxu1 %v2955_v8  ;;  %2588 = vmatprep.subr.bf16.mxu0 %v3107_v1  ;;  %v299_v17 = vshll.u32 %v2194_v14, 16  ;;  %v297_v19 = vshrl.u32 %v2194_v14, 16  ;;  %v306_v26 = vrot.slane %v304_v21, 1  ;;  %v328_v51 = vshll.u32 %v3276_v45, 16  ;;  %v761_v5 = vld [vmem:[%s3189_s8 + $0x4] sm:$0xe] }
  0x16   : > { %2624 = vmatprep.subr.bf16.mxu1 %v3107_v1  ;;  %v314_v36 = vrot.slane %v312_v31, 1  ;;  %v322_v43 = vrot.slane %v320_v38, 1  ;;  %v3299_v53 = vld [vmem:[%s3189_s8 + $0x28] ss:$0 sps:$4 sm:$0x11]   ;;  %v332_v59 = vshrl.u32 %v3276_v45, 16  ;;  %v2232_v8 = vcombine.low %v592_v4, %v3201_v12 }
  0x17   : > { %v301_v20 = vrot.slane %v299_v17, 1  ;;  %v310_v35 = vor.u32 %v308_v30, %v306_v26  ;;  %v330_v55 = vrot.slane %v328_v51, 1  ;;  %v336_v60 = vshll.u32 %v3299_v53, 16  ;;  %v3341_v6 = vld [vmem:[%s3189_s8 + $0x8] sm:$0xf]  ;;  %v2989_v17 = vld [vmem:[%s3778_s1 + $0x100] sm:$0xff]  }
  0x18   : > { %2589 = vmatpush3.bf16.msra.mxu0 %v2956_v9  ;;  %v318_v46 = vor.u32 %v316_v41, %v314_v36  ;;  %v326_v54 = vor.u32 %v324_v50, %v322_v43  ;;  %v3347_v9 = vcombine.low %v761_v5, %v3341_v6  ;;  %v614_v11 = vrot.slane %v2232_v8, 1  ;;  %v2996_v30 = vld [vmem:[%s3778_s1 + $0x118] sm:$0xff]   ;;  %v3003_v41 = vld [vmem:[%s3778_s1 + $0x168] sm:$0xff]  }
  0x19   : > { %2625 = vmatpush3.bf16.msra.mxu1 %v2957_v10  ;;  %2590 = vmatprep.subr.bf16.mxu0 %v3107_v1  ;;  %v302_v25 = vor.u32 %v301_v20, %v297_v19  ;;  %v315_v39 = vsel %vm295_vm1, %v310_v35, %v314_v36  ;;  %v334_v0 = vor.u32 %v332_v59, %v330_v55  ;;  %v338_v2 = vrot.slane %v336_v60, 1  ;;  %v3350_v10 = vld [vmem:[%s3189_s8 + $0xc] sm:$0xff]   ;;  %v3368_v19 = vld [vmem:[%s3189_s8 + $0x14] sm:$0xff]   ;;  %v3421_v36 = vld [vmem:[%s3189_s8 + $0x24] sm:$0xff]  }
  0x1a   : > { %2626 = vmatprep.subr.bf16.mxu1 %v3107_v1  ;;  %v323_v49 = vsel %vm295_vm1, %v318_v46, %v322_v43  ;;  %v331_v58 = vsel %vm295_vm1, %v326_v54, %v330_v55  ;;  %v615_v12 = vrot.slane %v3208_v15, 1  ;;  %v2990_v20 = vld [vmem:[%s3778_s1 + $0x108] sm:$0xff]   ;;  %v617_v21 = vrot.slane %v3231_v27, 1  ;;  %v3006_v46 = vld [vmem:[%s3778_s1 + $0x170] sm:$0xff]   ;;  %v3008_v54 = vld [vmem:[%s3778_s1 + $0x178] sm:$0xff]  }
  0x1b   : > { %v307_v29 = vsel %vm295_vm1, %v302_v25, %v306_v26  ;;  %v339_v7 = vsel %vm295_vm1, %v334_v0, %v338_v2  ;;  %v2993_v25 = vld [vmem:[%s3778_s1 + $0x110] sm:$0xff]   ;;  %v621_v38 = vrot.slane %v3276_v45, 1  ;;  %v3005_v43 = vld [vmem:[%s3189_s8 + $0x2c] ss:$0 sps:$4 sm:$0x11]   ;;  %v995_v50 = vshrl.u32 %v3350_v10, 16 }
  0x1c   : > { %2591 = vmatpush3.bf16.msra.mxu0 %v2958_v13  ;;  %v817_v13 = vrot.slane %v3347_v9, 1  ;;  %v998_v51 = vshll.u32 %v3350_v10, 16  ;;  %v1175_v55 = vld [vmem:[%s3189_s8 + $0x4] sm:$0xc]  ;;  %v1004_v2 = vshrl.u32 %v3368_v19, 16  ;;  %v1198_v5 = vrot.slane %v3350_v10, 2 }
  0x1d   : > { %2627 = vmatpush3.bf16.msra.mxu1 %v2959_v16  ;;  %2592 = vmatprep.subr.bf16.mxu0 %v3107_v1  ;;  %v616_v16 = vsel %vm613_vm2, %v614_v11, %v615_v12  ;;  %v997_v59 = vrot.slane %v995_v50, 1 }
  0x1e   : > { %2628 = vmatprep.subr.bf16.mxu1 %v3107_v1  ;;  %v1000_v60 = vrot.slane %v998_v51, 2  ;;  %v1006_v8 = vrot.slane %v1004_v2, 1  ;;  %v3566_v51 = vld [vmem:[%s3189_s8 + $0x10] sm:$0xff]  }
  0x20   : > { %2593 = vmatpush3.bf16.msra.mxu0 %v2960_v18  ;;  %v1001_v0 = vor.u32 %v1000_v60, %v997_v59  ;;  %v1581_v59 = vshll.u32 %v3566_v51, 16  ;;  %v3026_v60 = vld [vmem:[%s3778_s1 + $0x1f8] sm:$0xff]  }
  0x21   : > { %2629 = vmatpush3.bf16.msra.mxu1 %v2961_v22  ;;  %2594 = vmatprep.subr.bf16.mxu0 %v3107_v1  ;;  %v820_v22 = vrot.slane %v3368_v19, 1 }
  0x22   : > { %2630 = vmatprep.subr.bf16.mxu1 %v3107_v1 }
  0x24   : > { %2595 = vmatpush3.bf16.msra.mxu0 %v2962_v23  ;;  %v2994_v23 = vld [vmem:[%s3778_s1 + $0x148] sm:$0xff]  }
  0x25   : > { %2631 = vmatpush3.bf16.msra.mxu1 %v2963_v24  ;;  %2652 = vmatprep.subr.bf16.mxu0 %v3107_v1  ;;  %v618_v24 = vsel %vm613_vm2, %v615_v12, %v617_v21  ;;  %v3012_v12 = vld [vmem:[%s3778_s1 + $0x1c0] sm:$0xff]  }
  0x26   : > { %2688 = vmatprep.subr.bf16.mxu1 %v3107_v1 }
  0x27   : > { %2597 = vmatmul.mubr.bf16.vlgmr.msra.gmra.mrb[0].mxu0 %v307_v29  ;;  %v619_v29 = vrot.slane %v3247_v33, 1 }
  0x28   : > { %2633 = vmatmul.mubr.bf16.vlgmr.msra.gmra.mrb[0].mxu1 %v2194_v14  ;;  %2653 = vmatpush3.bf16.msra.mxu0 %v2966_v28  ;;  %v818_v14 = vrot.slane %v3350_v10, 1  ;;  %v2997_v28 = vld [vmem:[%s3778_s1 + $0x150] sm:$0xff]   ;;  %v3011_v10 = vld [vmem:[%s3778_s1 + $0x188] sm:$0xff]  }
  0x29   : > { %2654 = vmatprep.subr.bf16.mxu0 %v3107_v1  ;;  %2600 = vmatprep.mubr.msk.bf16.mxu0 %vm3108_vm0, %v3107_v1 }
  0x2a   : > { %2636 = vmatprep.mubr.msk.bf16.mxu1 %vm3108_vm0, %v3107_v1  ;;  %2689 = vmatpush3.bf16.msra.mxu1 %v2969_v32  ;;  %v819_v18 = vsel %vm613_vm2, %v817_v13, %v818_v14  ;;  %v821_v26 = vsel %vm613_vm2, %v818_v14, %v820_v22  ;;  %v2999_v32 = vld [vmem:[%s3778_s1 + $0x158] sm:$0xff]  }
  0x2b   : > { %2690 = vmatprep.subr.bf16.mxu1 %v3107_v1 }
  0x2c   : > { %2655 = vmatpush3.bf16.msra.mxu0 %v2967_v34  ;;  %v2998_v34 = vld [vmem:[%s3778_s1 + $0x120] sm:$0xff]  }
  0x2d   : > { %2656 = vmatprep.subr.bf16.mxu0 %v3107_v1 }
  0x2e   : > { %2691 = vmatpush3.bf16.msra.mxu1 %v2971_v37  ;;  %v3001_v37 = vld [vmem:[%s3778_s1 + $0x160] sm:$0xff]  }
  0x2f   : > { %2601 = vmatmul.mubr.bf16.gmra.mrb[4].mxu0 %v315_v39  ;;  %2692 = vmatprep.subr.bf16.mxu1 %v3107_v1  ;;  %v3002_v39 = vld [vmem:[%s3778_s1 + $0x128] sm:$0xff]  }
  0x30   : > { %2637 = vmatmul.mubr.bf16.gmra.mrb[4].mxu1 %v3208_v15  ;;  %2657 = vmatpush3.bf16.msra.mxu0 %v2970_v40  ;;  %v2992_v15 = vld [vmem:[%s3778_s1 + $0x140] sm:$0xff]   ;;  %v824_v40 = vrot.slane %v3421_v36, 1 }
  0x31   : > { %2604 = vmatprep.mubr.msk.bf16.mxu0 %vm3108_vm0, %v3107_v1  ;;  %2640 = vmatprep.mubr.msk.bf16.mxu1 %vm3108_vm0, %v3107_v1 }
  0x32   : > { %2658 = vmatprep.subr.bf16.mxu0 %v3107_v1  ;;  %2693 = vmatpush3.bf16.msra.mxu1 %v2974_v42  ;;  %v622_v42 = vsel %vm613_vm2, %v619_v29, %v621_v38 }
  0x33   : > { %2694 = vmatprep.subr.bf16.mxu1 %v3107_v1 }
  0x34   : > { %2659 = vmatpush3.bf16.msra.mxu0 %v2973_v44 }
  0x35   : > { %2660 = vmatprep.subr.bf16.mxu0 %v3107_v1 }
  0x36   : > { %2695 = vmatpush3.bf16.msra.mxu1 %v2976_v47  ;;  %v623_v47 = vrot.slane %v3299_v53, 1  ;;  %v3007_v53 = vld [vmem:[%s3778_s1 + $0x138] sm:$0xff]  }
  0x37   : > { %2605 = vmatmul.mubr.bf16.gmra.mrb[8].mxu0 %v323_v49  ;;  %2696 = vmatprep.subr.bf16.mxu1 %v3107_v1  ;;  %v990_v49 = vshll.u32 %v3347_v9, 16 }
  0x38   : > { %2641 = vmatmul.mubr.bf16.gmra.mrb[8].mxu1 %v3231_v27  ;;  %2661 = vmatpush3.bf16.msra.mxu0 %v2975_v48  ;;  %v3394_v27 = vld [vmem:[%s3189_s8 + $0x1c] sm:$0xff]   ;;  %v987_v48 = vshrl.u32 %v3347_v9, 16 }
  0x39   : > { %2608 = vmatprep.mubr.msk.bf16.mxu0 %vm3108_vm0, %v3107_v1  ;;  %2644 = vmatprep.mubr.msk.bf16.mxu1 %vm3108_vm0, %v3107_v1  ;;  %v822_v31 = vrot.slane %v3394_v27, 1  ;;  %v1013_v14 = vshrl.u32 %v3394_v27, 16 }
  0x3a   : > { %2662 = vmatprep.subr.bf16.mxu0 %v3107_v1  ;;  %2697 = vmatpush3.bf16.msra.mxu1 %v2978_v52  ;;  %v826_v52 = vrot.slane %v3005_v43, 1  ;;  %v3021_v43 = vld [vmem:[%s3778_s1 + $0x1e8] sm:$0xff]  }
  0x3b   : > { %2698 = vmatprep.subr.bf16.mxu1 %v3107_v1  ;;  %v823_v35 = vsel %vm613_vm2, %v820_v22, %v822_v31  ;;  %v825_v44 = vsel %vm613_vm2, %v822_v31, %v824_v40 }
  0x3c   : > { %2663 = vmatpush3.bf16.msra.mxu0 %v2979_v56  ;;  %v624_v56 = vsel %vm613_vm2, %v621_v38, %v623_v47 }
  0x3d   : > { %2664 = vmatprep.subr.bf16.mxu0 %v3107_v1 }
  0x3e   : > { %2699 = vmatpush3.bf16.msra.mxu1 %v2980_v57  ;;  %v989_v57 = vrot.slane %v987_v48, 1 }
  0x3f   : > { %2609 = vmatmul.mubr.bf16.gmra.mrb[12].mxu0 %v331_v58  ;;  %2700 = vmatprep.subr.bf16.mxu1 %v3107_v1  ;;  %v992_v58 = vrot.slane %v990_v49, 2 }
  0x40   : > { %2645 = vmatmul.mubr.bf16.gmra.mrb[12].mxu1 %v3247_v33  ;;  %2612 = vmatprep.mubr.msk.bf16.mxu0 %vm3108_vm0, %v3107_v1  ;;  %v620_v33 = vsel %vm613_vm2, %v617_v21, %v619_v29  ;;  %v1015_v21 = vrot.slane %v1013_v14, 1  ;;  %v1202_v29 = vrot.slane %v3394_v27, 2 }
  0x41   : > { %2648 = vmatprep.mubr.msk.bf16.mxu1 %vm3108_vm0, %v3107_v1  ;;  %2665 = vmatpush3.bf16.msra.mxu0 %v2981_v61  ;;  %v827_v61 = vsel %vm613_vm2, %v824_v40, %v826_v52  ;;  %v3024_v52 = vld [vmem:[%s3778_s1 + $0x1f0] sm:$0xff]  }
  0x42   : > { %2701 = vmatpush3.bf16.msra.mxu1 %v2983_v62  ;;  %2666 = vmatprep.subr.bf16.mxu0 %v3107_v1  ;;  %v2312_v62 = vcombine.low %v1175_v55, %v3341_v6  ;;  %v3025_v55 = vld [vmem:[%s3778_s1 + $0x1b8] sm:$0xff]  }
  0x43   : > { %2702 = vmatprep.subr.bf16.mxu1 %v3107_v1 }
  0x44   : > { %v1197_v4 = vrot.slane %v2312_v62, 2 }
  0x45   : > { %2667 = vmatpush3.bf16.msra.mxu0 %v2984_v63  ;;  %v993_v63 = vor.u32 %v992_v58, %v989_v57  ;;  %v1578_v58 = vshrl.u32 %v3566_v51, 16 }
  0x46   : > { %2703 = vmatpush3.bf16.msra.mxu1 %v2985_v3  ;;  %2724 = vmatprep.subr.bf16.mxu0 %v3107_v1  ;;  %v1007_v3 = vshll.u32 %v3368_v19, 16  ;;  %v1199_v11 = vsel %vm1196_vm4, %v1197_v4, %v1198_v5  ;;  %v3589_v4 = vld [vmem:[%s3189_s8 + $0x18] sm:$0xff]  }
  0x47   : > { %2613 = vmatmul.mubr.bf16.gmra.mrb[16].mxu0 %v339_v7  ;;  %2760 = vmatprep.subr.bf16.mxu1 %v3107_v1  ;;  %v1002_v6 = vsel %vm985_vm3, %v993_v63, %v1001_v0  ;;  %v3010_v7 = vld [vmem:[%s3778_s1 + $0x180] sm:$0xff]   ;;  %v1580_v2 = vrot.slane %v1578_v58, 2 }
  0x48   : > { %2649 = vmatmul.mubr.bf16.gmra.mrb[16].mxu1 %v3276_v45  ;;  %2668 = vmatprep.mubr.msk.bf16.mxu0 %vm3108_vm0, %v3107_v1  ;;  %v3004_v45 = vld [vmem:[%s3778_s1 + $0x130] sm:$0xff]   ;;  %v1009_v9 = vrot.slane %v1007_v3, 2  ;;  %v1583_v3 = vrot.slane %v1581_v59, 3 }
  0x49   : > { %2704 = vmatprep.mubr.msk.bf16.mxu1 %vm3108_vm0, %v3107_v1 }
  0x4a   : > { %v1010_v13 = vor.u32 %v1009_v9, %v1006_v8  ;;  %v1584_v8 = vor.u32 %v1583_v3, %v1580_v2  ;;  %v1587_v9 = vshrl.u32 %v3589_v4, 16 }
  0x4c   : > { %v1589_v14 = vrot.slane %v1587_v9, 2 }
  0x4f   : > { %2669 = vmatmul.mubr.bf16.vlgmr.msra.gmra.mrb[20].mxu0 %v616_v16  ;;  %v1016_v16 = vshll.u32 %v3394_v27, 16 }
  0x50   : > { %2705 = vmatmul.mubr.bf16.vlgmr.msra.gmra.mrb[20].mxu1 %v819_v18  ;;  %2725 = vmatpush3.bf16.msra.mxu0 %v2989_v17  ;;  %v1200_v17 = vrot.slane %v3368_v19, 2  ;;  %v3014_v18 = vld [vmem:[%s3778_s1 + $0x1c8] sm:$0xff]  }
  0x51   : > { %2726 = vmatprep.subr.bf16.mxu0 %v3107_v1  ;;  %2672 = vmatprep.mubr.msk.bf16.mxu0 %vm3108_vm0, %v3107_v1  ;;  %v1018_v22 = vrot.slane %v1016_v16, 2 }
  0x52   : > { %2708 = vmatprep.mubr.msk.bf16.mxu1 %vm3108_vm0, %v3107_v1  ;;  %2761 = vmatpush3.bf16.msra.mxu1 %v2992_v15  ;;  %v1011_v15 = vsel %vm985_vm3, %v1001_v0, %v1010_v13  ;;  %v1201_v19 = vsel %vm1196_vm4, %v1198_v5, %v1200_v17  ;;  %v1203_v27 = vsel %vm1196_vm4, %v1200_v17, %v1202_v29  ;;  %v3606_v17 = vld [vmem:[%s3189_s8 + $0x20] sm:$0xff]  }
  0x53   : > { %2762 = vmatprep.subr.bf16.mxu1 %v3107_v1 }
  0x54   : > { %2727 = vmatpush3.bf16.msra.mxu0 %v2990_v20  ;;  %v3013_v20 = vld [vmem:[%s3778_s1 + $0x190] sm:$0xff]  }
  0x55   : > { %2728 = vmatprep.subr.bf16.mxu0 %v3107_v1 }
  0x56   : > { %2763 = vmatpush3.bf16.msra.mxu1 %v2994_v23  ;;  %v3016_v23 = vld [vmem:[%s3778_s1 + $0x1d0] sm:$0xff]  }
  0x57   : > { %2673 = vmatmul.mubr.bf16.gmra.mrb[24].mxu0 %v618_v24  ;;  %2764 = vmatprep.subr.bf16.mxu1 %v3107_v1  ;;  %v1019_v24 = vor.u32 %v1018_v22, %v1015_v21  ;;  %v1596_v21 = vshrl.u32 %v3606_v17, 16  ;;  %v1599_v22 = vshll.u32 %v3606_v17, 16 }
  0x58   : > { %2709 = vmatmul.mubr.bf16.gmra.mrb[24].mxu1 %v821_v26  ;;  %2729 = vmatpush3.bf16.msra.mxu0 %v2993_v25  ;;  %v3015_v25 = vld [vmem:[%s3778_s1 + $0x198] sm:$0xff]   ;;  %v1022_v26 = vshrl.u32 %v3421_v36, 16 }
  0x59   : > { %2676 = vmatprep.mubr.msk.bf16.mxu0 %vm3108_vm0, %v3107_v1  ;;  %2712 = vmatprep.mubr.msk.bf16.mxu1 %vm3108_vm0, %v3107_v1  ;;  %v1020_v31 = vsel %vm985_vm3, %v1010_v13, %v1019_v24 }
  0x5a   : > { %2730 = vmatprep.subr.bf16.mxu0 %v3107_v1  ;;  %2765 = vmatpush3.bf16.msra.mxu1 %v2997_v28  ;;  %v1025_v28 = vshll.u32 %v3421_v36, 16 }
  0x5b   : > { %2766 = vmatprep.subr.bf16.mxu1 %v3107_v1 }
  0x5c   : > { %2731 = vmatpush3.bf16.msra.mxu0 %v2996_v30  ;;  %v3018_v30 = vld [vmem:[%s3778_s1 + $0x1d8] sm:$0xff]  }
  0x5d   : > { %2732 = vmatprep.subr.bf16.mxu0 %v3107_v1 }
  0x5e   : > { %2767 = vmatpush3.bf16.msra.mxu1 %v2999_v32  ;;  %v3017_v32 = vld [vmem:[%s3778_s1 + $0x1a0] sm:$0xff]  }
  0x5f   : > { %2677 = vmatmul.mubr.bf16.gmra.mrb[28].mxu0 %v620_v33  ;;  %2768 = vmatprep.subr.bf16.mxu1 %v3107_v1  ;;  %v1024_v33 = vrot.slane %v1022_v26, 1  ;;  %v1601_v26 = vrot.slane %v1599_v22, 3 }
  0x60   : > { %2713 = vmatmul.mubr.bf16.gmra.mrb[28].mxu1 %v823_v35  ;;  %2733 = vmatpush3.bf16.msra.mxu0 %v2998_v34  ;;  %v1027_v34 = vrot.slane %v1025_v28, 2  ;;  %v3023_v35 = vld [vmem:[%s3189_s8 + $0x2c] ss:$0 sps:$4 sm:$0x33]  }
  0x61   : > { %2680 = vmatprep.mubr.msk.bf16.mxu0 %vm3108_vm0, %v3107_v1  ;;  %2716 = vmatprep.mubr.msk.bf16.mxu1 %vm3108_vm0, %v3107_v1  ;;  %v1031_v40 = vshrl.u32 %v3023_v35, 16  ;;  %v3627_v28 = vld [vmem:[%s3189_s8 + $0x28] sm:$0xff]  }
  0x62   : > { %2734 = vmatprep.subr.bf16.mxu0 %v3107_v1  ;;  %2769 = vmatpush3.bf16.msra.mxu1 %v3001_v37  ;;  %v3019_v37 = vld [vmem:[%s3778_s1 + $0x1e0] sm:$0xff]   ;;  %v1028_v38 = vor.u32 %v1027_v34, %v1024_v33  ;;  %v1608_v33 = vshll.u32 %v3627_v28, 16 }
  0x63   : > { %2770 = vmatprep.subr.bf16.mxu1 %v3107_v1  ;;  %v1033_v47 = vrot.slane %v1031_v40, 1  ;;  %v1407_v40 = vrot.slane %v3627_v28, 2 }
  0x64   : > { %2735 = vmatpush3.bf16.msra.mxu0 %v3002_v39  ;;  %v3020_v39 = vld [vmem:[%s3778_s1 + $0x1a8] sm:$0xff]  }
  0x65   : > { %2736 = vmatprep.subr.bf16.mxu0 %v3107_v1 }
  0x66   : > { %2771 = vmatpush3.bf16.msra.mxu1 %v3003_v41  ;;  %v1034_v41 = vshll.u32 %v3023_v35, 16 }
  0x67   : > { %2681 = vmatmul.mubr.bf16.gmra.mrb[32].mxu0 %v622_v42  ;;  %2772 = vmatprep.subr.bf16.mxu1 %v3107_v1  ;;  %v1204_v42 = vrot.slane %v3421_v36, 2  ;;  %v3022_v36 = vld [vmem:[%s3778_s1 + $0x1b0] sm:$0xff]  }
  0x68   : > { %2717 = vmatmul.mubr.bf16.gmra.mrb[32].mxu1 %v825_v44  ;;  %2684 = vmatprep.mubr.msk.bf16.mxu0 %vm3108_vm0, %v3107_v1  ;;  %v1344_v44 = vld [vmem:[%s3189_s8 + $0x8] sm:$0xc]  ;;  %v1036_v48 = vrot.slane %v1034_v41, 2 }
  0x69   : > { %2720 = vmatprep.mubr.msk.bf16.mxu1 %vm3108_vm0, %v3107_v1  ;;  %2737 = vmatpush3.bf16.msra.mxu0 %v3004_v45  ;;  %v3555_v45 = vld [vmem:[%s3189_s8 + $0xc] sm:$0xf]  ;;  %v1205_v49 = vsel %vm1196_vm4, %v1202_v29, %v1204_v42  ;;  %v1405_v29 = vrot.slane %v3606_v17, 2 }
  0x6a   : > { %2773 = vmatpush3.bf16.msra.mxu1 %v3006_v46  ;;  %2738 = vmatprep.subr.bf16.mxu0 %v3107_v1  ;;  %v1029_v46 = vsel %vm985_vm3, %v1019_v24, %v1028_v38  ;;  %v2337_v50 = vcombine.low %v1344_v44, %v3555_v45  ;;  %v3037_v41 = vld [vmem:[%s3778_s1 + $0x228] sm:$0xff]  }
  0x6b   : > { %2774 = vmatprep.subr.bf16.mxu1 %v3107_v1 }
  0x6c   : > { %v1573_v57 = vshll.u32 %v2337_v50, 16  ;;  %v1400_v5 = vrot.slane %v2337_v50, 2 }
  0x6d   : > { %2739 = vmatpush3.bf16.msra.mxu0 %v3007_v53  ;;  %v1037_v53 = vor.u32 %v1036_v48, %v1033_v47  ;;  %v3039_v47 = vld [vmem:[%s3189_s8 + $0x30] ss:$0 sps:$4 sm:$0x33]  }
  0x6e   : > { %2775 = vmatpush3.bf16.msra.mxu1 %v3008_v54  ;;  %2796 = vmatprep.subr.bf16.mxu0 %v3107_v1  ;;  %v1206_v54 = vrot.slane %v3023_v35, 2  ;;  %v1575_v0 = vrot.slane %v1573_v57, 3  ;;  %v3035_v35 = vld [vmem:[%s3778_s1 + $0x220] sm:$0xff]  }
  0x6f   : > { %2685 = vmatmul.mubr.bf16.gmra.mrb[36].mxu0 %v624_v56  ;;  %2832 = vmatprep.subr.bf16.mxu1 %v3107_v1  ;;  %v1570_v56 = vshrl.u32 %v2337_v50, 16 }
  0x70   : > { %2721 = vmatmul.mubr.bf16.gmra.mrb[36].mxu1 %v827_v61  ;;  %2740 = vmatprep.mubr.msk.bf16.mxu0 %vm3108_vm0, %v3107_v1  ;;  %v1038_v61 = vsel %vm985_vm3, %v1028_v38, %v1037_v53  ;;  %v1207_v62 = vsel %vm1196_vm4, %v1204_v42, %v1206_v54  ;;  %v1610_v38 = vrot.slane %v1608_v33, 3  ;;  %v3041_v54 = vld [vmem:[%s3778_s1 + $0x238] sm:$0xff]  }
  0x71   : > { %2776 = vmatprep.mubr.msk.bf16.mxu1 %vm3108_vm0, %v3107_v1  ;;  %v1572_v63 = vrot.slane %v1570_v56, 2 }
  0x77   : > { %2741 = vmatmul.mubr.bf16.vlgmr.msra.gmra.mrb[40].mxu0 %v1002_v6  ;;  %v1401_v6 = vrot.slane %v3566_v51, 2 }
  0x78   : > { %2777 = vmatmul.mubr.bf16.vlgmr.msra.gmra.mrb[40].mxu1 %v1199_v11  ;;  %2797 = vmatpush3.bf16.msra.mxu0 %v3010_v7  ;;  %v1576_v7 = vor.u32 %v1575_v0, %v1572_v63  ;;  %v1590_v11 = vshll.u32 %v3589_v4, 16  ;;  %v1783_v0 = vrot.slane %v3589_v4, 3 }
  0x79   : > { %2798 = vmatprep.subr.bf16.mxu0 %v3107_v1  ;;  %2744 = vmatprep.mubr.msk.bf16.mxu0 %vm3108_vm0, %v3107_v1 }
  0x7a   : > { %2780 = vmatprep.mubr.msk.bf16.mxu1 %vm3108_vm0, %v3107_v1  ;;  %2833 = vmatpush3.bf16.msra.mxu1 %v3012_v12  ;;  %v1402_v12 = vsel %vm1196_vm4, %v1400_v5, %v1401_v6  ;;  %v1585_v13 = vsel %vm1568_vm5, %v1576_v7, %v1584_v8  ;;  %v1592_v16 = vrot.slane %v1590_v11, 3 }
  0x7b   : > { %2834 = vmatprep.subr.bf16.mxu1 %v3107_v1 }
  0x7c   : > { %2799 = vmatpush3.bf16.msra.mxu0 %v3011_v10  ;;  %v3029_v10 = vld [vmem:[%s3778_s1 + $0x200] sm:$0xff]  }
  0x7d   : > { %2800 = vmatprep.subr.bf16.mxu0 %v3107_v1 }
  0x7e   : > { %2835 = vmatpush3.bf16.msra.mxu1 %v3014_v18  ;;  %v3030_v18 = vld [vmem:[%s3778_s1 + $0x208] sm:$0xff]  }
  0x7f   : > { %2745 = vmatmul.mubr.bf16.gmra.mrb[44].mxu0 %v1011_v15  ;;  %2836 = vmatprep.subr.bf16.mxu1 %v3107_v1  ;;  %v1403_v15 = vrot.slane %v3589_v4, 2 }
  0x80   : > { %2781 = vmatmul.mubr.bf16.gmra.mrb[44].mxu1 %v1201_v19  ;;  %2801 = vmatpush3.bf16.msra.mxu0 %v3013_v20  ;;  %v1593_v20 = vor.u32 %v1592_v16, %v1589_v14 }
  0x81   : > { %2748 = vmatprep.mubr.msk.bf16.mxu0 %vm3108_vm0, %v3107_v1  ;;  %2784 = vmatprep.mubr.msk.bf16.mxu1 %vm3108_vm0, %v3107_v1  ;;  %v1404_v19 = vsel %vm1196_vm4, %v1401_v6, %v1403_v15  ;;  %v1406_v34 = vsel %vm1196_vm4, %v1403_v15, %v1405_v29 }
  0x82   : > { %2802 = vmatprep.subr.bf16.mxu0 %v3107_v1  ;;  %2837 = vmatpush3.bf16.msra.mxu1 %v3016_v23  ;;  %v3032_v23 = vld [vmem:[%s3778_s1 + $0x210] sm:$0xff]   ;;  %v1594_v24 = vsel %vm1568_vm5, %v1584_v8, %v1593_v20 }
  0x83   : > { %2838 = vmatprep.subr.bf16.mxu1 %v3107_v1 }
  0x84   : > { %2803 = vmatpush3.bf16.msra.mxu0 %v3015_v25  ;;  %v1598_v25 = vrot.slane %v1596_v21, 2 }
  0x85   : > { %2804 = vmatprep.subr.bf16.mxu0 %v3107_v1 }
  0x86   : > { %2839 = vmatpush3.bf16.msra.mxu1 %v3018_v30  ;;  %v3034_v30 = vld [vmem:[%s3778_s1 + $0x218] sm:$0xff]  }
  0x87   : > { %2749 = vmatmul.mubr.bf16.gmra.mrb[48].mxu0 %v1020_v31  ;;  %2840 = vmatprep.subr.bf16.mxu1 %v3107_v1  ;;  %v1602_v31 = vor.u32 %v1601_v26, %v1598_v25 }
  0x88   : > { %2785 = vmatmul.mubr.bf16.gmra.mrb[48].mxu1 %v1203_v27  ;;  %2805 = vmatpush3.bf16.msra.mxu0 %v3017_v32  ;;  %v1605_v32 = vshrl.u32 %v3627_v28, 16 }
  0x89   : > { %2752 = vmatprep.mubr.msk.bf16.mxu0 %vm3108_vm0, %v3107_v1  ;;  %2788 = vmatprep.mubr.msk.bf16.mxu1 %vm3108_vm0, %v3107_v1  ;;  %v1603_v27 = vsel %vm1568_vm5, %v1593_v20, %v1602_v31 }
  0x8a   : > { %2806 = vmatprep.subr.bf16.mxu0 %v3107_v1  ;;  %2841 = vmatpush3.bf16.msra.mxu1 %v3019_v37  ;;  %v1607_v37 = vrot.slane %v1605_v32, 2 }
  0x8b   : > { %2842 = vmatprep.subr.bf16.mxu1 %v3107_v1 }
  0x8c   : > { %2807 = vmatpush3.bf16.msra.mxu0 %v3020_v39  ;;  %v3649_v39 = vld [vmem:[%s3189_s8 + $0x30] ss:$0 sps:$4 sm:$0x77]   ;;  %v1611_v42 = vor.u32 %v1610_v38, %v1607_v37 }
  0x8d   : > { %2808 = vmatprep.subr.bf16.mxu0 %v3107_v1  ;;  %v1617_v44 = vshll.u32 %v3649_v39, 16 }
  0x8e   : > { %2843 = vmatpush3.bf16.msra.mxu1 %v3021_v43  ;;  %v1614_v43 = vshrl.u32 %v3649_v39, 16  ;;  %v1612_v48 = vsel %vm1568_vm5, %v1602_v31, %v1611_v42 }
  0x8f   : > { %2753 = vmatmul.mubr.bf16.gmra.mrb[52].mxu0 %v1029_v46  ;;  %2844 = vmatprep.subr.bf16.mxu1 %v3107_v1  ;;  %v1408_v46 = vsel %vm1196_vm4, %v1405_v29, %v1407_v40  ;;  %v1619_v50 = vrot.slane %v1617_v44, 3 }
  0x90   : > { %2789 = vmatmul.mubr.bf16.gmra.mrb[52].mxu1 %v1205_v49  ;;  %2756 = vmatprep.mubr.msk.bf16.mxu0 %vm3108_vm0, %v3107_v1  ;;  %v3038_v49 = vld [vmem:[%s3778_s1 + $0x230] sm:$0xff]  }
  0x91   : > { %2792 = vmatprep.mubr.msk.bf16.mxu1 %vm3108_vm0, %v3107_v1  ;;  %2809 = vmatpush3.bf16.msra.mxu0 %v3022_v36  ;;  %v1616_v36 = vrot.slane %v1614_v43, 2 }
  0x92   : > { %2845 = vmatpush3.bf16.msra.mxu1 %v3024_v52  ;;  %2810 = vmatprep.subr.bf16.mxu0 %v3107_v1  ;;  %v1409_v52 = vrot.slane %v3039_v47, 2 }
  0x93   : > { %2846 = vmatprep.subr.bf16.mxu1 %v3107_v1  ;;  %v1620_v53 = vor.u32 %v1619_v50, %v1616_v36 }
  0x94   : > { %v1410_v56 = vsel %vm1196_vm4, %v1407_v40, %v1409_v52 }
  0x95   : > { %2811 = vmatpush3.bf16.msra.mxu0 %v3025_v55  ;;  %v1758_v55 = vld [vmem:[%s3189_s8 + $0x8] sm:$0x8]  ;;  %v1621_v58 = vsel %vm1568_vm5, %v1611_v42, %v1620_v53 }
  0x96   : > { %2847 = vmatpush3.bf16.msra.mxu1 %v3026_v60  ;;  %2868 = vmatprep.subr.bf16.mxu0 %v3107_v1  ;;  %v2392_v57 = vcombine.low %v1758_v55, %v3555_v45  ;;  %v1781_v60 = vrot.slane %v3566_v51, 3  ;;  %v1787_v45 = vrot.slane %v3627_v28, 3  ;;  %v1789_v51 = vrot.slane %v3649_v39, 3 }
  0x97   : > { %2757 = vmatmul.mubr.bf16.gmra.mrb[56].mxu0 %v1038_v61  ;;  %2904 = vmatprep.subr.bf16.mxu1 %v3107_v1  ;;  %v1785_v61 = vrot.slane %v3606_v17, 3 }
  0x98   : > { %2793 = vmatmul.mubr.bf16.gmra.mrb[56].mxu1 %v1207_v62  ;;  %2812 = vmatprep.mubr.msk.bf16.mxu0 %vm3108_vm0, %v3107_v1  ;;  %v1780_v59 = vrot.slane %v2392_v57, 3  ;;  %v1784_v2 = vsel %vm1779_vm6, %v1781_v60, %v1783_v0  ;;  %v1790_v3 = vsel %vm1779_vm6, %v1787_v45, %v1789_v51 }
  0x99   : > { %2848 = vmatprep.mubr.msk.bf16.mxu1 %vm3108_vm0, %v3107_v1  ;;  %v1788_v63 = vsel %vm1779_vm6, %v1785_v61, %v1787_v45  ;;  %v1786_v5 = vsel %vm1779_vm6, %v1783_v0, %v1785_v61 }
  0x9a   : > { %v1782_v62 = vsel %vm1779_vm6, %v1780_v59, %v1781_v60 }
  0x9f   : > { %2813 = vmatmul.mubr.bf16.vlgmr.msra.gmra.mrb[60].mxu0 %v1402_v12 }
  0xa0   : > { %2849 = vmatmul.mubr.bf16.vlgmr.msra.gmra.mrb[60].mxu1 %v1585_v13  ;;  %2869 = vmatpush3.bf16.msra.mxu0 %v3029_v10 }
  0xa1   : > { %2870 = vmatprep.subr.bf16.mxu0 %v3107_v1  ;;  %2816 = vmatprep.mubr.msk.bf16.mxu0 %vm3108_vm0, %v3107_v1 }
  0xa2   : > { %2852 = vmatprep.mubr.msk.bf16.mxu1 %vm3108_vm0, %v3107_v1  ;;  %2912 = vmatpush3.bf16.msra.mxu1 %v3029_v10 }
  0xa3   : > { %2905 = vmatprep.subr.bf16.mxu1 %v3107_v1 }
  0xa4   : > { %2871 = vmatpush3.bf16.msra.mxu0 %v3030_v18 }
  0xa5   : > { %2872 = vmatprep.subr.bf16.mxu0 %v3107_v1 }
  0xa6   : > { %2913 = vmatpush3.bf16.msra.mxu1 %v3030_v18 }
  0xa7   : > { %2817 = vmatmul.mubr.bf16.gmra.mrb[64].mxu0 %v1404_v19  ;;  %2906 = vmatprep.subr.bf16.mxu1 %v3107_v1 }
  0xa8   : > { %2853 = vmatmul.mubr.bf16.gmra.mrb[64].mxu1 %v1594_v24  ;;  %2873 = vmatpush3.bf16.msra.mxu0 %v3032_v23 }
  0xa9   : > { %2820 = vmatprep.mubr.msk.bf16.mxu0 %vm3108_vm0, %v3107_v1  ;;  %2856 = vmatprep.mubr.msk.bf16.mxu1 %vm3108_vm0, %v3107_v1 }
  0xaa   : > { %2874 = vmatprep.subr.bf16.mxu0 %v3107_v1  ;;  %2914 = vmatpush3.bf16.msra.mxu1 %v3032_v23 }
  0xab   : > { %2907 = vmatprep.subr.bf16.mxu1 %v3107_v1 }
  0xac   : > { %2875 = vmatpush3.bf16.msra.mxu0 %v3034_v30 }
  0xad   : > { %2876 = vmatprep.subr.bf16.mxu0 %v3107_v1 }
  0xae   : > { %2915 = vmatpush3.bf16.msra.mxu1 %v3034_v30 }
  0xaf   : > { %2821 = vmatmul.mubr.bf16.gmra.mrb[68].mxu0 %v1406_v34  ;;  %2908 = vmatprep.subr.bf16.mxu1 %v3107_v1 }
  0xb0   : > { %2857 = vmatmul.mubr.bf16.gmra.mrb[68].mxu1 %v1603_v27  ;;  %2877 = vmatpush3.bf16.msra.mxu0 %v3035_v35 }
  0xb1   : > { %2824 = vmatprep.mubr.msk.bf16.mxu0 %vm3108_vm0, %v3107_v1  ;;  %2860 = vmatprep.mubr.msk.bf16.mxu1 %vm3108_vm0, %v3107_v1 }
  0xb2   : > { %2916 = vmatpush3.bf16.msra.mxu1 %v3035_v35  ;;  %2878 = vmatprep.subr.bf16.mxu0 %v3107_v1 }
  0xb3   : > { %2909 = vmatprep.subr.bf16.mxu1 %v3107_v1 }
  0xb4   : > { %2879 = vmatpush3.bf16.msra.mxu0 %v3037_v41 }
  0xb5   : > { %2880 = vmatprep.subr.bf16.mxu0 %v3107_v1 }
  0xb6   : > { %2917 = vmatpush3.bf16.msra.mxu1 %v3037_v41 }
  0xb7   : > { %2825 = vmatmul.mubr.bf16.gmra.mrb[72].mxu0 %v1408_v46  ;;  %2910 = vmatprep.subr.bf16.mxu1 %v3107_v1 }
  0xb8   : > { %2861 = vmatmul.mubr.bf16.gmra.mrb[72].mxu1 %v1612_v48  ;;  %2828 = vmatprep.mubr.msk.bf16.mxu0 %vm3108_vm0, %v3107_v1 }
  0xb9   : > { %2864 = vmatprep.mubr.msk.bf16.mxu1 %vm3108_vm0, %v3107_v1  ;;  %2881 = vmatpush3.bf16.msra.mxu0 %v3038_v49 }
  0xba   : > { %2918 = vmatpush3.bf16.msra.mxu1 %v3038_v49  ;;  %2882 = vmatprep.subr.bf16.mxu0 %v3107_v1 }
  0xbb   : > { %2911 = vmatprep.subr.bf16.mxu1 %v3107_v1 }
  0xbd   : > { %2883 = vmatpush3.bf16.msra.mxu0 %v3041_v54 }
  0xbe   : > { %2919 = vmatpush3.bf16.msra.mxu1 %v3041_v54 }
  0xbf   : > { %2829 = vmatmul.mubr.bf16.gmra.mrb[76].mxu0 %v1410_v56 }
  0xc0   : > { %2865 = vmatmul.mubr.bf16.gmra.mrb[76].mxu1 %v1621_v58  ;;  %2884 = vmatprep.mubr.msk.bf16.mxu0 %vm3108_vm0, %v3107_v1 }
  0xc1   : > { %2896 = vmatprep.mubr.msk.bf16.mxu1 %vm3108_vm0, %v3107_v1 }
  0xc7   : > { %2885 = vmatmul.mubr.bf16.vlgmr.msra.gmra.mrb[80].mxu0 %v1782_v62 }
  0xc8   : > { %2897 = vmatmul.mubr.bf16.vlgmr.msra.gmra.mrb[80].mxu1 %v1788_v63  ;;  %2888 = vmatprep.mubr.msk.bf16.mxu0 %vm3108_vm0, %v3107_v1 }
  0xc9   : > { %2900 = vmatprep.mubr.msk.bf16.mxu1 %vm3108_vm0, %v3107_v1 }
  0xcf   : > { %2889 = vmatmul.mubr.bf16.gmra.mrb[84].mxu0 %v1784_v2 }
  0xd0   : > { %2901 = vmatmul.mubr.bf16.gmra.mrb[84].mxu1 %v1790_v3  ;;  %2892 = vmatprep.mubr.msk.bf16.mxu0 %vm3108_vm0, %v3107_v1 }
  0xd7   : > { %2893 = vmatmul.mubr.bf16.gmra.mrb[88].mxu0 %v1786_v5 }
  0xfa   : > { %v427_v6 = vpop.f32.mrb[0].mxu0 }
  0xfb   : > { %v553_v7 = vpop.f32.mrb[0].mxu1  ;;  %v2598_v4 = vpop.f32.mrb[1].mxu0 }
  0xfc   : > { %v554_v8 = vadd.f32 %v553_v7, %v427_v6  ;;  %v2634_v9 = vpop.f32.mrb[1].mxu1  ;;  %v430_v11 = vpop.f32.mrb[2].mxu0 }
  0xfd   : > { %v556_v12 = vpop.f32.mrb[2].mxu1  ;;  %v2599_v10 = vpop.f32.mrb[3].mxu0 }
  0xfe   : > { %v557_v13 = vadd.f32 %v556_v12, %v430_v11  ;;  %v2635_v14 = vpop.f32.mrb[3].mxu1 }
 0x102   : > { %v435_v16 = vpop.f32.mrb[4].mxu0 }
 0x103   : > { %v561_v17 = vpop.f32.mrb[4].mxu1  ;;  %v2602_v18 = vpop.f32.mrb[5].mxu0 }
 0x104   : > { %v562_v15 = vadd.f32 %v561_v17, %v435_v16  ;;  %v2638_v20 = vpop.f32.mrb[5].mxu1  ;;  %v438_v21 = vpop.f32.mrb[6].mxu0 }
 0x105   : > { %v564_v1 = vpop.f32.mrb[6].mxu1  ;;  %v2603_v22 = vpop.f32.mrb[7].mxu0 }
 0x106   : > { %v565_v19 = vadd.f32 %v564_v1, %v438_v21  ;;  %v2639_v23 = vpop.f32.mrb[7].mxu1 }
 0x10a   : > { %v443_v24 = vpop.f32.mrb[8].mxu0 }
 0x10b   : > { %v569_v25 = vpop.f32.mrb[8].mxu1  ;;  %v2606_v26 = vpop.f32.mrb[9].mxu0 }
 0x10c   : > { %v570_v28 = vadd.f32 %v569_v25, %v443_v24  ;;  %v2642_v29 = vpop.f32.mrb[9].mxu1  ;;  %v446_v30 = vpop.f32.mrb[10].mxu0 }
 0x10d   : > { %v572_v31 = vpop.f32.mrb[10].mxu1  ;;  %v2607_v32 = vpop.f32.mrb[11].mxu0 }
 0x10e   : > { %v573_v33 = vadd.f32 %v572_v31, %v446_v30  ;;  %v2643_v34 = vpop.f32.mrb[11].mxu1 }
 0x112   : > { %v451_v35 = vpop.f32.mrb[12].mxu0 }
 0x113   : > { %v577_v27 = vpop.f32.mrb[12].mxu1  ;;  %v2610_v37 = vpop.f32.mrb[13].mxu0 }
 0x114   : > { %v578_v38 = vadd.f32 %v577_v27, %v451_v35  ;;  %v2646_v39 = vpop.f32.mrb[13].mxu1  ;;  %v454_v40 = vpop.f32.mrb[14].mxu0 }
 0x115   : > { %v580_v41 = vpop.f32.mrb[14].mxu1  ;;  %v2611_v42 = vpop.f32.mrb[15].mxu0 }
 0x116   : > { %v581_v43 = vadd.f32 %v580_v41, %v454_v40  ;;  %v2647_v44 = vpop.f32.mrb[15].mxu1 }
 0x11a   : > { %v459_v46 = vpop.f32.mrb[16].mxu0 }
 0x11b   : > { %v585_v47 = vpop.f32.mrb[16].mxu1  ;;  %v2614_v48 = vpop.f32.mrb[17].mxu0 }
 0x11c   : > { %v586_v49 = vadd.f32 %v585_v47, %v459_v46  ;;  %v2650_v36 = vpop.f32.mrb[17].mxu1  ;;  %v462_v50 = vpop.f32.mrb[18].mxu0 }
 0x11d   : > { %v588_v52 = vpop.f32.mrb[18].mxu1  ;;  %v2615_v53 = vpop.f32.mrb[19].mxu0 }
 0x11e   : > { %v589_v54 = vadd.f32 %v588_v52, %v462_v50  ;;  %v2651_v55 = vpop.f32.mrb[19].mxu1 }
 0x122   : > { %v712_v56 = vpop.f32.mrb[20].mxu0 }
 0x123   : > { %v751_v57 = vadd.f32 %v712_v56, %v554_v8  ;;  %v2670_v58 = vpop.f32.mrb[21].mxu0  ;;  %v915_v59 = vpop.f32.mrb[20].mxu1 }
 0x124   : > { %v715_v60 = vpop.f32.mrb[22].mxu0  ;;  %v2706_v61 = vpop.f32.mrb[21].mxu1 }
 0x125   : > { %v752_v45 = vadd.f32 %v715_v60, %v557_v13  ;;  %v954_v62 = vadd.f32 %v915_v59, %v751_v57  ;;  %v2671_v63 = vpop.f32.mrb[23].mxu0  ;;  %v918_v0 = vpop.f32.mrb[22].mxu1 }
 0x126   : > { %v2707_v51 = vpop.f32.mrb[23].mxu1 }
 0x127   : > { %v955_v2 = vadd.f32 %v918_v0, %v752_v45 }
 0x12a   : > { %v720_v3 = vpop.f32.mrb[24].mxu0 }
 0x12b   : > { %v753_v5 = vadd.f32 %v720_v3, %v562_v15  ;;  %v2674_v6 = vpop.f32.mrb[25].mxu0  ;;  %v923_v7 = vpop.f32.mrb[24].mxu1 }
 0x12c   : > { %v723_v4 = vpop.f32.mrb[26].mxu0  ;;  %v2710_v9 = vpop.f32.mrb[25].mxu1 }
 0x12d   : > { %v754_v11 = vadd.f32 %v723_v4, %v565_v19  ;;  %v956_v12 = vadd.f32 %v923_v7, %v753_v5  ;;  %v2675_v10 = vpop.f32.mrb[27].mxu0  ;;  %v926_v8 = vpop.f32.mrb[26].mxu1 }
 0x12e   : > { %v2711_v14 = vpop.f32.mrb[27].mxu1 }
 0x12f   : > { %v957_v16 = vadd.f32 %v926_v8, %v754_v11 }
 0x132   : > { %v728_v17 = vpop.f32.mrb[28].mxu0 }
 0x133   : > { %v755_v18 = vadd.f32 %v728_v17, %v570_v28  ;;  %v2678_v13 = vpop.f32.mrb[29].mxu0  ;;  %v931_v20 = vpop.f32.mrb[28].mxu1 }
 0x134   : > { %v731_v21 = vpop.f32.mrb[30].mxu0  ;;  %v2714_v1 = vpop.f32.mrb[29].mxu1 }
 0x135   : > { %v756_v22 = vadd.f32 %v731_v21, %v573_v33  ;;  %v958_v23 = vadd.f32 %v931_v20, %v755_v18  ;;  %v2679_v24 = vpop.f32.mrb[31].mxu0  ;;  %v934_v15 = vpop.f32.mrb[30].mxu1 }
 0x136   : > { %v2715_v25 = vpop.f32.mrb[31].mxu1 }
 0x137   : > { %v959_v26 = vadd.f32 %v934_v15, %v756_v22 }
 0x13a   : > { %v736_v29 = vpop.f32.mrb[32].mxu0 }
 0x13b   : > { %v757_v30 = vadd.f32 %v736_v29, %v578_v38  ;;  %v2682_v19 = vpop.f32.mrb[33].mxu0  ;;  %v939_v31 = vpop.f32.mrb[32].mxu1 }
 0x13c   : > { %v739_v32 = vpop.f32.mrb[34].mxu0  ;;  %v2718_v34 = vpop.f32.mrb[33].mxu1 }
 0x13d   : > { %v758_v35 = vadd.f32 %v739_v32, %v581_v43  ;;  %v960_v27 = vadd.f32 %v939_v31, %v757_v30  ;;  %v2683_v37 = vpop.f32.mrb[35].mxu0  ;;  %v942_v28 = vpop.f32.mrb[34].mxu1 }
 0x13e   : > { %v2719_v39 = vpop.f32.mrb[35].mxu1 }
 0x13f   : > { %v961_v40 = vadd.f32 %v942_v28, %v758_v35 }
 0x142   : > { %v744_v41 = vpop.f32.mrb[36].mxu0 }
 0x143   : > { %v759_v42 = vadd.f32 %v744_v41, %v586_v49  ;;  %v2686_v33 = vpop.f32.mrb[37].mxu0  ;;  %v947_v44 = vpop.f32.mrb[36].mxu1 }
 0x144   : > { %v747_v46 = vpop.f32.mrb[38].mxu0  ;;  %v2722_v47 = vpop.f32.mrb[37].mxu1 }
 0x145   : > { %v760_v48 = vadd.f32 %v747_v46, %v589_v54  ;;  %v962_v36 = vadd.f32 %v947_v44, %v759_v42  ;;  %v2687_v50 = vpop.f32.mrb[39].mxu0  ;;  %v950_v38 = vpop.f32.mrb[38].mxu1 }
 0x146   : > { %v2723_v52 = vpop.f32.mrb[39].mxu1 }
 0x147   : > { %v963_v53 = vadd.f32 %v950_v38, %v760_v48 }
 0x14a   : > { %v1126_v55 = vpop.f32.mrb[40].mxu0 }
 0x14b   : > { %v1165_v56 = vadd.f32 %v1126_v55, %v954_v62  ;;  %v2742_v43 = vpop.f32.mrb[41].mxu0  ;;  %v1295_v57 = vpop.f32.mrb[40].mxu1 }
 0x14c   : > { %v1129_v58 = vpop.f32.mrb[42].mxu0  ;;  %v2778_v59 = vpop.f32.mrb[41].mxu1 }
 0x14d   : > { %v1166_v60 = vadd.f32 %v1129_v58, %v955_v2  ;;  %v1334_v61 = vadd.f32 %v1295_v57, %v1165_v56  ;;  %v2743_v45 = vpop.f32.mrb[43].mxu0  ;;  %v1298_v49 = vpop.f32.mrb[42].mxu1 }
 0x14e   : > { %v2779_v63 = vpop.f32.mrb[43].mxu1 }
 0x14f   : > { %v1335_v0 = vadd.f32 %v1298_v49, %v1166_v60 }
 0x152   : > { %v1134_v51 = vpop.f32.mrb[44].mxu0 }
 0x153   : > { %v1167_v3 = vadd.f32 %v1134_v51, %v956_v12  ;;  %v2746_v54 = vpop.f32.mrb[45].mxu0  ;;  %v1303_v5 = vpop.f32.mrb[44].mxu1 }
 0x154   : > { %v1137_v6 = vpop.f32.mrb[46].mxu0  ;;  %v2782_v7 = vpop.f32.mrb[45].mxu1 }
 0x155   : > { %v1168_v4 = vadd.f32 %v1137_v6, %v957_v16  ;;  %v1336_v9 = vadd.f32 %v1303_v5, %v1167_v3  ;;  %v2747_v11 = vpop.f32.mrb[47].mxu0  ;;  %v1306_v62 = vpop.f32.mrb[46].mxu1 }
 0x156   : > { %v2783_v10 = vpop.f32.mrb[47].mxu1 }
 0x157   : > { %v1337_v8 = vadd.f32 %v1306_v62, %v1168_v4 }
 0x15a   : > { %v1142_v14 = vpop.f32.mrb[48].mxu0 }
 0x15b   : > { %v1169_v17 = vadd.f32 %v1142_v14, %v958_v23  ;;  %v2750_v2 = vpop.f32.mrb[49].mxu0  ;;  %v1311_v18 = vpop.f32.mrb[48].mxu1 }
 0x15c   : > { %v1145_v13 = vpop.f32.mrb[50].mxu0  ;;  %v2786_v20 = vpop.f32.mrb[49].mxu1 }
 0x15d   : > { %v1170_v21 = vadd.f32 %v1145_v13, %v959_v26  ;;  %v1338_v1 = vadd.f32 %v1311_v18, %v1169_v17  ;;  %v2751_v22 = vpop.f32.mrb[51].mxu0  ;;  %v1314_v12 = vpop.f32.mrb[50].mxu1 }
 0x15e   : > { %v2787_v24 = vpop.f32.mrb[51].mxu1 }
 0x15f   : > { %v1339_v15 = vadd.f32 %v1314_v12, %v1170_v21 }
 0x162   : > { %v1150_v25 = vpop.f32.mrb[52].mxu0 }
 0x163   : > { %v1171_v29 = vadd.f32 %v1150_v25, %v960_v27  ;;  %v2754_v16 = vpop.f32.mrb[53].mxu0  ;;  %v1319_v30 = vpop.f32.mrb[52].mxu1 }
 0x164   : > { %v1153_v19 = vpop.f32.mrb[54].mxu0  ;;  %v2790_v31 = vpop.f32.mrb[53].mxu1 }
 0x165   : > { %v1172_v32 = vadd.f32 %v1153_v19, %v961_v40  ;;  %v1340_v34 = vadd.f32 %v1319_v30, %v1171_v29  ;;  %v2755_v35 = vpop.f32.mrb[55].mxu0  ;;  %v1322_v23 = vpop.f32.mrb[54].mxu1 }
 0x166   : > { %v2791_v37 = vpop.f32.mrb[55].mxu1 }
 0x167   : > { %v1341_v28 = vadd.f32 %v1322_v23, %v1172_v32 }
 0x16a   : > { %v1158_v39 = vpop.f32.mrb[56].mxu0 }
 0x16b   : > { %v1173_v41 = vadd.f32 %v1158_v39, %v962_v36  ;;  %v2758_v26 = vpop.f32.mrb[57].mxu0  ;;  %v1327_v42 = vpop.f32.mrb[56].mxu1 }
 0x16c   : > { %v1161_v33 = vpop.f32.mrb[58].mxu0  ;;  %v2794_v44 = vpop.f32.mrb[57].mxu1 }
 0x16d   : > { %v1174_v46 = vadd.f32 %v1161_v33, %v963_v53  ;;  %v1342_v47 = vadd.f32 %v1327_v42, %v1173_v41  ;;  %v2759_v48 = vpop.f32.mrb[59].mxu0  ;;  %v1330_v27 = vpop.f32.mrb[58].mxu1 }
 0x16e   : > { %v2795_v50 = vpop.f32.mrb[59].mxu1 }
 0x16f   : > { %v1343_v38 = vadd.f32 %v1330_v27, %v1174_v46 }
 0x172   : > { %v1498_v52 = vpop.f32.mrb[60].mxu0 }
 0x173   : > { %v1537_v55 = vadd.f32 %v1498_v52, %v1334_v61  ;;  %v2814_v40 = vpop.f32.mrb[61].mxu0  ;;  %v1709_v56 = vpop.f32.mrb[60].mxu1 }
 0x174   : > { %v1501_v43 = vpop.f32.mrb[62].mxu0  ;;  %v2850_v57 = vpop.f32.mrb[61].mxu1 }
 0x175   : > { %v1538_v58 = vadd.f32 %v1501_v43, %v1335_v0  ;;  %v1748_v59 = vadd.f32 %v1709_v56, %v1537_v55  ;;  %v2815_v60 = vpop.f32.mrb[63].mxu0  ;;  %v1712_v36 = vpop.f32.mrb[62].mxu1 }
 0x176   : > { %v2851_v45 = vpop.f32.mrb[63].mxu1 }
 0x177   : > { %v1749_v49 = vadd.f32 %v1712_v36, %v1538_v58 }
 0x17a   : > { %v1506_v63 = vpop.f32.mrb[64].mxu0 }
 0x17b   : > { %v1539_v51 = vadd.f32 %v1506_v63, %v1336_v9  ;;  %v2818_v53 = vpop.f32.mrb[65].mxu0  ;;  %v1717_v3 = vpop.f32.mrb[64].mxu1 }
 0x17c   : > { %v1509_v54 = vpop.f32.mrb[66].mxu0  ;;  %v2854_v5 = vpop.f32.mrb[65].mxu1 }
 0x17d   : > { %v1540_v6 = vadd.f32 %v1509_v54, %v1337_v8  ;;  %v3705_v7 = vadd.f32 %v1717_v3, %v1539_v51  ;;  %v2819_v61 = vpop.f32.mrb[67].mxu0  ;;  %v1720_v4 = vpop.f32.mrb[66].mxu1 }
 0x17e   : > { %v2855_v11 = vpop.f32.mrb[67].mxu1 }
 0x17f   : > { %v3707_v62 = vadd.f32 %v1720_v4, %v1540_v6 }
 0x182   : > { %v1514_v0 = vpop.f32.mrb[68].mxu0 }
 0x183   : > { %v1541_v10 = vadd.f32 %v1514_v0, %v1338_v1  ;;  %v2822_v14 = vpop.f32.mrb[69].mxu0  ;;  %v1725_v17 = vpop.f32.mrb[68].mxu1 }
 0x184   : > { %v1517_v2 = vpop.f32.mrb[70].mxu0  ;;  %v2858_v18 = vpop.f32.mrb[69].mxu1 }
 0x185   : > { %v1542_v13 = vadd.f32 %v1517_v2, %v1339_v15  ;;  %v3709_v9 = vadd.f32 %v1725_v17, %v1541_v10  ;;  %v2823_v20 = vpop.f32.mrb[71].mxu0  ;;  %v1728_v21 = vpop.f32.mrb[70].mxu1 }
 0x186   : > { %v2859_v22 = vpop.f32.mrb[71].mxu1 }
 0x187   : > { %v3711_v8 = vadd.f32 %v1728_v21, %v1542_v13 }
 0x18a   : > { %v1522_v12 = vpop.f32.mrb[72].mxu0 }
 0x18b   : > { %v1543_v24 = vadd.f32 %v1522_v12, %v1340_v34  ;;  %v2826_v25 = vpop.f32.mrb[73].mxu0  ;;  %v1733_v29 = vpop.f32.mrb[72].mxu1 }
 0x18c   : > { %v1525_v16 = vpop.f32.mrb[74].mxu0  ;;  %v2862_v30 = vpop.f32.mrb[73].mxu1 }
 0x18d   : > { %v1544_v19 = vadd.f32 %v1525_v16, %v1341_v28  ;;  %v1754_v1 = vadd.f32 %v1733_v29, %v1543_v24  ;;  %v2827_v31 = vpop.f32.mrb[75].mxu0  ;;  %v1736_v32 = vpop.f32.mrb[74].mxu1  ;;  %v3716_v28 = vld [vmem:[%s3779_s2] ss:$0 sm:$0xff] }
 0x18e   : > { %v2863_v35 = vpop.f32.mrb[75].mxu1 }
 0x18f   : > { %v1755_v23 = vadd.f32 %v1736_v32, %v1544_v19 }
 0x192   : > { %v1530_v15 = vpop.f32.mrb[76].mxu0 }
 0x193   : > { %v1545_v37 = vadd.f32 %v1530_v15, %v1342_v47  ;;  %v2830_v39 = vpop.f32.mrb[77].mxu0  ;;  %v1741_v41 = vpop.f32.mrb[76].mxu1 }
 0x194   : > { %v1533_v26 = vpop.f32.mrb[78].mxu0  ;;  %v2866_v42 = vpop.f32.mrb[77].mxu1 }
 0x195   : > { %v1546_v33 = vadd.f32 %v1533_v26, %v1343_v38  ;;  %v1756_v44 = vadd.f32 %v1741_v41, %v1545_v37  ;;  %v2831_v46 = vpop.f32.mrb[79].mxu0  ;;  %v1744_v34 = vpop.f32.mrb[78].mxu1 }
 0x196   : > { %v2867_v48 = vpop.f32.mrb[79].mxu1 }
 0x197   : > { %v1757_v27 = vadd.f32 %v1744_v34, %v1546_v33 }
 0x19a   : > { %v1878_v50 = vpop.f32.mrb[80].mxu0 }
 0x19b   : > { %v1917_v52 = vadd.f32 %v1878_v50, %v1748_v59  ;;  %v1902_v55 = vpop.f32.mrb[80].mxu1  ;;  %v2886_v40 = vpop.f32.mrb[81].mxu0 }
 0x19c   : > { %v1923_v47 = vadd.f32 %v1902_v55, %v1754_v1  ;;  %v2898_v56 = vpop.f32.mrb[81].mxu1  ;;  %v1881_v43 = vpop.f32.mrb[82].mxu0 }
 0x19d   : > { %v3719_v57 = vadd.f32 %v3716_v28, %v1917_v52  ;;  %v1918_v38 = vadd.f32 %v1881_v43, %v1749_v49  ;;  %v1905_v58 = vpop.f32.mrb[82].mxu1  ;;  %v2887_v60 = vpop.f32.mrb[83].mxu0 }
 0x19e   : > { %v3722_v36 = vadd.f32 %v3716_v28, %v1923_v47  ;;  %v1924_v45 = vadd.f32 %v1905_v58, %v1755_v23  ;;  %v2899_v63 = vpop.f32.mrb[83].mxu1 }
 0x19f   : > { %v2402_v51 = vmul.f32 -1.442695, %v3719_v57  ;;  %v3726_v59 = vadd.f32 %v3716_v28, %v1918_v38 }
 0x1a0   : > { %v2408_v53 = vmul.f32 -1.442695, %v3722_v36  ;;  %v3730_v3 = vadd.f32 %v3716_v28, %v1924_v45 }
 0x1a1   : > { %3043 = vpow2.f32 %v2402_v51  ;;  %v2403_v49 = vmul.f32 -1.442695, %v3726_v59 }
 0x1a2   : > { %3045 = vpow2.f32 %v2408_v53  ;;  %v2409_v54 = vmul.f32 -1.442695, %v3730_v3  ;;  %v1886_v5 = vpop.f32.mrb[84].mxu0 }
 0x1a3   : > { %3047 = vpow2.f32 %v2403_v49  ;;  %v1919_v6 = vadd.f32 %v1886_v5, %v3705_v7  ;;  %v1910_v61 = vpop.f32.mrb[84].mxu1  ;;  %v2890_v4 = vpop.f32.mrb[85].mxu0 }
 0x1a4   : > { %3049 = vpow2.f32 %v2409_v54  ;;  %v1925_v11 = vadd.f32 %v1910_v61, %v1756_v44  ;;  %v2902_v0 = vpop.f32.mrb[85].mxu1  ;;  %v1889_v10 = vpop.f32.mrb[86].mxu0 }
 0x1a5   : > { %v3736_v14 = vadd.f32 %v3716_v28, %v1919_v6  ;;  %v1920_v17 = vadd.f32 %v1889_v10, %v3707_v62  ;;  %v1913_v2 = vpop.f32.mrb[86].mxu1  ;;  %v2891_v18 = vpop.f32.mrb[87].mxu0 }
 0x1a6   : > { %v3740_v13 = vadd.f32 %v3716_v28, %v1925_v11  ;;  %v1926_v20 = vadd.f32 %v1913_v2, %v1757_v27  ;;  %v2903_v21 = vpop.f32.mrb[87].mxu1 }
 0x1a7   : > { %v2404_v7 = vmul.f32 -1.442695, %v3736_v14  ;;  %v3744_v22 = vadd.f32 %v3716_v28, %v1920_v17 }
 0x1a8   : > { %v2410_v12 = vmul.f32 -1.442695, %v3740_v13  ;;  %v3748_v24 = vadd.f32 %v3716_v28, %v1926_v20 }
 0x1a9   : > { %3051 = vpow2.f32 %v2404_v7  ;;  %v2405_v62 = vmul.f32 -1.442695, %v3744_v22 }
 0x1aa   : > { %3053 = vpow2.f32 %v2410_v12  ;;  %v2411_v25 = vmul.f32 -1.442695, %v3748_v24  ;;  %v1894_v29 = vpop.f32.mrb[88].mxu0 }
 0x1ab   : > { %v3044_v16 = vpop.eup %3043  ;;  %3055 = vpow2.f32 %v2405_v62  ;;  %v1921_v30 = vadd.f32 %v1894_v29, %v3709_v9  ;;  %v2894_v19 = vpop.f32.mrb[89].mxu0 }
 0x1ac   : > { %v3046_v1 = vpop.eup %3045  ;;  %v1974_v31 = vadd.f32 1.0, %v3044_v16  ;;  %3057 = vpow2.f32 %v2411_v25  ;;  %v1897_v32 = vpop.f32.mrb[90].mxu0 }
 0x1ad   : > { %v3048_v35 = vpop.eup %3047  ;;  %v1980_v23 = vadd.f32 1.0, %v3046_v1  ;;  %v1938_v15 = vadd.f32 %v3716_v28, %v1921_v30  ;;  %v1922_v37 = vadd.f32 %v1897_v32, %v3711_v8  ;;  %v2895_v39 = vpop.f32.mrb[91].mxu0 }
 0x1ae   : > { %v3050_v41 = vpop.eup %3049  ;;  %3059 = vrcp.f32 %v1974_v31  ;;  %v1975_v26 = vadd.f32 1.0, %v3048_v35 }
 0x1af   : > { %3061 = vrcp.f32 %v1980_v23  ;;  %v1981_v42 = vadd.f32 1.0, %v3050_v41  ;;  %v2406_v33 = vmul.f32 -1.442695, %v1938_v15  ;;  %v1939_v9 = vadd.f32 %v3716_v28, %v1922_v37 }
 0x1b0   : > { %3063 = vrcp.f32 %v1975_v26 }
 0x1b1   : > { %3065 = vrcp.f32 %v1981_v42  ;;  %v2407_v44 = vmul.f32 -1.442695, %v1939_v9 }
 0x1b2   : > { %3067 = vpow2.f32 %v2406_v33 }
 0x1b3   : > { %v3052_v46 = vpop.eup %3051  ;;  %3069 = vpow2.f32 %v2407_v44 }
 0x1b4   : > { %v3054_v34 = vpop.eup %3053  ;;  %v1976_v48 = vadd.f32 1.0, %v3052_v46 }
 0x1b5   : > { %v3056_v27 = vpop.eup %3055  ;;  %v1982_v8 = vadd.f32 1.0, %v3054_v34 }
 0x1b6   : > { %v3058_v50 = vpop.eup %3057  ;;  %3071 = vrcp.f32 %v1976_v48  ;;  %v1977_v52 = vadd.f32 1.0, %v3056_v27 }
 0x1b7   : > { %3073 = vrcp.f32 %v1982_v8  ;;  %v1983_v55 = vadd.f32 1.0, %v3058_v50 }
 0x1b8   : > { %v3060_v40 = vpop.eup %3059  ;;  %3075 = vrcp.f32 %v1977_v52 }
 0x1b9   : > { %v3062_v28 = vpop.eup %3061  ;;  %3077 = vrcp.f32 %v1983_v55  ;;  %v2004_v43 = vmul.f32 %v3060_v40, %v3719_v57 }
 0x1ba   : > { %v3064_v47 = vpop.eup %3063  ;;  %v2010_v60 = vmul.f32 %v3062_v28, %v3722_v36 }
 0x1bb   : > { %v3066_v56 = vpop.eup %3065  ;;  %v2005_v38 = vmul.f32 %v3064_v47, %v3726_v59 }
 0x1bc   : > { %v3068_v58 = vpop.eup %3067  ;;  %v2011_v45 = vmul.f32 %v3066_v56, %v3730_v3 }
 0x1bd   : > { %v3070_v63 = vpop.eup %3069  ;;  %v2437_v51 = vpack.c.bf16 %v2005_v38, %v2004_v43  ;;  %v1978_v53 = vadd.f32 1.0, %v3068_v58 }
 0x1be   : > { %v2452_v49 = vpack.c.bf16 %v2011_v45, %v2010_v60  ;;  %v1979_v54 = vadd.f32 1.0, %v3070_v63 }
 0x1bf   : > { %2438 = vst [vmem:[%s221_s9] sm:$0xff] %v2437_v51   ;;  %3079 = vrcp.f32 %v1978_v53 }
 0x1c0   : > { %v3072_v5 = vpop.eup %3071  ;;  %2461 = vst [vmem:[%s221_s9 + $0x18] sm:$0xff] %v2452_v49   ;;  %3081 = vrcp.f32 %v1979_v54 }
 0x1c1   : > { %v3074_v57 = vpop.eup %3073  ;;  %v2006_v36 = vmul.f32 %v3072_v5, %v3736_v14 }
 0x1c2   : > { %v3076_v59 = vpop.eup %3075  ;;  %v2012_v4 = vmul.f32 %v3074_v57, %v3740_v13 }
 0x1c3   : > { %v3078_v6 = vpop.eup %3077  ;;  %v2007_v61 = vmul.f32 %v3076_v59, %v3744_v22 }
 0x1c4   : > { %v2013_v3 = vmul.f32 %v3078_v6, %v3748_v24 }
 0x1c5   : > { %v2442_v11 = vpack.c.bf16 %v2007_v61, %v2006_v36 }
 0x1c6   : > { %v2457_v0 = vpack.c.bf16 %v2013_v3, %v2012_v4 }
 0x1c7   : > { %2459 = vst [vmem:[%s221_s9 + $0x8] sm:$0xff] %v2442_v11  }
 0x1c8   : > { %2462 = vst [vmem:[%s221_s9 + $0x20] sm:$0xff] %v2457_v0  }
 0x1c9   : > { %v3080_v10 = vpop.eup %3079 }
 0x1ca   : > { %v3082_v17 = vpop.eup %3081  ;;  %v2008_v2 = vmul.f32 %v3080_v10, %v1938_v15 }
 0x1cb   : > { %v2009_v18 = vmul.f32 %v3082_v17, %v1939_v9 }
 0x1cd   : > { %v2447_v20 = vpack.c.bf16 %v2009_v18, %v2008_v2 }
 0x1cf   : > { %2460 = vst [vmem:[%s221_s9 + $0x10] sm:$0xff] %v2447_v20  }
 0x1d0 PF: > { %s13_s14 = sadd.s32 1, %s3105_s14   ;;  %s3781_s12 = smov %s3101_s13 }
 0x1d1   : > { %p10_p5 = scmp.ge.s32.totalorder %s13_s14, 4   ;;  %s3782_s13 = smov %s3784_s15 }
 0x1d3   :  { %12 = sbr.rel (!%p10_p5) target bundleno = 2 (0x2), region = 76 }

// kernel: _lambda_.14
= control target key start
LH: loop header
LB: loop body
LE: loop exit
PB: predicated region body
PF: predicated region fallthrough
CT: control target
= control target key end

     0   :  { %s5804_s12 = smov 0   ;;  %s5806_s13 = smov 0   ;;  %s6917_s0 = inlined_call_operand.vmem [shape: bf16[2,326,3], index: 0, kind: input, shape index: {}]   ;;  %s6918_s1 = inlined_call_operand.vmem [shape: bf16[9,3,128], index: 1, kind: input, shape index: {}]   ;;  %s6919_s2 = inlined_call_operand.vmem [shape: f32[1,128], index: 2, kind: input, shape index: {}]   ;;  %s6920_s3 = inlined_call_operand.vmem [shape: bf16[2,288,128], index: 3, kind: output, shape index: {}]  }
   0x1   :  { %s5808_s14 = smov 0  }
   0x2 LB: > { %s25_s15 = sadd.s32 1, %s5777_s13  ;;  %p4260_p0 = scmp.ge.s32.totalorder %s5781_s14, 1  ;;  %s5781_s14 = sphi %s5808_s14, %s13_s14   ;;  %s5777_s13 = sphi %s5806_s13, %s6922_s13   ;;  %s5773_s12 = sphi %s5804_s12, %s6921_s12  }
   0x3   : > { %p27_p1 = scmp.ge.s32.totalorder %s25_s15, 2  ;;  %p168_p2 = scmp.lt.s32.totalorder %s5781_s14, 3 }
   0x5   : > { %s6924_s15 = smov (%p27_p1, %s25_s15), 0  ;;  %p169_p3 = pnand %p4260_p0, %p168_p2 }
   0x6   : > { %vm560_vm0 = vcmask (!%p169_p3), 1040384   ;;  %vm561_vm1 = vcmask (!%p169_p3), 1041408   ;;  %v4377_v0 = vld [vmem:[%s6918_s1 + $0x8] sm:$0x3] (!%p169_p3)  ;;  %p202_p4 = scmp.lt.s32.totalorder (!%p169_p3), %s5773_s12, 1  ;;  %v5783_v1 = vmov (!%p169_p3), 65535  }
   0x7   : > { %172 = sbr.rel (%p169_p3) target bundleno = 607 (0x25f), region = 32  ;;  %v562_v2 = vsel (!%p169_p3), %vm560_vm0, 4294967295, %v5783_v1  ;;  %v4263_v3 = vld [vmem:[%s6918_s1 + $0x2] sm:$0x3] (!%p169_p3)  ;;  %v4397_v5 = vld [vmem:[%s6918_s1 + $0xa] sm:$0x3] (!%p169_p3) }
   0x8   : > { %v5828_v4 = vsel (!%p169_p3), %vm561_vm1, %v562_v2, 0  ;;  %v259_v9 = vld [vmem:[%s6918_s1] sm:$0x3] (!%p169_p3)  ;;  %vm356_vm2 = vsmask.f32 (!%p169_p3), 7424  ;;  %vm505_vm3 = vcmask (!%p169_p3), 23552  }
   0x9   : > { %v5836_v6 = vand.u32 (!%p169_p3), %v4377_v0, %v5828_v4  ;;  %v565_v7 = vand.u32 (!%p169_p3), %v4263_v3, %v5828_v4  ;;  %v5840_v8 = vand.u32 (!%p169_p3), %v4397_v5, %v5828_v4  ;;  %v5847_v10 = vand.u32 (!%p169_p3), %v5828_v4, %v259_v9  ;;  %v4417_v11 = vld [vmem:[%s6918_s1 + $0xc] sm:$0x3] (!%p169_p3)  ;;  %v4319_v17 = vld [vmem:[%s6918_s1 + $0x4] sm:$0x3] (!%p169_p3) }
   0xa   : > { %vm1719_vm4 = vsmask.f32 (!%p169_p3), 6400  ;;  %v5892_v26 = vand.u32 (!%p169_p3), %v4417_v11, %v5828_v4  ;;  %v5903_v35 = vand.u32 (!%p169_p3), %v4319_v17, %v5828_v4  ;;  %vm2166_vm5 = vcmask (!%p169_p3), 1045504  }
   0xb   : > { %5036 = vmatprep.subr.bf16.mxu0 (!%p169_p3), %v5836_v6  ;;  %4884 = vmatprep.subr.bf16.mxu1 (!%p169_p3), %v565_v7  ;;  %vm966_vm6 = vcmask (!%p169_p3), 1046528   ;;  %vm2919_vm7 = vsmask.f32 (!%p169_p3), 5376  ;;  %vm3366_vm8 = vcmask (!%p169_p3), 1044480  }
   0xc   : > { %5037 = vmatpush3.bf16.msra.mxu0 (!%p169_p3), %v5836_v6  ;;  %4885 = vmatpush3.bf16.msra.mxu1 (!%p169_p3), %v565_v7 }
   0xd   : > { %5074 = vmatprep.subr.bf16.mxu0 (!%p169_p3), %v5840_v8  ;;  %4922 = vmatprep.subr.bf16.mxu1 (!%p169_p3), %v5847_v10 }
   0xe   : > { %s6926_s12 = smov (!%p202_p4, %s5773_s12), 1 }
   0xf   : > { %s5516_s24 = smul.u32 164, %s6926_s12 }
  0x10   : > { %s5517_s17 = smul.u32 144, %s6926_s12 }
  0x11   : > { %s5854_s27 = scalar_lea.vmem %s6917_s0, %s5516_s24 }
  0x12   : > { %v223_v12 = vld [vmem:[%s5854_s27] sm:$0xf]  ;;  %v5861_v13 = vld [vmem:[%s5854_s27 + $0x4] sm:$0xf]  ;;  %v5869_v15 = vld [vmem:[%s5854_s27 + $0x8] sm:$0xff]   ;;  %s6732_s19 = scalar_lea.vmem %s6920_s3, %s5517_s17 }
  0x13   : > { %v5866_v14 = vcombine.low %v223_v12, %v5861_v13  ;;  %v1274_v16 = vld [vmem:[%s5854_s27 + $0x8] sm:$0xe]  ;;  %v5876_v18 = vld [vmem:[%s5854_s27 + $0xc] sm:$0xf]  ;;  %v365_v21 = vshll.u32 %v5869_v15, 16  ;;  %v369_v22 = vshrl.u32 %v5869_v15, 16 }
  0x14   : > { %v5883_v23 = vld [vmem:[%s5854_s27 + $0x10] sm:$0xff]   ;;  %v5889_v25 = vcombine.low %v1274_v16, %v5876_v18  ;;  %v5900_v34 = vld [vmem:[%s5854_s27 + $0x18] sm:$0xff]   ;;  %v5909_v41 = vld [vmem:[%s5854_s27 + $0x20] sm:$0xff]  }
  0x15   : > { %v358_v19 = vshrl.u32 %v5866_v14, 16  ;;  %v360_v20 = vshll.u32 %v5866_v14, 16  ;;  %v5886_v24 = vld [vmem:[%s5854_s27 + $0x10] sm:$0xff]   ;;  %v367_v28 = vrot.slane %v365_v21, 1  ;;  %v1729_v29 = vshrl.u32 %v5883_v23, 16  ;;  %v5906_v40 = vld [vmem:[%s5854_s27 + $0x18] sm:$0xff]  }
  0x16   : > { %v1732_v30 = vshll.u32 %v5883_v23, 16  ;;  %v1721_v31 = vshrl.u32 %v5889_v25, 16  ;;  %v1724_v32 = vshll.u32 %v5889_v25, 16  ;;  %v373_v33 = vshll.u32 %v5886_v24, 16  ;;  %v5919_v54 = vld [vmem:[%s5854_s27 + $0x20] sm:$0xff]   ;;  %v5922_v55 = vld [vmem:[%s5854_s27 + $0x28] sm:$0xff]  }
  0x17   : > { %v362_v27 = vrot.slane %v360_v20, 1  ;;  %v371_v37 = vor.u32 %v369_v22, %v367_v28  ;;  %v1731_v38 = vrot.slane %v1729_v29, 1  ;;  %v1738_v45 = vshrl.u32 %v5900_v34, 16  ;;  %v5928_v60 = vld [vmem:[%s5854_s27 + $0x28] sm:$0xff]   ;;  %v5935_v1 = vld [vmem:[%s5854_s27 + $0x30] sm:$0xff]  }
  0x18   : > { %v1734_v39 = vrot.slane %v1732_v30, 2  ;;  %v1723_v42 = vrot.slane %v1721_v31, 1  ;;  %v1726_v43 = vrot.slane %v1724_v32, 2  ;;  %v375_v44 = vrot.slane %v373_v33, 1  ;;  %v5940_v9 = vld [vmem:[%s5854_s27 + $0x30] sm:$0xff]   ;;  %v5953_v30 = vld [vmem:[%s5854_s27 + $0x38] sm:$0xff]  }
  0x19   : > { %v363_v36 = vor.u32 %v362_v27, %v358_v19  ;;  %v1741_v48 = vshll.u32 %v5900_v34, 16  ;;  %v377_v49 = vshrl.u32 %v5886_v24, 16  ;;  %v1740_v52 = vrot.slane %v1738_v45, 1 }
  0x1a   : > { %v1735_v47 = vor.u32 %v1734_v39, %v1731_v38  ;;  %v1727_v50 = vor.u32 %v1726_v43, %v1723_v42  ;;  %v376_v51 = vsel %vm356_vm2, %v371_v37, %v375_v44  ;;  %v381_v53 = vshll.u32 %v5906_v40, 16  ;;  %v5962_v43 = vld [vmem:[%s5854_s27 + $0x38] sm:$0xff]  }
  0x1b   : > { %v368_v46 = vsel %vm356_vm2, %v363_v36, %v367_v28  ;;  %v1743_v56 = vrot.slane %v1741_v48, 2  ;;  %v379_v57 = vor.u32 %v377_v49, %v375_v44  ;;  %v1747_v58 = vshrl.u32 %v5909_v41, 16 }
  0x1c   : > { %4886 = vmatprep.mubr.msk.bf16.mxu1 %vm505_vm3, %v368_v46  ;;  %v1750_v59 = vshll.u32 %v5909_v41, 16  ;;  %v1736_v61 = vsel %vm1719_vm4, %v1727_v50, %v1735_v47  ;;  %v383_v62 = vrot.slane %v381_v53, 1  ;;  %v385_v63 = vshrl.u32 %v5906_v40, 16 }
  0x1d   : > { %4887 = vmatmul.mubr.msk.bf16.vlgmr.msra.gmra.mrb[0].mxu1 %vm505_vm3, %v376_v51  ;;  %v389_v0 = vshll.u32 %v5919_v54, 16  ;;  %5038 = vmatprep.mubr.msk.bf16.mxu0 %vm505_vm3, %v1736_v61  ;;  %v1744_v2 = vor.u32 %v1743_v56, %v1740_v52  ;;  %v1749_v3 = vrot.slane %v1747_v58, 1  ;;  %v1756_v7 = vshrl.u32 %v5922_v55, 16  ;;  %v5972_v51 = vld [vmem:[%s5854_s27 + $0x40] sm:$0xff]  }
  0x1e   : > { %4923 = vmatpush3.bf16.msra.mxu1 %v5847_v10  ;;  %v1752_v5 = vrot.slane %v1750_v59, 2  ;;  %v384_v11 = vsel %vm356_vm2, %v379_v57, %v383_v62  ;;  %v387_v12 = vor.u32 %v385_v63, %v383_v62  ;;  %v1759_v10 = vshll.u32 %v5922_v55, 16  ;;  %v5977_v58 = vld [vmem:[%s5854_s27 + $0x40] sm:$0xff]  }
  0x1f   : > { %4960 = vmatprep.subr.bf16.mxu1 %v5903_v35  ;;  %v391_v16 = vrot.slane %v389_v0, 1  ;;  %v1745_v17 = vsel %vm1719_vm4, %v1735_v47, %v1744_v2  ;;  %4890 = vmatprep.mubr.msk.bf16.mxu1 %vm505_vm3, %v384_v11  ;;  %v1758_v20 = vrot.slane %v1756_v7, 1  ;;  %v393_v21 = vshrl.u32 %v5919_v54, 16  ;;  %v5985_v7 = vld [vmem:[%s5854_s27 + $0x48] sm:$0xff]  }
  0x20   : > { %v1753_v19 = vor.u32 %v1752_v5, %v1749_v3  ;;  %5039 = vmatmul.mubr.msk.bf16.vlgmr.msra.gmra.mrb[0].mxu0 %vm505_vm3, %v1745_v17  ;;  %v1761_v27 = vrot.slane %v1759_v10, 2  ;;  %v397_v28 = vshll.u32 %v5928_v60, 16  ;;  %v1765_v29 = vshrl.u32 %v5935_v1, 16  ;;  %v5988_v11 = vld [vmem:[%s5854_s27 + $0x48] sm:$0xff]  }
  0x21   : > { %v392_v22 = vsel %vm356_vm2, %v387_v12, %v391_v16  ;;  %5075 = vmatpush3.bf16.msra.mxu0 %v5840_v8  ;;  %v395_v32 = vor.u32 %v393_v21, %v391_v16  ;;  %v1768_v33 = vshll.u32 %v5935_v1, 16  ;;  %v401_v36 = vshrl.u32 %v5928_v60, 16  ;;  %v5997_v21 = vld [vmem:[%s5854_s27 + $0x50] sm:$0xff]  }
  0x22   : > { %v1754_v31 = vsel %vm1719_vm4, %v1744_v2, %v1753_v19  ;;  %v1762_v37 = vor.u32 %v1761_v27, %v1758_v20  ;;  %v399_v38 = vrot.slane %v397_v28, 1  ;;  %v1767_v39 = vrot.slane %v1765_v29, 1  ;;  %5112 = vmatprep.subr.bf16.mxu0 %v5892_v26 }
  0x23   : > { %5042 = vmatprep.mubr.msk.bf16.mxu0 %vm505_vm3, %v1754_v31  ;;  %v405_v42 = vshll.u32 %v5940_v9, 16  ;;  %v1770_v8 = vrot.slane %v1768_v33, 2  ;;  %v1774_v44 = vshrl.u32 %v5953_v30, 16  ;;  %v1777_v45 = vshll.u32 %v5953_v30, 16  ;;  %v6005_v33 = vld [vmem:[%s5854_s27 + $0x50] sm:$0xff]  }
  0x24   : > { %v409_v46 = vshrl.u32 %v5940_v9, 16  ;;  %v1763_v47 = vsel %vm1719_vm4, %v1753_v19, %v1762_v37  ;;  %v400_v48 = vsel %vm356_vm2, %v395_v32, %v399_v38  ;;  %v403_v49 = vor.u32 %v401_v36, %v399_v38  ;;  %v6010_v38 = vld [vmem:[%s5854_s27 + $0x58] sm:$0xff]  }
  0x25   : > { %4891 = vmatmul.mubr.msk.bf16.gmra.mrb[4].mxu1 %vm505_vm3, %v392_v22  ;;  %v407_v50 = vrot.slane %v405_v42, 1  ;;  %v1771_v52 = vor.u32 %v1770_v8, %v1767_v39  ;;  %v1776_v53 = vrot.slane %v1774_v44, 1  ;;  %v1779_v56 = vrot.slane %v1777_v45, 2 }
  0x26   : > { %4894 = vmatprep.mubr.msk.bf16.mxu1 %vm505_vm3, %v400_v48  ;;  %v413_v57 = vshll.u32 %v5962_v43, 16  ;;  %v1783_v62 = vshrl.u32 %v5972_v51, 16  ;;  %v1786_v63 = vshll.u32 %v5972_v51, 16  ;;  %v417_v5 = vshrl.u32 %v5962_v43, 16 }
  0x27   : > { %v408_v59 = vsel %vm356_vm2, %v403_v49, %v407_v50  ;;  %v411_v61 = vor.u32 %v409_v46, %v407_v50  ;;  %v1772_v0 = vsel %vm1719_vm4, %v1762_v37, %v1771_v52  ;;  %v1780_v2 = vor.u32 %v1779_v56, %v1776_v53  ;;  %v6015_v49 = vld [vmem:[%s5854_s27 + $0x58] sm:$0xff]  }
  0x28   : > { %v415_v3 = vrot.slane %v413_v57, 1  ;;  %5043 = vmatmul.mubr.msk.bf16.gmra.mrb[4].mxu0 %vm505_vm3, %v1763_v47  ;;  %v1785_v12 = vrot.slane %v1783_v62, 1  ;;  %v1788_v16 = vrot.slane %v1786_v63, 2  ;;  %v421_v10 = vshll.u32 %v5977_v58, 16 }
  0x29   : > { %v425_v17 = vshrl.u32 %v5977_v58, 16  ;;  %5046 = vmatprep.mubr.msk.bf16.mxu0 %vm505_vm3, %v1772_v0  ;;  %v1792_v20 = vshrl.u32 %v5985_v7, 16  ;;  %v1795_v27 = vshll.u32 %v5985_v7, 16  ;;  %v429_v28 = vshll.u32 %v5988_v11, 16 }
  0x2a   : > { %v416_v19 = vsel %vm356_vm2, %v411_v61, %v415_v3  ;;  %v1789_v22 = vor.u32 %v1788_v16, %v1785_v12  ;;  %v423_v29 = vrot.slane %v421_v10, 1  ;;  %v1801_v31 = vshrl.u32 %v5997_v21, 16 }
  0x2b   : > { %v1804_v32 = vshll.u32 %v5997_v21, 16  ;;  %v1781_v36 = vsel %vm1719_vm4, %v1771_v52, %v1780_v2  ;;  %v419_v37 = vor.u32 %v417_v5, %v415_v3  ;;  %v1794_v39 = vrot.slane %v1792_v20, 1  ;;  %v6029_v3 = vld [vmem:[%s5854_s27 + $0x60] sm:$0xff]   ;;  %v6034_v20 = vld [vmem:[%s5854_s27 + $0x68] sm:$0xff]  }
  0x2c   : > { %v1797_v42 = vrot.slane %v1795_v27, 2  ;;  %v427_v8 = vor.u32 %v425_v17, %v423_v29  ;;  %v431_v44 = vrot.slane %v429_v28, 1  ;;  %v1790_v45 = vsel %vm1719_vm4, %v1780_v2, %v1789_v22  ;;  %v2160_v2 = vld [vmem:[%s5854_s27 + $0x8] sm:$0xc] }
  0x2d   : > { %4895 = vmatmul.mubr.msk.bf16.gmra.mrb[8].mxu1 %vm505_vm3, %v408_v59  ;;  %v1803_v46 = vrot.slane %v1801_v31, 1  ;;  %v1806_v47 = vrot.slane %v1804_v32, 2  ;;  %v437_v48 = vshll.u32 %v6005_v33, 16  ;;  %v424_v50 = vsel %vm356_vm2, %v419_v37, %v423_v29 }
  0x2e   : > { %4898 = vmatprep.mubr.msk.bf16.mxu1 %vm505_vm3, %v416_v19  ;;  %v433_v52 = vshrl.u32 %v5988_v11, 16  ;;  %v1810_v53 = vshrl.u32 %v6010_v38, 16  ;;  %v1813_v56 = vshll.u32 %v6010_v38, 16  ;;  %v1798_v57 = vor.u32 %v1797_v42, %v1794_v39 }
  0x2f   : > { %v432_v59 = vsel %vm356_vm2, %v427_v8, %v431_v44  ;;  %v441_v61 = vshrl.u32 %v6005_v33, 16  ;;  %v445_v62 = vshll.u32 %v6015_v49, 16  ;;  %v1807_v63 = vor.u32 %v1806_v47, %v1803_v46 }
  0x30   : > { %5047 = vmatmul.mubr.msk.bf16.gmra.mrb[8].mxu0 %vm505_vm3, %v1781_v36  ;;  %v439_v0 = vrot.slane %v437_v48, 1  ;;  %v435_v5 = vor.u32 %v433_v52, %v431_v44  ;;  %v1812_v12 = vrot.slane %v1810_v53, 1  ;;  %v1815_v16 = vrot.slane %v1813_v56, 2  ;;  %v6051_v44 = vld [vmem:[%s5854_s27 + $0x70] sm:$0xff]  }
  0x31   : > { %5050 = vmatprep.mubr.msk.bf16.mxu0 %vm505_vm3, %v1790_v45  ;;  %v1799_v10 = vsel %vm1719_vm4, %v1789_v22, %v1798_v57  ;;  %v447_v19 = vrot.slane %v445_v62, 1  ;;  %v1808_v27 = vsel %vm1719_vm4, %v1798_v57, %v1807_v63  ;;  %v4398_v28 = vcombine.low %v2160_v2, %v5876_v18  ;;  %v6072_v2 = vld [vmem:[%s5854_s27 + $0x80] sm:$0xff]  }
  0x32   : > { %v443_v17 = vor.u32 %v441_v61, %v439_v0  ;;  %v453_v29 = vshll.u32 %v6029_v3, 16  ;;  %v440_v31 = vsel %vm356_vm2, %v435_v5, %v439_v0  ;;  %v449_v32 = vshrl.u32 %v6015_v49, 16 }
  0x33   : > { %v6043_v22 = vor.u32 %v1815_v16, %v1812_v12  ;;  %v457_v37 = vshrl.u32 %v6029_v3, 16  ;;  %v461_v39 = vshll.u32 %v6034_v20, 16  ;;  %v2167_v18 = vrot.slane %v4398_v28, 2 }
  0x34   : > { %v448_v36 = vsel %vm356_vm2, %v443_v17, %v447_v19  ;;  %v2168_v42 = vrot.slane %v5883_v23, 2  ;;  %v455_v8 = vrot.slane %v453_v29, 1  ;;  %v451_v45 = vor.u32 %v449_v32, %v447_v19  ;;  %v6080_v17 = vld [vmem:[%s5854_s27 + $0x88] sm:$0xff]  }
  0x35   : > { %4899 = vmatmul.mubr.msk.bf16.gmra.mrb[12].mxu1 %vm505_vm3, %v424_v50  ;;  %v1817_v46 = vsel %vm1719_vm4, %v1807_v63, %v6043_v22  ;;  %v463_v48 = vrot.slane %v461_v39, 1  ;;  %v6057_v50 = vld [vmem:[%s5854_s27 + $0x78] sm:$0xff]   ;;  %v469_v23 = vshll.u32 %v6051_v44, 16  ;;  %v2170_v56 = vrot.slane %v5900_v34, 2  ;;  %v4455_v34 = vld [vmem:[%s6918_s1 + $0xe] sm:$0x3] }
  0x36   : > { %4902 = vmatprep.mubr.msk.bf16.mxu1 %vm505_vm3, %v432_v59  ;;  %v459_v47 = vor.u32 %v457_v37, %v455_v8  ;;  %v2169_v52 = vsel %vm2166_vm5, %v2167_v18, %v2168_v42  ;;  %v456_v53 = vsel %vm356_vm2, %v451_v45, %v455_v8  ;;  %v465_v57 = vshrl.u32 %v6034_v20, 16 }
  0x37   : > { %v473_v61 = vshrl.u32 %v6051_v44, 16  ;;  %v477_v62 = vshll.u32 %v6057_v50, 16  ;;  %v2172_v63 = vrot.slane %v5909_v41, 2  ;;  %v471_v0 = vrot.slane %v469_v23, 1 }
  0x38   : > { %5051 = vmatmul.mubr.msk.bf16.gmra.mrb[12].mxu0 %vm505_vm3, %v1799_v10  ;;  %v464_v59 = vsel %vm356_vm2, %v459_v47, %v463_v48  ;;  %v467_v5 = vor.u32 %v465_v57, %v463_v48  ;;  %v2171_v12 = vsel %vm2166_vm5, %v2168_v42, %v2170_v56  ;;  %v6084_v19 = vand.u32 %v4455_v34, %v5828_v4  ;;  %v6101_v42 = vld [vmem:[%s5854_s27 + $0x90] ss:$0 sps:$4 sm:$0x11]   ;;  %v6128_v34 = vld [vmem:[%s5854_s27 + $0x60] sm:$0xff]  }
  0x39   : > { %5054 = vmatprep.mubr.msk.bf16.mxu0 %vm505_vm3, %v1808_v27  ;;  %v475_v16 = vor.u32 %v473_v61, %v471_v0  ;;  %v479_v10 = vrot.slane %v477_v62, 1  ;;  %v2173_v41 = vsel %vm2166_vm5, %v2170_v56, %v2172_v63  ;;  %v485_v27 = vshll.u32 %v6072_v2, 16 }
  0x3a   : > { %v472_v28 = vsel %vm356_vm2, %v467_v5, %v471_v0  ;;  %v2174_v29 = vrot.slane %v5922_v55, 2  ;;  %v493_v37 = vshll.u32 %v6080_v17, 16  ;;  %v2176_v39 = vrot.slane %v5935_v1, 2  ;;  %v4339_v5 = vld [vmem:[%s6918_s1 + $0x6] sm:$0x3] }
  0x3b   : > { %v480_v32 = vsel %vm356_vm2, %v475_v16, %v479_v10  ;;  %v487_v18 = vrot.slane %v485_v27, 1  ;;  %v497_v47 = vshrl.u32 %v6080_v17, 16  ;;  %v501_v48 = vshll.u32 %v6101_v42, 16  ;;  %v6147_v16 = vld [vmem:[%s5854_s27 + $0x68] sm:$0xff]  }
  0x3c   : > { %v495_v45 = vrot.slane %v493_v37, 1 }
  0x3d   : > { %4903 = vmatmul.mubr.msk.bf16.gmra.mrb[16].mxu1 %vm505_vm3, %v440_v31  ;;  %v481_v31 = vshrl.u32 %v6057_v50, 16  ;;  %v503_v57 = vrot.slane %v501_v48, 1 }
  0x3e   : > { %4906 = vmatprep.mubr.msk.bf16.mxu1 %vm505_vm3, %v448_v36  ;;  %v489_v36 = vshrl.u32 %v6072_v2, 16  ;;  %v499_v56 = vor.u32 %v497_v47, %v495_v45  ;;  %v6200_v47 = vld [vmem:[%s5854_s27 + $0x98] ss:$0 sps:$4 sm:$0x33]  }
  0x3f   : > { %v483_v55 = vor.u32 %v481_v31, %v479_v10  ;;  %v6152_v10 = vld [vmem:[%s5854_s27 + $0x70] sm:$0xff]   ;;  %v6168_v31 = vld [vmem:[%s5854_s27 + $0x80] sm:$0xff]  }
  0x40   : > { %5055 = vmatmul.mubr.msk.bf16.gmra.mrb[16].mxu0 %vm505_vm3, %v1817_v46  ;;  %v491_v8 = vor.u32 %v489_v36, %v487_v18  ;;  %v2177_v46 = vsel %vm2166_vm5, %v2174_v29, %v2176_v39  ;;  %v504_v62 = vsel %vm356_vm2, %v499_v56, %v503_v57  ;;  %v2192_v27 = vrot.slane %v6152_v10, 2 }
  0x41   : > { %5076 = vmatprep.mubr.msk.bf16.mxu0 %vm505_vm3, %v2169_v52  ;;  %v488_v1 = vsel %vm356_vm2, %v483_v55, %v487_v18  ;;  %v2178_v52 = vrot.slane %v5953_v30, 2  ;;  %v2182_v30 = vrot.slane %v5985_v7, 2  ;;  %v2186_v7 = vrot.slane %v6010_v38, 2  ;;  %v6184_v55 = vld [vmem:[%s5854_s27 + $0x90] sm:$0xff]  }
  0x42   : > { %v496_v23 = vsel %vm356_vm2, %v491_v8, %v495_v45  ;;  %v2196_v36 = vrot.slane %v6168_v31, 2  ;;  %v2200_v8 = vrot.slane %v6184_v55, 2  ;;  %v2474_v45 = vld [vmem:[%s5854_s27 + $0x10] sm:$0xc] }
  0x45   : > { %4907 = vmatmul.mubr.msk.bf16.gmra.mrb[20].mxu1 %vm505_vm3, %v456_v53  ;;  %v2180_v53 = vrot.slane %v5972_v51, 2  ;;  %v2184_v51 = vrot.slane %v5997_v21, 2  ;;  %v6137_v21 = vand.u32 %v4339_v5, %v5828_v4 }
  0x46   : > { %4910 = vmatprep.mubr.msk.bf16.mxu1 %vm505_vm3, %v464_v59  ;;  %v2179_v59 = vsel %vm2166_vm5, %v2176_v39, %v2178_v52  ;;  %v6180_v39 = vld [vmem:[%s5854_s27 + $0x88] sm:$0xff]  }
  0x47   : > { %v2181_v61 = vsel %vm2166_vm5, %v2178_v52, %v2180_v53  ;;  %v2185_v0 = vsel %vm2166_vm5, %v2182_v30, %v2184_v51 }
  0x48   : > { %5077 = vmatmul.mubr.msk.bf16.vlgmr.msra.gmra.mrb[0].mxu0 %vm505_vm3, %v2171_v12  ;;  %v2187_v12 = vsel %vm2166_vm5, %v2184_v51, %v2186_v7 }
  0x49   : > { %5113 = vmatpush3.bf16.msra.mxu0 %v5892_v26  ;;  %5080 = vmatprep.mubr.msk.bf16.mxu0 %vm505_vm3, %v2173_v41  ;;  %v2175_v26 = vsel %vm2166_vm5, %v2172_v63, %v2174_v29  ;;  %v2183_v63 = vsel %vm2166_vm5, %v2180_v53, %v2182_v30  ;;  %v2190_v41 = vrot.slane %v6147_v16, 2  ;;  %v2202_v53 = vrot.slane %v6200_v47, 2  ;;  %v6224_v30 = vld [vmem:[%s5854_s27 + $0x28] sm:$0xff]  }
  0x4a   : > { %5150 = vmatprep.subr.bf16.mxu0 %v6084_v19 }
  0x4b   : > { %v2193_v29 = vsel %vm2166_vm5, %v2190_v41, %v2192_v27 }
  0x4d   : > { %4911 = vmatmul.mubr.msk.bf16.gmra.mrb[24].mxu1 %vm505_vm3, %v472_v28  ;;  %v6164_v28 = vld [vmem:[%s5854_s27 + $0x78] sm:$0xff]  }
  0x4e   : > { %4914 = vmatprep.mubr.msk.bf16.mxu1 %vm505_vm3, %v480_v32  ;;  %v2194_v32 = vrot.slane %v6164_v28, 2 }
  0x50   : > { %5081 = vmatmul.mubr.msk.bf16.gmra.mrb[4].mxu0 %vm505_vm3, %v2175_v26  ;;  %v2195_v37 = vsel %vm2166_vm5, %v2192_v27, %v2194_v32  ;;  %v2197_v18 = vsel %vm2166_vm5, %v2194_v32, %v2196_v36  ;;  %v2198_v26 = vrot.slane %v6180_v39, 2  ;;  %v960_v32 = vld [vmem:[%s5854_s27] sm:$0xe] }
  0x51   : > { %5084 = vmatprep.mubr.msk.bf16.mxu0 %vm505_vm3, %v2177_v46  ;;  %v6194_v46 = vld [vmem:[%s5854_s27 + $0x14] sm:$0xf] }
  0x52   : > { %v2201_v48 = vsel %vm2166_vm5, %v2198_v26, %v2200_v8  ;;  %v6204_v52 = vcombine.low %v2474_v45, %v6194_v46 }
  0x54   : > { %v2606_v56 = vrot.slane %v6204_v52, 2 }
  0x55   : > { %4915 = vmatmul.mubr.msk.bf16.gmra.mrb[28].mxu1 %vm505_vm3, %v488_v1  ;;  %v2199_v1 = vsel %vm2166_vm5, %v2196_v36, %v2198_v26 }
  0x56   : > { %4918 = vmatprep.mubr.msk.bf16.mxu1 %vm505_vm3, %v496_v23  ;;  %v6207_v23 = vld [vmem:[%s5854_s27 + $0x18] sm:$0xff]  }
  0x57   : > { %v2607_v57 = vrot.slane %v6207_v23, 2 }
  0x58   : > { %5085 = vmatmul.mubr.msk.bf16.gmra.mrb[8].mxu0 %vm505_vm3, %v2179_v59  ;;  %v2203_v59 = vsel %vm2166_vm5, %v2200_v8, %v2202_v53  ;;  %v6278_v8 = vld [vmem:[%s5854_s27 + $0x50] sm:$0xff]  }
  0x59   : > { %5088 = vmatprep.mubr.msk.bf16.mxu0 %vm505_vm3, %v2181_v61  ;;  %v6220_v61 = vld [vmem:[%s5854_s27 + $0x20] sm:$0xff]   ;;  %v2621_v53 = vrot.slane %v6278_v8, 2 }
  0x5a   : > { %v2609_v51 = vrot.slane %v6220_v61, 2 }
  0x5c   : > { %v2610_v5 = vsel %vm2166_vm5, %v2607_v57, %v2609_v51 }
  0x5d   : > { %4919 = vmatmul.mubr.msk.bf16.gmra.mrb[32].mxu1 %vm505_vm3, %v504_v62  ;;  %v2608_v62 = vsel %vm2166_vm5, %v2606_v56, %v2607_v57 }
  0x5e   : > { %4924 = vmatprep.mubr.msk.bf16.mxu1 %vm505_vm3, %v5866_v14  ;;  %v2188_v14 = vrot.slane %v6128_v34, 2 }
  0x60   : > { %5089 = vmatmul.mubr.msk.bf16.gmra.mrb[12].mxu0 %vm505_vm3, %v2183_v63  ;;  %v2189_v38 = vsel %vm2166_vm5, %v2186_v7, %v2188_v14  ;;  %v2611_v63 = vrot.slane %v6224_v30, 2  ;;  %v6239_v7 = vld [vmem:[%s5854_s27 + $0x30] sm:$0xff]  }
  0x61   : > { %5092 = vmatprep.mubr.msk.bf16.mxu0 %vm505_vm3, %v2185_v0  ;;  %v4475_v0 = vld [vmem:[%s6918_s1 + $0x10] sm:$0x3] }
  0x65   : > { %4925 = vmatmul.mubr.msk.bf16.vlgmr.msra.gmra.mrb[0].mxu1 %vm505_vm3, %v5869_v15 }
  0x66   : > { %4928 = vmatprep.mubr.msk.bf16.mxu1 %vm505_vm3, %v5886_v24  ;;  %4961 = vmatpush3.bf16.msra.mxu1 %v5903_v35  ;;  %v2191_v35 = vsel %vm2166_vm5, %v2188_v14, %v2190_v41  ;;  %v2612_v14 = vsel %vm2166_vm5, %v2609_v51, %v2611_v63  ;;  %v2613_v41 = vrot.slane %v6239_v7, 2  ;;  %v972_v51 = vrot.slane %v5906_v40, 1 }
  0x67   : > { %4998 = vmatprep.subr.bf16.mxu1 %v6137_v21 }
  0x68   : > { %5093 = vmatmul.mubr.msk.bf16.gmra.mrb[16].mxu0 %vm505_vm3, %v2187_v12  ;;  %v6243_v12 = vld [vmem:[%s5854_s27 + $0x38] sm:$0xff]  }
  0x69   : > { %5096 = vmatprep.mubr.msk.bf16.mxu0 %vm505_vm3, %v2189_v38  ;;  %v6246_v38 = vand.u32 %v4475_v0, %v5828_v4  ;;  %v2615_v27 = vrot.slane %v6243_v12, 2  ;;  %v2614_v4 = vsel %vm2166_vm5, %v2611_v63, %v2613_v41  ;;  %v6301_v0 = vld [vmem:[%s5854_s27 + $0x68] sm:$0xff]  }
  0x6d   : > { %4929 = vmatmul.mubr.msk.bf16.gmra.mrb[4].mxu1 %vm505_vm3, %v5906_v40  ;;  %v974_v40 = vrot.slane %v5919_v54, 1 }
  0x6e   : > { %4932 = vmatprep.mubr.msk.bf16.mxu1 %vm505_vm3, %v5919_v54 }
  0x6f   : > { %v975_v54 = vsel %vm966_vm6, %v972_v51, %v974_v40 }
  0x70   : > { %5097 = vmatmul.mubr.msk.bf16.gmra.mrb[20].mxu0 %vm505_vm3, %v2191_v35  ;;  %v6260_v35 = vld [vmem:[%s5854_s27 + $0x40] sm:$0xff]  }
  0x71   : > { %5100 = vmatprep.mubr.msk.bf16.mxu0 %vm505_vm3, %v2193_v29  ;;  %v6264_v29 = vld [vmem:[%s5854_s27 + $0x48] sm:$0xff]   ;;  %v2617_v36 = vrot.slane %v6260_v35, 2 }
  0x73   : > { %v2618_v26 = vsel %vm2166_vm5, %v2615_v27, %v2617_v36 }
  0x75   : > { %4933 = vmatmul.mubr.msk.bf16.gmra.mrb[8].mxu1 %vm505_vm3, %v5928_v60 }
  0x76   : > { %4936 = vmatprep.mubr.msk.bf16.mxu1 %vm505_vm3, %v5940_v9 }
  0x78   : > { %5101 = vmatmul.mubr.msk.bf16.gmra.mrb[24].mxu0 %vm505_vm3, %v2195_v37  ;;  %v4320_v37 = vcombine.low %v960_v32, %v5861_v13  ;;  %v6283_v13 = vld [vmem:[%s5854_s27 + $0x58] sm:$0xff]  }
  0x79   : > { %5104 = vmatprep.mubr.msk.bf16.mxu0 %vm505_vm3, %v2197_v18  ;;  %v2619_v18 = vrot.slane %v6264_v29, 2  ;;  %v2623_v57 = vrot.slane %v6283_v13, 2 }
  0x7a   : > { %v967_v45 = vrot.slane %v4320_v37, 1 }
  0x7b   : > { %v2624_v63 = vsel %vm2166_vm5, %v2621_v53, %v2623_v57 }
  0x7d   : > { %4937 = vmatmul.mubr.msk.bf16.gmra.mrb[12].mxu1 %vm505_vm3, %v5962_v43 }
  0x7e   : > { %4940 = vmatprep.mubr.msk.bf16.mxu1 %vm505_vm3, %v5977_v58 }
  0x80   : > { %5105 = vmatmul.mubr.msk.bf16.gmra.mrb[28].mxu0 %vm505_vm3, %v2199_v1  ;;  %v968_v1 = vrot.slane %v5869_v15, 1  ;;  %v970_v15 = vrot.slane %v5886_v24, 1 }
  0x81   : > { %5108 = vmatprep.mubr.msk.bf16.mxu0 %vm505_vm3, %v2201_v48  ;;  %v2620_v48 = vsel %vm2166_vm5, %v2617_v36, %v2619_v18  ;;  %v6321_v36 = vld [vmem:[%s5854_s27 + $0x78] sm:$0xff]  }
  0x82   : > { %v969_v56 = vsel %vm966_vm6, %v967_v45, %v968_v1  ;;  %v6334_v45 = vld [vmem:[%s5854_s27 + $0x80] sm:$0xff]  }
  0x85   : > { %4941 = vmatmul.mubr.msk.bf16.gmra.mrb[16].mxu1 %vm505_vm3, %v5988_v11 }
  0x86   : > { %4944 = vmatprep.mubr.msk.bf16.mxu1 %vm505_vm3, %v6005_v33 }
  0x88   : > { %5109 = vmatmul.mubr.msk.bf16.gmra.mrb[32].mxu0 %vm505_vm3, %v2203_v59  ;;  %v2622_v59 = vsel %vm2166_vm5, %v2619_v18, %v2621_v53  ;;  %v2631_v18 = vrot.slane %v6321_v36, 2  ;;  %v6339_v53 = vld [vmem:[%s5854_s27 + $0x88] sm:$0xff]  }
  0x89   : > { %5114 = vmatprep.mubr.msk.bf16.mxu0 %vm505_vm3, %v2608_v62  ;;  %v6296_v62 = vld [vmem:[%s5854_s27 + $0x60] sm:$0xff]  }
  0x8a   : > { %v2625_v24 = vrot.slane %v6296_v62, 2 }
  0x8d   : > { %4945 = vmatmul.mubr.msk.bf16.gmra.mrb[20].mxu1 %vm505_vm3, %v6015_v49 }
  0x8e   : > { %4948 = vmatprep.mubr.msk.bf16.mxu1 %vm505_vm3, %v6029_v3 }
  0x90   : > { %5115 = vmatmul.mubr.msk.bf16.vlgmr.msra.gmra.mrb[0].mxu0 %vm505_vm3, %v2610_v5  ;;  %v971_v5 = vsel %vm966_vm6, %v968_v1, %v970_v15  ;;  %v980_v1 = vrot.slane %v5962_v43, 1  ;;  %v982_v43 = vrot.slane %v5977_v58, 1 }
  0x91   : > { %5151 = vmatpush3.bf16.msra.mxu0 %v6084_v19  ;;  %5118 = vmatprep.mubr.msk.bf16.mxu0 %vm505_vm3, %v2612_v14  ;;  %v2616_v19 = vsel %vm2166_vm5, %v2613_v41, %v2615_v27  ;;  %v973_v14 = vsel %vm966_vm6, %v970_v15, %v972_v51  ;;  %v2627_v41 = vrot.slane %v6301_v0, 2  ;;  %v2626_v27 = vsel %vm2166_vm5, %v2623_v57, %v2625_v24  ;;  %v6352_v51 = vld [vmem:[%s5854_s27 + $0x90] sm:$0xff]  }
  0x92   : > { %5188 = vmatprep.subr.bf16.mxu0 %v6246_v38  ;;  %v2635_v15 = vrot.slane %v6339_v53, 2 }
  0x93   : > { %v2628_v32 = vsel %vm2166_vm5, %v2625_v24, %v2627_v41 }
  0x95   : > { %4949 = vmatmul.mubr.msk.bf16.gmra.mrb[24].mxu1 %vm505_vm3, %v6034_v20 }
  0x96   : > { %4952 = vmatprep.mubr.msk.bf16.mxu1 %vm505_vm3, %v6051_v44 }
  0x98   : > { %5119 = vmatmul.mubr.msk.bf16.gmra.mrb[4].mxu0 %vm505_vm3, %v2614_v4  ;;  %v6315_v4 = vld [vmem:[%s5854_s27 + $0x70] sm:$0xff]  }
  0x99   : > { %5122 = vmatprep.mubr.msk.bf16.mxu0 %vm505_vm3, %v2616_v19  ;;  %v976_v19 = vrot.slane %v5928_v60, 1  ;;  %v978_v60 = vrot.slane %v5940_v9, 1  ;;  %v2633_v9 = vrot.slane %v6334_v45, 2 }
  0x9b   : > { %v977_v37 = vsel %vm966_vm6, %v974_v40, %v976_v19  ;;  %v981_v57 = vsel %vm966_vm6, %v978_v60, %v980_v1  ;;  %v2636_v24 = vsel %vm2166_vm5, %v2633_v9, %v2635_v15 }
  0x9d   : > { %4953 = vmatmul.mubr.msk.bf16.gmra.mrb[28].mxu1 %vm505_vm3, %v6057_v50 }
  0x9e   : > { %4956 = vmatprep.mubr.msk.bf16.mxu1 %vm505_vm3, %v6072_v2 }
  0xa0   : > { %5123 = vmatmul.mubr.msk.bf16.gmra.mrb[8].mxu0 %vm505_vm3, %v2618_v26 }
  0xa1   : > { %5126 = vmatprep.mubr.msk.bf16.mxu0 %vm505_vm3, %v2620_v48 }
  0xa5   : > { %4957 = vmatmul.mubr.msk.bf16.gmra.mrb[32].mxu1 %vm505_vm3, %v6080_v17 }
  0xa6   : > { %4962 = vmatprep.mubr.msk.bf16.mxu1 %vm505_vm3, %v969_v56  ;;  %v979_v56 = vsel %vm966_vm6, %v976_v19, %v978_v60  ;;  %v2929_v19 = vshrl.u32 %v6207_v23, 16  ;;  %v988_v60 = vrot.slane %v6015_v49, 1  ;;  %v2947_v49 = vshrl.u32 %v6224_v30, 16 }
  0xa8   : > { %5127 = vmatmul.mubr.msk.bf16.gmra.mrb[12].mxu0 %vm505_vm3, %v2622_v59  ;;  %v2634_v59 = vsel %vm2166_vm5, %v2631_v18, %v2633_v9 }
  0xa9   : > { %5130 = vmatprep.mubr.msk.bf16.mxu0 %vm505_vm3, %v2624_v63  ;;  %v984_v63 = vrot.slane %v5988_v11, 1  ;;  %v2924_v11 = vshll.u32 %v6204_v52, 16 }
  0xab   : > { %v985_v58 = vsel %vm966_vm6, %v982_v43, %v984_v63 }
  0xad   : > { %4963 = vmatmul.mubr.msk.bf16.vlgmr.msra.gmra.mrb[0].mxu1 %vm505_vm3, %v971_v5  ;;  %v6356_v5 = vld [vmem:[%s5854_s27 + $0x98] sm:$0xff]  }
  0xae   : > { %4966 = vmatprep.mubr.msk.bf16.mxu1 %vm505_vm3, %v973_v14  ;;  %4999 = vmatpush3.bf16.msra.mxu1 %v6137_v21  ;;  %v2629_v21 = vrot.slane %v6315_v4, 2  ;;  %v983_v14 = vsel %vm966_vm6, %v980_v1, %v982_v43  ;;  %v2639_v40 = vrot.slane %v6356_v5, 2  ;;  %v2926_v1 = vrot.slane %v2924_v11, 3 }
  0xaf   : > { %5226 = vmatprep.subr.bf16.mxu1 %v5836_v6 }
  0xb0   : > { %5131 = vmatmul.mubr.msk.bf16.gmra.mrb[16].mxu0 %vm505_vm3, %v2626_v27  ;;  %v2630_v26 = vsel %vm2166_vm5, %v2627_v41, %v2629_v21  ;;  %v2632_v48 = vsel %vm2166_vm5, %v2629_v21, %v2631_v18  ;;  %v2637_v41 = vrot.slane %v6352_v51, 2  ;;  %v2921_v27 = vshrl.u32 %v6204_v52, 16  ;;  %v5601_v18 = vld [vmem:[%s5854_s27 + $0xa0] ss:$0 sps:$4 sm:$0x33]  }
  0xb1   : > { %5134 = vmatprep.mubr.msk.bf16.mxu0 %vm505_vm3, %v2628_v32  ;;  %v2932_v32 = vshll.u32 %v6207_v23, 16  ;;  %v2931_v52 = vrot.slane %v2929_v19, 2  ;;  %v2641_v9 = vrot.slane %v5601_v18, 2  ;;  %v2949_v19 = vrot.slane %v2947_v49, 2 }
  0xb2   : > { %v2638_v21 = vsel %vm2166_vm5, %v2635_v15, %v2637_v41  ;;  %v2941_v15 = vshll.u32 %v6220_v61, 16  ;;  %v2977_v49 = vshll.u32 %v6260_v35, 16 }
  0xb5   : > { %4967 = vmatmul.mubr.msk.bf16.gmra.mrb[4].mxu1 %vm505_vm3, %v975_v54  ;;  %v986_v54 = vrot.slane %v6005_v33, 1 }
  0xb6   : > { %4970 = vmatprep.mubr.msk.bf16.mxu1 %vm505_vm3, %v977_v37  ;;  %v2640_v37 = vsel %vm2166_vm5, %v2637_v41, %v2639_v40 }
  0xb7   : > { %v989_v33 = vsel %vm966_vm6, %v986_v54, %v988_v60 }
  0xb8   : > { %5135 = vmatmul.mubr.msk.bf16.gmra.mrb[20].mxu0 %vm505_vm3, %v2630_v26  ;;  %v2923_v26 = vrot.slane %v2921_v27, 2  ;;  %v992_v27 = vrot.slane %v6034_v20, 1  ;;  %v2965_v20 = vshrl.u32 %v6243_v12, 16 }
  0xb9   : > { %5138 = vmatprep.mubr.msk.bf16.mxu0 %vm505_vm3, %v2632_v48  ;;  %v2934_v48 = vrot.slane %v2932_v32, 3 }
  0xba   : > { %v2927_v43 = vor.u32 %v2926_v1, %v2923_v26  ;;  %v2968_v26 = vshll.u32 %v6243_v12, 16 }
  0xbd   : > { %4971 = vmatmul.mubr.msk.bf16.gmra.mrb[8].mxu1 %vm505_vm3, %v979_v56  ;;  %v987_v56 = vsel %vm966_vm6, %v984_v63, %v986_v54  ;;  %v990_v63 = vrot.slane %v6029_v3, 1  ;;  %v2956_v3 = vshrl.u32 %v6239_v7, 16 }
  0xbe   : > { %4974 = vmatprep.mubr.msk.bf16.mxu1 %vm505_vm3, %v981_v57  ;;  %v2938_v57 = vshrl.u32 %v6220_v61, 16 }
  0xbf   : > { %v991_v54 = vsel %vm966_vm6, %v988_v60, %v990_v63  ;;  %v994_v60 = vrot.slane %v6051_v44, 1 }
  0xc0   : > { %5139 = vmatmul.mubr.msk.bf16.gmra.mrb[24].mxu0 %vm505_vm3, %v2634_v59  ;;  %v2935_v59 = vor.u32 %v2934_v48, %v2931_v52  ;;  %v2940_v41 = vrot.slane %v2938_v57, 2  ;;  %v2958_v52 = vrot.slane %v2956_v3, 2  ;;  %v2970_v57 = vrot.slane %v2968_v26, 3 }
  0xc1   : > { %5142 = vmatprep.mubr.msk.bf16.mxu0 %vm505_vm3, %v2636_v24  ;;  %v2950_v24 = vshll.u32 %v6224_v30, 16  ;;  %v2995_v3 = vshll.u32 %v6278_v8, 16 }
  0xc2   : > { %v2936_v11 = vsel %vm2919_vm7, %v2927_v43, %v2935_v59 }
  0xc3   : > { %v2952_v32 = vrot.slane %v2950_v24, 3  ;;  %v2983_v24 = vshrl.u32 %v6264_v29, 16 }
  0xc5   : > { %4975 = vmatmul.mubr.msk.bf16.gmra.mrb[12].mxu1 %vm505_vm3, %v983_v14  ;;  %v2642_v14 = vsel %vm2166_vm5, %v2639_v40, %v2641_v9  ;;  %v2959_v40 = vshll.u32 %v6239_v7, 16  ;;  %v2953_v18 = vor.u32 %v2952_v32, %v2949_v19  ;;  %v2985_v19 = vrot.slane %v2983_v24, 2  ;;  %v5750_v24 = vld [vmem:[%s5854_s27 + $0x18] sm:$0xff]  }
  0xc6   : > { %4978 = vmatprep.mubr.msk.bf16.mxu1 %vm505_vm3, %v985_v58  ;;  %v2943_v58 = vrot.slane %v2941_v15, 3  ;;  %v995_v15 = vsel %vm966_vm6, %v992_v27, %v994_v60 }
  0xc7   : > { %v2961_v48 = vrot.slane %v2959_v40, 3 }
  0xc8   : > { %5143 = vmatmul.mubr.msk.bf16.gmra.mrb[28].mxu0 %vm505_vm3, %v2638_v21  ;;  %v2944_v21 = vor.u32 %v2943_v58, %v2940_v41  ;;  %v2979_v58 = vrot.slane %v2977_v49, 3  ;;  %v3019_v49 = vshrl.u32 %v6301_v0, 16 }
  0xc9   : > { %5146 = vmatprep.mubr.msk.bf16.mxu0 %vm505_vm3, %v2640_v37  ;;  %v993_v37 = vsel %vm966_vm6, %v990_v63, %v992_v27  ;;  %v2962_v43 = vor.u32 %v2961_v48, %v2958_v52  ;;  %v2986_v63 = vshll.u32 %v6264_v29, 16  ;;  %v1000_v27 = vrot.slane %v6080_v17, 1  ;;  %v5749_v48 = vld [vmem:[%s5854_s27 + $0x10] sm:$0xff]  }
  0xca   : > { %v2945_v1 = vsel %vm2919_vm7, %v2935_v59, %v2944_v21  ;;  %v2954_v9 = vsel %vm2919_vm7, %v2944_v21, %v2953_v18  ;;  %v2974_v59 = vshrl.u32 %v6260_v35, 16  ;;  %v2992_v21 = vshrl.u32 %v6278_v8, 16 }
  0xcb   : > { %v2988_v32 = vrot.slane %v2986_v63, 3  ;;  %v3001_v17 = vshrl.u32 %v6283_v13, 16  ;;  %v1406_v52 = vrot.slane %v5889_v25, 1  ;;  %v3013_v25 = vshll.u32 %v6296_v62, 16 }
  0xcc   : > { %v2976_v41 = vrot.slane %v2974_v59, 2  ;;  %v2994_v26 = vrot.slane %v2992_v21, 2  ;;  %v1409_v63 = vrot.slane %v5750_v24, 1 }
  0xcd   : > { %4979 = vmatmul.mubr.msk.bf16.gmra.mrb[16].mxu1 %vm505_vm3, %v987_v56  ;;  %v996_v56 = vrot.slane %v6057_v50, 1  ;;  %v2989_v40 = vor.u32 %v2988_v32, %v2985_v19  ;;  %v3021_v19 = vrot.slane %v3019_v49, 2  ;;  %v3058_v49 = vshll.u32 %v6339_v53, 16 }
  0xce   : > { %4982 = vmatprep.mubr.msk.bf16.mxu1 %vm505_vm3, %v989_v33  ;;  %v2967_v33 = vrot.slane %v2965_v20, 2  ;;  %v1002_v20 = vrot.slane %v6101_v42, 1 }
  0xcf   : > { %v997_v44 = vsel %vm966_vm6, %v994_v60, %v996_v56 }
  0xd0   : > { %5147 = vmatmul.mubr.msk.bf16.gmra.mrb[32].mxu0 %vm505_vm3, %v2642_v14  ;;  %v2971_v50 = vor.u32 %v2970_v57, %v2967_v33  ;;  %v2963_v14 = vsel %vm2919_vm7, %v2953_v18, %v2962_v43  ;;  %v3004_v18 = vshll.u32 %v6283_v13, 16  ;;  %v3003_v33 = vrot.slane %v3001_v17, 2 }
  0xd1   : > { %5152 = vmatprep.mubr.msk.bf16.mxu0 %vm505_vm3, %v2936_v11  ;;  %v3037_v17 = vshrl.u32 %v6321_v36, 16 }
  0xd2   : > { %v2972_v11 = vsel %vm2919_vm7, %v2962_v43, %v2971_v50  ;;  %v3006_v57 = vrot.slane %v3004_v18, 3  ;;  %v3040_v18 = vshll.u32 %v6321_v36, 16 }
  0xd4   : > { %v3007_v59 = vor.u32 %v3006_v57, %v3003_v33  ;;  %v3039_v33 = vrot.slane %v3037_v17, 2  ;;  %v3042_v57 = vrot.slane %v3040_v18, 3  ;;  %v3076_v17 = vshll.u32 %v6356_v5, 16  ;;  %v5756_v18 = vld [vmem:[%s5854_s27 + $0x48] sm:$0xff]  }
  0xd5   : > { %4983 = vmatmul.mubr.msk.bf16.gmra.mrb[20].mxu1 %vm505_vm3, %v991_v54 }
  0xd6   : > { %4986 = vmatprep.mubr.msk.bf16.mxu1 %vm505_vm3, %v993_v37 }
  0xd8   : > { %5153 = vmatmul.mubr.msk.bf16.vlgmr.msra.gmra.mrb[0].mxu0 %vm505_vm3, %v2945_v1  ;;  %v2997_v1 = vrot.slane %v2995_v3, 3  ;;  %v3031_v3 = vshll.u32 %v6315_v4, 16 }
  0xd9   : > { %5189 = vmatpush3.bf16.msra.mxu0 %v6246_v38  ;;  %5156 = vmatprep.mubr.msk.bf16.mxu0 %vm505_vm3, %v2954_v9  ;;  %v998_v38 = vrot.slane %v6072_v2, 1  ;;  %v2980_v2 = vor.u32 %v2979_v58, %v2976_v41  ;;  %v3015_v41 = vrot.slane %v3013_v25, 3  ;;  %v5751_v58 = vld [vmem:[%s5854_s27 + $0x20] sm:$0xff]   ;;  %v3043_v25 = vor.u32 %v3042_v57, %v3039_v33 }
  0xda   : > { %v2998_v42 = vor.u32 %v2997_v1, %v2994_v26  ;;  %v3078_v57 = vrot.slane %v3076_v17, 3  ;;  %v3372_v17 = vrot.slane %v6224_v30, 3  ;;  %v3374_v30 = vrot.slane %v6239_v7, 3 }
  0xdb   : > { %v999_v54 = vsel %vm966_vm6, %v996_v56, %v998_v38  ;;  %v1001_v37 = vsel %vm966_vm6, %v998_v38, %v1000_v27  ;;  %v2981_v60 = vsel %vm2919_vm7, %v2971_v50, %v2980_v2  ;;  %v1407_v56 = vrot.slane %v5749_v48, 1  ;;  %v5753_v48 = vld [vmem:[%s5854_s27 + $0x30] sm:$0xff]  }
  0xdc   : > { %v2990_v9 = vsel %vm2919_vm7, %v2980_v2, %v2989_v40  ;;  %v3022_v50 = vshll.u32 %v6301_v0, 16  ;;  %v2999_v38 = vsel %vm2919_vm7, %v2989_v40, %v2998_v42 }
  0xdd   : > { %4987 = vmatmul.mubr.msk.bf16.gmra.mrb[24].mxu1 %vm505_vm3, %v995_v15  ;;  %v1003_v15 = vsel %vm966_vm6, %v1000_v27, %v1002_v20  ;;  %v1408_v43 = vsel %vm966_vm6, %v1406_v52, %v1407_v56  ;;  %v1411_v27 = vrot.slane %v5751_v58, 1  ;;  %v5752_v20 = vld [vmem:[%s5854_s27 + $0x28] sm:$0xff]   ;;  %v3033_v52 = vrot.slane %v3031_v3, 3 }
  0xde   : > { %4990 = vmatprep.mubr.msk.bf16.mxu1 %vm505_vm3, %v997_v44  ;;  %v3010_v44 = vshrl.u32 %v6296_v62, 16  ;;  %v3024_v32 = vrot.slane %v3022_v50, 3  ;;  %v1413_v26 = vrot.slane %v5752_v20, 1  ;;  %v5754_v50 = vld [vmem:[%s5854_s27 + $0x38] sm:$0xff]   ;;  %v1421_v20 = vrot.slane %v5756_v18, 1 }
  0xdf   : > { %v1412_v2 = vsel %vm966_vm6, %v1409_v63, %v1411_v27  ;;  %v1417_v24 = vrot.slane %v5754_v50, 1  ;;  %v1433_v18 = vrot.slane %v6164_v28, 1 }
  0xe0   : > { %5157 = vmatmul.mubr.msk.bf16.gmra.mrb[4].mxu0 %vm505_vm3, %v2963_v14  ;;  %v3012_v14 = vrot.slane %v3010_v44, 2  ;;  %v3025_v40 = vor.u32 %v3024_v32, %v3021_v19  ;;  %v3049_v44 = vshll.u32 %v6334_v45, 16  ;;  %v3060_v19 = vrot.slane %v3058_v49, 3  ;;  %v5758_v49 = vld [vmem:[%s5854_s27 + $0x58] sm:$0xff]  }
  0xe1   : > { %5160 = vmatprep.mubr.msk.bf16.mxu0 %vm505_vm3, %v2972_v11  ;;  %v3008_v11 = vsel %vm2919_vm7, %v2998_v42, %v3007_v59  ;;  %v1425_v50 = vrot.slane %v5758_v49, 1  ;;  %v1828_v49 = vshrl.u32 %v6147_v16, 16 }
  0xe2   : > { %v3016_v21 = vor.u32 %v3015_v41, %v3012_v14  ;;  %v3051_v14 = vrot.slane %v3049_v44, 3  ;;  %v5755_v41 = vld [vmem:[%s5854_s27 + $0x40] sm:$0xff]  }
  0xe3   : > { %v1419_v58 = vrot.slane %v5755_v41, 1 }
  0xe5   : > { %4991 = vmatmul.mubr.msk.bf16.gmra.mrb[28].mxu1 %vm505_vm3, %v999_v54  ;;  %v1410_v54 = vsel %vm966_vm6, %v1407_v56, %v1409_v63  ;;  %v1415_v56 = vrot.slane %v5753_v48, 1 }
  0xe6   : > { %4994 = vmatprep.mubr.msk.bf16.mxu1 %vm505_vm3, %v1001_v37  ;;  %v3028_v37 = vshrl.u32 %v6315_v4, 16 }
  0xe7   : > { %v1418_v32 = vsel %vm966_vm6, %v1415_v56, %v1417_v24 }
  0xe8   : > { %5161 = vmatmul.mubr.msk.bf16.gmra.mrb[8].mxu0 %vm505_vm3, %v2981_v60  ;;  %v3017_v60 = vsel %vm2919_vm7, %v3007_v59, %v3016_v21  ;;  %v3030_v1 = vrot.slane %v3028_v37, 2  ;;  %v3055_v59 = vshrl.u32 %v6339_v53, 16  ;;  %v3067_v37 = vshll.u32 %v6352_v51, 16 }
  0xe9   : > { %5164 = vmatprep.mubr.msk.bf16.mxu0 %vm505_vm3, %v2990_v9  ;;  %v3026_v9 = vsel %vm2919_vm7, %v3016_v21, %v3025_v40  ;;  %v1420_v21 = vsel %vm966_vm6, %v1417_v24, %v1419_v58 }
  0xea   : > { %v3034_v42 = vor.u32 %v3033_v52, %v3030_v1  ;;  %v3069_v1 = vrot.slane %v3067_v37, 3  ;;  %v5757_v52 = vld [vmem:[%s5854_s27 + $0x50] sm:$0xff]  }
  0xeb   : > { %v1423_v48 = vrot.slane %v5757_v52, 1  ;;  %v3376_v52 = vrot.slane %v6243_v12, 3 }
  0xec   : > { %v3035_v63 = vsel %vm2919_vm7, %v3025_v40, %v3034_v42  ;;  %v3073_v40 = vshrl.u32 %v6356_v5, 16 }
  0xed   : > { %4995 = vmatmul.mubr.msk.bf16.gmra.mrb[32].mxu1 %vm505_vm3, %v1003_v15  ;;  %v1414_v15 = vsel %vm966_vm6, %v1411_v27, %v1413_v26  ;;  %v3044_v27 = vsel %vm2919_vm7, %v3034_v42, %v3043_v25  ;;  %v3377_v7 = vsel %vm3366_vm8, %v3374_v30, %v3376_v52 }
  0xee   : > { %5000 = vmatprep.mubr.msk.bf16.mxu1 %vm505_vm3, %v1408_v43  ;;  %v3046_v43 = vshrl.u32 %v6334_v45, 16  ;;  %v3075_v33 = vrot.slane %v3073_v40, 2 }
  0xf0   : > { %5165 = vmatmul.mubr.msk.bf16.gmra.mrb[12].mxu0 %vm505_vm3, %v2999_v38  ;;  %v3048_v38 = vrot.slane %v3046_v43, 2 }
  0xf1   : > { %5168 = vmatprep.mubr.msk.bf16.mxu0 %vm505_vm3, %v3008_v11  ;;  %v3057_v11 = vrot.slane %v3055_v59, 2  ;;  %v3360_v59 = vld [vmem:[%s5854_s27 + $0x10] sm:$0x8] }
  0xf3   : > { %v3061_v3 = vor.u32 %v3060_v19, %v3057_v11 }
  0xf5   : > { %5001 = vmatmul.mubr.msk.bf16.vlgmr.msra.gmra.mrb[0].mxu1 %vm505_vm3, %v1410_v54  ;;  %v3052_v54 = vor.u32 %v3051_v14, %v3048_v38  ;;  %v1427_v14 = vrot.slane %v6128_v34, 1 }
  0xf6   : > { %5004 = vmatprep.mubr.msk.bf16.mxu1 %vm505_vm3, %v1412_v2  ;;  %5227 = vmatpush3.bf16.msra.mxu1 %v5836_v6  ;;  %v1416_v6 = vsel %vm966_vm6, %v1413_v26, %v1415_v56  ;;  %v3064_v2 = vshrl.u32 %v6352_v51, 16  ;;  %v6491_v56 = vld [vmem:[%s5854_s27 + $0xa0] ss:$0 sps:$4 sm:$0x77]  }
  0xf7   : > { %v3053_v26 = vsel %vm2919_vm7, %v3043_v25, %v3052_v54  ;;  %v3082_v43 = vshrl.u32 %v6491_v56, 16  ;;  %v3085_v44 = vshll.u32 %v6491_v56, 16  ;;  %v3079_v25 = vor.u32 %v3078_v57, %v3075_v33 }
  0xf8   : > { %5169 = vmatmul.mubr.msk.bf16.gmra.mrb[16].mxu0 %vm505_vm3, %v3017_v60  ;;  %v3066_v60 = vrot.slane %v3064_v2, 2  ;;  %v1428_v19 = vsel %vm966_vm6, %v1425_v50, %v1427_v14  ;;  %v1431_v2 = vrot.slane %v6152_v10, 1  ;;  %v1439_v33 = vrot.slane %v6184_v55, 1 }
  0xf9   : > { %5172 = vmatprep.mubr.msk.bf16.mxu0 %vm505_vm3, %v3026_v9  ;;  %v3062_v9 = vsel %vm2919_vm7, %v3052_v54, %v3061_v3  ;;  %v3087_v38 = vrot.slane %v3085_v44, 3  ;;  %v3368_v54 = vrot.slane %v6207_v23, 3  ;;  %v3370_v23 = vrot.slane %v6220_v61, 3 }
  0xfa   : > { %v3070_v42 = vor.u32 %v3069_v1, %v3066_v60  ;;  %v1434_v61 = vsel %vm966_vm6, %v1431_v2, %v1433_v18  ;;  %v1819_v57 = vshrl.u32 %v6128_v34, 16 }
  0xfb   : > { %v3373_v60 = vsel %vm3366_vm8, %v3370_v23, %v3372_v17 }
  0xfc   : > { %v3071_v24 = vsel %vm2919_vm7, %v3061_v3, %v3070_v42  ;;  %v3080_v41 = vsel %vm2919_vm7, %v3070_v42, %v3079_v25  ;;  %v5604_v42 = vld [vmem:[%s5854_s27 + $0x98] ss:$0 sps:$4 sm:$0x11]   ;;  %v1821_v44 = vrot.slane %v1819_v57, 1 }
  0xfd   : > { %5005 = vmatmul.mubr.msk.bf16.gmra.mrb[4].mxu1 %vm505_vm3, %v1414_v15  ;;  %v1422_v15 = vsel %vm966_vm6, %v1419_v58, %v1421_v20  ;;  %v4476_v58 = vcombine.low %v3360_v59, %v6194_v46  ;;  %v3380_v59 = vrot.slane %v6264_v29, 3 }
  0xfe   : > { %5008 = vmatprep.mubr.msk.bf16.mxu1 %vm505_vm3, %v1416_v6  ;;  %v1424_v6 = vsel %vm966_vm6, %v1421_v20, %v1423_v48  ;;  %v3371_v20 = vsel %vm3366_vm8, %v3368_v54, %v3370_v23 }
 0x100   : > { %5173 = vmatmul.mubr.msk.bf16.gmra.mrb[20].mxu0 %vm505_vm3, %v3035_v63  ;;  %v3084_v63 = vrot.slane %v3082_v43, 2 }
 0x101   : > { %5176 = vmatprep.mubr.msk.bf16.mxu0 %vm505_vm3, %v3044_v27  ;;  %v1426_v27 = vsel %vm966_vm6, %v1423_v48, %v1425_v50  ;;  %v1437_v48 = vrot.slane %v6180_v39, 1  ;;  %v1831_v50 = vshll.u32 %v6147_v16, 16 }
 0x102   : > { %v3088_v11 = vor.u32 %v3087_v38, %v3084_v63  ;;  %v1840_v38 = vshll.u32 %v6152_v10, 16 }
 0x103   : > { %v1440_v43 = vsel %vm966_vm6, %v1437_v48, %v1439_v33 }
 0x104   : > { %v3089_v46 = vsel %vm2919_vm7, %v3079_v25, %v3088_v11 }
 0x105   : > { %5009 = vmatmul.mubr.msk.bf16.gmra.mrb[8].mxu1 %vm505_vm3, %v1418_v32  ;;  %v3367_v32 = vrot.slane %v4476_v58, 3  ;;  %v1833_v58 = vrot.slane %v1831_v50, 2 }
 0x106   : > { %5012 = vmatprep.mubr.msk.bf16.mxu1 %vm505_vm3, %v1420_v21  ;;  %v1429_v21 = vrot.slane %v6147_v16, 1 }
 0x107   : > { %v3369_v37 = vsel %vm3366_vm8, %v3367_v32, %v3368_v54  ;;  %v3384_v32 = vrot.slane %v6283_v13, 3  ;;  %v1846_v54 = vshrl.u32 %v6164_v28, 16 }
 0x108   : > { %5177 = vmatmul.mubr.msk.bf16.gmra.mrb[24].mxu0 %vm505_vm3, %v3053_v26  ;;  %v1430_v3 = vsel %vm966_vm6, %v1427_v14, %v1429_v21  ;;  %v1432_v40 = vsel %vm966_vm6, %v1429_v21, %v1431_v2  ;;  %v1435_v26 = vrot.slane %v6168_v31, 1  ;;  %v1849_v21 = vshll.u32 %v6164_v28, 16 }
 0x109   : > { %5180 = vmatprep.mubr.msk.bf16.mxu0 %vm505_vm3, %v3062_v9  ;;  %v3375_v9 = vsel %vm3366_vm8, %v3372_v17, %v3374_v30 }
 0x10a   : > { %v1436_v1 = vsel %vm966_vm6, %v1433_v18, %v1435_v26  ;;  %v1438_v12 = vsel %vm966_vm6, %v1435_v26, %v1437_v48  ;;  %v1851_v23 = vrot.slane %v1849_v21, 2  ;;  %v1864_v26 = vshrl.u32 %v6180_v39, 16 }
 0x10c   : > { %v1866_v48 = vrot.slane %v1864_v26, 1 }
 0x10d   : > { %5013 = vmatmul.mubr.msk.bf16.gmra.mrb[12].mxu1 %vm505_vm3, %v1422_v15  ;;  %v1822_v15 = vshll.u32 %v6128_v34, 16  ;;  %v1441_v34 = vrot.slane %v5604_v42, 1  ;;  %v1885_v42 = vshll.u32 %v6200_v47, 16 }
 0x10e   : > { %5016 = vmatprep.mubr.msk.bf16.mxu1 %vm505_vm3, %v1424_v6  ;;  %v3378_v6 = vrot.slane %v6260_v35, 3  ;;  %v1837_v35 = vshrl.u32 %v6152_v10, 16 }
 0x10f   : > { %v1824_v25 = vrot.slane %v1822_v15, 2  ;;  %v1442_v29 = vsel %vm966_vm6, %v1439_v33, %v1441_v34  ;;  %v3390_v33 = vrot.slane %v6315_v4, 3 }
 0x110   : > { %5181 = vmatmul.mubr.msk.bf16.gmra.mrb[28].mxu0 %vm505_vm3, %v3071_v24  ;;  %v3379_v24 = vsel %vm3366_vm8, %v3376_v52, %v3378_v6  ;;  %v3381_v14 = vsel %vm3366_vm8, %v3378_v6, %v3380_v59  ;;  %v1839_v11 = vrot.slane %v1837_v35, 1  ;;  %v3400_v35 = vrot.slane %v6356_v5, 3 }
 0x111   : > { %5184 = vmatprep.mubr.msk.bf16.mxu0 %vm505_vm3, %v3080_v41  ;;  %v1825_v63 = vor.u32 %v1824_v25, %v1821_v44  ;;  %v1830_v41 = vrot.slane %v1828_v49, 1  ;;  %v3396_v49 = vrot.slane %v6339_v53, 3 }
 0x113   : > { %v1826_v16 = vsel %vm1719_vm4, %v6043_v22, %v1825_v63  ;;  %v1834_v10 = vor.u32 %v1833_v58, %v1830_v41  ;;  %v1858_v22 = vshll.u32 %v6168_v31, 16 }
 0x115   : > { %5017 = vmatmul.mubr.msk.bf16.gmra.mrb[16].mxu1 %vm505_vm3, %v1426_v27  ;;  %v3382_v27 = vrot.slane %v6278_v8, 3  ;;  %v1855_v8 = vshrl.u32 %v6168_v31, 16  ;;  %v1835_v13 = vsel %vm1719_vm4, %v1825_v63, %v1834_v10  ;;  %v1860_v18 = vrot.slane %v1858_v22, 2 }
 0x116   : > { %5020 = vmatprep.mubr.msk.bf16.mxu1 %vm505_vm3, %v1428_v19  ;;  %v1842_v19 = vrot.slane %v1840_v38, 2 }
 0x117   : > { %v1857_v17 = vrot.slane %v1855_v8, 1 }
 0x118   : > { %5185 = vmatmul.mubr.msk.bf16.gmra.mrb[32].mxu0 %vm505_vm3, %v3089_v46  ;;  %v3383_v46 = vsel %vm3366_vm8, %v3380_v59, %v3382_v27  ;;  %v1843_v2 = vor.u32 %v1842_v19, %v1839_v11  ;;  %v3394_v59 = vrot.slane %v6334_v45, 3  ;;  %v3398_v45 = vrot.slane %v6352_v51, 3 }
 0x119   : > { %5190 = vmatprep.mubr.msk.bf16.mxu0 %vm505_vm3, %v3369_v37  ;;  %v3385_v37 = vsel %vm3366_vm8, %v3382_v27, %v3384_v32  ;;  %v1861_v30 = vor.u32 %v1860_v18, %v1857_v17 }
 0x11a   : > { %v1844_v28 = vsel %vm1719_vm4, %v1834_v10, %v1843_v2  ;;  %v3399_v53 = vsel %vm3366_vm8, %v3396_v49, %v3398_v45  ;;  %v3401_v38 = vsel %vm3366_vm8, %v3398_v45, %v3400_v35 }
 0x11d   : > { %5021 = vmatmul.mubr.msk.bf16.gmra.mrb[20].mxu1 %vm505_vm3, %v1430_v3  ;;  %v1848_v3 = vrot.slane %v1846_v54, 1 }
 0x11e   : > { %5024 = vmatprep.mubr.msk.bf16.mxu1 %vm505_vm3, %v1432_v40  ;;  %v3386_v40 = vrot.slane %v6296_v62, 3  ;;  %v1873_v62 = vshrl.u32 %v6184_v55, 16 }
 0x11f   : > { %v1852_v31 = vor.u32 %v1851_v23, %v1848_v3 }
 0x120   : > { %5191 = vmatmul.mubr.msk.bf16.vlgmr.msra.gmra.mrb[0].mxu0 %vm505_vm3, %v3371_v20  ;;  %v3388_v20 = vrot.slane %v6301_v0, 3  ;;  %v1875_v57 = vrot.slane %v1873_v62, 1 }
 0x121   : > { %5194 = vmatprep.mubr.msk.bf16.mxu0 %vm505_vm3, %v3373_v60  ;;  %v1867_v60 = vshll.u32 %v6180_v39, 16  ;;  %v1853_v0 = vsel %vm1719_vm4, %v1843_v2, %v1852_v31  ;;  %v1862_v39 = vsel %vm1719_vm4, %v1852_v31, %v1861_v30 }
 0x122   : > { %v3389_v52 = vsel %vm3366_vm8, %v3386_v40, %v3388_v20  ;;  %v3391_v6 = vsel %vm3366_vm8, %v3388_v20, %v3390_v33 }
 0x125   : > { %5025 = vmatmul.mubr.msk.bf16.gmra.mrb[24].mxu1 %vm505_vm3, %v1434_v61  ;;  %v3387_v61 = vsel %vm3366_vm8, %v3384_v32, %v3386_v40  ;;  %v6645_v40 = vld [vmem:[%s6919_s2] ss:$0 sm:$0xff] }
 0x126   : > { %5028 = vmatprep.mubr.msk.bf16.mxu1 %vm505_vm3, %v1436_v1  ;;  %v1876_v1 = vshll.u32 %v6184_v55, 16 }
 0x128   : > { %5195 = vmatmul.mubr.msk.bf16.gmra.mrb[4].mxu0 %vm505_vm3, %v3375_v9  ;;  %v1869_v9 = vrot.slane %v1867_v60, 2  ;;  %v1878_v15 = vrot.slane %v1876_v1, 2 }
 0x129   : > { %5198 = vmatprep.mubr.msk.bf16.mxu0 %vm505_vm3, %v3377_v7  ;;  %v3392_v7 = vrot.slane %v6321_v36, 3  ;;  %v1887_v36 = vrot.slane %v1885_v42, 2 }
 0x12a   : > { %v1870_v55 = vor.u32 %v1869_v9, %v1866_v48 }
 0x12b   : > { %v3393_v4 = vsel %vm3366_vm8, %v3390_v33, %v3392_v7  ;;  %v3395_v50 = vsel %vm3366_vm8, %v3392_v7, %v3394_v59 }
 0x12c   : > { %v1871_v44 = vsel %vm1719_vm4, %v1861_v30, %v1870_v55 }
 0x12d   : > { %5029 = vmatmul.mubr.msk.bf16.gmra.mrb[28].mxu1 %vm505_vm3, %v1438_v12  ;;  %v1882_v12 = vshrl.u32 %v6200_v47, 16 }
 0x12e   : > { %5032 = vmatprep.mubr.msk.bf16.mxu1 %vm505_vm3, %v1440_v43  ;;  %v1879_v43 = vor.u32 %v1878_v15, %v1875_v57 }
 0x12f   : > { %v1884_v25 = vrot.slane %v1882_v12, 1 }
 0x130   : > { %5199 = vmatmul.mubr.msk.bf16.gmra.mrb[8].mxu0 %vm505_vm3, %v3379_v24  ;;  %v1880_v34 = vsel %vm1719_vm4, %v1870_v55, %v1879_v43  ;;  %v3397_v24 = vsel %vm3366_vm8, %v3394_v59, %v3396_v49 }
 0x131   : > { %5202 = vmatprep.mubr.msk.bf16.mxu0 %vm505_vm3, %v3381_v14  ;;  %v1888_v47 = vor.u32 %v1887_v36, %v1884_v25  ;;  %v3402_v14 = vrot.slane %v6491_v56, 3 }
 0x133   : > { %v1889_v63 = vsel %vm1719_vm4, %v1879_v43, %v1888_v47 }
 0x135   : > { %5033 = vmatmul.mubr.msk.bf16.gmra.mrb[32].mxu1 %vm505_vm3, %v1442_v29  ;;  %v3403_v29 = vsel %vm3366_vm8, %v3400_v35, %v3402_v14 }
 0x136   : > { %5058 = vmatprep.mubr.msk.bf16.mxu1 %vm505_vm3, %v1826_v16 }
 0x138   : > { %5203 = vmatmul.mubr.msk.bf16.gmra.mrb[12].mxu0 %vm505_vm3, %v3383_v46 }
 0x139   : > { %5206 = vmatprep.mubr.msk.bf16.mxu0 %vm505_vm3, %v3385_v37 }
 0x13d   : > { %5059 = vmatmul.mubr.msk.bf16.vlgmr.msra.gmra.mrb[20].mxu1 %vm505_vm3, %v1835_v13 }
 0x13e   : > { %5062 = vmatprep.mubr.msk.bf16.mxu1 %vm505_vm3, %v1844_v28 }
 0x140   : > { %5207 = vmatmul.mubr.msk.bf16.gmra.mrb[16].mxu0 %vm505_vm3, %v3387_v61 }
 0x141   : > { %5210 = vmatprep.mubr.msk.bf16.mxu0 %vm505_vm3, %v3389_v52 }
 0x145   : > { %5063 = vmatmul.mubr.msk.bf16.gmra.mrb[24].mxu1 %vm505_vm3, %v1853_v0 }
 0x146   : > { %5066 = vmatprep.mubr.msk.bf16.mxu1 %vm505_vm3, %v1862_v39 }
 0x148   : > { %5211 = vmatmul.mubr.msk.bf16.gmra.mrb[20].mxu0 %vm505_vm3, %v3391_v6 }
 0x149   : > { %5214 = vmatprep.mubr.msk.bf16.mxu0 %vm505_vm3, %v3393_v4 }
 0x14d   : > { %5067 = vmatmul.mubr.msk.bf16.gmra.mrb[28].mxu1 %vm505_vm3, %v1871_v44 }
 0x14e   : > { %5070 = vmatprep.mubr.msk.bf16.mxu1 %vm505_vm3, %v1880_v34 }
 0x150   : > { %5215 = vmatmul.mubr.msk.bf16.gmra.mrb[24].mxu0 %vm505_vm3, %v3395_v50 }
 0x151   : > { %5218 = vmatprep.mubr.msk.bf16.mxu0 %vm505_vm3, %v3397_v24 }
 0x155   : > { %5071 = vmatmul.mubr.msk.bf16.gmra.mrb[32].mxu1 %vm505_vm3, %v1889_v63 }
 0x158   : > { %5219 = vmatmul.mubr.msk.bf16.gmra.mrb[28].mxu0 %vm505_vm3, %v3399_v53 }
 0x159   : > { %5222 = vmatprep.mubr.msk.bf16.mxu0 %vm505_vm3, %v3401_v38 }
 0x160   : > { %5223 = vmatmul.mubr.msk.bf16.gmra.mrb[32].mxu0 %vm505_vm3, %v3403_v29 }
 0x1c8   : > { %v5002_v41 = vpop.f32.mrb[0].mxu1 }
 0x1c9   : > { %v1534_v51 = vpop.f32.mrb[1].mxu1 }
 0x1ca   : > { %v5003_v58 = vpop.f32.mrb[2].mxu1 }
 0x1cb   : > { %v1537_v5 = vpop.f32.mrb[3].mxu1 }
 0x1d0   : > { %v5006_v27 = vpop.f32.mrb[4].mxu1 }
 0x1d1   : > { %v1550_v16 = vpop.f32.mrb[5].mxu1 }
 0x1d2   : > { %v5007_v11 = vpop.f32.mrb[6].mxu1 }
 0x1d3   : > { %v1553_v19 = vpop.f32.mrb[7].mxu1 }
 0x1d8   : > { %v5010_v32 = vpop.f32.mrb[8].mxu1 }
 0x1d9   : > { %v1566_v10 = vpop.f32.mrb[9].mxu1 }
 0x1da   : > { %v5011_v54 = vpop.f32.mrb[10].mxu1 }
 0x1db   : > { %v6624_v21 = vpop.f32.mrb[11].mxu1 }
 0x1e0   : > { %v6626_v46 = vpop.f32.mrb[12].mxu1 }
 0x1e1   : > { %v6628_v56 = vpop.f32.mrb[13].mxu1 }
 0x1e2   : > { %v6630_v2 = vpop.f32.mrb[14].mxu1 }
 0x1e3   : > { %v6632_v8 = vpop.f32.mrb[15].mxu1 }
 0x1e8   : > { %v6634_v22 = vpop.f32.mrb[16].mxu1 }
 0x1e9   : > { %v6636_v37 = vpop.f32.mrb[17].mxu1 }
 0x1ea   : > { %v6638_v13 = vpop.f32.mrb[18].mxu1 }
 0x1eb   : > { %v6640_v3 = vpop.f32.mrb[19].mxu1 }
 0x1f3   : > { %v5192_v23 = vpop.f32.mrb[0].mxu0 }
 0x1f4   : > { %v5228_v28 = vadd.f32 %v5192_v23, %v5002_v41  ;;  %v3495_v17 = vpop.f32.mrb[1].mxu0 }
 0x1f5   : > { %v5229_v18 = vadd.f32 %v3495_v17, %v1534_v51  ;;  %v5193_v20 = vpop.f32.mrb[2].mxu0 }
 0x1f6   : > { %v6648_v31 = vadd.f32 %v5228_v28, %v6645_v40  ;;  %v5230_v26 = vadd.f32 %v5193_v20, %v5003_v58  ;;  %v3498_v60 = vpop.f32.mrb[3].mxu0 }
 0x1f7   : > { %v6651_v61 = vadd.f32 %v5229_v18, %v6645_v40  ;;  %v5231_v30 = vadd.f32 %v3498_v60, %v1537_v5 }
 0x1f8   : > { %v4498_v62 = vmul.f32 -1.442695, %v6648_v31  ;;  %v6655_v1 = vadd.f32 %v5230_v26, %v6645_v40 }
 0x1f9   : > { %v4496_v52 = vmul.f32 -1.442695, %v6651_v61  ;;  %v6659_v0 = vadd.f32 %v5231_v30, %v6645_v40 }
 0x1fa   : > { %5605 = vpow2.f32 %v4498_v62  ;;  %v4499_v48 = vmul.f32 -1.442695, %v6655_v1 }
 0x1fb   : > { %5607 = vpow2.f32 %v4496_v52  ;;  %v4497_v9 = vmul.f32 -1.442695, %v6659_v0  ;;  %v5196_v33 = vpop.f32.mrb[4].mxu0 }
 0x1fc   : > { %5609 = vpow2.f32 %v4499_v48  ;;  %v5232_v39 = vadd.f32 %v5196_v33, %v5006_v27  ;;  %v3511_v57 = vpop.f32.mrb[5].mxu0 }
 0x1fd   : > { %5611 = vpow2.f32 %v4497_v9  ;;  %v5233_v15 = vadd.f32 %v3511_v57, %v1550_v16  ;;  %v5197_v7 = vpop.f32.mrb[6].mxu0 }
 0x1fe   : > { %v6664_v55 = vadd.f32 %v5232_v39, %v6645_v40  ;;  %v5234_v12 = vadd.f32 %v5197_v7, %v5007_v11  ;;  %v3514_v42 = vpop.f32.mrb[7].mxu0 }
 0x1ff   : > { %v6667_v6 = vadd.f32 %v5233_v15, %v6645_v40  ;;  %v5235_v43 = vadd.f32 %v3514_v42, %v1553_v19 }
 0x200   : > { %v4502_v4 = vmul.f32 -1.442695, %v6664_v55  ;;  %v6671_v44 = vadd.f32 %v5234_v12, %v6645_v40 }
 0x201   : > { %v4500_v25 = vmul.f32 -1.442695, %v6667_v6  ;;  %v6675_v36 = vadd.f32 %v5235_v43, %v6645_v40 }
 0x202   : > { %5613 = vpow2.f32 %v4502_v4  ;;  %v4503_v59 = vmul.f32 -1.442695, %v6671_v44 }
 0x203   : > { %5615 = vpow2.f32 %v4500_v25  ;;  %v4501_v34 = vmul.f32 -1.442695, %v6675_v36  ;;  %v5200_v49 = vpop.f32.mrb[8].mxu0 }
 0x204   : > { %v5606_v47 = vpop.eup %5605  ;;  %5617 = vpow2.f32 %v4503_v59  ;;  %v5236_v50 = vadd.f32 %v5200_v49, %v5010_v32  ;;  %v3527_v24 = vpop.f32.mrb[9].mxu0 }
 0x205   : > { %v5608_v63 = vpop.eup %5607  ;;  %v3827_v45 = vadd.f32 1.0, %v5606_v47  ;;  %5619 = vpow2.f32 %v4501_v34  ;;  %v5237_v35 = vadd.f32 %v3527_v24, %v1566_v10  ;;  %v5201_v53 = vpop.f32.mrb[10].mxu0 }
 0x206   : > { %v5610_v38 = vpop.eup %5609  ;;  %v3825_v14 = vadd.f32 1.0, %v5608_v63  ;;  %v6680_v29 = vadd.f32 %v5236_v50, %v6645_v40  ;;  %v5238_v41 = vadd.f32 %v5201_v53, %v5011_v54  ;;  %v3530_v51 = vpop.f32.mrb[11].mxu0 }
 0x207   : > { %v5612_v58 = vpop.eup %5611  ;;  %5621 = vrcp.f32 %v3827_v45  ;;  %v3828_v5 = vadd.f32 1.0, %v5610_v38  ;;  %v6683_v27 = vadd.f32 %v5237_v35, %v6645_v40  ;;  %v5239_v16 = vadd.f32 %v3530_v51, %v6624_v21 }
 0x208   : > { %5623 = vrcp.f32 %v3825_v14  ;;  %v3826_v11 = vadd.f32 1.0, %v5612_v58  ;;  %v4506_v19 = vmul.f32 -1.442695, %v6680_v29  ;;  %v6688_v32 = vadd.f32 %v5238_v41, %v6645_v40 }
 0x209   : > { %5625 = vrcp.f32 %v3828_v5  ;;  %v4504_v10 = vmul.f32 -1.442695, %v6683_v27  ;;  %v6692_v54 = vadd.f32 %v5239_v16, %v6645_v40 }
 0x20a   : > { %5627 = vrcp.f32 %v3826_v11  ;;  %v4507_v23 = vmul.f32 -1.442695, %v6688_v32 }
 0x20b   : > { %5629 = vpow2.f32 %v4506_v19  ;;  %v4505_v28 = vmul.f32 -1.442695, %v6692_v54  ;;  %v5204_v21 = vpop.f32.mrb[12].mxu0 }
 0x20c   : > { %v5614_v17 = vpop.eup %5613  ;;  %5631 = vpow2.f32 %v4504_v10  ;;  %v5240_v18 = vadd.f32 %v5204_v21, %v6626_v46  ;;  %v3543_v20 = vpop.f32.mrb[13].mxu0 }
 0x20d   : > { %v5616_v26 = vpop.eup %5615  ;;  %v3831_v60 = vadd.f32 1.0, %v5614_v17  ;;  %5633 = vpow2.f32 %v4507_v23  ;;  %v5241_v30 = vadd.f32 %v3543_v20, %v6628_v56  ;;  %v5205_v62 = vpop.f32.mrb[14].mxu0 }
 0x20e   : > { %v5618_v52 = vpop.eup %5617  ;;  %v3829_v48 = vadd.f32 1.0, %v5616_v26  ;;  %5635 = vpow2.f32 %v4505_v28  ;;  %v6699_v9 = vadd.f32 %v5240_v18, %v6645_v40  ;;  %v5242_v33 = vadd.f32 %v5205_v62, %v6630_v2  ;;  %v3546_v39 = vpop.f32.mrb[15].mxu0 }
 0x20f   : > { %v5620_v46 = vpop.eup %5619  ;;  %5637 = vrcp.f32 %v3831_v60  ;;  %v3832_v15 = vadd.f32 1.0, %v5618_v52  ;;  %v6705_v7 = vadd.f32 %v5241_v30, %v6645_v40  ;;  %v5243_v56 = vadd.f32 %v3546_v39, %v6632_v8 }
 0x210   : > { %v6702_v57 = vpop.f32.mrb[20].mxu1  ;;  %5639 = vrcp.f32 %v3829_v48  ;;  %v3830_v42 = vadd.f32 1.0, %v5620_v46  ;;  %v4510_v43 = vmul.f32 -1.442695, %v6699_v9  ;;  %v6712_v4 = vadd.f32 %v5242_v33, %v6645_v40 }
 0x211   : > { %v6708_v12 = vpop.f32.mrb[21].mxu1  ;;  %v5622_v25 = vpop.eup %5621  ;;  %5641 = vrcp.f32 %v3832_v15  ;;  %v4508_v59 = vmul.f32 -1.442695, %v6705_v7  ;;  %v6719_v34 = vadd.f32 %v5243_v56, %v6645_v40 }
 0x212   : > { %v6714_v2 = vpop.f32.mrb[22].mxu1  ;;  %v5624_v49 = vpop.eup %5623  ;;  %5643 = vrcp.f32 %v3830_v42  ;;  %v4511_v47 = vmul.f32 -1.442695, %v6712_v4  ;;  %v3935_v35 = vmul.f32 %v5622_v25, %v6648_v31 }
 0x213   : > { %v6721_v8 = vpop.f32.mrb[23].mxu1  ;;  %v5626_v50 = vpop.eup %5625  ;;  %5645 = vpow2.f32 %v4510_v43  ;;  %v4509_v24 = vmul.f32 -1.442695, %v6719_v34  ;;  %v3933_v51 = vmul.f32 %v5624_v49, %v6651_v61 }
 0x214   : > { %v5208_v63 = vpop.f32.mrb[16].mxu0  ;;  %v5628_v45 = vpop.eup %5627  ;;  %v3936_v53 = vmul.f32 %v5626_v50, %v6655_v1  ;;  %5647 = vpow2.f32 %v4508_v59 }
 0x215   : > { %v5244_v38 = vadd.f32 %v5208_v63, %v6634_v22  ;;  %v3559_v14 = vpop.f32.mrb[17].mxu0  ;;  %v5630_v41 = vpop.eup %5629  ;;  %v3934_v58 = vmul.f32 %v5628_v45, %v6659_v0  ;;  %5649 = vpow2.f32 %v4511_v47 }
 0x216   : > { %v5245_v5 = vadd.f32 %v3559_v14, %v6636_v37  ;;  %v5209_v31 = vpop.f32.mrb[18].mxu0  ;;  %v5632_v1 = vpop.eup %5631  ;;  %v4614_v16 = vpack.c.bf16 %v3936_v53, %v3935_v35  ;;  %v3835_v11 = vadd.f32 1.0, %v5630_v41  ;;  %5651 = vpow2.f32 %v4509_v24 }
 0x217   : > { %v6737_v22 = vadd.f32 %v5244_v38, %v6645_v40  ;;  %v3562_v61 = vpop.f32.mrb[19].mxu0  ;;  %v5634_v10 = vpop.eup %5633  ;;  %v4609_v23 = vpack.c.bf16 %v3934_v58, %v3933_v51  ;;  %v3833_v28 = vadd.f32 1.0, %v5632_v1  ;;  %v5246_v37 = vadd.f32 %v5209_v31, %v6638_v13 }
 0x218   : > { %v6739_v19 = vpop.f32.mrb[24].mxu1  ;;  %v6742_v0 = vadd.f32 %v5245_v5, %v6645_v40  ;;  %v5636_v17 = vpop.eup %5635  ;;  %4696 = vst [vmem:[%s6732_s19 + $0x8] sm:$0xff] %v4614_v16   ;;  %5653 = vrcp.f32 %v3835_v11  ;;  %v3836_v18 = vadd.f32 1.0, %v5634_v10  ;;  %v5247_v26 = vadd.f32 %v3562_v61, %v6640_v3 }
 0x219   : > { %v6745_v21 = vpop.f32.mrb[25].mxu1  ;;  %v4514_v20 = vmul.f32 -1.442695, %v6737_v22  ;;  %v5638_v30 = vpop.eup %5637  ;;  %4610 = vst [vmem:[%s6732_s19] sm:$0xff] %v4609_v23   ;;  %5655 = vrcp.f32 %v3833_v28  ;;  %v3834_v62 = vadd.f32 1.0, %v5636_v17  ;;  %v6755_v13 = vadd.f32 %v5246_v37, %v6645_v40 }
 0x21a   : > { %v6750_v60 = vpop.f32.mrb[26].mxu1  ;;  %v4512_v52 = vmul.f32 -1.442695, %v6742_v0  ;;  %v5640_v33 = vpop.eup %5639  ;;  %5657 = vrcp.f32 %v3836_v18  ;;  %v6760_v39 = vadd.f32 %v5247_v26, %v6645_v40  ;;  %v3939_v3 = vmul.f32 %v5638_v30, %v6664_v55 }
 0x21b   : > { %v6757_v48 = vpop.f32.mrb[27].mxu1  ;;  %v5642_v46 = vpop.eup %5641  ;;  %5659 = vrcp.f32 %v3834_v62  ;;  %v4515_v15 = vmul.f32 -1.442695, %v6755_v13  ;;  %v3937_v50 = vmul.f32 %v5640_v33, %v6667_v6 }
 0x21c   : > { %v5212_v56 = vpop.f32.mrb[20].mxu0  ;;  %v5644_v42 = vpop.eup %5643  ;;  %v3940_v43 = vmul.f32 %v5642_v46, %v6671_v44  ;;  %5661 = vpow2.f32 %v4514_v20  ;;  %v4513_v25 = vmul.f32 -1.442695, %v6760_v39 }
 0x21d   : > { %v5248_v59 = vadd.f32 %v5212_v56, %v6702_v57  ;;  %v3575_v49 = vpop.f32.mrb[21].mxu0  ;;  %v5646_v47 = vpop.eup %5645  ;;  %v3938_v24 = vmul.f32 %v5644_v42, %v6675_v36  ;;  %5663 = vpow2.f32 %v4512_v52 }
 0x21e   : > { %v5249_v55 = vadd.f32 %v3575_v49, %v6708_v12  ;;  %v5213_v63 = vpop.f32.mrb[22].mxu0  ;;  %v5648_v45 = vpop.eup %5647  ;;  %v4624_v35 = vpack.c.bf16 %v3940_v43, %v3939_v3  ;;  %v3839_v53 = vadd.f32 1.0, %v5646_v47  ;;  %5665 = vpow2.f32 %v4515_v15 }
 0x21f   : > { %v6771_v44 = vadd.f32 %v5248_v59, %v6645_v40  ;;  %v3578_v57 = vpop.f32.mrb[23].mxu0  ;;  %v5650_v14 = vpop.eup %5649  ;;  %v4619_v6 = vpack.c.bf16 %v3938_v24, %v3937_v50  ;;  %v3837_v41 = vadd.f32 1.0, %v5648_v45  ;;  %5667 = vpow2.f32 %v4513_v25 }
 0x220   : > { %v6773_v38 = vpop.f32.mrb[28].mxu1  ;;  %v6776_v36 = vadd.f32 %v5249_v55, %v6645_v40  ;;  %v5652_v51 = vpop.eup %5651  ;;  %4698 = vst [vmem:[%s6732_s19 + $0x18] sm:$0xff] %v4624_v35   ;;  %5669 = vrcp.f32 %v3839_v53  ;;  %v3840_v58 = vadd.f32 1.0, %v5650_v14  ;;  %v5250_v31 = vadd.f32 %v5213_v63, %v6714_v2 }
 0x221   : > { %v6778_v12 = vpop.f32.mrb[29].mxu1  ;;  %v4518_v5 = vmul.f32 -1.442695, %v6771_v44  ;;  %4697 = vst [vmem:[%s6732_s19 + $0x10] sm:$0xff] %v4619_v6   ;;  %5671 = vrcp.f32 %v3837_v41  ;;  %v3838_v16 = vadd.f32 1.0, %v5652_v51  ;;  %v5251_v61 = vadd.f32 %v3578_v57, %v6721_v8 }
 0x222   : > { %v6783_v1 = vpop.f32.mrb[30].mxu1  ;;  %v4516_v11 = vmul.f32 -1.442695, %v6776_v36  ;;  %v5654_v23 = vpop.eup %5653  ;;  %5673 = vrcp.f32 %v3840_v58  ;;  %v6791_v28 = vadd.f32 %v5250_v31, %v6645_v40 }
 0x223   : > { %v6788_v10 = vpop.f32.mrb[31].mxu1  ;;  %v5656_v37 = vpop.eup %5655  ;;  %v3943_v17 = vmul.f32 %v5654_v23, %v6680_v29  ;;  %5675 = vrcp.f32 %v3838_v16  ;;  %v6795_v2 = vadd.f32 %v5251_v61, %v6645_v40 }
 0x224   : > { %v5216_v18 = vpop.f32.mrb[24].mxu0  ;;  %v5658_v20 = vpop.eup %5657  ;;  %v3941_v26 = vmul.f32 %v5656_v37, %v6683_v27  ;;  %5677 = vpow2.f32 %v4518_v5  ;;  %v4519_v8 = vmul.f32 -1.442695, %v6791_v28 }
 0x225   : > { %v5252_v30 = vadd.f32 %v5216_v18, %v6739_v19  ;;  %v3591_v62 = vpop.f32.mrb[25].mxu0  ;;  %v5660_v52 = vpop.eup %5659  ;;  %v3944_v33 = vmul.f32 %v5658_v20, %v6688_v32  ;;  %5679 = vpow2.f32 %v4516_v11  ;;  %v4517_v29 = vmul.f32 -1.442695, %v6795_v2 }
 0x226   : > { %v5253_v46 = vadd.f32 %v3591_v62, %v6745_v21  ;;  %v5217_v3 = vpop.f32.mrb[26].mxu0  ;;  %v5662_v15 = vpop.eup %5661  ;;  %v3942_v56 = vmul.f32 %v5660_v52, %v6692_v54  ;;  %5681 = vpow2.f32 %v4519_v8 }
 0x227   : > { %v6805_v27 = vadd.f32 %v5252_v30, %v6645_v40  ;;  %v5254_v19 = vadd.f32 %v5217_v3, %v6750_v60  ;;  %v3594_v42 = vpop.f32.mrb[27].mxu0  ;;  %v5664_v32 = vpop.eup %5663  ;;  %v4634_v25 = vpack.c.bf16 %v3944_v33, %v3943_v17  ;;  %v3843_v59 = vadd.f32 1.0, %v5662_v15 }
 0x228   : > { %v6808_v43 = vpop.f32.mrb[32].mxu1  ;;  %5683 = vpow2.f32 %v4517_v29  ;;  %v6811_v21 = vadd.f32 %v5253_v46, %v6645_v40  ;;  %v5666_v54 = vpop.eup %5665  ;;  %v4629_v47 = vpack.c.bf16 %v3942_v56, %v3941_v26  ;;  %v3841_v50 = vadd.f32 1.0, %v5664_v32 }
 0x229   : > { %v6813_v49 = vpop.f32.mrb[33].mxu1  ;;  %v6816_v24 = vadd.f32 %v5254_v19, %v6645_v40  ;;  %v5668_v55 = vpop.eup %5667  ;;  %4700 = vst [vmem:[%s6732_s19 + $0x28] sm:$0xff] %v4634_v25   ;;  %5685 = vrcp.f32 %v3843_v59  ;;  %v3844_v63 = vadd.f32 1.0, %v5666_v54  ;;  %v4522_v45 = vmul.f32 -1.442695, %v6805_v27 }
 0x22a   : > { %v6818_v60 = vpop.f32.mrb[34].mxu1  ;;  %v5255_v35 = vadd.f32 %v3594_v42, %v6757_v48  ;;  %v5670_v57 = vpop.eup %5669  ;;  %4699 = vst [vmem:[%s6732_s19 + $0x20] sm:$0xff] %v4629_v47   ;;  %5687 = vrcp.f32 %v3841_v50  ;;  %v3842_v14 = vadd.f32 1.0, %v5668_v55  ;;  %v4520_v6 = vmul.f32 -1.442695, %v6811_v21 }
 0x22b   : > { %v6823_v53 = vpop.f32.mrb[35].mxu1  ;;  %v5672_v41 = vpop.eup %5671  ;;  %5689 = vrcp.f32 %v3844_v63  ;;  %v4523_v51 = vmul.f32 -1.442695, %v6816_v24  ;;  %v3947_v16 = vmul.f32 %v5670_v57, %v6699_v9 }
 0x22c   : > { %v6829_v58 = vadd.f32 %v5255_v35, %v6645_v40  ;;  %v5220_v5 = vpop.f32.mrb[28].mxu0  ;;  %v5674_v31 = vpop.eup %5673  ;;  %v3945_v48 = vmul.f32 %v5672_v41, %v6705_v7  ;;  %5691 = vrcp.f32 %v3842_v14 }
 0x22d   : > { %v5256_v11 = vadd.f32 %v5220_v5, %v6773_v38  ;;  %v3607_v61 = vpop.f32.mrb[29].mxu0  ;;  %v5676_v23 = vpop.eup %5675  ;;  %v3948_v37 = vmul.f32 %v5674_v31, %v6712_v4  ;;  %5693 = vpow2.f32 %v4522_v45 }
 0x22e   : > { %v4521_v17 = vmul.f32 -1.442695, %v6829_v58  ;;  %v5257_v18 = vadd.f32 %v3607_v61, %v6778_v12  ;;  %v5221_v20 = vpop.f32.mrb[30].mxu0  ;;  %v5678_v26 = vpop.eup %5677  ;;  %v3946_v8 = vmul.f32 %v5676_v23, %v6719_v34  ;;  %5695 = vpow2.f32 %v4520_v6 }
 0x22f   : > { %v6839_v9 = vadd.f32 %v5256_v11, %v6645_v40  ;;  %v5258_v7 = vadd.f32 %v5221_v20, %v6783_v1  ;;  %v3610_v38 = vpop.f32.mrb[31].mxu0  ;;  %v5680_v30 = vpop.eup %5679  ;;  %v4644_v4 = vpack.c.bf16 %v3948_v37, %v3947_v16  ;;  %v3847_v62 = vadd.f32 1.0, %v5678_v26 }
 0x230   : > { %5697 = vpow2.f32 %v4523_v51  ;;  %v6843_v52 = vadd.f32 %v5257_v18, %v6645_v40  ;;  %v5682_v12 = vpop.eup %5681  ;;  %v4639_v33 = vpack.c.bf16 %v3946_v8, %v3945_v48  ;;  %v3845_v29 = vadd.f32 1.0, %v5680_v30 }
 0x231   : > { %5699 = vpow2.f32 %v4521_v17  ;;  %4702 = vst [vmem:[%s6732_s19 + $0x38] sm:$0xff] %v4644_v4   ;;  %v3848_v46 = vadd.f32 1.0, %v5682_v12  ;;  %v4526_v3 = vmul.f32 -1.442695, %v6839_v9  ;;  %v6848_v1 = vadd.f32 %v5258_v7, %v6645_v40 }
 0x232   : > { %v5684_v34 = vpop.eup %5683  ;;  %5701 = vrcp.f32 %v3847_v62  ;;  %4701 = vst [vmem:[%s6732_s19 + $0x30] sm:$0xff] %v4639_v33   ;;  %v4524_v56 = vmul.f32 -1.442695, %v6843_v52  ;;  %v5259_v19 = vadd.f32 %v3610_v38, %v6788_v10 }
 0x233   : > { %5703 = vrcp.f32 %v3845_v29  ;;  %v3846_v15 = vadd.f32 1.0, %v5684_v34  ;;  %v5686_v42 = vpop.eup %5685  ;;  %v4527_v32 = vmul.f32 -1.442695, %v6848_v1  ;;  %v5224_v25 = vpop.f32.mrb[32].mxu0 }
 0x234   : > { %5705 = vrcp.f32 %v3848_v46  ;;  %v5688_v59 = vpop.eup %5687  ;;  %v6855_v54 = vadd.f32 %v5259_v19, %v6645_v40  ;;  %v5260_v47 = vadd.f32 %v5224_v25, %v6808_v43  ;;  %v3623_v50 = vpop.f32.mrb[33].mxu0  ;;  %v3951_v63 = vmul.f32 %v5686_v42, %v6737_v22 }
 0x235   : > { %5707 = vrcp.f32 %v3846_v15  ;;  %v5690_v55 = vpop.eup %5689  ;;  %v3949_v45 = vmul.f32 %v5688_v59, %v6742_v0  ;;  %v5261_v10 = vadd.f32 %v3623_v50, %v6813_v49  ;;  %v5225_v35 = vpop.f32.mrb[34].mxu0 }
 0x236   : > { %5709 = vpow2.f32 %v4526_v3  ;;  %v5692_v57 = vpop.eup %5691  ;;  %v3952_v14 = vmul.f32 %v5690_v55, %v6755_v13  ;;  %v4525_v6 = vmul.f32 -1.442695, %v6855_v54  ;;  %v6864_v41 = vadd.f32 %v5260_v47, %v6645_v40  ;;  %v3626_v43 = vpop.f32.mrb[35].mxu0 }
 0x237   : > { %5711 = vpow2.f32 %v4524_v56  ;;  %v5694_v51 = vpop.eup %5693  ;;  %v3950_v22 = vmul.f32 %v5692_v57, %v6760_v39  ;;  %v6868_v0 = vadd.f32 %v5261_v10, %v6645_v40  ;;  %v5262_v49 = vadd.f32 %v5225_v35, %v6818_v60 }
 0x238   : > { %5713 = vpow2.f32 %v4527_v32  ;;  %v5696_v5 = vpop.eup %5695  ;;  %v4654_v13 = vpack.c.bf16 %v3952_v14, %v3951_v63  ;;  %v3851_v31 = vadd.f32 1.0, %v5694_v51  ;;  %v4530_v37 = vmul.f32 -1.442695, %v6864_v41 }
 0x239   : > { %5715 = vpow2.f32 %v4525_v6  ;;  %v4649_v48 = vpack.c.bf16 %v3950_v22, %v3949_v45  ;;  %v3849_v11 = vadd.f32 1.0, %v5696_v5  ;;  %v6872_v61 = vadd.f32 %v5262_v49, %v6645_v40 }
 0x23a   : > { %v5698_v16 = vpop.eup %5697  ;;  %4704 = vst [vmem:[%s6732_s19 + $0x48] sm:$0xff] %v4654_v13   ;;  %5717 = vrcp.f32 %v3851_v31  ;;  %v5263_v17 = vadd.f32 %v3626_v43, %v6823_v53  ;;  %v4528_v20 = vmul.f32 -1.442695, %v6868_v0 }
 0x23b   : > { %v5700_v23 = vpop.eup %5699  ;;  %v3852_v39 = vadd.f32 1.0, %v5698_v16  ;;  %4703 = vst [vmem:[%s6732_s19 + $0x40] sm:$0xff] %v4649_v48   ;;  %5719 = vrcp.f32 %v3849_v11  ;;  %v4531_v8 = vmul.f32 -1.442695, %v6872_v61 }
 0x23c   : > { %v5702_v60 = vpop.eup %5701  ;;  %v3850_v18 = vadd.f32 1.0, %v5700_v23  ;;  %v6881_v7 = vadd.f32 %v5263_v17, %v6645_v40 }
 0x23d   : > { %v5704_v26 = vpop.eup %5703  ;;  %5721 = vrcp.f32 %v3852_v39  ;;  %v3955_v4 = vmul.f32 %v5702_v60, %v6771_v44 }
 0x23e   : > { %v5706_v38 = vpop.eup %5705  ;;  %5723 = vrcp.f32 %v3850_v18  ;;  %v4529_v62 = vmul.f32 -1.442695, %v6881_v7  ;;  %v3953_v33 = vmul.f32 %v5704_v26, %v6776_v36 }
 0x23f   : > { %v5708_v30 = vpop.eup %5707  ;;  %v3956_v53 = vmul.f32 %v5706_v38, %v6791_v28  ;;  %5725 = vpow2.f32 %v4530_v37 }
 0x240   : > { %v5710_v12 = vpop.eup %5709  ;;  %v3954_v29 = vmul.f32 %v5708_v30, %v6795_v2  ;;  %5727 = vpow2.f32 %v4528_v20 }
 0x241   : > { %v5712_v40 = vpop.eup %5711  ;;  %v4664_v34 = vpack.c.bf16 %v3956_v53, %v3955_v4  ;;  %v3855_v46 = vadd.f32 1.0, %v5710_v12  ;;  %5729 = vpow2.f32 %v4531_v8 }
 0x242   : > { %v5714_v3 = vpop.eup %5713  ;;  %v4659_v15 = vpack.c.bf16 %v3954_v29, %v3953_v33  ;;  %v3853_v44 = vadd.f32 1.0, %v5712_v40  ;;  %5731 = vpow2.f32 %v4529_v62 }
 0x243   : > { %v5716_v28 = vpop.eup %5715  ;;  %4706 = vst [vmem:[%s6732_s19 + $0x58] sm:$0xff] %v4664_v34   ;;  %5733 = vrcp.f32 %v3855_v46  ;;  %v3856_v56 = vadd.f32 1.0, %v5714_v3 }
 0x244   : > { %4705 = vst [vmem:[%s6732_s19 + $0x50] sm:$0xff] %v4659_v15   ;;  %5735 = vrcp.f32 %v3853_v44  ;;  %v3854_v19 = vadd.f32 1.0, %v5716_v28  ;;  %v5718_v42 = vpop.eup %5717 }
 0x245   : > { %5737 = vrcp.f32 %v3856_v56  ;;  %v5720_v36 = vpop.eup %5719  ;;  %v3959_v25 = vmul.f32 %v5718_v42, %v6805_v27 }
 0x246   : > { %5739 = vrcp.f32 %v3854_v19  ;;  %v3957_v50 = vmul.f32 %v5720_v36, %v6811_v21 }
 0x247   : > { %v5722_v2 = vpop.eup %5721 }
 0x248   : > { %v5724_v32 = vpop.eup %5723  ;;  %v3960_v59 = vmul.f32 %v5722_v2, %v6816_v24 }
 0x249   : > { %v5726_v47 = vpop.eup %5725  ;;  %v3958_v55 = vmul.f32 %v5724_v32, %v6829_v58 }
 0x24a   : > { %v5728_v63 = vpop.eup %5727  ;;  %v4674_v45 = vpack.c.bf16 %v3960_v59, %v3959_v25  ;;  %v3859_v10 = vadd.f32 1.0, %v5726_v47 }
 0x24b   : > { %v5730_v35 = vpop.eup %5729  ;;  %v4669_v57 = vpack.c.bf16 %v3958_v55, %v3957_v50  ;;  %v3857_v14 = vadd.f32 1.0, %v5728_v63 }
 0x24c   : > { %v5732_v6 = vpop.eup %5731  ;;  %4708 = vst [vmem:[%s6732_s19 + $0x68] sm:$0xff] %v4674_v45   ;;  %5741 = vrcp.f32 %v3859_v10  ;;  %v3860_v43 = vadd.f32 1.0, %v5730_v35 }
 0x24d   : > { %v5734_v27 = vpop.eup %5733  ;;  %4707 = vst [vmem:[%s6732_s19 + $0x60] sm:$0xff] %v4669_v57   ;;  %5743 = vrcp.f32 %v3857_v14  ;;  %v3858_v24 = vadd.f32 1.0, %v5732_v6 }
 0x24e   : > { %v5736_v51 = vpop.eup %5735  ;;  %5745 = vrcp.f32 %v3860_v43  ;;  %v3963_v22 = vmul.f32 %v5734_v27, %v6839_v9 }
 0x24f   : > { %v5738_v21 = vpop.eup %5737  ;;  %5747 = vrcp.f32 %v3858_v24  ;;  %v3961_v5 = vmul.f32 %v5736_v51, %v6843_v52 }
 0x250   : > { %v5740_v58 = vpop.eup %5739  ;;  %v3964_v49 = vmul.f32 %v5738_v21, %v6848_v1 }
 0x251   : > { %v3962_v13 = vmul.f32 %v5740_v58, %v6855_v54 }
 0x252   : > { %v4684_v31 = vpack.c.bf16 %v3964_v49, %v3963_v22 }
 0x253   : > { %v4679_v16 = vpack.c.bf16 %v3962_v13, %v3961_v5 }
 0x254   : > { %4710 = vst [vmem:[%s6732_s19 + $0x78] sm:$0xff] %v4684_v31  }
 0x255   : > { %4709 = vst [vmem:[%s6732_s19 + $0x70] sm:$0xff] %v4679_v16  }
 0x256   : > { %v5742_v48 = vpop.eup %5741 }
 0x257   : > { %v5744_v11 = vpop.eup %5743  ;;  %v3967_v37 = vmul.f32 %v5742_v48, %v6864_v41 }
 0x258   : > { %v5746_v23 = vpop.eup %5745  ;;  %v3965_v1 = vmul.f32 %v5744_v11, %v6868_v0 }
 0x259   : > { %v5748_v39 = vpop.eup %5747  ;;  %v3968_v9 = vmul.f32 %v5746_v23, %v6872_v61 }
 0x25a   : > { %v3966_v52 = vmul.f32 %v5748_v39, %v6881_v7 }
 0x25b   : > { %v4694_v17 = vpack.c.bf16 %v3968_v9, %v3967_v37 }
 0x25c   : > { %v4689_v60 = vpack.c.bf16 %v3966_v52, %v3965_v1 }
 0x25d   : > { %4712 = vst [vmem:[%s6732_s19 + $0x88] sm:$0xff] %v4694_v17  }
 0x25e   : > { %4711 = vst [vmem:[%s6732_s19 + $0x80] sm:$0xff] %v4689_v60  }
 0x25f PF: > { %s13_s14 = sadd.s32 1, %s5781_s14   ;;  %s6921_s12 = smov %s5777_s13 }
 0x260   : > { %p10_p5 = scmp.ge.s32.totalorder %s13_s14, 4   ;;  %s6922_s13 = smov %s6924_s15 }
 0x262   :  { %12 = sbr.rel (!%p10_p5) target bundleno = 2 (0x2), region = 76 }

// kernel: _lambda_.19
= control target key start
LH: loop header
LB: loop body
LE: loop exit
PB: predicated region body
PF: predicated region fallthrough
CT: control target
= control target key end

     0   :  { %s921_s18 = smov 0   ;;  %s923_s19 = smov 0   ;;  %s1116_s0 = inlined_call_operand.vmem [shape: bf16[2,38,128], index: 0, kind: input, shape index: {}]   ;;  %s1117_s1 = inlined_call_operand.vmem [shape: f32[9,1,128], index: 1, kind: input, shape index: {}]   ;;  %s1118_s2 = inlined_call_operand.vmem [shape: f32[1,128], index: 2, kind: input, shape index: {}]   ;;  %s1119_s3 = inlined_call_operand.vmem [shape: f32[24,1], index: 3, kind: input, shape index: {}]   ;;  %s1120_s4 = inlined_call_operand.vmem [shape: bf16[2,24,128], index: 4, kind: output, shape index: {0}]   ;;  %s1121_s5 = inlined_call_operand.vmem [shape: f32[2,1,128], index: 5, kind: output, shape index: {1}]  }
   0x1   :  { %s925_s20 = smov 0  }
   0x2 LB: > { %s28_s21 = sadd.s32 1, %s884_s19  ;;  %p784_p0 = scmp.ge.s32.totalorder %s888_s20, 1  ;;  %s888_s20 = sphi %s925_s20, %s16_s20   ;;  %s884_s19 = sphi %s923_s19, %s1123_s19   ;;  %s880_s18 = sphi %s921_s18, %s1122_s18  }
   0x3   : > { %p30_p1 = scmp.ge.s32.totalorder %s28_s21, 2  ;;  %p227_p2 = scmp.lt.s32.totalorder %s888_s20, 3 }
   0x5   : > { %s1125_s21 = smov (%p30_p1, %s28_s21), 0  ;;  %p228_p3 = pnand %p784_p0, %p227_p2 }
   0x6   : > { %v605_v0 = vld [vmem:[%s1119_s3] sm:$0xff] (!%p228_p3)  ;;  %v607_v1 = vld [vmem:[%s1119_s3 + $0x10] sm:$0xff] (!%p228_p3)  ;;  %p273_p4 = scmp.lt.s32.totalorder (!%p228_p3), %s880_s18, 1  ;;  %v890_v2 = vmov (!%p228_p3), 0   ;;  %v606_v3 = vld [vmem:[%s1119_s3 + $0x8] sm:$0xff] (!%p228_p3)  ;;  %vm335_vm0 = vcmask (!%p228_p3), 1046528  }
   0x7   : > { %231 = sbr.rel (%p228_p3) target bundleno = 159 (0x9f), region = 36  ;;  %852 = vset.pattern.permute.xlu0 (!%p228_p3), %v890_v2  ;;  %853 = vset.pattern.permute.xlu1 (!%p228_p3), %v890_v2  ;;  %v954_v4 = vld [vmem:[%s1117_s1] ss:$0 sm:$0xff] (!%p228_p3)  ;;  %v959_v5 = vld [vmem:[%s1117_s1 + $0x1] ss:$0 sm:$0xff] (!%p228_p3)  ;;  %vm367_vm1 = vcmask (!%p228_p3), 1045504  }
   0x8   : > { %610 = vperm.xlu0 (!%p228_p3), %852, %v605_v0   ;;  %620 = vperm.xlu1 (!%p228_p3), %853, %v607_v1   ;;  %v969_v6 = vld [vmem:[%s1117_s1 + $0x2] ss:$0 sm:$0xff] (!%p228_p3)  ;;  %v974_v7 = vld [vmem:[%s1117_s1 + $0x3] ss:$0 sm:$0xff] (!%p228_p3)  ;;  %vm401_vm2 = vcmask (!%p228_p3), 1041408   ;;  %vm433_vm3 = vcmask (!%p228_p3), 1040384  }
   0x9   : > { %v983_v15 = vld [vmem:[%s1117_s1 + $0x4] ss:$0 sm:$0xff] (!%p228_p3)  ;;  %vm481_vm4 = vcmask (!%p228_p3), 1043456   ;;  %vm513_vm5 = vcmask (!%p228_p3), 1042432   ;;  %v1000_v29 = vld [vmem:[%s1117_s1 + $0x6] ss:$0 sm:$0xff] (!%p228_p3) }
   0xa   : > { %v1006_v37 = vld [vmem:[%s1117_s1 + $0x7] ss:$0 sm:$0xff] (!%p228_p3)  ;;  %v1013_v43 = vld [vmem:[%s1117_s1 + $0x8] ss:$0 sm:$0xff] (!%p228_p3)  ;;  %v1024_v49 = vld [vmem:[%s1117_s1 + $0x5] ss:$0 sm:$0xff] (!%p228_p3) }
   0xc   : > { %615 = vperm.xlu0 (!%p228_p3), %852, %v606_v3  }
   0xe   : > { %s1127_s18 = smov (!%p273_p4, %s880_s18), 1 }
   0xf   : > { %s825_s28 = smul.u32 20, %s1127_s18  ;;  %s300_s12 = scalar_lea.vmem %s1121_s5, %s1127_s18 }
  0x10   : > { %s826_s6 = smul.u32 12, %s1127_s18 }
  0x11   : > { %s964_s10 = scalar_lea.vmem %s1116_s0, %s825_s28 }
  0x12   : > { %v817_v8 = vld [vmem:[%s964_s10] sm:$0xff]   ;;  %v303_v9 = vld [vmem:[%s964_s10 + $0x8] sm:$0xff]   ;;  %s294_s9 = scalar_lea.vmem %s1120_s4, %s826_s6 }
  0x13   : > { %v349_v10 = vld [vmem:[%s964_s10] sm:$0xe]  ;;  %v818_v11 = vunpack.c.l.bf16 %v817_v8  ;;  %v819_v12 = vunpack.c.h.bf16 %v817_v8  ;;  %v461_v16 = vld [vmem:[%s964_s10 + $0x4] sm:$0xc]  ;;  %v986_v17 = vunpack.c.l.bf16 %v303_v9  ;;  %v1018_v47 = vunpack.c.h.bf16 %v303_v9 }
  0x14   : > { %v350_v13 = vunpack.c.l.bf16 %v349_v10  ;;  %v381_v14 = vld [vmem:[%s964_s10] sm:$0x8]  ;;  %v463_v19 = vunpack.c.l.bf16 %v461_v16  ;;  %v527_v24 = vld [vmem:[%s964_s10 + $0x4] sm:$0x8] }
  0x15   : > { %v383_v18 = vunpack.c.l.bf16 %v381_v14  ;;  %v314_v20 = vmul.f32 %v818_v11, %v954_v4  ;;  %v327_v21 = vmul.f32 %v818_v11, %v959_v5  ;;  %v328_v22 = vmul.f32 %v819_v12, %v959_v5 }
  0x16   : > { %v359_v23 = vmul.f32 %v969_v6, %v350_v13  ;;  %v360_v25 = vmul.f32 %v819_v12, %v969_v6  ;;  %v394_v27 = vmul.f32 %v819_v12, %v974_v7  ;;  %v426_v33 = vmul.f32 %v819_v12, %v983_v15 }
  0x17   : > { %v393_v26 = vmul.f32 %v974_v7, %v383_v18  ;;  %v425_v28 = vmul.f32 %v983_v15, %v383_v18  ;;  %v336_v30 = vrot.slane %v327_v21, 1  ;;  %v337_v31 = vrot.slane %v328_v22, 1 }
  0x18   : > { %v368_v32 = vrot.slane %v359_v23, 2  ;;  %v369_v34 = vrot.slane %v360_v25, 2  ;;  %v403_v36 = vrot.slane %v394_v27, 6  ;;  %v528_v38 = vunpack.c.l.bf16 %v527_v24  ;;  %v317_v23 = vld [vmem:[%s964_s10 + $0xc] sm:$0x1] }
  0x19   : > { %v402_v35 = vrot.slane %v393_v26, 6  ;;  %v338_v39 = vsel %vm335_vm0, %v336_v30, %v337_v31  ;;  %v434_v40 = vrot.slane %v425_v28, 7  ;;  %v435_v41 = vrot.slane %v426_v33, 7  ;;  %v382_v28 = vld [vmem:[%s964_s10 + $0xc] sm:$0x7] }
  0x1a   : > { %v473_v42 = vmul.f32 %v1000_v29, %v463_v19  ;;  %v346_v44 = vadd.f32 %v338_v39, %v314_v20  ;;  %v370_v45 = vsel %vm367_vm1, %v368_v32, %v369_v34  ;;  %v474_v46 = vmul.f32 %v1000_v29, %v986_v17 }
  0x1b   : > { %v404_v48 = vsel %vm401_vm2, %v402_v35, %v403_v36  ;;  %v505_v51 = vmul.f32 %v1006_v37, %v463_v19  ;;  %v506_v52 = vmul.f32 %v1006_v37, %v986_v17  ;;  %v537_v55 = vmul.f32 %v1013_v43, %v528_v38 }
  0x1c   : > { %v482_v50 = vrot.slane %v473_v42, 4  ;;  %v378_v53 = vadd.f32 %v370_v45, %v346_v44  ;;  %v483_v54 = vrot.slane %v474_v46, 4  ;;  %v1032_v56 = vmul.f32 %v1013_v43, %v986_v17  ;;  %v462_v44 = vld [vmem:[%s964_s10 + $0x10] sm:$0x3]  ;;  %v804_v45 = vld [vmem:[%s1118_s2] ss:$0 sm:$0xff] }
  0x1d   : > { %v436_v57 = vsel %vm433_vm3, %v434_v40, %v435_v41  ;;  %v514_v58 = vrot.slane %v505_v51, 5  ;;  %v515_v59 = vrot.slane %v506_v52, 5  ;;  %v329_v60 = vmul.f32 %v959_v5, %v986_v17  ;;  %v495_v51 = vld [vmem:[%s964_s10 + $0x10] sm:$0x7] }
  0x1e   : > { %v412_v61 = vadd.f32 %v404_v48, %v378_v53  ;;  %v455_v62 = vmul.f32 %v819_v12, %v1024_v49  ;;  %v484_v63 = vsel %vm481_vm4, %v482_v50, %v483_v54  ;;  %v315_v0 = vmul.f32 %v819_v12, %v954_v4 }
  0x1f   : > { %v545_v1 = vrot.slane %v537_v55, 6  ;;  %v339_v2 = vrot.slane %v329_v60, 1  ;;  %v361_v3 = vmul.f32 %v969_v6, %v986_v17  ;;  %v395_v8 = vmul.f32 %v974_v7, %v986_v17 }
  0x20   : > { %v444_v9 = vadd.f32 %v436_v57, %v412_v61  ;;  %v516_v10 = vsel %vm513_vm5, %v514_v58, %v515_v59  ;;  %v546_v11 = vrot.slane %v1032_v56, 6  ;;  %v427_v13 = vmul.f32 %v983_v15, %v986_v17 }
  0x21   : > { %v340_v12 = vsel %vm335_vm0, %v337_v31, %v339_v2  ;;  %v371_v14 = vrot.slane %v361_v3, 2  ;;  %v405_v16 = vrot.slane %v395_v8, 6  ;;  %v1051_v18 = vmul.f32 %v1000_v29, %v1018_v47 }
  0x22   : > { %v458_v19 = vadd.f32 %v455_v62, %v444_v9  ;;  %v347_v20 = vadd.f32 %v340_v12, %v315_v0  ;;  %v437_v21 = vrot.slane %v427_v13, 7  ;;  %v1055_v22 = vmul.f32 %v1006_v37, %v1018_v47 }
  0x23   : > { %v372_v24 = vsel %vm367_vm1, %v369_v34, %v371_v14  ;;  %v406_v25 = vsel %vm401_vm2, %v403_v36, %v405_v16  ;;  %v485_v26 = vrot.slane %v1051_v18, 4  ;;  %v1063_v27 = vmul.f32 %v1013_v43, %v1018_v47 }
  0x24   : > { %v492_v30 = vadd.f32 %v484_v63, %v458_v19  ;;  %v547_v31 = vsel %vm401_vm2, %v545_v1, %v546_v11  ;;  %v379_v32 = vadd.f32 %v372_v24, %v347_v20  ;;  %v438_v33 = vsel %vm433_vm3, %v435_v41, %v437_v21 }
  0x25   : > { %v456_v34 = vmul.f32 %v1024_v49, %v986_v17  ;;  %v517_v35 = vrot.slane %v1055_v22, 5  ;;  %v318_v36 = vunpack.c.l.bf16 %v317_v23  ;;  %v486_v40 = vsel %vm481_vm4, %v483_v54, %v485_v26 }
  0x26   : > { %v524_v38 = vadd.f32 %v516_v10, %v492_v30  ;;  %v413_v39 = vadd.f32 %v406_v25, %v379_v32  ;;  %v384_v42 = vunpack.c.l.bf16 %v382_v28  ;;  %v548_v46 = vrot.slane %v1063_v27, 6 }
  0x27   : > { %v330_v41 = vmul.f32 %v959_v5, %v318_v36  ;;  %v362_v48 = vmul.f32 %v969_v6, %v318_v36  ;;  %v428_v50 = vmul.f32 %v983_v15, %v1018_v47  ;;  %v316_v54 = vmul.f32 %v954_v4, %v986_v17 }
  0x28   : > { %v555_v52 = vadd.f32 %v547_v31, %v524_v38  ;;  %v445_v53 = vadd.f32 %v438_v33, %v413_v39  ;;  %v396_v55 = vmul.f32 %v974_v7, %v384_v42  ;;  %v518_v56 = vsel %vm513_vm5, %v515_v59, %v517_v35 }
  0x29   : > { %v341_v57 = vrot.slane %v330_v41, 1  ;;  %v373_v58 = vrot.slane %v362_v48, 2  ;;  %v464_v60 = vunpack.c.l.bf16 %v462_v44  ;;  %v496_v6 = vunpack.c.l.bf16 %v495_v51 }
  0x2a   : > { %v565_v61 = vadd.f32 %v804_v45, %v555_v52  ;;  %v459_v5 = vadd.f32 %v456_v34, %v445_v53  ;;  %v407_v62 = vrot.slane %v396_v55, 6  ;;  %v439_v0 = vrot.slane %v428_v50, 7 }
  0x2b   : > { %v342_v63 = vsel %vm335_vm0, %v339_v2, %v341_v57  ;;  %v374_v15 = vsel %vm367_vm1, %v371_v14, %v373_v58  ;;  %v476_v1 = vmul.f32 %v1000_v29, %v464_v60  ;;  %v549_v7 = vsel %vm401_vm2, %v546_v11, %v548_v46 }
  0x2c   : > { %v805_v3 = vmul.f32 -1.442695, %v565_v61  ;;  %v493_v4 = vadd.f32 %v486_v40, %v459_v5  ;;  %v348_v17 = vadd.f32 %v342_v63, %v316_v54  ;;  %v408_v59 = vsel %vm401_vm2, %v405_v16, %v407_v62 }
  0x2d   : > { %v508_v8 = vmul.f32 %v1006_v37, %v496_v6  ;;  %v440_v13 = vsel %vm433_vm3, %v437_v21, %v439_v0  ;;  %v487_v12 = vrot.slane %v476_v1, 4  ;;  %v540_v2 = vmul.f32 %v1013_v43, %v496_v6 }
  0x2e   : > { %v525_v9 = vadd.f32 %v518_v56, %v493_v4  ;;  %v380_v10 = vadd.f32 %v374_v15, %v348_v17  ;;  %854 = vpow2.f32 %v805_v3  ;;  %v457_v29 = vmul.f32 %v1024_v49, %v1018_v47 }
  0x2f   : > { %v519_v19 = vrot.slane %v508_v8, 5  ;;  %v488_v16 = vsel %vm481_vm4, %v485_v26, %v487_v12  ;;  %v550_v22 = vrot.slane %v540_v2, 6 }
  0x30   : > { %v556_v14 = vadd.f32 %v549_v7, %v525_v9  ;;  %v414_v18 = vadd.f32 %v408_v59, %v380_v10 }
  0x31   : > { %v520_v24 = vsel %vm513_vm5, %v517_v35, %v519_v19  ;;  %v551_v43 = vsel %vm401_vm2, %v548_v46, %v550_v22 }
  0x32   : > { %v566_v20 = vadd.f32 %v804_v45, %v556_v14  ;;  %v446_v11 = vadd.f32 %v440_v13, %v414_v18 }
  0x34   : > { %v806_v37 = vmul.f32 -1.442695, %v566_v20  ;;  %v460_v23 = vadd.f32 %v457_v29, %v446_v11 }
  0x36   : > { %856 = vpow2.f32 %v806_v37  ;;  %v494_v21 = vadd.f32 %v488_v16, %v460_v23 }
  0x38   : > { %v526_v25 = vadd.f32 %v520_v24, %v494_v21  ;;  %v855_v27 = vpop.eup %854 }
  0x39   : > { %v577_v47 = vadd.f32 1.0, %v855_v27 }
  0x3a   : > { %v557_v28 = vadd.f32 %v551_v43, %v526_v25 }
  0x3c   : > { %v567_v30 = vadd.f32 %v804_v45, %v557_v28 }
  0x3e   : > { %v807_v49 = vmul.f32 -1.442695, %v567_v30 }
  0x40   : > { %v857_v31 = vpop.eup %856  ;;  %858 = vpow2.f32 %v807_v49 }
  0x41   : > { %860 = vrcp.f32 %v577_v47  ;;  %v578_v26 = vadd.f32 1.0, %v857_v31 }
  0x43   : > { %862 = vrcp.f32 %v578_v26 }
  0x4a   : > { %v859_v32 = vpop.eup %858 }
  0x4b   : > { %v861_v33 = vpop.eup %860  ;;  %v579_v34 = vadd.f32 1.0, %v859_v32 }
  0x4c   : > { %v586_v36 = vmul.f32 %v861_v33, %v565_v61 }
  0x4d   : > { %v863_v35 = vpop.eup %862  ;;  %864 = vrcp.f32 %v579_v34 }
  0x4e   : > { %v587_v38 = vmul.f32 %v863_v35, %v566_v20 }
  0x50   : > { %v823_v39 = vpack.c.bf16 %v587_v38, %v586_v36 }
  0x52   : > { %824 = vst [vmem:[%s294_s9] sm:$0xff] %v823_v39  }
  0x57   : > { %v865_v40 = vpop.eup %864 }
  0x58   : > { %v588_v42 = vmul.f32 %v865_v40, %v567_v30 }
  0x5a   : > { %v815_v44 = vpack.c.bf16 %v588_v42, %v588_v42 }
  0x5c   : > { %604 = vst [vmem:[%s294_s9 + $0x8] sm:$0xf] %v815_v44 }
  0x87   : > { %v611_v45 = vpop.permute.xlu0 %610  ;;  %v621_v46 = vpop.permute.xlu1 %620 }
  0x88   : > { %v623_v48 = vmul.f32 %v611_v45, %v586_v36  ;;  %v625_v51 = vmul.f32 %v621_v46, %v588_v42 }
  0x8b   : > { %v616_v41 = vpop.permute.xlu0 %615 }
  0x8c   : > { %v624_v50 = vmul.f32 %v616_v41, %v587_v38 }
  0x8e   : > { %v626_v52 = vadd.f32 %v624_v50, %v623_v48 }
  0x90   : > { %v627_v53 = vadd.f32 %v626_v52, %v625_v51 }
  0x92   : > { %v628_v54 = vrot.slane %v627_v53, 4 }
  0x94   : > { %v629_v55 = vadd.f32 %v628_v54, %v627_v53 }
  0x96   : > { %v630_v56 = vrot.slane %v629_v55, 2 }
  0x98   : > { %v631_v57 = vadd.f32 %v630_v56, %v629_v55 }
  0x9a   : > { %v632_v58 = vrot.slane %v631_v57, 1 }
  0x9c   : > { %v633_v60 = vadd.f32 %v632_v58, %v631_v57 }
  0x9e   : > { %634 = vst [vmem:[%s300_s12] sm:$0x1] %v633_v60 }
  0x9f PF: > { %s16_s20 = sadd.s32 1, %s888_s20   ;;  %s1122_s18 = smov %s884_s19 }
  0xa0   : > { %p13_p5 = scmp.ge.s32.totalorder %s16_s20, 4   ;;  %s1123_s19 = smov %s1125_s21 }
  0xa2   :  { %15 = sbr.rel (!%p13_p5) target bundleno = 2 (0x2), region = 92 }

// kernel: _lambda_.21
= control target key start
LH: loop header
LB: loop body
LE: loop exit
PB: predicated region body
PF: predicated region fallthrough
CT: control target
= control target key end

     0   :  { %s738_s15 = smov 0   ;;  %s740_s16 = smov 0   ;;  %s805_s0 = inlined_call_operand.vmem [shape: bf16[2,8,128], index: 0, kind: input, shape index: {}]   ;;  %s806_s1 = inlined_call_operand.vmem [shape: f32[2,1,128], index: 1, kind: input, shape index: {}]   ;;  %s807_s2 = inlined_call_operand.vmem [shape: bf16[128,128], index: 2, kind: input, shape index: {}]   ;;  %s808_s3 = inlined_call_operand.vmem [shape: f32[1,128], index: 3, kind: input, shape index: {}]   ;;  %s809_s4 = inlined_call_operand.vmem [shape: bf16[2,8,128], index: 4, kind: output, shape index: {}]  }
   0x1   :  { %s742_s17 = smov 0  }
   0x2 LB: > { %s40_s18 = sadd.s32 1, %s705_s16  ;;  %p609_p0 = scmp.ge.s32.totalorder %s709_s17, 1  ;;  %s709_s17 = sphi %s742_s17, %s14_s17   ;;  %s705_s16 = sphi %s740_s16, %s811_s16   ;;  %s701_s15 = sphi %s738_s15, %s810_s15  }
   0x3   : > { %p42_p1 = scmp.ge.s32.totalorder %s40_s18, 2  ;;  %p238_p2 = scmp.lt.s32.totalorder %s709_s17, 3 }
   0x5   : > { %s813_s18 = smov (%p42_p1, %s40_s18), 0  ;;  %p239_p3 = pnand %p609_p0, %p238_p2 }
   0x6   : > { %v679_v0 = vld [vmem:[%s807_s2] sm:$0xff] (!%p239_p3)   ;;  %v711_v1 = vmov (!%p239_p3), 0.0   ;;  %v680_v2 = vld [vmem:[%s807_s2 + $0x8] sm:$0xff] (!%p239_p3)   ;;  %vm712_vm0 = vmmov (!%p239_p3), 0   ;;  %p291_p4 = scmp.lt.s32.totalorder (!%p239_p3), %s701_s15, 1  ;;  %v681_v3 = vld [vmem:[%s807_s2 + $0x10] sm:$0xff] (!%p239_p3)  }
   0x7   : > { %242 = sbr.rel (%p239_p3) target bundleno = 256 (0x100), region = 36  ;;  %633 = vmatprep.subr.bf16.mxu0 (!%p239_p3), %v711_v1  ;;  %649 = vmatprep.mubr.msk.bf16.mxu0 (!%p239_p3), %vm712_vm0, %v711_v1  ;;  %v682_v4 = vld [vmem:[%s807_s2 + $0x18] sm:$0xff] (!%p239_p3)   ;;  %v683_v5 = vld [vmem:[%s807_s2 + $0x20] sm:$0xff] (!%p239_p3)   ;;  %v684_v6 = vld [vmem:[%s807_s2 + $0x28] sm:$0xff] (!%p239_p3)  }
   0x8   : > { %634 = vmatpush3.bf16.msra.mxu0 (!%p239_p3), %v679_v0  ;;  %v685_v9 = vld [vmem:[%s807_s2 + $0x30] sm:$0xff] (!%p239_p3)   ;;  %v686_v12 = vld [vmem:[%s807_s2 + $0x38] sm:$0xff] (!%p239_p3)   ;;  %v621_v14 = vld [vmem:[%s808_s3] ss:$0 sm:$0xff] (!%p239_p3) }
   0x9   : > { %635 = vmatprep.subr.bf16.mxu0 (!%p239_p3), %v711_v1 }
   0xc   : > { %636 = vmatpush3.bf16.msra.mxu0 (!%p239_p3), %v680_v2 }
   0xd   : > { %637 = vmatprep.subr.bf16.mxu0 (!%p239_p3), %v711_v1 }
   0xe   : > { %s815_s15 = smov (!%p291_p4, %s701_s15), 1 }
   0xf   : > { %s610_s27 = sshll.u32 %s815_s15, 2  ;;  %s306_s11 = scalar_lea.vmem %s806_s1, %s815_s15 }
  0x10   : > { %638 = vmatpush3.bf16.msra.mxu0 %v681_v3  ;;  %s300_s6 = scalar_lea.vmem %s805_s0, %s610_s27  ;;  %v612_v10 = vld [vmem:[%s306_s11] ss:$0 sm:$0xff]  ;;  %s328_s23 = scalar_lea.vmem %s809_s4, %s610_s27 }
  0x11   : > { %639 = vmatprep.subr.bf16.mxu0 %v711_v1  ;;  %v335_v7 = vld [vmem:[%s300_s6] sm:$0xf] }
  0x12   : > { %v336_v8 = vunpack.c.l.bf16 %v335_v7 }
  0x14   : > { %640 = vmatpush3.bf16.msra.mxu0 %v682_v4  ;;  %v344_v11 = vmul.f32 %v612_v10, %v336_v8 }
  0x15   : > { %641 = vmatprep.subr.bf16.mxu0 %v711_v1 }
  0x16   : > { %v345_v13 = vpack.c.bf16 %v344_v11, %v344_v11 }
  0x18   : > { %642 = vmatpush3.bf16.msra.mxu0 %v683_v5 }
  0x19   : > { %643 = vmatprep.subr.bf16.mxu0 %v711_v1 }
  0x1c   : > { %644 = vmatpush3.bf16.msra.mxu0 %v684_v6 }
  0x1d   : > { %645 = vmatprep.subr.bf16.mxu0 %v711_v1 }
  0x20   : > { %646 = vmatpush3.bf16.msra.mxu0 %v685_v9 }
  0x21   : > { %647 = vmatprep.subr.bf16.mxu0 %v711_v1 }
  0x24   : > { %648 = vmatpush3.bf16.msra.mxu0 %v686_v12 }
  0x27   : > { %650 = vmatmul.mubr.bf16.vlgmr.msra.gmra.mrb[0].mxu0 %v345_v13 }
  0xfa   : > { %v445_v15 = vpop.f32.mrb[0].mxu0 }
  0xfb   : > { %v464_v16 = vadd.f32 %v621_v14, %v445_v15  ;;  %v651_v17 = vpop.f32.mrb[1].mxu0 }
  0xfc   : > { %v448_v18 = vpop.f32.mrb[2].mxu0 }
  0xfd   : > { %v465_v19 = vpack.c.bf16 %v464_v16, %v464_v16  ;;  %v652_v20 = vpop.f32.mrb[3].mxu0 }
  0xff   : > { %466 = vst [vmem:[%s328_s23] sm:$0xf] %v465_v19 }
 0x100 PF: > { %s14_s17 = sadd.s32 1, %s709_s17   ;;  %s810_s15 = smov %s705_s16 }
 0x101   : > { %p11_p5 = scmp.ge.s32.totalorder %s14_s17, 4   ;;  %s811_s16 = smov %s813_s18 }
 0x103   :  { %13 = sbr.rel (!%p11_p5) target bundleno = 2 (0x2), region = 83 }

// kernel: _lambda_.20
= control target key start
LH: loop header
LB: loop body
LE: loop exit
PB: predicated region body
PF: predicated region fallthrough
CT: control target
= control target key end

     0   :  { %v318_v0 = vmov 0.0|0.0   ;;  %vm319_vm0 = vmmov 0   ;;  %v320_v4 = vmov 0.0   ;;  %vm133_vm1 = vcmask 1043456   ;;  %s414_s1 = inlined_call_operand.vmem [shape: f32[128,4], index: 1, kind: input, shape index: {}]   ;;  %s415_s0 = inlined_call_operand.vmem [shape: f32[2,128], index: 0, kind: input, shape index: {}]   ;;  %s416_s3 = inlined_call_operand.vmem [shape: f32[4,128], index: 3, kind: input, shape index: {}]   ;;  %s417_s2 = inlined_call_operand.vmem [shape: f32[1,4], index: 2, kind: input, shape index: {}]   ;;  %s418_s4 = inlined_call_operand.vmem [shape: f32[1,128], index: 4, kind: input, shape index: {}]   ;;  %s419_s5 = inlined_call_operand.vmem [shape: f32[2,128], index: 5, kind: output, shape index: {}]  }
   0x1   :  { %283 = vmatprep.subr.bf16.mxu0 %v318_v0  ;;  %v21_v1 = vld [vmem:[%s414_s1] sm:$0xff]  ;;  %v22_v2 = vld [vmem:[%s414_s1 + $0x8] sm:$0xff]  ;;  %v23_v3 = vld [vmem:[%s414_s1 + $0x10] sm:$0xff]  ;;  %275 = vmatprep.mubr.msk.f32.mxu0 %vm319_vm0, %v320_v4  ;;  %vm129_vm2 = vcmask 31744  }
   0x2   :  { %v284_v5 = vpack.c.bf16 %v22_v2, %v21_v1  ;;  %v24_v6 = vld [vmem:[%s414_s1 + $0x18] sm:$0xff]  ;;  %278 = vmatprep.subr.mxu1 %v320_v4  ;;  %280 = vmatprep.mubr.msk.f32.mxu1 %vm319_vm0, %v320_v4  ;;  %v25_v8 = vld [vmem:[%s414_s1 + $0x20] sm:$0xff]  ;;  %v26_v9 = vld [vmem:[%s414_s1 + $0x28] sm:$0xff] }
   0x3   :  { %v287_v7 = vpack.c.bf16 %v24_v6, %v23_v3  ;;  %v290_v10 = vpack.c.bf16 %v26_v9, %v25_v8  ;;  %v27_v11 = vld [vmem:[%s414_s1 + $0x30] sm:$0xff]  ;;  %v28_v12 = vld [vmem:[%s414_s1 + $0x38] sm:$0xff]  ;;  %v29_v14 = vld [vmem:[%s414_s1 + $0x40] sm:$0xff] }
   0x4   :  { %285 = vmatpush3.bf16.msra.mxu0 %v284_v5  ;;  %v293_v13 = vpack.c.bf16 %v28_v12, %v27_v11  ;;  %v30_v15 = vld [vmem:[%s414_s1 + $0x48] sm:$0xff]  ;;  %v31_v17 = vld [vmem:[%s414_s1 + $0x50] sm:$0xff]  ;;  %v32_v18 = vld [vmem:[%s414_s1 + $0x58] sm:$0xff] }
   0x5   :  { %286 = vmatprep.subr.bf16.mxu0 %v318_v0  ;;  %v296_v16 = vpack.c.bf16 %v30_v15, %v29_v14  ;;  %v299_v19 = vpack.c.bf16 %v32_v18, %v31_v17  ;;  %v33_v20 = vld [vmem:[%s414_s1 + $0x60] sm:$0xff]  ;;  %v34_v21 = vld [vmem:[%s414_s1 + $0x68] sm:$0xff]  ;;  %v35_v23 = vld [vmem:[%s414_s1 + $0x70] sm:$0xff] }
   0x6   :  { %v302_v22 = vpack.c.bf16 %v34_v21, %v33_v20  ;;  %v36_v24 = vld [vmem:[%s414_s1 + $0x78] sm:$0xff]  ;;  %v20_v26 = vld [vmem:[%s415_s0] sm:$0x3] }
   0x7   :  { %v305_v25 = vpack.c.bf16 %v36_v24, %v35_v23  ;;  %v121_v27 = vld [vmem:[%s416_s3] sm:$0xf] }
   0x8   :  { %288 = vmatpush3.bf16.msra.mxu0 %v287_v7  ;;  %279 = vmatpush3.msk.msra.mxu1 %vm133_vm1, %v121_v27  ;;  %v218_v28 = vld [vmem:[%s417_s2] ss:$0 sm:$0xff] }
   0x9   :  { %289 = vmatprep.subr.bf16.mxu0 %v318_v0  ;;  %v220_v37 = vld [vmem:[%s418_s4] ss:$0 sm:$0xff] }
   0xc   :  { %291 = vmatpush3.bf16.msra.mxu0 %v290_v10 }
   0xd   :  { %292 = vmatprep.subr.bf16.mxu0 %v318_v0 }
  0x10   :  { %294 = vmatpush3.bf16.msra.mxu0 %v293_v13 }
  0x11   :  { %295 = vmatprep.subr.bf16.mxu0 %v318_v0 }
  0x14   :  { %297 = vmatpush3.bf16.msra.mxu0 %v296_v16 }
  0x15   :  { %298 = vmatprep.subr.bf16.mxu0 %v318_v0 }
  0x18   :  { %300 = vmatpush3.bf16.msra.mxu0 %v299_v19 }
  0x19   :  { %301 = vmatprep.subr.bf16.mxu0 %v318_v0 }
  0x1c   :  { %303 = vmatpush3.bf16.msra.mxu0 %v302_v22 }
  0x1d   :  { %304 = vmatprep.subr.bf16.mxu0 %v318_v0 }
  0x20   :  { %306 = vmatpush3.bf16.msra.mxu0 %v305_v25 }
  0x23   :  { %276 = vmatmul.mubr.f32.vlgmr.msra.gmra.mrb[0].mxu0 %v20_v26 }
  0xf6   :  { %v110_v29 = vpop.f32.mrb[0].mxu0 }
  0xf7   :  { %v111_v30 = vadd.f32 %v218_v28, %v110_v29  ;;  %v277_v31 = vpop.f32.mrb[1].mxu0 }
  0xf9   :  { %v219_v32 = vmul.f32 -1.442695, %v111_v30 }
  0xfb   :  { %310 = vpow2.f32 %v219_v32 }
 0x105   :  { %v311_v33 = vpop.eup %310 }
 0x106   :  { %v117_v34 = vadd.f32 1.0, %v311_v33 }
 0x108   :  { %312 = vrcp.f32 %v117_v34 }
 0x112   :  { %v313_v35 = vpop.eup %312 }
 0x113   :  { %v120_v36 = vmul.f32 %v313_v35, %v111_v30 }
 0x115   :  { %281 = vmatmul.mubr.msk.f32.vlgmr.msra.gmra.mrb[0].mxu1 %vm129_vm2, %v120_v36 }
 0x1e8   :  { %v203_v38 = vpop.f32.mrb[0].mxu1 }
 0x1e9   :  { %v204_v39 = vadd.f32 %v220_v37, %v203_v38  ;;  %v282_v40 = vpop.f32.mrb[1].mxu1 }
 0x1eb   :  { %v223_v41 = vmul.f32 -1.442695, %v204_v39 }
 0x1ed   :  { %314 = vpow2.f32 %v223_v41 }
 0x1f7   :  { %v315_v42 = vpop.eup %314 }
 0x1f8   :  { %v210_v43 = vadd.f32 1.0, %v315_v42 }
 0x1fa   :  { %316 = vrcp.f32 %v210_v43 }
 0x204   :  { %v317_v44 = vpop.eup %316 }
 0x205   :  { %213 = vst [vmem:[%s419_s5] sm:$0x3] %v317_v44 }

// kernel: _lambda_.22
= control target key start
LH: loop header
LB: loop body
LE: loop exit
PB: predicated region body
PF: predicated region fallthrough
CT: control target
= control target key end

     0   :  { %v264_v1 = vmov 0   ;;  %v172_v18 = vlaneseq  ;;  %s342_s1 = inlined_call_operand.vmem [shape: bf16[128,256], index: 1, kind: input, shape index: {}]   ;;  %s343_s0 = inlined_call_operand.vmem [shape: bf16[8,128], index: 0, kind: input, shape index: {}]   ;;  %s344_s2 = inlined_call_operand.vmem [shape: f32[1,256], index: 2, kind: input, shape index: {}]   ;;  %s345_s3 = inlined_call_operand.vmem [shape: bf16[8,256], index: 3, kind: output, shape index: {}]  }
   0x1   :  { %v232_v0 = vld [vmem:[%s342_s1 + $0x4] ss:$8 sps:$4 sm:$0xff]   ;;  %152 = vmatprep.mubr.bf16.mxu0 %v264_v1  ;;  %v234_v2 = vld [vmem:[%s342_s1] ss:$8 sps:$4 sm:$0xff]   ;;  %v235_v3 = vld [vmem:[%s342_s1 + $0x14] ss:$8 sps:$4 sm:$0xff]  }
   0x2   :  { %120 = vmatprep.subr.bf16.mxu0 %v232_v0  ;;  %v237_v4 = vld [vmem:[%s342_s1 + $0x10] ss:$8 sps:$4 sm:$0xff]   ;;  %v238_v5 = vld [vmem:[%s342_s1 + $0x24] ss:$8 sps:$4 sm:$0xff]   ;;  %v240_v6 = vld [vmem:[%s342_s1 + $0x20] ss:$8 sps:$4 sm:$0xff]  }
   0x3   :  { %121 = vmatpush1.bf16.msra.mxu0 %v234_v2  ;;  %v241_v7 = vld [vmem:[%s342_s1 + $0x34] ss:$8 sps:$4 sm:$0xff]   ;;  %v243_v8 = vld [vmem:[%s342_s1 + $0x30] ss:$8 sps:$4 sm:$0xff]   ;;  %v244_v9 = vld [vmem:[%s342_s1 + $0x44] ss:$8 sps:$4 sm:$0xff]  }
   0x4   :  { %122 = vmatprep.subr.bf16.mxu0 %v235_v3  ;;  %v246_v10 = vld [vmem:[%s342_s1 + $0x40] ss:$8 sps:$4 sm:$0xff]   ;;  %v247_v11 = vld [vmem:[%s342_s1 + $0x54] ss:$8 sps:$4 sm:$0xff]   ;;  %v249_v12 = vld [vmem:[%s342_s1 + $0x50] ss:$8 sps:$4 sm:$0xff]  }
   0x5   :  { %v250_v13 = vld [vmem:[%s342_s1 + $0x64] ss:$8 sps:$4 sm:$0xff]   ;;  %v252_v14 = vld [vmem:[%s342_s1 + $0x60] ss:$8 sps:$4 sm:$0xff]   ;;  %v253_v15 = vld [vmem:[%s342_s1 + $0x74] ss:$8 sps:$4 sm:$0xff]  }
   0x6   :  { %v255_v16 = vld [vmem:[%s342_s1 + $0x70] ss:$8 sps:$4 sm:$0xff]   ;;  %v23_v17 = vld [vmem:[%s343_s0] sm:$0xf]  ;;  %v173_v19 = vshrl.u32 %v172_v18, 7 }
   0x7   :  { %123 = vmatpush1.bf16.msra.mxu0 %v237_v4  ;;  %v170_v21 = vld [vmem:[%s344_s2] sm:$0x3] }
   0x8   :  { %124 = vmatprep.subr.bf16.mxu0 %v238_v5  ;;  %v174_v20 = vsub.s32 0, %v173_v19  ;;  %v178_v22 = vsub.s32 1, %v173_v19 }
   0xa   :  { %v175_v23 = vrot.slane %v170_v21, %v174_v20  ;;  %v179_v24 = vrot.slane %v170_v21, %v178_v22 }
   0xb   :  { %125 = vmatpush1.bf16.msra.mxu0 %v240_v6 }
   0xc   :  { %126 = vmatprep.subr.bf16.mxu0 %v241_v7 }
   0xf   :  { %127 = vmatpush1.bf16.msra.mxu0 %v243_v8 }
  0x10   :  { %128 = vmatprep.subr.bf16.mxu0 %v244_v9 }
  0x13   :  { %129 = vmatpush1.bf16.msra.mxu0 %v246_v10 }
  0x14   :  { %130 = vmatprep.subr.bf16.mxu0 %v247_v11 }
  0x17   :  { %131 = vmatpush1.bf16.msra.mxu0 %v249_v12 }
  0x18   :  { %132 = vmatprep.subr.bf16.mxu0 %v250_v13 }
  0x1b   :  { %133 = vmatpush1.bf16.msra.mxu0 %v252_v14 }
  0x1c   :  { %134 = vmatprep.subr.bf16.mxu0 %v253_v15 }
  0x1f   :  { %135 = vmatpush1.bf16.msra.mxu0 %v255_v16 }
  0x22   :  { %153 = vmatmul.mubr.bf16.vlgmr.msra.gmra.mrb[0].mxu0 %v23_v17 }
  0xf5   :  { %v154_v25 = vpop.f32.mrb[0].mxu0 }
  0xf6   :  { %v182_v26 = vadd.f32 %v175_v23, %v154_v25  ;;  %v156_v27 = vpop.f32.mrb[1].mxu0 }
  0xf7   :  { %v183_v28 = vadd.f32 %v179_v24, %v156_v27  ;;  %v158_v29 = vpop.f32.mrb[2].mxu0 }
  0xf8   :  { %v227_v30 = vmul.f32 -1.442695, %v182_v26  ;;  %v159_v31 = vpop.f32.mrb[3].mxu0 }
  0xf9   :  { %v228_v32 = vmul.f32 -1.442695, %v183_v28 }
  0xfa   :  { %256 = vpow2.f32 %v227_v30 }
  0xfb   :  { %258 = vpow2.f32 %v228_v32 }
 0x104   :  { %v257_v33 = vpop.eup %256 }
 0x105   :  { %v259_v34 = vpop.eup %258  ;;  %v190_v35 = vadd.f32 1.0, %v257_v33 }
 0x106   :  { %v191_v36 = vadd.f32 1.0, %v259_v34 }
 0x107   :  { %260 = vrcp.f32 %v190_v35 }
 0x108   :  { %262 = vrcp.f32 %v191_v36 }
 0x111   :  { %v261_v37 = vpop.eup %260 }
 0x112   :  { %v263_v38 = vpop.eup %262  ;;  %v196_v39 = vmul.f32 %v261_v37, %v182_v26 }
 0x113   :  { %v197_v40 = vmul.f32 %v263_v38, %v183_v28 }
 0x115   :  { %v230_v41 = vpack.c.bf16 %v197_v40, %v196_v39 }
 0x117   :  { %206 = vst [vmem:[%s345_s3] sm:$0xff] %v230_v41 }

// kernel: _lambda_.25
= control target key start
LH: loop header
LB: loop body
LE: loop exit
PB: predicated region body
PF: predicated region fallthrough
CT: control target
= control target key end

     0   :  { %s938_s18 = smov 0   ;;  %s940_s19 = smov 0   ;;  %s1033_s0 = inlined_call_operand.vmem [shape: bf16[2,8,256], index: 0, kind: input, shape index: {}]   ;;  %s1034_s1 = inlined_call_operand.vmem [shape: f32[2,1,256], index: 1, kind: input, shape index: {}]   ;;  %s1035_s2 = inlined_call_operand.vmem [shape: bf16[256,128], index: 2, kind: input, shape index: {}]   ;;  %s1036_s3 = inlined_call_operand.vmem [shape: f32[1,128], index: 3, kind: input, shape index: {}]   ;;  %s1037_s4 = inlined_call_operand.vmem [shape: bf16[2,8,128], index: 4, kind: input, shape index: {}]   ;;  %s1038_s5 = inlined_call_operand.vmem [shape: bf16[2,8,128], index: 5, kind: output, shape index: {}]  }
   0x1   :  { %s942_s20 = smov 0  }
   0x2 LB: > { %s41_s21 = sadd.s32 1, %s902_s19  ;;  %p796_p0 = scmp.ge.s32.totalorder %s906_s20, 1  ;;  %s906_s20 = sphi %s942_s20, %s15_s20   ;;  %s902_s19 = sphi %s940_s19, %s1040_s19   ;;  %s898_s18 = sphi %s938_s18, %s1039_s18  }
   0x3   : > { %p43_p1 = scmp.ge.s32.totalorder %s41_s21, 2  ;;  %p289_p2 = scmp.lt.s32.totalorder %s906_s20, 3 }
   0x5   : > { %s1042_s21 = smov (%p43_p1, %s41_s21), 0  ;;  %p290_p3 = pnand %p796_p0, %p289_p2 }
   0x6   : > { %v868_v0 = vld [vmem:[%s1035_s2 + $0x40] sm:$0xff] (!%p290_p3)   ;;  %v870_v2 = vld [vmem:[%s1035_s2 + $0x48] sm:$0xff] (!%p290_p3)   ;;  %p360_p4 = scmp.lt.s32.totalorder (!%p290_p3), %s898_s18, 1  ;;  %v872_v4 = vld [vmem:[%s1035_s2 + $0x50] sm:$0xff] (!%p290_p3)   ;;  %v425_v5 = vlaneseq (!%p290_p3) }
   0x7   : > { %293 = sbr.rel (%p290_p3) target bundleno = 261 (0x105), region = 40  ;;  %v869_v1 = vld [vmem:[%s1035_s2] sm:$0xff] (!%p290_p3)   ;;  %822 = vmatprep.subr.bf16.mxu0 (!%p290_p3), %v868_v0  ;;  %v871_v3 = vld [vmem:[%s1035_s2 + $0x8] sm:$0xff] (!%p290_p3)   ;;  %v873_v6 = vld [vmem:[%s1035_s2 + $0x10] sm:$0xff] (!%p290_p3)  }
   0x8   : > { %823 = vmatpush3.bf16.msra.mxu0 (!%p290_p3), %v869_v1  ;;  %v874_v7 = vld [vmem:[%s1035_s2 + $0x58] sm:$0xff] (!%p290_p3)   ;;  %v426_v8 = vshrl.u32 (!%p290_p3), %v425_v5, 7  ;;  %v876_v10 = vld [vmem:[%s1035_s2 + $0x60] sm:$0xff] (!%p290_p3)   ;;  %v878_v13 = vld [vmem:[%s1035_s2 + $0x68] sm:$0xff] (!%p290_p3)  }
   0x9   : > { %824 = vmatprep.subr.bf16.mxu0 (!%p290_p3), %v870_v2  ;;  %v875_v9 = vld [vmem:[%s1035_s2 + $0x18] sm:$0xff] (!%p290_p3)   ;;  %v877_v12 = vld [vmem:[%s1035_s2 + $0x20] sm:$0xff] (!%p290_p3)   ;;  %v879_v19 = vld [vmem:[%s1035_s2 + $0x28] sm:$0xff] (!%p290_p3)  }
   0xa   : > { %v431_v11 = vsub.s32 (!%p290_p3), 1, %v426_v8  ;;  %v427_v18 = vsub.s32 (!%p290_p3), 0, %v426_v8  ;;  %v880_v21 = vld [vmem:[%s1035_s2 + $0x70] sm:$0xff] (!%p290_p3)   ;;  %v882_v26 = vld [vmem:[%s1035_s2 + $0x78] sm:$0xff] (!%p290_p3)   ;;  %v818_v33 = vld [vmem:[%s1036_s3] ss:$0 sm:$0xff] (!%p290_p3) }
   0xb   : > { %v881_v25 = vld [vmem:[%s1035_s2 + $0x30] sm:$0xff] (!%p290_p3)   ;;  %v883_v28 = vld [vmem:[%s1035_s2 + $0x38] sm:$0xff] (!%p290_p3)  }
   0xc   : > { %825 = vmatpush3.bf16.msra.mxu0 (!%p290_p3), %v871_v3 }
   0xd   : > { %826 = vmatprep.subr.bf16.mxu0 (!%p290_p3), %v872_v4 }
   0xe   : > { %s1044_s18 = smov (!%p360_p4, %s898_s18), 1 }
   0xf   : > { %s821_s11 = sshll.u32 %s1044_s18, 3  ;;  %s799_s12 = sshll.u32 %s1044_s18, 1 }
  0x10   : > { %827 = vmatpush3.bf16.msra.mxu0 %v873_v6  ;;  %s371_s23 = scalar_lea.vmem %s1033_s0, %s821_s11  ;;  %s380_s26 = scalar_lea.vmem %s1034_s1, %s799_s12 }
  0x11   : > { %828 = vmatprep.subr.bf16.mxu0 %v874_v7  ;;  %v420_v14 = vld [vmem:[%s371_s23] sm:$0xff]  ;;  %s800_s16 = sshll.u32 %s1044_s18, 2 }
  0x12   : > { %v423_v15 = vld [vmem:[%s380_s26] sm:$0x3]  ;;  %v422_v16 = vunpack.c.h.bf16 %v420_v14  ;;  %v421_v23 = vunpack.c.l.bf16 %v420_v14  ;;  %s403_s23 = scalar_lea.vmem %s1037_s4, %s800_s16  ;;  %s413_s18 = scalar_lea.vmem %s1038_s5, %s800_s16 }
  0x13   : > { %v432_v17 = vrot.slane %v423_v15, %v431_v11  ;;  %v428_v24 = vrot.slane %v423_v15, %v427_v18  ;;  %v622_v30 = vld [vmem:[%s403_s23] sm:$0xf] }
  0x14   : > { %829 = vmatpush3.bf16.msra.mxu0 %v875_v9  ;;  %v623_v35 = vunpack.c.l.bf16 %v622_v30 }
  0x15   : > { %830 = vmatprep.subr.bf16.mxu0 %v876_v10  ;;  %v436_v20 = vmul.f32 %v432_v17, %v422_v16  ;;  %v435_v27 = vmul.f32 %v428_v24, %v421_v23 }
  0x17   : > { %v438_v22 = vpack.c.bf16 %v436_v20, %v436_v20  ;;  %v437_v29 = vpack.c.bf16 %v435_v27, %v435_v27 }
  0x18   : > { %831 = vmatpush3.bf16.msra.mxu0 %v877_v12 }
  0x19   : > { %832 = vmatprep.subr.bf16.mxu0 %v878_v13  ;;  %600 = vmatprep.mubr.bf16.mxu0 %v438_v22 }
  0x1c   : > { %833 = vmatpush3.bf16.msra.mxu0 %v879_v19 }
  0x1d   : > { %834 = vmatprep.subr.bf16.mxu0 %v880_v21 }
  0x20   : > { %835 = vmatpush3.bf16.msra.mxu0 %v881_v25 }
  0x21   : > { %836 = vmatprep.subr.bf16.mxu0 %v882_v26 }
  0x24   : > { %837 = vmatpush3.bf16.msra.mxu0 %v883_v28 }
  0x27   : > { %601 = vmatmul.mubr.bf16.vlgmr.msra.gmra.mrb[0].mxu0 %v437_v29 }
  0xfa   : > { %v838_v31 = vpop.f32.mrb[0].mxu0 }
  0xfb   : > { %v839_v32 = vpop.f32.mrb[1].mxu0 }
  0xfc   : > { %v840_v34 = vadd.f32 %v839_v32, %v838_v31  ;;  %v841_v36 = vpop.f32.mrb[2].mxu0 }
  0xfd   : > { %v842_v37 = vpop.f32.mrb[3].mxu0 }
  0xfe   : > { %v621_v38 = vadd.f32 %v840_v34, %v818_v33 }
 0x100   : > { %v624_v39 = vadd.f32 %v623_v35, %v621_v38 }
 0x102   : > { %v625_v40 = vpack.c.bf16 %v624_v39, %v624_v39 }
 0x104   : > { %626 = vst [vmem:[%s413_s18] sm:$0xf] %v625_v40 }
 0x105 PF: > { %s15_s20 = sadd.s32 1, %s906_s20   ;;  %s1039_s18 = smov %s902_s19 }
 0x106   : > { %p12_p5 = scmp.ge.s32.totalorder %s15_s20, 4   ;;  %s1040_s19 = smov %s1042_s21 }
 0x108   :  { %14 = sbr.rel (!%p12_p5) target bundleno = 2 (0x2), region = 90 }

// kernel: _lambda_.24
= control target key start
LH: loop header
LB: loop body
LE: loop exit
PB: predicated region body
PF: predicated region fallthrough
CT: control target
= control target key end

     0   :  { %vm166_vm0 = vcmask 1045504   ;;  %v361_v52 = vmov 0.0   ;;  %vm162_vm1 = vcmask 48128   ;;  %v152_v63 = vlaneseq  ;;  %s506_s1 = inlined_call_operand.vmem [shape: f32[256,6], index: 1, kind: input, shape index: {}]   ;;  %s507_s0 = inlined_call_operand.vmem [shape: f32[2,256], index: 0, kind: input, shape index: {}]   ;;  %s508_s3 = inlined_call_operand.vmem [shape: f32[6,256], index: 3, kind: input, shape index: {}]   ;;  %s509_s2 = inlined_call_operand.vmem [shape: f32[1,6], index: 2, kind: input, shape index: {}]   ;;  %s510_s4 = inlined_call_operand.vmem [shape: f32[1,256], index: 4, kind: input, shape index: {}]   ;;  %s511_s5 = inlined_call_operand.vmem [shape: f32[2,256], index: 5, kind: output, shape index: {}]  }
   0x1   :  { %v37_v0 = vld [vmem:[%s506_s1 + $0x80] sm:$0xff]  ;;  %v38_v1 = vld [vmem:[%s506_s1 + $0x88] sm:$0xff]  ;;  %v39_v5 = vld [vmem:[%s506_s1 + $0x90] sm:$0xff]  ;;  %237 = vmatprep.mubr.f32.mxu1 %v361_v52 }
   0x2   :  { %v21_v2 = vld [vmem:[%s506_s1] sm:$0xff]  ;;  %v316_v3 = vpack.c.bf16 %v38_v1, %v37_v0  ;;  %v22_v4 = vld [vmem:[%s506_s1 + $0x8] sm:$0xff]  ;;  %v40_v6 = vld [vmem:[%s506_s1 + $0x98] sm:$0xff]  ;;  %v153_v0 = vshrl.u32 %v152_v63, 7 }
   0x3   :  { %v318_v7 = vpack.c.bf16 %v22_v4, %v21_v2  ;;  %v320_v8 = vpack.c.bf16 %v40_v6, %v39_v5  ;;  %v23_v9 = vld [vmem:[%s506_s1 + $0x10] sm:$0xff]  ;;  %v24_v10 = vld [vmem:[%s506_s1 + $0x18] sm:$0xff]  ;;  %v41_v11 = vld [vmem:[%s506_s1 + $0xa0] sm:$0xff] }
   0x4   :  { %317 = vmatprep.subr.bf16.mxu0 %v316_v3  ;;  %v42_v12 = vld [vmem:[%s506_s1 + $0xa8] sm:$0xff]  ;;  %v322_v13 = vpack.c.bf16 %v24_v10, %v23_v9  ;;  %v25_v15 = vld [vmem:[%s506_s1 + $0x20] sm:$0xff]  ;;  %v43_v17 = vld [vmem:[%s506_s1 + $0xb0] sm:$0xff]  ;;  %v154_v1 = vsub.s32 0, %v153_v0  ;;  %v158_v3 = vsub.s32 1, %v153_v0 }
   0x5   :  { %319 = vmatpush3.bf16.msra.mxu0 %v318_v7  ;;  %v324_v14 = vpack.c.bf16 %v42_v12, %v41_v11  ;;  %v26_v16 = vld [vmem:[%s506_s1 + $0x28] sm:$0xff]  ;;  %v44_v18 = vld [vmem:[%s506_s1 + $0xb8] sm:$0xff]  ;;  %v27_v21 = vld [vmem:[%s506_s1 + $0x30] sm:$0xff] }
   0x6   :  { %321 = vmatprep.subr.bf16.mxu0 %v320_v8  ;;  %v326_v19 = vpack.c.bf16 %v26_v16, %v25_v15  ;;  %v328_v20 = vpack.c.bf16 %v44_v18, %v43_v17  ;;  %v28_v22 = vld [vmem:[%s506_s1 + $0x38] sm:$0xff]  ;;  %v45_v23 = vld [vmem:[%s506_s1 + $0xc0] sm:$0xff]  ;;  %v46_v24 = vld [vmem:[%s506_s1 + $0xc8] sm:$0xff] }
   0x7   :  { %v273_v25 = vld.sshfl [vmem:[%s507_s0] sm:$0x33 pattern:$0x76325410]  ;;  %v330_v27 = vpack.c.bf16 %v28_v22, %v27_v21  ;;  %v332_v28 = vpack.c.bf16 %v46_v24, %v45_v23  ;;  %v30_v30 = vld [vmem:[%s506_s1 + $0x48] sm:$0xff]  ;;  %v47_v31 = vld [vmem:[%s506_s1 + $0xd0] sm:$0xff] }
   0x8   :  { %v68_v26 = vcombine.high %v273_v25, %v273_v25  ;;  %v29_v29 = vld [vmem:[%s506_s1 + $0x40] sm:$0xff]  ;;  %v48_v32 = vld [vmem:[%s506_s1 + $0xd8] sm:$0xff]  ;;  %v31_v35 = vld [vmem:[%s506_s1 + $0x50] sm:$0xff] }
   0x9   :  { %323 = vmatpush3.bf16.msra.mxu0 %v322_v13  ;;  %v334_v33 = vpack.c.bf16 %v30_v30, %v29_v29  ;;  %v336_v34 = vpack.c.bf16 %v48_v32, %v47_v31  ;;  %v32_v36 = vld [vmem:[%s506_s1 + $0x58] sm:$0xff]  ;;  %v49_v37 = vld [vmem:[%s506_s1 + $0xe0] sm:$0xff]  ;;  %v50_v38 = vld [vmem:[%s506_s1 + $0xe8] sm:$0xff] }
   0xa   :  { %325 = vmatprep.subr.bf16.mxu0 %v324_v14  ;;  %135 = vmatprep.mubr.f32.mxu0 %v68_v26  ;;  %v338_v39 = vpack.c.bf16 %v32_v36, %v31_v35  ;;  %v340_v40 = vpack.c.bf16 %v50_v38, %v49_v37  ;;  %v33_v41 = vld [vmem:[%s506_s1 + $0x60] sm:$0xff]  ;;  %v34_v42 = vld [vmem:[%s506_s1 + $0x68] sm:$0xff]  ;;  %v51_v43 = vld [vmem:[%s506_s1 + $0xf0] sm:$0xff] }
   0xb   :  { %v52_v44 = vld [vmem:[%s506_s1 + $0xf8] sm:$0xff]  ;;  %v342_v45 = vpack.c.bf16 %v34_v42, %v33_v41  ;;  %v35_v47 = vld [vmem:[%s506_s1 + $0x70] sm:$0xff]  ;;  %v149_v50 = vld [vmem:[%s508_s3 + $0x8] sm:$0x3f] }
   0xc   :  { %v344_v46 = vpack.c.bf16 %v52_v44, %v51_v43  ;;  %v36_v48 = vld [vmem:[%s506_s1 + $0x78] sm:$0xff]  ;;  %275 = vmatprep.subr.msk.mxu1 %vm166_vm0, %v149_v50  ;;  %v148_v51 = vld [vmem:[%s508_s3] sm:$0x3f] }
   0xd   :  { %327 = vmatpush3.bf16.msra.mxu0 %v326_v19  ;;  %v346_v49 = vpack.c.bf16 %v36_v48, %v35_v47  ;;  %276 = vmatpush1.msk.msra.mxu1 %vm166_vm0, %v148_v51  ;;  %v272_v54 = vld [vmem:[%s509_s2] ss:$0 sm:$0xff] }
   0xe   :  { %329 = vmatprep.subr.bf16.mxu0 %v328_v20  ;;  %v150_v2 = vld [vmem:[%s510_s4] sm:$0x3] }
   0xf   :  { %v155_v4 = vrot.slane %v150_v2, %v154_v1  ;;  %v159_v5 = vrot.slane %v150_v2, %v158_v3 }
  0x11   :  { %331 = vmatpush3.bf16.msra.mxu0 %v330_v27 }
  0x12   :  { %333 = vmatprep.subr.bf16.mxu0 %v332_v28 }
  0x15   :  { %335 = vmatpush3.bf16.msra.mxu0 %v334_v33 }
  0x16   :  { %337 = vmatprep.subr.bf16.mxu0 %v336_v34 }
  0x19   :  { %339 = vmatpush3.bf16.msra.mxu0 %v338_v39 }
  0x1a   :  { %341 = vmatprep.subr.bf16.mxu0 %v340_v40 }
  0x1d   :  { %343 = vmatpush3.bf16.msra.mxu0 %v342_v45 }
  0x1e   :  { %345 = vmatprep.subr.bf16.mxu0 %v344_v46 }
  0x21   :  { %347 = vmatpush3.bf16.msra.mxu0 %v346_v49 }
  0x24   :  { %136 = vmatmul.mubr.f32.vlgmr.msra.gmra.mrb[0].mxu0 %v273_v25 }
  0xf7   :  { %v313_v53 = vpop.f32.mrb[0].mxu0 }
  0xf8   :  { %v314_v55 = vpop.f32.mrb[1].mxu0 }
  0xf9   :  { %v315_v56 = vadd.f32 %v314_v55, %v313_v53 }
  0xfb   :  { %v138_v57 = vadd.f32 %v315_v56, %v272_v54 }
  0xfd   :  { %v274_v58 = vmul.f32 -1.442695, %v138_v57 }
  0xff   :  { %349 = vpow2.f32 %v274_v58 }
 0x109   :  { %v350_v59 = vpop.eup %349 }
 0x10a   :  { %v144_v60 = vadd.f32 1.0, %v350_v59 }
 0x10c   :  { %351 = vrcp.f32 %v144_v60 }
 0x116   :  { %v352_v61 = vpop.eup %351 }
 0x117   :  { %v147_v62 = vmul.f32 %v352_v61, %v138_v57 }
 0x119   :  { %277 = vmatmul.mubr.msk.f32.vlgmr.msra.gmra.mrb[0].mxu1 %vm162_vm1, %v147_v62 }
 0x1ec   :  { %v239_v6 = vpop.f32.mrb[0].mxu1 }
 0x1ed   :  { %v240_v7 = vadd.f32 %v239_v6, %v155_v4  ;;  %v241_v8 = vpop.f32.mrb[1].mxu1 }
 0x1ee   :  { %v242_v9 = vadd.f32 %v241_v8, %v159_v5 }
 0x1ef   :  { %v278_v10 = vmul.f32 -1.442695, %v240_v7 }
 0x1f0   :  { %v279_v11 = vmul.f32 -1.442695, %v242_v9 }
 0x1f1   :  { %353 = vpow2.f32 %v278_v10 }
 0x1f2   :  { %355 = vpow2.f32 %v279_v11 }
 0x1fb   :  { %v354_v12 = vpop.eup %353 }
 0x1fc   :  { %v356_v13 = vpop.eup %355  ;;  %v250_v14 = vadd.f32 1.0, %v354_v12 }
 0x1fd   :  { %v251_v15 = vadd.f32 1.0, %v356_v13 }
 0x1fe   :  { %357 = vrcp.f32 %v250_v14 }
 0x1ff   :  { %359 = vrcp.f32 %v251_v15 }
 0x208   :  { %v358_v16 = vpop.eup %357 }
 0x209   :  { %v360_v17 = vpop.eup %359 }
 0x20a   :  { %v258_v18 = vcombine.low %v358_v16, %v360_v17 }
 0x20c   :  { %280 = vst.sshfl [vmem:[%s511_s5] sm:$0x33 pattern:$0x76325410] %v258_v18 }

// kernel: _lambda_.23
= control target key start
LH: loop header
LB: loop body
LE: loop exit
PB: predicated region body
PF: predicated region fallthrough
CT: control target
= control target key end

     0   :  { %s960_s18 = smov 0   ;;  %s962_s19 = smov 0   ;;  %s1091_s0 = inlined_call_operand.vmem [shape: bf16[2,18,256], index: 0, kind: input, shape index: {}]   ;;  %s1092_s1 = inlined_call_operand.vmem [shape: f32[9,1,256], index: 1, kind: input, shape index: {}]   ;;  %s1093_s2 = inlined_call_operand.vmem [shape: f32[1,256], index: 2, kind: input, shape index: {}]   ;;  %s1094_s3 = inlined_call_operand.vmem [shape: f32[8,1], index: 3, kind: input, shape index: {}]   ;;  %s1095_s4 = inlined_call_operand.vmem [shape: bf16[2,8,256], index: 4, kind: output, shape index: {0}]   ;;  %s1096_s5 = inlined_call_operand.vmem [shape: f32[2,1,256], index: 5, kind: output, shape index: {1}]  }
   0x1   :  { %s964_s20 = smov 0  }
   0x2 LB: > { %s28_s21 = sadd.s32 1, %s922_s19  ;;  %p848_p0 = scmp.ge.s32.totalorder %s926_s20, 1  ;;  %s926_s20 = sphi %s964_s20, %s16_s20   ;;  %s922_s19 = sphi %s962_s19, %s1098_s19   ;;  %s918_s18 = sphi %s960_s18, %s1097_s18  }
   0x3   : > { %p30_p1 = scmp.ge.s32.totalorder %s28_s21, 2  ;;  %p233_p2 = scmp.lt.s32.totalorder %s926_s20, 3 }
   0x5   : > { %s1100_s21 = smov (%p30_p1, %s28_s21), 0  ;;  %p234_p3 = pnand %p848_p0, %p233_p2 }
   0x6   : > { %v644_v0 = vld [vmem:[%s1094_s3] sm:$0xff] (!%p234_p3)  ;;  %p286_p4 = scmp.lt.s32.totalorder (!%p234_p3), %s918_s18, 1  ;;  %v329_v1 = vlaneseq (!%p234_p3)  ;;  %v928_v2 = vmov (!%p234_p3), 0   ;;  %vm365_vm0 = vcmask (!%p234_p3), 1046528   ;;  %vm400_vm1 = vcmask (!%p234_p3), 1045504  }
   0x7   : > { %237 = sbr.rel (%p234_p3) target bundleno = 157 (0x9d), region = 36  ;;  %895 = vset.pattern.permute.xlu0 (!%p234_p3), %v928_v2  ;;  %v327_v4 = vld [vmem:[%s1092_s1] sm:$0x3] (!%p234_p3)  ;;  %v853_v5 = vld [vmem:[%s1092_s1 + $0x2] sm:$0x3] (!%p234_p3)  ;;  %vm438_vm2 = vcmask (!%p234_p3), 1043456  }
   0x8   : > { %647 = vperm.xlu0 (!%p234_p3), %895, %v644_v0   ;;  %v984_v3 = vshrl.u32 (!%p234_p3), %v329_v1, 7  ;;  %v854_v6 = vld [vmem:[%s1092_s1 + $0x4] sm:$0x3] (!%p234_p3)  ;;  %v855_v9 = vld [vmem:[%s1092_s1 + $0x6] sm:$0x3] (!%p234_p3)  ;;  %vm473_vm3 = vcmask (!%p234_p3), 1042432  }
   0x9   : > { %v856_v60 = vld [vmem:[%s1092_s1 + $0x8] sm:$0x3] (!%p234_p3)  ;;  %vm508_vm4 = vcmask (!%p234_p3), 1041408   ;;  %vm684_vm5 = vcmp.lt.s32.totalorder (!%p234_p3), %v329_v1, 256 }
   0xa   : > { %v997_v7 = vsub.s32 (!%p234_p3), 0, %v984_v3  ;;  %v1000_v8 = vsub.s32 (!%p234_p3), 1, %v984_v3 }
   0xc   : > { %v332_v10 = vrot.slane (!%p234_p3), %v327_v4, %v997_v7  ;;  %v336_v11 = vrot.slane (!%p234_p3), %v327_v4, %v1000_v8  ;;  %v350_v12 = vrot.slane (!%p234_p3), %v853_v5, %v997_v7  ;;  %v354_v13 = vrot.slane (!%p234_p3), %v853_v5, %v1000_v8  ;;  %v857_v4 = vld [vmem:[%s1092_s1 + $0xa] sm:$0x3] (!%p234_p3) }
   0xd   : > { %v385_v17 = vrot.slane (!%p234_p3), %v854_v6, %v997_v7  ;;  %v389_v18 = vrot.slane (!%p234_p3), %v854_v6, %v1000_v8  ;;  %v423_v19 = vrot.slane (!%p234_p3), %v855_v9, %v997_v7  ;;  %v427_v20 = vrot.slane (!%p234_p3), %v855_v9, %v1000_v8 }
   0xe   : > { %s1102_s18 = smov (!%p286_p4, %s918_s18), 1 }
   0xf   : > { %s868_s30 = smul.u32 24, %s1102_s18  ;;  %s866_s27 = sshll.u32 %s1102_s18, 3 }
  0x10   : > { %s852_s6 = sshll.u32 %s1102_s18, 1 }
  0x11   : > { %s1008_s10 = scalar_lea.vmem %s1091_s0, %s868_s30  ;;  %s313_s30 = scalar_lea.vmem %s1095_s4, %s866_s27 }
  0x12   : > { %v324_v14 = vld [vmem:[%s1008_s10] sm:$0xff]  ;;  %v341_v15 = vld [vmem:[%s1008_s10 + $0x8] sm:$0x11]  ;;  %s322_s9 = scalar_lea.vmem %s1096_s5, %s852_s6 }
  0x13   : > { %v376_v16 = vld [vmem:[%s1008_s10] sm:$0xee]  ;;  %v325_v21 = vunpack.c.l.bf16 %v324_v14  ;;  %v326_v22 = vunpack.c.h.bf16 %v324_v14  ;;  %v342_v23 = vunpack.c.l.bf16 %v341_v15  ;;  %v343_v24 = vunpack.c.h.bf16 %v341_v15  ;;  %v412_v38 = vld [vmem:[%s1008_s10 + $0x8] sm:$0x33] }
  0x14   : > { %v411_v25 = vld [vmem:[%s1008_s10] sm:$0xcc]  ;;  %v377_v26 = vunpack.c.l.bf16 %v376_v16  ;;  %v378_v27 = vunpack.c.h.bf16 %v376_v16  ;;  %v415_v49 = vunpack.c.l.bf16 %v412_v38  ;;  %v416_v50 = vunpack.c.h.bf16 %v412_v38  ;;  %v449_v55 = vld [vmem:[%s1008_s10 + $0x8] sm:$0x77] }
  0x15   : > { %v413_v28 = vunpack.c.l.bf16 %v411_v25  ;;  %v414_v29 = vunpack.c.h.bf16 %v411_v25  ;;  %v339_v30 = vmul.f32 %v332_v10, %v325_v21  ;;  %v340_v31 = vmul.f32 %v336_v11, %v326_v22  ;;  %v484_v2 = vld [vmem:[%s1008_s10] sm:$0x88] }
  0x16   : > { %v357_v32 = vmul.f32 %v350_v12, %v325_v21  ;;  %v358_v33 = vmul.f32 %v354_v13, %v326_v22  ;;  %v359_v34 = vmul.f32 %v350_v12, %v342_v23  ;;  %v360_v35 = vmul.f32 %v354_v13, %v343_v24 }
  0x17   : > { %v392_v36 = vmul.f32 %v385_v17, %v377_v26  ;;  %v393_v37 = vmul.f32 %v389_v18, %v378_v27  ;;  %v394_v41 = vmul.f32 %v385_v17, %v342_v23  ;;  %v395_v42 = vmul.f32 %v389_v18, %v343_v24  ;;  %v519_v27 = vld [vmem:[%s1008_s10 + $0x8] sm:$0xff] }
  0x18   : > { %v366_v39 = vrot.slane %v357_v32, 1  ;;  %v369_v40 = vrot.slane %v358_v33, 1  ;;  %v367_v43 = vrot.slane %v359_v34, 1  ;;  %v370_v44 = vrot.slane %v360_v35, 1 }
  0x19   : > { %v401_v45 = vrot.slane %v392_v36, 2  ;;  %v404_v46 = vrot.slane %v393_v37, 2  ;;  %v402_v47 = vrot.slane %v394_v41, 2  ;;  %v405_v48 = vrot.slane %v395_v42, 2  ;;  %v539_v41 = vld [vmem:[%s1008_s10 + $0x10] sm:$0x11] }
  0x1a   : > { %v368_v51 = vsel %vm365_vm0, %v366_v39, %v367_v43  ;;  %v371_v52 = vsel %vm365_vm0, %v369_v40, %v370_v44  ;;  %v430_v53 = vmul.f32 %v423_v19, %v413_v28  ;;  %v431_v54 = vmul.f32 %v427_v20, %v414_v29 }
  0x1b   : > { %v374_v56 = vadd.f32 %v368_v51, %v339_v30  ;;  %v375_v57 = vadd.f32 %v371_v52, %v340_v31  ;;  %v403_v58 = vsel %vm400_vm1, %v401_v45, %v402_v47  ;;  %v406_v59 = vsel %vm400_vm1, %v404_v46, %v405_v48  ;;  %v573_v51 = vld [vmem:[%s1008_s10 + $0x8] sm:$0xee] }
  0x1c   : > { %v432_v61 = vmul.f32 %v423_v19, %v415_v49  ;;  %v433_v62 = vmul.f32 %v427_v20, %v416_v50  ;;  %v439_v63 = vrot.slane %v430_v53, 4  ;;  %v442_v0 = vrot.slane %v431_v54, 4  ;;  %v859_v50 = vld [vmem:[%s1092_s1 + $0xe] sm:$0x3] }
  0x1d   : > { %v409_v5 = vadd.f32 %v403_v58, %v374_v56  ;;  %v410_v6 = vadd.f32 %v406_v59, %v375_v57  ;;  %v450_v9 = vunpack.c.l.bf16 %v449_v55  ;;  %v451_v10 = vunpack.c.h.bf16 %v449_v55  ;;  %v860_v56 = vld [vmem:[%s1092_s1 + $0x10] sm:$0x3] }
  0x1e   : > { %v440_v11 = vrot.slane %v432_v61, 4  ;;  %v443_v12 = vrot.slane %v433_v62, 4  ;;  %v458_v13 = vrot.slane %v856_v60, %v997_v7  ;;  %v462_v14 = vrot.slane %v856_v60, %v1000_v8 }
  0x1f   : > { %v485_v15 = vunpack.c.l.bf16 %v484_v2  ;;  %v486_v16 = vunpack.c.h.bf16 %v484_v2  ;;  %v493_v17 = vrot.slane %v857_v4, %v997_v7  ;;  %v497_v18 = vrot.slane %v857_v4, %v1000_v8 }
  0x20   : > { %v441_v19 = vsel %vm438_vm2, %v439_v63, %v440_v11  ;;  %v444_v20 = vsel %vm438_vm2, %v442_v0, %v443_v12  ;;  %v465_v21 = vmul.f32 %v458_v13, %v413_v28  ;;  %v466_v22 = vmul.f32 %v462_v14, %v414_v29  ;;  %v858_v28 = vld [vmem:[%s1092_s1 + $0xc] sm:$0x3] }
  0x21   : > { %v447_v23 = vadd.f32 %v441_v19, %v409_v5  ;;  %v448_v24 = vadd.f32 %v444_v20, %v410_v6  ;;  %v467_v25 = vmul.f32 %v458_v13, %v450_v9  ;;  %v468_v26 = vmul.f32 %v462_v14, %v451_v10 }
  0x22   : > { %v474_v30 = vrot.slane %v465_v21, 5  ;;  %v477_v31 = vrot.slane %v466_v22, 5  ;;  %v500_v32 = vmul.f32 %v493_v17, %v485_v15  ;;  %v501_v33 = vmul.f32 %v497_v18, %v486_v16 }
  0x23   : > { %v475_v34 = vrot.slane %v467_v25, 5  ;;  %v478_v35 = vrot.slane %v468_v26, 5  ;;  %v502_v36 = vmul.f32 %v493_v17, %v450_v9  ;;  %v503_v37 = vmul.f32 %v497_v18, %v451_v10  ;;  %v607_v17 = vld [vmem:[%s1093_s2] sm:$0x3] }
  0x24   : > { %v509_v29 = vrot.slane %v500_v32, 6  ;;  %v512_v38 = vrot.slane %v501_v33, 6  ;;  %v520_v39 = vunpack.c.l.bf16 %v519_v27  ;;  %v521_v40 = vunpack.c.h.bf16 %v519_v27 }
  0x25   : > { %v476_v42 = vsel %vm473_vm3, %v474_v30, %v475_v34  ;;  %v479_v43 = vsel %vm473_vm3, %v477_v31, %v478_v35  ;;  %v510_v44 = vrot.slane %v502_v36, 6  ;;  %v513_v45 = vrot.slane %v503_v37, 6 }
  0x26   : > { %v482_v46 = vadd.f32 %v476_v42, %v447_v23  ;;  %v483_v47 = vadd.f32 %v479_v43, %v448_v24  ;;  %v528_v48 = vrot.slane %v858_v28, %v997_v7  ;;  %v532_v49 = vrot.slane %v858_v28, %v1000_v8 }
  0x27   : > { %v511_v52 = vsel %vm508_vm4, %v509_v29, %v510_v44  ;;  %v514_v53 = vsel %vm508_vm4, %v512_v38, %v513_v45  ;;  %v540_v54 = vunpack.c.l.bf16 %v539_v41  ;;  %v541_v55 = vunpack.c.h.bf16 %v539_v41 }
  0x28   : > { %v517_v57 = vadd.f32 %v511_v52, %v482_v46  ;;  %v518_v58 = vadd.f32 %v514_v53, %v483_v47  ;;  %v535_v59 = vmul.f32 %v528_v48, %v520_v39  ;;  %v536_v60 = vmul.f32 %v532_v49, %v521_v40 }
  0x29   : > { %v548_v61 = vrot.slane %v859_v50, %v997_v7  ;;  %v552_v62 = vrot.slane %v859_v50, %v1000_v8  ;;  %v574_v63 = vunpack.c.l.bf16 %v573_v51  ;;  %v575_v0 = vunpack.c.h.bf16 %v573_v51 }
  0x2a   : > { %v537_v2 = vadd.f32 %v535_v59, %v517_v57  ;;  %v538_v4 = vadd.f32 %v536_v60, %v518_v58  ;;  %v582_v5 = vrot.slane %v860_v56, %v997_v7  ;;  %v586_v6 = vrot.slane %v860_v56, %v1000_v8 }
  0x2b   : > { %v555_v9 = vmul.f32 %v548_v61, %v520_v39  ;;  %v556_v10 = vmul.f32 %v552_v62, %v521_v40  ;;  %v557_v11 = vmul.f32 %v548_v61, %v540_v54  ;;  %v558_v12 = vmul.f32 %v552_v62, %v541_v55 }
  0x2c   : > { %v589_v13 = vmul.f32 %v582_v5, %v574_v63  ;;  %v590_v14 = vmul.f32 %v586_v6, %v575_v0  ;;  %v591_v15 = vmul.f32 %v582_v5, %v540_v54  ;;  %v592_v16 = vmul.f32 %v586_v6, %v541_v55 }
  0x2d   : > { %v563_v18 = vrot.slane %v555_v9, 1  ;;  %v564_v19 = vrot.slane %v557_v11, 1  ;;  %v566_v20 = vrot.slane %v556_v10, 1  ;;  %v567_v21 = vrot.slane %v558_v12, 1 }
  0x2e   : > { %v597_v22 = vrot.slane %v589_v13, 2  ;;  %v598_v23 = vrot.slane %v591_v15, 2  ;;  %v600_v24 = vrot.slane %v590_v14, 2  ;;  %v601_v25 = vrot.slane %v592_v16, 2 }
  0x2f   : > { %v565_v26 = vsel %vm365_vm0, %v563_v18, %v564_v19  ;;  %v568_v27 = vsel %vm365_vm0, %v566_v20, %v567_v21  ;;  %v612_v30 = vrot.slane %v607_v17, %v997_v7  ;;  %v616_v31 = vrot.slane %v607_v17, %v1000_v8 }
  0x30   : > { %v571_v32 = vadd.f32 %v565_v26, %v537_v2  ;;  %v572_v33 = vadd.f32 %v568_v27, %v538_v4  ;;  %v599_v34 = vsel %vm400_vm1, %v597_v22, %v598_v23  ;;  %v602_v35 = vsel %vm400_vm1, %v600_v24, %v601_v25 }
  0x31   : > { %v929_v54 = vmov 1966171168  }
  0x32   : > { %v605_v36 = vadd.f32 %v599_v34, %v571_v32  ;;  %v606_v37 = vadd.f32 %v602_v35, %v572_v33  ;;  %v668_v55 = vunpack.c.l.s4 %v929_v54 }
  0x34   : > { %v619_v28 = vadd.f32 %v612_v30, %v605_v36  ;;  %v620_v29 = vadd.f32 %v616_v31, %v606_v37  ;;  %v669_v60 = vunpack.c.0.s8 %v668_v55 }
  0x36   : > { %v861_v38 = vmul.f32 -1.442695, %v619_v28  ;;  %v862_v39 = vmul.f32 -1.442695, %v620_v29  ;;  %v672_v2 = vsub.s32 %v669_v60, %v984_v3 }
  0x38   : > { %896 = vpow2.f32 %v861_v38 }
  0x39   : > { %898 = vpow2.f32 %v862_v39 }
  0x42   : > { %v897_v40 = vpop.eup %896 }
  0x43   : > { %v899_v41 = vpop.eup %898  ;;  %v627_v7 = vadd.f32 1.0, %v897_v40 }
  0x44   : > { %v628_v42 = vadd.f32 1.0, %v899_v41 }
  0x45   : > { %900 = vrcp.f32 %v627_v7 }
  0x46   : > { %902 = vrcp.f32 %v628_v42 }
  0x4f   : > { %v901_v8 = vpop.eup %900 }
  0x50   : > { %v903_v43 = vpop.eup %902  ;;  %v633_v44 = vmul.f32 %v901_v8, %v619_v28 }
  0x51   : > { %v634_v45 = vmul.f32 %v903_v43, %v620_v29 }
  0x53   : > { %v867_v46 = vpack.c.bf16 %v634_v45, %v633_v44 }
  0x55   : > { %643 = vst [vmem:[%s313_s30] sm:$0xff] %v867_v46 }
  0x87   : > { %v648_v47 = vpop.permute.xlu0 %647 }
  0x88   : > { %v650_v48 = vmul.f32 %v648_v47, %v633_v44  ;;  %v651_v49 = vmul.f32 %v648_v47, %v634_v45 }
  0x8a   : > { %v652_v50 = vrot.slane %v650_v48, 4  ;;  %v658_v51 = vrot.slane %v651_v49, 4 }
  0x8c   : > { %v653_v52 = vadd.f32 %v652_v50, %v650_v48  ;;  %v659_v53 = vadd.f32 %v658_v51, %v651_v49 }
  0x8e   : > { %v654_v56 = vrot.slane %v653_v52, 2  ;;  %v660_v57 = vrot.slane %v659_v53, 2 }
  0x90   : > { %v655_v58 = vadd.f32 %v654_v56, %v653_v52  ;;  %v661_v59 = vadd.f32 %v660_v57, %v659_v53 }
  0x92   : > { %v656_v61 = vrot.slane %v655_v58, 1  ;;  %v662_v62 = vrot.slane %v661_v59, 1 }
  0x94   : > { %v657_v63 = vadd.f32 %v656_v61, %v655_v58  ;;  %v663_v0 = vadd.f32 %v662_v62, %v661_v59 }
  0x96   : > { %v666_v4 = vcombine.low %v657_v63, %v663_v0 }
  0x98   : > { %v673_v5 = vrot.slane %v666_v4, %v672_v2 }
  0x9a   : > { %v680_v6 = vrot.slane %v673_v5, %v672_v2 }
  0x9c   : > { %686 = vst.msk [vmem:[%s322_s9] sm:$0x3] %vm684_vm5, %v680_v6 }
  0x9d PF: > { %s16_s20 = sadd.s32 1, %s926_s20   ;;  %s1097_s18 = smov %s922_s19 }
  0x9e   : > { %p13_p5 = scmp.ge.s32.totalorder %s16_s20, 4   ;;  %s1098_s19 = smov %s1100_s21 }
  0xa0   :  { %15 = sbr.rel (!%p13_p5) target bundleno = 2 (0x2), region = 92 }

// kernel: _lambda_.26
= control target key start
LH: loop header
LB: loop body
LE: loop exit
PB: predicated region body
PF: predicated region fallthrough
CT: control target
= control target key end

     0   :  { %v206_v0 = vmov 0.0   ;;  %vm207_vm0 = vmmov 0   ;;  %s261_s1 = inlined_call_operand.vmem [shape: bf16[128,128], index: 1, kind: input, shape index: {}]   ;;  %s262_s0 = inlined_call_operand.vmem [shape: bf16[8,128], index: 0, kind: input, shape index: {}]   ;;  %s263_s2 = inlined_call_operand.vmem [shape: f32[1,128], index: 2, kind: input, shape index: {}]   ;;  %s264_s3 = inlined_call_operand.vmem [shape: bf16[8,128], index: 3, kind: output, shape index: {}]  }
   0x1   :  { %172 = vmatprep.subr.bf16.mxu0 %v206_v0  ;;  %v194_v1 = vld [vmem:[%s261_s1] sm:$0xff]   ;;  %188 = vmatprep.mubr.msk.bf16.mxu0 %vm207_vm0, %v206_v0  ;;  %v195_v2 = vld [vmem:[%s261_s1 + $0x8] sm:$0xff]   ;;  %v196_v3 = vld [vmem:[%s261_s1 + $0x10] sm:$0xff]  }
   0x2   :  { %173 = vmatpush3.bf16.msra.mxu0 %v194_v1  ;;  %v197_v4 = vld [vmem:[%s261_s1 + $0x18] sm:$0xff]   ;;  %v198_v5 = vld [vmem:[%s261_s1 + $0x20] sm:$0xff]   ;;  %v199_v6 = vld [vmem:[%s261_s1 + $0x28] sm:$0xff]  }
   0x3   :  { %174 = vmatprep.subr.bf16.mxu0 %v206_v0  ;;  %v200_v7 = vld [vmem:[%s261_s1 + $0x30] sm:$0xff]   ;;  %v201_v8 = vld [vmem:[%s261_s1 + $0x38] sm:$0xff]   ;;  %v21_v9 = vld [vmem:[%s262_s0] sm:$0xf] }
   0x4   :  { %v161_v10 = vld [vmem:[%s263_s2] ss:$0 sm:$0xff] }
   0x6   :  { %175 = vmatpush3.bf16.msra.mxu0 %v195_v2 }
   0x7   :  { %176 = vmatprep.subr.bf16.mxu0 %v206_v0 }
   0xa   :  { %177 = vmatpush3.bf16.msra.mxu0 %v196_v3 }
   0xb   :  { %178 = vmatprep.subr.bf16.mxu0 %v206_v0 }
   0xe   :  { %179 = vmatpush3.bf16.msra.mxu0 %v197_v4 }
   0xf   :  { %180 = vmatprep.subr.bf16.mxu0 %v206_v0 }
  0x12   :  { %181 = vmatpush3.bf16.msra.mxu0 %v198_v5 }
  0x13   :  { %182 = vmatprep.subr.bf16.mxu0 %v206_v0 }
  0x16   :  { %183 = vmatpush3.bf16.msra.mxu0 %v199_v6 }
  0x17   :  { %184 = vmatprep.subr.bf16.mxu0 %v206_v0 }
  0x1a   :  { %185 = vmatpush3.bf16.msra.mxu0 %v200_v7 }
  0x1b   :  { %186 = vmatprep.subr.bf16.mxu0 %v206_v0 }
  0x1e   :  { %187 = vmatpush3.bf16.msra.mxu0 %v201_v8 }
  0x21   :  { %189 = vmatmul.mubr.bf16.vlgmr.msra.gmra.mrb[0].mxu0 %v21_v9 }
  0xf4   :  { %v120_v11 = vpop.f32.mrb[0].mxu0 }
  0xf5   :  { %v139_v12 = vadd.f32 %v161_v10, %v120_v11  ;;  %v190_v13 = vpop.f32.mrb[1].mxu0 }
  0xf6   :  { %v123_v14 = vpop.f32.mrb[2].mxu0 }
  0xf7   :  { %v162_v15 = vmul.f32 -1.442695, %v139_v12  ;;  %v191_v16 = vpop.f32.mrb[3].mxu0 }
  0xf9   :  { %202 = vpow2.f32 %v162_v15 }
 0x103   :  { %v203_v17 = vpop.eup %202 }
 0x104   :  { %v143_v18 = vadd.f32 1.0, %v203_v17 }
 0x106   :  { %204 = vrcp.f32 %v143_v18 }
 0x110   :  { %v205_v19 = vpop.eup %204 }
 0x111   :  { %v146_v20 = vmul.f32 %v205_v19, %v139_v12 }
 0x113   :  { %v147_v21 = vpack.c.bf16 %v146_v20, %v146_v20 }
 0x115   :  { %148 = vst [vmem:[%s264_s3] sm:$0xf] %v147_v21 }

// kernel: _lambda_.27
= control target key start
LH: loop header
LB: loop body
LE: loop exit
PB: predicated region body
PF: predicated region fallthrough
CT: control target
= control target key end

     0   :  { %v267_v3 = vmov 0.0|0.0   ;;  %v268_v6 = vmov 0.0   ;;  %vm269_vm0 = vmmov 0   ;;  %s357_s0 = inlined_call_operand.vmem [shape: bf16[2,8,128], index: 0, kind: input, shape index: {}]   ;;  %s358_s1 = inlined_call_operand.vmem [shape: f32[128,10], index: 1, kind: input, shape index: {}]   ;;  %s359_s2 = inlined_call_operand.vmem [shape: f32[1,10], index: 2, kind: input, shape index: {}]   ;;  %s360_s3 = inlined_call_operand.hbm [shape: f32[2,10], index: 3, kind: output, shape index: {}]  }
   0x1   :  { %v49_v0 = vld [vmem:[%s358_s1] sm:$0xff]  ;;  %v50_v1 = vld [vmem:[%s358_s1 + $0x8] sm:$0xff]  ;;  %v51_v2 = vld [vmem:[%s358_s1 + $0x10] sm:$0xff]  ;;  %215 = vmatprep.subr.bf16.mxu0 %v267_v3  ;;  %19 = vst [vmem:[#allocation2] sm:$0x3] %v268_v6  ;;  %212 = vmatprep.mubr.msk.f32.mxu0 %vm269_vm0, %v268_v6 }
   0x2   :  { %v216_v4 = vpack.c.bf16 %v50_v1, %v49_v0  ;;  %v52_v5 = vld [vmem:[%s358_s1 + $0x18] sm:$0xff]  ;;  %v53_v8 = vld [vmem:[%s358_s1 + $0x20] sm:$0xff]  ;;  %v54_v9 = vld [vmem:[%s358_s1 + $0x28] sm:$0xff] }
   0x3   :  { %v219_v7 = vpack.c.bf16 %v52_v5, %v51_v2  ;;  %v160_v10 = vld [vmem:[%s357_s0] sm:$0xff]  }
   0x4   :  { %217 = vmatpush3.bf16.msra.mxu0 %v216_v4  ;;  %v161_v11 = vunpack.c.l.bf16 %v160_v10  ;;  %v162_v12 = vunpack.c.h.bf16 %v160_v10 }
   0x5   :  { %218 = vmatprep.subr.bf16.mxu0 %v267_v3 }
   0x6   :  { %8 = vsyncpa [#allocation4], 0  ;;  %v222_v13 = vpack.c.bf16 %v54_v9, %v53_v8  ;;  %v55_v14 = vld [vmem:[%s358_s1 + $0x30] sm:$0xff]  ;;  %v56_v15 = vld [vmem:[%s358_s1 + $0x38] sm:$0xff]  ;;  %v25_v16 = vrot.slane %v161_v11, 4  ;;  %v31_v17 = vrot.slane %v162_v12, 4 }
   0x7   :  { %v225_v20 = vpack.c.bf16 %v56_v15, %v55_v14  ;;  %v57_v21 = vld [vmem:[%s358_s1 + $0x40] sm:$0xff]  ;;  %v58_v22 = vld [vmem:[%s358_s1 + $0x48] sm:$0xff]  ;;  %v59_v28 = vld [vmem:[%s358_s1 + $0x50] sm:$0xff]  ;;  %vm39_vm1 = vcmask 1041409   ;;  %s270_s20 = smov [#allocation3]   ;;  %vm142_vm2 = vcmask 74752  }
   0x8   :  { %220 = vmatpush3.bf16.msra.mxu0 %v219_v7  ;;  %v26_v18 = vadd.f32 %v161_v11, %v25_v16  ;;  %v32_v19 = vadd.f32 %v162_v12, %v31_v17  ;;  %v228_v27 = vpack.c.bf16 %v58_v22, %v57_v21  ;;  %v60_v29 = vld [vmem:[%s358_s1 + $0x58] sm:$0xff]  ;;  %v20_v32 = vld [vmem:[#allocation2] sm:$0x3]  ;;  %v62_v37 = vld [vmem:[%s358_s1 + $0x68] sm:$0xff]  ;;  %s150_s21 = sshll.u32 %s270_s20, 4  ;;  %s151_s21 = int_to_ptr.vmem [resolvable:$true] %s150_s21 }
   0x9   :  { %221 = vmatprep.subr.bf16.mxu0 %v267_v3  ;;  %v231_v35 = vpack.c.bf16 %v60_v29, %v59_v28  ;;  %v61_v36 = vld [vmem:[%s358_s1 + $0x60] sm:$0xff]  ;;  %v63_v41 = vld [vmem:[%s358_s1 + $0x70] sm:$0xff]  ;;  %v64_v42 = vld [vmem:[%s358_s1 + $0x78] sm:$0xff]  ;;  %s243_s1 = scalar_lea.vmem %s151_s21, 32  ;;  %p248_p1 = scmp.lt.s32.totalorder %s151_s21, %s151_s21 }
   0xa   :  { %v27_v23 = vrot.slane %v26_v18, 2  ;;  %v33_v24 = vrot.slane %v32_v19, 2  ;;  %v234_v40 = vpack.c.bf16 %v62_v37, %v61_v36  ;;  %v237_v43 = vpack.c.bf16 %v64_v42, %v63_v41  ;;  %v158_v46 = vld [vmem:[%s359_s2] ss:$0 sm:$0xff]  ;;  %p244_p0 = scmp.ne.s32.totalorder %s151_s21, %s243_s1  ;;  %p249_p2 = scmp.lt.s32.totalorder %s243_s1, %s243_s1 }
   0xc   :  { %223 = vmatpush3.bf16.msra.mxu0 %v222_v13  ;;  %v28_v25 = vadd.f32 %v27_v23, %v26_v18  ;;  %v34_v26 = vadd.f32 %v33_v24, %v32_v19  ;;  %p250_p3 = por %p249_p2, %p248_p1 }
   0xd   :  { %224 = vmatprep.subr.bf16.mxu0 %v267_v3 }
   0xe   :  { %v29_v30 = vrot.slane %v28_v25, 1  ;;  %v35_v31 = vrot.slane %v34_v26, 1  ;;  %p251_p4 = pnand %p250_p3, %p244_p0 }
  0x10   :  { %226 = vmatpush3.bf16.msra.mxu0 %v225_v20  ;;  %v30_v33 = vadd.f32 %v29_v30, %v28_v25  ;;  %v36_v34 = vadd.f32 %v35_v31, %v34_v26 }
  0x11   :  { %227 = vmatprep.subr.bf16.mxu0 %v267_v3 }
  0x12   :  { %v40_v38 = vsel %vm39_vm1, %v36_v34, %v30_v33 }
  0x13   :  { %v42_v39 = vadd.f32 %v40_v38, %v20_v32 }
  0x14   :  { %229 = vmatpush3.bf16.msra.mxu0 %v228_v27 }
  0x15   :  { %230 = vmatprep.subr.bf16.mxu0 %v267_v3  ;;  %43 = vst [vmem:[#allocation2] sm:$0x3] %v42_v39 }
  0x18   :  { %232 = vmatpush3.bf16.msra.mxu0 %v231_v35 }
  0x19   :  { %233 = vmatprep.subr.bf16.mxu0 %v267_v3 }
  0x1c   :  { %235 = vmatpush3.bf16.msra.mxu0 %v234_v40  ;;  %v47_v44 = vld [vmem:[#allocation2] sm:$0x3] }
  0x1d   :  { %236 = vmatprep.subr.bf16.mxu0 %v267_v3  ;;  %v48_v45 = vmul.f32 0.25, %v47_v44 }
  0x20   :  { %238 = vmatpush3.bf16.msra.mxu0 %v237_v43 }
  0x23   :  { %213 = vmatmul.mubr.f32.vlgmr.msra.gmra.mrb[0].mxu0 %v48_v45 }
  0xf6   :  { %v138_v47 = vpop.f32.mrb[0].mxu0 }
  0xf7   :  { %v139_v48 = vadd.f32 %v158_v46, %v138_v47  ;;  %v214_v49 = vpop.f32.mrb[1].mxu0 }
  0xf9   :  { %143 = vst.msk [vmem:[#allocation3] sm:$0x3] %vm142_vm2, %v139_v48 }
  0xfa   :  { %254 = shalt.err (!%p251_p4)
}
  0xfb   :  { %s255_s24 = scalar_lea.hbm %s360_s3, 32 }
  0xfc   :  { %p256_p5 = scmp.ne.s32.totalorder %s360_s3, %s255_s24  ;;  %p259_p6 = scmp.lt.u32.totalorder %s255_s24, %s360_s3 }
  0xfe   :  { %p261_p7 = pnand %p259_p6, %p256_p5 }
 0x100   :  { %264 = shalt.err (!%p261_p7)
}
 0x101   :  { %153 = dma.vmem_to_hbm [thread:$0]  %s151_s21, 32, %s360_s3, [#allocation4]  }
 0x102   :  { %265 = dma.done.wait [#allocation4], 32  }
 0x103   :  { %266 = vsyncadd [#allocation4], 4294967264 }
 0x104   :  { %157 = vsyncpa [#allocation4], 1 }

</bundles_post_ra>
